<compile_context>
chip_gen: v7x
topology: tpu7x:2x2x1
jax: 0.10.0
libtpu: 0.0.40
codegen_flags: <defaults>
</compile_context>

<pallas_src>
import jax
import jax.numpy as jnp
from jax import lax
from jax.experimental import pallas as pl
from jax.experimental.pallas import tpu as pltpu

BN_EPS = 1e-5
LANE = 128        # conv1/conv2 output channels zero-padded to this for lane-dense stores
POS_CHUNK = 25    # conv3 output positions per streamed head-weight chunk (49 -> 50 -> 2 chunks)


def _tensorcores_per_chip():
    """2 on megacore-style chips (v4 / v5p / v7x); 1 on v5e / v6e / unknown (always safe)."""
    try:
        kind = jax.devices()[0].device_kind.lower()
    except Exception:
        return 1
    if "lite" in kind or "v5e" in kind or "v6e" in kind:
        return 1
    if "v4" in kind or "v5p" in kind or "7" in kind:
        return 2
    return 1


N_TC = _tensorcores_per_chip()


# --------------------------------------------------------------------------
# Pallas kernels
# --------------------------------------------------------------------------
def conv_bn_relu_kernel(p_ref, w_ref, scale_ref, shift_ref, o_ref):
    """Fused im2col-matmul + folded BatchNorm (eval) + ReLU for one row tile."""
    acc = jnp.dot(p_ref[...], w_ref[...], preferred_element_type=jnp.float32)
    o_ref[...] = jnp.maximum(acc * scale_ref[...] + shift_ref[...], 0.0)


def conv_bn_relu(patches, wmat, scale, shift, n_row_tiles=1):
    """patches: (M, K) f32; wmat: (K, Cp) with Cp lane-padded; scale/shift: (1, Cp)."""
    M, K = patches.shape
    Cp = wmat.shape[1]
    tm = -(-M // n_row_tiles)
    tm = -(-tm // 8) * 8
    Mp = tm * n_row_tiles
    if Mp != M:
        patches = jnp.pad(patches, ((0, Mp - M), (0, 0)))
    return pl.pallas_call(
        conv_bn_relu_kernel,
        out_shape=jax.ShapeDtypeStruct((Mp, Cp), jnp.float32),
        grid=(n_row_tiles,),
        in_specs=[
            pl.BlockSpec((tm, K), lambda i: (i, 0)),
            pl.BlockSpec((K, Cp), lambda i: (0, 0)),
            pl.BlockSpec((1, Cp), lambda i: (0, 0)),
            pl.BlockSpec((1, Cp), lambda i: (0, 0)),
        ],
        out_specs=pl.BlockSpec((tm, Cp), lambda i: (i, 0)),
        compiler_params=pltpu.CompilerParams(
            dimension_semantics=("parallel",)),   # row tiles shard across TCs on 2-TC chips
    )(patches, wmat, scale, shift)


def conv3_head_kernel(p_ref, w3_ref, s3_ref, t3_ref, w1_ref, b1_ref, w2_ref,
                      out_ref, acc_ref):
    """Grid = (core_split, weight_chunk).  Per step: conv3 (+BN+ReLU) for POS_CHUNK output
    positions, each contracted against its bf16 block of the fused stage-1 head weights
    (this core's column half) into an f32 VMEM accumulator; last chunk applies the stage-1
    bias and this core's half of the fused stage-2 matmul."""
    t = pl.program_id(1)

    @pl.when(t == 0)
    def _():
        acc_ref[...] = jnp.zeros_like(acc_ref)

    w3 = w3_ref[...]
    scale = s3_ref[...]
    shift = t3_ref[...]
    parts = []
    for q in range(p_ref.shape[0]):                      # static unroll over positions
        c = jnp.dot(p_ref[q], w3, preferred_element_type=jnp.float32)      # (B, 64)
        # NOTE: padded (all-zero) patch rows give relu(shift) != 0 here; they are cancelled
        # by the matching zero rows of w1 (padded in prepare_params).
        c = jnp.maximum(c * scale + shift, 0.0).astype(jnp.bfloat16)
        parts.append(jnp.dot(c, w1_ref[q], preferred_element_type=jnp.float32))  # (B, H2c)
    # balanced tree-sum of independent partials (no serialized add chain)
    while len(parts) > 1:
        nxt = [a + b for a, b in zip(parts[0::2], parts[1::2])]
        if len(parts) % 2:
            nxt.append(parts[-1])
        parts = nxt
    acc_ref[...] += parts[0]

    @pl.when(t == pl.num_programs(1) - 1)
    def _():
        h = (acc_ref[...] + b1_ref[...]).astype(jnp.bfloat16)              # (B, H2c)
        out_ref[0] = jnp.dot(h, w2_ref[...], preferred_element_type=jnp.float32)


def conv3_dueling_head(patches3, w3mat, s3, t3, w1c, b1c, w2c, n_cores=1):
    npos_pad, B, K3 = patches3.shape
    Cout3 = w3mat.shape[1]
    H2 = w1c.shape[2]                 # 2 * 512 (value + dueling branches fused)
    nout = w2c.shape[1]
    n_steps = npos_pad // POS_CHUNK
    assert H2 % n_cores == 0
    H2c = H2 // n_cores
    return pl.pallas_call(
        conv3_head_kernel,
        out_shape=jax.ShapeDtypeStruct((n_cores, B, nout), jnp.float32),
        grid=(n_cores, n_steps),
        in_specs=[
            pl.BlockSpec((POS_CHUNK, B, K3), lambda c, t: (t, 0, 0)),
            pl.BlockSpec((K3, Cout3), lambda c, t: (0, 0)),
            pl.BlockSpec((1, Cout3), lambda c, t: (0, 0)),
            pl.BlockSpec((1, Cout3), lambda c, t: (0, 0)),
            pl.BlockSpec((POS_CHUNK, Cout3, H2c), lambda c, t: (t, 0, c)),  # bf16 stream
            pl.BlockSpec((1, H2c), lambda c, t: (0, c)),
            pl.BlockSpec((H2c, nout), lambda c, t: (c, 0)),
        ],
        out_specs=pl.BlockSpec((1, B, nout), lambda c, t: (c, 0, 0)),
        scratch_shapes=[pltpu.VMEM((B, H2c), jnp.float32)],
        compiler_params=pltpu.CompilerParams(
            # leading axis shards the two head branches across TensorCores (v7x / v4 / v5p);
            # trailing axis streams head-weight chunks (reduction into the VMEM accumulator).
            dimension_semantics=("parallel", "arbitrary"),
            vmem_limit_bytes=32 * 1024 * 1024),
    )(patches3, w3mat, s3, t3, w1c, b1c, w2c)


# --------------------------------------------------------------------------
# Glue (im2col patch extraction, one-time parameter re-layout) — plain JAX
# --------------------------------------------------------------------------
def im2col(x, kh, kw, stride):
    # x: (N, H, W, C) -> (N*OH*OW, kh*kw*C); column order = (kh, kw, cin)
    N, Hdim, Wdim, C = x.shape
    oh = (Hdim - kh) // stride + 1
    ow = (Wdim - kw) // stride + 1
    cols = []
    for i in range(kh):
        for j in range(kw):
            cols.append(x[:, i:i + stride * (oh - 1) + 1:stride,
                           j:j + stride * (ow - 1) + 1:stride, :])
    p = jnp.stack(cols, axis=3)                      # (N, oh, ow, kh*kw, C)
    return p.reshape(N * oh * ow, kh * kw * C), oh, ow


def im2col_posmajor(x, kh, kw, stride, pad_pos):
    # -> (pad_pos, N, kh*kw*C): rows grouped by output position (oh, ow), batch minor.
    N, Hdim, Wdim, C = x.shape
    oh = (Hdim - kh) // stride + 1
    ow = (Wdim - kw) // stride + 1
    cols = []
    for i in range(kh):
        for j in range(kw):
            cols.append(x[:, i:i + stride * (oh - 1) + 1:stride,
                           j:j + stride * (ow - 1) + 1:stride, :])
    p = jnp.stack(cols, axis=3)                      # (N, oh, ow, kh*kw, C)
    p = jnp.transpose(p, (1, 2, 0, 3, 4))            # (oh, ow, N, kh*kw, C)
    p = p.reshape(oh * ow, N, kh * kw * C)
    return jnp.pad(p, ((0, pad_pos - oh * ow), (0, 0), (0, 0)))


def _fold_conv_bn(cw, cb, g, bt, mu, var, cout_pad):
    """Conv weight -> (kh*kw*cin, cout) matmul matrix with eval-BN folded into scale/shift;
    output-channel dim zero-padded to cout_pad for lane-dense (unmasked) stores."""
    Cout, Cin, KH, KW = cw.shape
    wmat = jnp.transpose(cw, (2, 3, 1, 0)).reshape(KH * KW * Cin, Cout)
    scale = g / jnp.sqrt(var + BN_EPS)
    shift = (cb - mu) * scale + bt
    pad = cout_pad - Cout
    if pad:
        wmat = jnp.pad(wmat, ((0, 0), (0, pad)))
        scale = jnp.pad(scale, (0, pad))
        shift = jnp.pad(shift, (0, pad))
    return wmat, scale.reshape(1, -1), shift.reshape(1, -1)


def prepare_params(params):
    """One-time ('offline') weight re-layout: BN folding, lane padding, head-branch fusion,
    NCHW->NHWC flatten permutation of the head rows, bf16 cast of the streamed head weights."""
    c1, c2, c3 = params["convs"]
    conv1 = _fold_conv_bn(*c1, cout_pad=LANE)
    conv2 = _fold_conv_bn(*c2, cout_pad=LANE)
    w3mat, s3, t3 = _fold_conv_bn(*c3, cout_pad=c3[0].shape[0])   # conv3 un-padded (fused)

    w1, b1, w1d, b1d, w2, b2, w2d, b2d = params["head"]
    Cout3 = c3[0].shape[0]                      # 64
    nout = w2.shape[1]
    H = w1.shape[1]                             # 512
    OHW = w1.shape[0] // Cout3                  # 49
    side = int(round(OHW ** 0.5))               # 7

    def permute_rows(w):                        # torch (c,h,w) flatten -> (h,w,c) row order
        return (w.reshape(Cout3, side, side, -1)
                 .transpose(1, 2, 0, 3)
                 .reshape(OHW * Cout3, -1))

    # column layout: [0:H) = value branch, [H:2H) = dueling branch (core split uses halves)
    w1c = jnp.concatenate([permute_rows(w1), permute_rows(w1d)], axis=1)   # (3136, 1024)
    npos_pad = -(-OHW // POS_CHUNK) * POS_CHUNK                            # 50
    w1c = w1c.reshape(OHW, Cout3, 2 * H)
    # position padding rows MUST be zero: they cancel the relu(shift) of padded patch rows.
    w1c = jnp.pad(w1c, ((0, npos_pad - OHW), (0, 0), (0, 0))).astype(jnp.bfloat16)
    b1c = jnp.concatenate([b1, b1d]).reshape(1, 2 * H)
    w2c = jnp.concatenate([w2, jnp.tile(w2d, (1, nout))], axis=0).astype(jnp.bfloat16)
    b2c = (b2 + b2d).reshape(1, nout)           # added in XLA after summing core partials

    return {"conv1": conv1, "conv2": conv2, "conv3": (w3mat, s3, t3),
            "head": (w1c, b1c, w2c, b2c)}


def dqn_forward(x_nchw, prep):
    N = x_nchw.shape[0]
    y = jnp.transpose(x_nchw, (0, 2, 3, 1))               # NCHW -> NHWC

    # conv1 + conv2: XLA im2col -> Pallas matmul + folded BN + ReLU
    for name, (kh, stride, cout) in (("conv1", (8, 4, 32)), ("conv2", (4, 2, 64))):
        wmat, scale, shift = prep[name]
        patches, oh, ow = im2col(y, kh, kh, stride)
        out = conv_bn_relu(patches, wmat, scale, shift, n_row_tiles=N_TC)
        y = out[:N * oh * ow, :cout].reshape(N, oh, ow, cout)

    # conv3 fused with the dueling head (conv3 activations stay in VMEM)
    kh3 = 3
    oh3 = y.shape[1] - kh3 + 1                             # 7
    npos_pad = -(-(oh3 * oh3) // POS_CHUNK) * POS_CHUNK    # 50
    patches3 = im2col_posmajor(y, kh3, kh3, 1, npos_pad)   # (50, N, 576)
    w3mat, s3, t3 = prep["conv3"]
    w1c, b1c, w2c, b2c = prep["head"]
    partials = conv3_dueling_head(patches3, w3mat, s3, t3, w1c, b1c, w2c, n_cores=N_TC)
    return jnp.sum(partials, axis=0) + b2c                 # (B, nout)


# --------------------------------------------------------------------------
# Pure-JAX reference and parameter init
# --------------------------------------------------------------------------
def ref_forward(x_nchw, params):
    y = x_nchw
    for (cw, cb, g, bt, mu, var), s in zip(params["convs"], (4, 2, 1)):
        y = lax.conv_general_dilated(y, cw, (s, s), "VALID",
                                     dimension_numbers=("NCHW", "OIHW", "NCHW"),
                                     precision=lax.Precision.HIGHEST)
        y = y + cb[None, :, None, None]
        y = ((y - mu[None, :, None, None])
             / jnp.sqrt(var + BN_EPS)[None, :, None, None]
             * g[None, :, None, None] + bt[None, :, None, None])
        y = jnp.maximum(y, 0.0)
    flat = y.reshape(y.shape[0], -1)
    w1, b1, w1d, b1d, w2, b2, w2d, b2d = params["head"]
    pm = lax.Precision.HIGHEST
    h1 = jnp.dot(flat, w1, precision=pm) + b1
    hd = jnp.dot(flat, w1d, precision=pm) + b1d
    out = jnp.dot(h1, w2, precision=pm) + b2
    dl = jnp.dot(hd, w2d, precision=pm) + b2d
    return out + dl


def init_params(key, c=4, outputs=4):
    ks = iter(jax.random.split(key, 40))

    def conv_block(cout, cin, k):
        w = jax.random.normal(next(ks), (cout, cin, k, k), jnp.float32) * 0.05
        b = jax.random.normal(next(ks), (cout,), jnp.float32) * 0.05
        g = 1.0 + 0.2 * jax.random.normal(next(ks), (cout,), jnp.float32)
        bt = 0.1 * jax.random.normal(next(ks), (cout,), jnp.float32)
        mu = 0.1 * jax.random.normal(next(ks), (cout,), jnp.float32)
        var = 0.5 + jax.random.uniform(next(ks), (cout,), jnp.float32)
        return (w, b, g, bt, mu, var)

    convs = [conv_block(32, c, 8), conv_block(64, 32, 4), conv_block(64, 64, 3)]

    feat = 7 * 7 * 64
    w1 = jax.random.normal(next(ks), (feat, 512), jnp.float32) * 0.02
    b1 = jax.random.normal(next(ks), (512,), jnp.float32) * 0.02
    w1d = jax.random.normal(next(ks), (feat, 512), jnp.float32) * 0.02
    b1d = jax.random.normal(next(ks), (512,), jnp.float32) * 0.02
    w2 = jax.random.normal(next(ks), (512, outputs), jnp.float32) * 0.02
    b2 = jax.random.normal(next(ks), (outputs,), jnp.float32) * 0.02
    w2d = jax.random.normal(next(ks), (512, 1), jnp.float32) * 0.02
    b2d = jax.random.normal(next(ks), (1,), jnp.float32) * 0.02
    head = (w1, b1, w1d, b1d, w2, b2, w2d, b2d)
    return {"convs": convs, "head": head}


if __name__ == "__main__":
    key = jax.random.PRNGKey(0)
    pkey, xkey = jax.random.split(key)
    params = init_params(pkey, c=4, outputs=4)
    # DQN forward implies 84x84 spatial input (flatten is hard-coded to 7*7*64)
    x = jax.random.normal(xkey, (2, 4, 84, 84), jnp.float32)

    prep = prepare_params(params)                 # one-time weight re-layout ("offline")
    out = jax.block_until_ready(jax.jit(dqn_forward)(x, prep))

    ref = jax.block_until_ready(jax.jit(ref_forward)(x, params))
    assert out.shape == (2, 4), out.shape
    if jnp.allclose(out, ref, rtol=1e-2, atol=1e-2):
        print("KERNEL_OK")
    else:
        print("MISMATCH", float(jnp.max(jnp.abs(out - ref))))
</pallas_src>

<mosaic_0001>
module attributes {stable_mosaic.version = 11 : i64} {
  func.func @conv_bn_relu_kernel(%arg0: i32, %arg1: memref<800x256xf32, #tpu.memory_space<vmem>>, %arg2: memref<256x128xf32, #tpu.memory_space<vmem>>, %arg3: memref<1x128xf32, #tpu.memory_space<vmem>>, %arg4: memref<1x128xf32, #tpu.memory_space<vmem>>, %arg5: memref<800x128xf32, #tpu.memory_space<vmem>>) attributes {dimension_semantics = [#tpu.dimension_semantics<parallel>], iteration_bounds = array<i64: 1>, scalar_prefetch = 0 : i64, scratch_operands = 0 : i64, tpu.core_type = #tpu.core_type<tc>, window_params = [{transform_indices = @transform_0, window_bounds = array<i64: 800, 256>}, {pipeline_mode = #tpu.pipeline_mode<synchronous>, transform_indices = @transform_1, window_bounds = array<i64: 256, 128>}, {pipeline_mode = #tpu.pipeline_mode<synchronous>, transform_indices = @transform_2, window_bounds = array<i64: 1, 128>}, {pipeline_mode = #tpu.pipeline_mode<synchronous>, transform_indices = @transform_3, window_bounds = array<i64: 1, 128>}, {transform_indices = @transform_4, window_bounds = array<i64: 800, 128>}]} {
    %c0 = arith.constant 0 : index
    %c0_0 = arith.constant 0 : index
    %0 = vector.load %arg1[%c0, %c0_0] : memref<800x256xf32, #tpu.memory_space<vmem>>, vector<800x256xf32>
    %c0_1 = arith.constant 0 : index
    %c0_2 = arith.constant 0 : index
    %1 = vector.load %arg2[%c0_1, %c0_2] : memref<256x128xf32, #tpu.memory_space<vmem>>, vector<256x128xf32>
    %cst = arith.constant dense<0.000000e+00> : vector<800x128xf32>
    %2 = tpu.matmul %0, %1, %cst {dimension_numbers = #tpu.dot_dimension_numbers<[1], [0], [0], [1], [0, 0, 1, 1], [], []>} : vector<800x256xf32>, vector<256x128xf32>, vector<800x128xf32> -> vector<800x128xf32>
    %c0_3 = arith.constant 0 : index
    %c0_4 = arith.constant 0 : index
    %3 = vector.load %arg3[%c0_3, %c0_4] : memref<1x128xf32, #tpu.memory_space<vmem>>, vector<1x128xf32>
    %4 = vector.broadcast %3 : vector<1x128xf32> to vector<800x128xf32>
    %5 = arith.mulf %2, %4 : vector<800x128xf32>
    %c0_5 = arith.constant 0 : index
    %c0_6 = arith.constant 0 : index
    %6 = vector.load %arg4[%c0_5, %c0_6] : memref<1x128xf32, #tpu.memory_space<vmem>>, vector<1x128xf32>
    %7 = vector.broadcast %6 : vector<1x128xf32> to vector<800x128xf32>
    %8 = arith.addf %5, %7 : vector<800x128xf32>
    %cst_7 = arith.constant 0.000000e+00 : f32
    %9 = vector.broadcast %cst_7 : f32 to vector<800x128xf32>
    %10 = arith.maximumf %8, %9 : vector<800x128xf32>
    %c0_8 = arith.constant 0 : index
    %c0_9 = arith.constant 0 : index
    %11 = vector.load %arg5[%c0_8, %c0_9] : memref<800x128xf32, #tpu.memory_space<vmem>>, vector<800x128xf32>
    tpu.vector_store %arg5[%c0_8, %c0_9], %10 {strides = array<i32>} : memref<800x128xf32, #tpu.memory_space<vmem>>, vector<800x128xf32>,
    return
  }
  func.func @transform_0(%arg0: i32) -> (i32, i32) {
    %c0_i32 = arith.constant 0 : i32
    %c0_i32_0 = arith.constant 0 : i32
    return %arg0, %c0_i32 : i32, i32
  }
  func.func @transform_1(%arg0: i32) -> (i32, i32) {
    %c0_i32 = arith.constant 0 : i32
    %c0_i32_0 = arith.constant 0 : i32
    %c0_i32_1 = arith.constant 0 : i32
    return %c0_i32, %c0_i32_0 : i32, i32
  }
  func.func @transform_2(%arg0: i32) -> (i32, i32) {
    %c0_i32 = arith.constant 0 : i32
    %c0_i32_0 = arith.constant 0 : i32
    %c0_i32_1 = arith.constant 0 : i32
    return %c0_i32, %c0_i32_0 : i32, i32
  }
  func.func @transform_3(%arg0: i32) -> (i32, i32) {
    %c0_i32 = arith.constant 0 : i32
    %c0_i32_0 = arith.constant 0 : i32
    %c0_i32_1 = arith.constant 0 : i32
    return %c0_i32, %c0_i32_0 : i32, i32
  }
  func.func @transform_4(%arg0: i32) -> (i32, i32) {
    %c0_i32 = arith.constant 0 : i32
    %c0_i32_0 = arith.constant 0 : i32
    return %arg0, %c0_i32 : i32, i32
  }
}

module attributes {stable_mosaic.version = 11 : i64} {
  func.func @conv_bn_relu_kernel(%arg0: i32, %arg1: memref<168x512xf32, #tpu.memory_space<vmem>>, %arg2: memref<512x128xf32, #tpu.memory_space<vmem>>, %arg3: memref<1x128xf32, #tpu.memory_space<vmem>>, %arg4: memref<1x128xf32, #tpu.memory_space<vmem>>, %arg5: memref<168x128xf32, #tpu.memory_space<vmem>>) attributes {dimension_semantics = [#tpu.dimension_semantics<parallel>], iteration_bounds = array<i64: 1>, scalar_prefetch = 0 : i64, scratch_operands = 0 : i64, tpu.core_type = #tpu.core_type<tc>, window_params = [{transform_indices = @transform_0, window_bounds = array<i64: 168, 512>}, {pipeline_mode = #tpu.pipeline_mode<synchronous>, transform_indices = @transform_1, window_bounds = array<i64: 512, 128>}, {pipeline_mode = #tpu.pipeline_mode<synchronous>, transform_indices = @transform_2, window_bounds = array<i64: 1, 128>}, {pipeline_mode = #tpu.pipeline_mode<synchronous>, transform_indices = @transform_3, window_bounds = array<i64: 1, 128>}, {transform_indices = @transform_4, window_bounds = array<i64: 168, 128>}]} {
    %c0 = arith.constant 0 : index
    %c0_0 = arith.constant 0 : index
    %0 = vector.load %arg1[%c0, %c0_0] : memref<168x512xf32, #tpu.memory_space<vmem>>, vector<168x512xf32>
    %c0_1 = arith.constant 0 : index
    %c0_2 = arith.constant 0 : index
    %1 = vector.load %arg2[%c0_1, %c0_2] : memref<512x128xf32, #tpu.memory_space<vmem>>, vector<512x128xf32>
    %cst = arith.constant dense<0.000000e+00> : vector<168x128xf32>
    %2 = tpu.matmul %0, %1, %cst {dimension_numbers = #tpu.dot_dimension_numbers<[1], [0], [0], [1], [0, 0, 1, 1], [], []>} : vector<168x512xf32>, vector<512x128xf32>, vector<168x128xf32> -> vector<168x128xf32>
    %c0_3 = arith.constant 0 : index
    %c0_4 = arith.constant 0 : index
    %3 = vector.load %arg3[%c0_3, %c0_4] : memref<1x128xf32, #tpu.memory_space<vmem>>, vector<1x128xf32>
    %4 = vector.broadcast %3 : vector<1x128xf32> to vector<168x128xf32>
    %5 = arith.mulf %2, %4 : vector<168x128xf32>
    %c0_5 = arith.constant 0 : index
    %c0_6 = arith.constant 0 : index
    %6 = vector.load %arg4[%c0_5, %c0_6] : memref<1x128xf32, #tpu.memory_space<vmem>>, vector<1x128xf32>
    %7 = vector.broadcast %6 : vector<1x128xf32> to vector<168x128xf32>
    %8 = arith.addf %5, %7 : vector<168x128xf32>
    %cst_7 = arith.constant 0.000000e+00 : f32
    %9 = vector.broadcast %cst_7 : f32 to vector<168x128xf32>
    %10 = arith.maximumf %8, %9 : vector<168x128xf32>
    %c0_8 = arith.constant 0 : index
    %c0_9 = arith.constant 0 : index
    %11 = vector.load %arg5[%c0_8, %c0_9] : memref<168x128xf32, #tpu.memory_space<vmem>>, vector<168x128xf32>
    tpu.vector_store %arg5[%c0_8, %c0_9], %10 {strides = array<i32>} : memref<168x128xf32, #tpu.memory_space<vmem>>, vector<168x128xf32>,
    return
  }
  func.func @transform_0(%arg0: i32) -> (i32, i32) {
    %c0_i32 = arith.constant 0 : i32
    %c0_i32_0 = arith.constant 0 : i32
    return %arg0, %c0_i32 : i32, i32
  }
  func.func @transform_1(%arg0: i32) -> (i32, i32) {
    %c0_i32 = arith.constant 0 : i32
    %c0_i32_0 = arith.constant 0 : i32
    %c0_i32_1 = arith.constant 0 : i32
    return %c0_i32, %c0_i32_0 : i32, i32
  }
  func.func @transform_2(%arg0: i32) -> (i32, i32) {
    %c0_i32 = arith.constant 0 : i32
    %c0_i32_0 = arith.constant 0 : i32
    %c0_i32_1 = arith.constant 0 : i32
    return %c0_i32, %c0_i32_0 : i32, i32
  }
  func.func @transform_3(%arg0: i32) -> (i32, i32) {
    %c0_i32 = arith.constant 0 : i32
    %c0_i32_0 = arith.constant 0 : i32
    %c0_i32_1 = arith.constant 0 : i32
    return %c0_i32, %c0_i32_0 : i32, i32
  }
  func.func @transform_4(%arg0: i32) -> (i32, i32) {
    %c0_i32 = arith.constant 0 : i32
    %c0_i32_0 = arith.constant 0 : i32
    return %arg0, %c0_i32 : i32, i32
  }
}

module attributes {stable_mosaic.version = 11 : i64} {
  func.func @conv3_head_kernel(%arg0: i32, %arg1: i32, %arg2: memref<25x2x576xf32, #tpu.memory_space<vmem>>, %arg3: memref<576x64xf32, #tpu.memory_space<vmem>>, %arg4: memref<1x64xf32, #tpu.memory_space<vmem>>, %arg5: memref<1x64xf32, #tpu.memory_space<vmem>>, %arg6: memref<25x64x1024xbf16, #tpu.memory_space<vmem>>, %arg7: memref<1x1024xf32, #tpu.memory_space<vmem>>, %arg8: memref<1024x4xbf16, #tpu.memory_space<vmem>>, %arg9: memref<1x2x4xf32, #tpu.memory_space<vmem>>, %arg10: memref<2x1024xf32, #tpu.memory_space<vmem>>) attributes {dimension_semantics = [#tpu.dimension_semantics<parallel>, #tpu.dimension_semantics<arbitrary>], iteration_bounds = array<i64: 1, 2>, scalar_prefetch = 0 : i64, scratch_operands = 1 : i64, tpu.core_type = #tpu.core_type<tc>, window_params = [{transform_indices = @transform_0, window_bounds = array<i64: 25, 2, 576>}, {pipeline_mode = #tpu.pipeline_mode<synchronous>, transform_indices = @transform_1, window_bounds = array<i64: 576, 64>}, {pipeline_mode = #tpu.pipeline_mode<synchronous>, transform_indices = @transform_2, window_bounds = array<i64: 1, 64>}, {pipeline_mode = #tpu.pipeline_mode<synchronous>, transform_indices = @transform_3, window_bounds = array<i64: 1, 64>}, {transform_indices = @transform_4, window_bounds = array<i64: 25, 64, 1024>}, {transform_indices = @transform_5, window_bounds = array<i64: 1, 1024>}, {transform_indices = @transform_6, window_bounds = array<i64: 1024, 4>}, {transform_indices = @transform_7, window_bounds = array<i64: 1, 2, 4>}]} {
    %c0_i32 = arith.constant 0 : i32
    %0 = arith.cmpi eq, %arg1, %c0_i32 : i32
    %1 = arith.extui %0 : i1 to i32
    %c0_i32_0 = arith.constant 0 : i32
    %2 = arith.cmpi ne, %1, %c0_i32_0 : i32
    scf.if %2 {
      %cst_211 = arith.constant 0.000000e+00 : f32
      %361 = vector.broadcast %cst_211 : f32 to vector<2x1024xf32>
      %c0_212 = arith.constant 0 : index
      %c0_213 = arith.constant 0 : index
      %362 = vector.load %arg10[%c0_212, %c0_213] : memref<2x1024xf32, #tpu.memory_space<vmem>>, vector<2x1024xf32>
      tpu.vector_store %arg10[%c0_212, %c0_213], %361 {strides = array<i32>} : memref<2x1024xf32, #tpu.memory_space<vmem>>, vector<2x1024xf32>,
    } else {
    }
    %c0 = arith.constant 0 : index
    %c0_1 = arith.constant 0 : index
    %3 = vector.load %arg3[%c0, %c0_1] : memref<576x64xf32, #tpu.memory_space<vmem>>, vector<576x64xf32>
    %c0_2 = arith.constant 0 : index
    %c0_3 = arith.constant 0 : index
    %4 = vector.load %arg4[%c0_2, %c0_3] : memref<1x64xf32, #tpu.memory_space<vmem>>, vector<1x64xf32>
    %c0_4 = arith.constant 0 : index
    %c0_5 = arith.constant 0 : index
    %5 = vector.load %arg5[%c0_4, %c0_5] : memref<1x64xf32, #tpu.memory_space<vmem>>, vector<1x64xf32>
    %c0_6 = arith.constant 0 : index
    %c0_7 = arith.constant 0 : index
    %c0_8 = arith.constant 0 : index
    %6 = vector.load %arg2[%c0_6, %c0_7, %c0_8] : memref<25x2x576xf32, #tpu.memory_space<vmem>>, vector<1x2x576xf32>
    %7 = vector.shape_cast %6 : vector<1x2x576xf32> to vector<2x576xf32>
    %cst = arith.constant dense<0.000000e+00> : vector<2x64xf32>
    %8 = tpu.matmul %7, %3, %cst {dimension_numbers = #tpu.dot_dimension_numbers<[1], [0], [0], [1], [0, 0, 1, 1], [], []>} : vector<2x576xf32>, vector<576x64xf32>, vector<2x64xf32> -> vector<2x64xf32>
    %9 = vector.broadcast %4 : vector<1x64xf32> to vector<2x64xf32>
    %10 = arith.mulf %8, %9 : vector<2x64xf32>
    %11 = vector.broadcast %5 : vector<1x64xf32> to vector<2x64xf32>
    %12 = arith.addf %10, %11 : vector<2x64xf32>
    %cst_9 = arith.constant 0.000000e+00 : f32
    %13 = vector.broadcast %cst_9 : f32 to vector<2x64xf32>
    %14 = arith.maximumf %12, %13 : vector<2x64xf32>
    %15 = arith.truncf %14 : vector<2x64xf32> to vector<2x64xbf16>
    %c0_10 = arith.constant 0 : index
    %c0_11 = arith.constant 0 : index
    %c0_12 = arith.constant 0 : index
    %16 = vector.load %arg6[%c0_10, %c0_11, %c0_12] : memref<25x64x1024xbf16, #tpu.memory_space<vmem>>, vector<1x64x1024xbf16>
    %17 = vector.shape_cast %16 : vector<1x64x1024xbf16> to vector<64x1024xbf16>
    %cst_13 = arith.constant dense<0.000000e+00> : vector<2x1024xf32>
    %18 = tpu.matmul %15, %17, %cst_13 {dimension_numbers = #tpu.dot_dimension_numbers<[1], [0], [0], [1], [0, 0, 1, 1], [], []>} : vector<2x64xbf16>, vector<64x1024xbf16>, vector<2x1024xf32> -> vector<2x1024xf32>
    %c1 = arith.constant 1 : index
    %c0_14 = arith.constant 0 : index
    %c0_15 = arith.constant 0 : index
    %19 = vector.load %arg2[%c1, %c0_14, %c0_15] : memref<25x2x576xf32, #tpu.memory_space<vmem>>, vector<1x2x576xf32>
    %20 = vector.shape_cast %19 : vector<1x2x576xf32> to vector<2x576xf32>
    %cst_16 = arith.constant dense<0.000000e+00> : vector<2x64xf32>
    %21 = tpu.matmul %20, %3, %cst_16 {dimension_numbers = #tpu.dot_dimension_numbers<[1], [0], [0], [1], [0, 0, 1, 1], [], []>} : vector<2x576xf32>, vector<576x64xf32>, vector<2x64xf32> -> vector<2x64xf32>
    %22 = vector.broadcast %4 : vector<1x64xf32> to vector<2x64xf32>
    %23 = arith.mulf %21, %22 : vector<2x64xf32>
    %24 = vector.broadcast %5 : vector<1x64xf32> to vector<2x64xf32>
    %25 = arith.addf %23, %24 : vector<2x64xf32>
    %cst_17 = arith.constant 0.000000e+00 : f32
    %26 = vector.broadcast %cst_17 : f32 to vector<2x64xf32>
    %27 = arith.maximumf %25, %26 : vector<2x64xf32>
    %28 = arith.truncf %27 : vector<2x64xf32> to vector<2x64xbf16>
    %c1_18 = arith.constant 1 : index
    %c0_19 = arith.constant 0 : index
    %c0_20 = arith.constant 0 : index
    %29 = vector.load %arg6[%c1_18, %c0_19, %c0_20] : memref<25x64x1024xbf16, #tpu.memory_space<vmem>>, vector<1x64x1024xbf16>
    %30 = vector.shape_cast %29 : vector<1x64x1024xbf16> to vector<64x1024xbf16>
    %cst_21 = arith.constant dense<0.000000e+00> : vector<2x1024xf32>
    %31 = tpu.matmul %28, %30, %cst_21 {dimension_numbers = #tpu.dot_dimension_numbers<[1], [0], [0], [1], [0, 0, 1, 1], [], []>} : vector<2x64xbf16>, vector<64x1024xbf16>, vector<2x1024xf32> -> vector<2x1024xf32>
    %c2 = arith.constant 2 : index
    %c0_22 = arith.constant 0 : index
    %c0_23 = arith.constant 0 : index
    %32 = vector.load %arg2[%c2, %c0_22, %c0_23] : memref<25x2x576xf32, #tpu.memory_space<vmem>>, vector<1x2x576xf32>
    %33 = vector.shape_cast %32 : vector<1x2x576xf32> to vector<2x576xf32>
    %cst_24 = arith.constant dense<0.000000e+00> : vector<2x64xf32>
    %34 = tpu.matmul %33, %3, %cst_24 {dimension_numbers = #tpu.dot_dimension_numbers<[1], [0], [0], [1], [0, 0, 1, 1], [], []>} : vector<2x576xf32>, vector<576x64xf32>, vector<2x64xf32> -> vector<2x64xf32>
    %35 = vector.broadcast %4 : vector<1x64xf32> to vector<2x64xf32>
    %36 = arith.mulf %34, %35 : vector<2x64xf32>
    %37 = vector.broadcast %5 : vector<1x64xf32> to vector<2x64xf32>
    %38 = arith.addf %36, %37 : vector<2x64xf32>
    %cst_25 = arith.constant 0.000000e+00 : f32
    %39 = vector.broadcast %cst_25 : f32 to vector<2x64xf32>
    %40 = arith.maximumf %38, %39 : vector<2x64xf32>
    %41 = arith.truncf %40 : vector<2x64xf32> to vector<2x64xbf16>
    %c2_26 = arith.constant 2 : index
    %c0_27 = arith.constant 0 : index
    %c0_28 = arith.constant 0 : index
    %42 = vector.load %arg6[%c2_26, %c0_27, %c0_28] : memref<25x64x1024xbf16, #tpu.memory_space<vmem>>, vector<1x64x1024xbf16>
    %43 = vector.shape_cast %42 : vector<1x64x1024xbf16> to vector<64x1024xbf16>
    %cst_29 = arith.constant dense<0.000000e+00> : vector<2x1024xf32>
    %44 = tpu.matmul %41, %43, %cst_29 {dimension_numbers = #tpu.dot_dimension_numbers<[1], [0], [0], [1], [0, 0, 1, 1], [], []>} : vector<2x64xbf16>, vector<64x1024xbf16>, vector<2x1024xf32> -> vector<2x1024xf32>
    %c3 = arith.constant 3 : index
    %c0_30 = arith.constant 0 : index
    %c0_31 = arith.constant 0 : index
    %45 = vector.load %arg2[%c3, %c0_30, %c0_31] : memref<25x2x576xf32, #tpu.memory_space<vmem>>, vector<1x2x576xf32>
    %46 = vector.shape_cast %45 : vector<1x2x576xf32> to vector<2x576xf32>
    %cst_32 = arith.constant dense<0.000000e+00> : vector<2x64xf32>
    %47 = tpu.matmul %46, %3, %cst_32 {dimension_numbers = #tpu.dot_dimension_numbers<[1], [0], [0], [1], [0, 0, 1, 1], [], []>} : vector<2x576xf32>, vector<576x64xf32>, vector<2x64xf32> -> vector<2x64xf32>
    %48 = vector.broadcast %4 : vector<1x64xf32> to vector<2x64xf32>
    %49 = arith.mulf %47, %48 : vector<2x64xf32>
    %50 = vector.broadcast %5 : vector<1x64xf32> to vector<2x64xf32>
    %51 = arith.addf %49, %50 : vector<2x64xf32>
    %cst_33 = arith.constant 0.000000e+00 : f32
    %52 = vector.broadcast %cst_33 : f32 to vector<2x64xf32>
    %53 = arith.maximumf %51, %52 : vector<2x64xf32>
    %54 = arith.truncf %53 : vector<2x64xf32> to vector<2x64xbf16>
    %c3_34 = arith.constant 3 : index
    %c0_35 = arith.constant 0 : index
    %c0_36 = arith.constant 0 : index
    %55 = vector.load %arg6[%c3_34, %c0_35, %c0_36] : memref<25x64x1024xbf16, #tpu.memory_space<vmem>>, vector<1x64x1024xbf16>
    %56 = vector.shape_cast %55 : vector<1x64x1024xbf16> to vector<64x1024xbf16>
    %cst_37 = arith.constant dense<0.000000e+00> : vector<2x1024xf32>
    %57 = tpu.matmul %54, %56, %cst_37 {dimension_numbers = #tpu.dot_dimension_numbers<[1], [0], [0], [1], [0, 0, 1, 1], [], []>} : vector<2x64xbf16>, vector<64x1024xbf16>, vector<2x1024xf32> -> vector<2x1024xf32>
    %c4 = arith.constant 4 : index
    %c0_38 = arith.constant 0 : index
    %c0_39 = arith.constant 0 : index
    %58 = vector.load %arg2[%c4, %c0_38, %c0_39] : memref<25x2x576xf32, #tpu.memory_space<vmem>>, vector<1x2x576xf32>
    %59 = vector.shape_cast %58 : vector<1x2x576xf32> to vector<2x576xf32>
    %cst_40 = arith.constant dense<0.000000e+00> : vector<2x64xf32>
    %60 = tpu.matmul %59, %3, %cst_40 {dimension_numbers = #tpu.dot_dimension_numbers<[1], [0], [0], [1], [0, 0, 1, 1], [], []>} : vector<2x576xf32>, vector<576x64xf32>, vector<2x64xf32> -> vector<2x64xf32>
    %61 = vector.broadcast %4 : vector<1x64xf32> to vector<2x64xf32>
    %62 = arith.mulf %60, %61 : vector<2x64xf32>
    %63 = vector.broadcast %5 : vector<1x64xf32> to vector<2x64xf32>
    %64 = arith.addf %62, %63 : vector<2x64xf32>
    %cst_41 = arith.constant 0.000000e+00 : f32
    %65 = vector.broadcast %cst_41 : f32 to vector<2x64xf32>
    %66 = arith.maximumf %64, %65 : vector<2x64xf32>
    %67 = arith.truncf %66 : vector<2x64xf32> to vector<2x64xbf16>
    %c4_42 = arith.constant 4 : index
    %c0_43 = arith.constant 0 : index
    %c0_44 = arith.constant 0 : index
    %68 = vector.load %arg6[%c4_42, %c0_43, %c0_44] : memref<25x64x1024xbf16, #tpu.memory_space<vmem>>, vector<1x64x1024xbf16>
    %69 = vector.shape_cast %68 : vector<1x64x1024xbf16> to vector<64x1024xbf16>
    %cst_45 = arith.constant dense<0.000000e+00> : vector<2x1024xf32>
    %70 = tpu.matmul %67, %69, %cst_45 {dimension_numbers = #tpu.dot_dimension_numbers<[1], [0], [0], [1], [0, 0, 1, 1], [], []>} : vector<2x64xbf16>, vector<64x1024xbf16>, vector<2x1024xf32> -> vector<2x1024xf32>
    %c5 = arith.constant 5 : index
    %c0_46 = arith.constant 0 : index
    %c0_47 = arith.constant 0 : index
    %71 = vector.load %arg2[%c5, %c0_46, %c0_47] : memref<25x2x576xf32, #tpu.memory_space<vmem>>, vector<1x2x576xf32>
    %72 = vector.shape_cast %71 : vector<1x2x576xf32> to vector<2x576xf32>
    %cst_48 = arith.constant dense<0.000000e+00> : vector<2x64xf32>
    %73 = tpu.matmul %72, %3, %cst_48 {dimension_numbers = #tpu.dot_dimension_numbers<[1], [0], [0], [1], [0, 0, 1, 1], [], []>} : vector<2x576xf32>, vector<576x64xf32>, vector<2x64xf32> -> vector<2x64xf32>
    %74 = vector.broadcast %4 : vector<1x64xf32> to vector<2x64xf32>
    %75 = arith.mulf %73, %74 : vector<2x64xf32>
    %76 = vector.broadcast %5 : vector<1x64xf32> to vector<2x64xf32>
    %77 = arith.addf %75, %76 : vector<2x64xf32>
    %cst_49 = arith.constant 0.000000e+00 : f32
    %78 = vector.broadcast %cst_49 : f32 to vector<2x64xf32>
    %79 = arith.maximumf %77, %78 : vector<2x64xf32>
    %80 = arith.truncf %79 : vector<2x64xf32> to vector<2x64xbf16>
    %c5_50 = arith.constant 5 : index
    %c0_51 = arith.constant 0 : index
    %c0_52 = arith.constant 0 : index
    %81 = vector.load %arg6[%c5_50, %c0_51, %c0_52] : memref<25x64x1024xbf16, #tpu.memory_space<vmem>>, vector<1x64x1024xbf16>
    %82 = vector.shape_cast %81 : vector<1x64x1024xbf16> to vector<64x1024xbf16>
    %cst_53 = arith.constant dense<0.000000e+00> : vector<2x1024xf32>
    %83 = tpu.matmul %80, %82, %cst_53 {dimension_numbers = #tpu.dot_dimension_numbers<[1], [0], [0], [1], [0, 0, 1, 1], [], []>} : vector<2x64xbf16>, vector<64x1024xbf16>, vector<2x1024xf32> -> vector<2x1024xf32>
    %c6 = arith.constant 6 : index
    %c0_54 = arith.constant 0 : index
    %c0_55 = arith.constant 0 : index
    %84 = vector.load %arg2[%c6, %c0_54, %c0_55] : memref<25x2x576xf32, #tpu.memory_space<vmem>>, vector<1x2x576xf32>
    %85 = vector.shape_cast %84 : vector<1x2x576xf32> to vector<2x576xf32>
    %cst_56 = arith.constant dense<0.000000e+00> : vector<2x64xf32>
    %86 = tpu.matmul %85, %3, %cst_56 {dimension_numbers = #tpu.dot_dimension_numbers<[1], [0], [0], [1], [0, 0, 1, 1], [], []>} : vector<2x576xf32>, vector<576x64xf32>, vector<2x64xf32> -> vector<2x64xf32>
    %87 = vector.broadcast %4 : vector<1x64xf32> to vector<2x64xf32>
    %88 = arith.mulf %86, %87 : vector<2x64xf32>
    %89 = vector.broadcast %5 : vector<1x64xf32> to vector<2x64xf32>
    %90 = arith.addf %88, %89 : vector<2x64xf32>
    %cst_57 = arith.constant 0.000000e+00 : f32
    %91 = vector.broadcast %cst_57 : f32 to vector<2x64xf32>
    %92 = arith.maximumf %90, %91 : vector<2x64xf32>
    %93 = arith.truncf %92 : vector<2x64xf32> to vector<2x64xbf16>
    %c6_58 = arith.constant 6 : index
    %c0_59 = arith.constant 0 : index
    %c0_60 = arith.constant 0 : index
    %94 = vector.load %arg6[%c6_58, %c0_59, %c0_60] : memref<25x64x1024xbf16, #tpu.memory_space<vmem>>, vector<1x64x1024xbf16>
    %95 = vector.shape_cast %94 : vector<1x64x1024xbf16> to vector<64x1024xbf16>
    %cst_61 = arith.constant dense<0.000000e+00> : vector<2x1024xf32>
    %96 = tpu.matmul %93, %95, %cst_61 {dimension_numbers = #tpu.dot_dimension_numbers<[1], [0], [0], [1], [0, 0, 1, 1], [], []>} : vector<2x64xbf16>, vector<64x1024xbf16>, vector<2x1024xf32> -> vector<2x1024xf32>
    %c7 = arith.constant 7 : index
    %c0_62 = arith.constant 0 : index
    %c0_63 = arith.constant 0 : index
    %97 = vector.load %arg2[%c7, %c0_62, %c0_63] : memref<25x2x576xf32, #tpu.memory_space<vmem>>, vector<1x2x576xf32>
    %98 = vector.shape_cast %97 : vector<1x2x576xf32> to vector<2x576xf32>
    %cst_64 = arith.constant dense<0.000000e+00> : vector<2x64xf32>
    %99 = tpu.matmul %98, %3, %cst_64 {dimension_numbers = #tpu.dot_dimension_numbers<[1], [0], [0], [1], [0, 0, 1, 1], [], []>} : vector<2x576xf32>, vector<576x64xf32>, vector<2x64xf32> -> vector<2x64xf32>
    %100 = vector.broadcast %4 : vector<1x64xf32> to vector<2x64xf32>
    %101 = arith.mulf %99, %100 : vector<2x64xf32>
    %102 = vector.broadcast %5 : vector<1x64xf32> to vector<2x64xf32>
    %103 = arith.addf %101, %102 : vector<2x64xf32>
    %cst_65 = arith.constant 0.000000e+00 : f32
    %104 = vector.broadcast %cst_65 : f32 to vector<2x64xf32>
    %105 = arith.maximumf %103, %104 : vector<2x64xf32>
    %106 = arith.truncf %105 : vector<2x64xf32> to vector<2x64xbf16>
    %c7_66 = arith.constant 7 : index
    %c0_67 = arith.constant 0 : index
    %c0_68 = arith.constant 0 : index
    %107 = vector.load %arg6[%c7_66, %c0_67, %c0_68] : memref<25x64x1024xbf16, #tpu.memory_space<vmem>>, vector<1x64x1024xbf16>
    %108 = vector.shape_cast %107 : vector<1x64x1024xbf16> to vector<64x1024xbf16>
    %cst_69 = arith.constant dense<0.000000e+00> : vector<2x1024xf32>
    %109 = tpu.matmul %106, %108, %cst_69 {dimension_numbers = #tpu.dot_dimension_numbers<[1], [0], [0], [1], [0, 0, 1, 1], [], []>} : vector<2x64xbf16>, vector<64x1024xbf16>, vector<2x1024xf32> -> vector<2x1024xf32>
    %c8 = arith.constant 8 : index
    %c0_70 = arith.constant 0 : index
    %c0_71 = arith.constant 0 : index
    %110 = vector.load %arg2[%c8, %c0_70, %c0_71] : memref<25x2x576xf32, #tpu.memory_space<vmem>>, vector<1x2x576xf32>
    %111 = vector.shape_cast %110 : vector<1x2x576xf32> to vector<2x576xf32>
    %cst_72 = arith.constant dense<0.000000e+00> : vector<2x64xf32>
    %112 = tpu.matmul %111, %3, %cst_72 {dimension_numbers = #tpu.dot_dimension_numbers<[1], [0], [0], [1], [0, 0, 1, 1], [], []>} : vector<2x576xf32>, vector<576x64xf32>, vector<2x64xf32> -> vector<2x64xf32>
    %113 = vector.broadcast %4 : vector<1x64xf32> to vector<2x64xf32>
    %114 = arith.mulf %112, %113 : vector<2x64xf32>
    %115 = vector.broadcast %5 : vector<1x64xf32> to vector<2x64xf32>
    %116 = arith.addf %114, %115 : vector<2x64xf32>
    %cst_73 = arith.constant 0.000000e+00 : f32
    %117 = vector.broadcast %cst_73 : f32 to vector<2x64xf32>
    %118 = arith.maximumf %116, %117 : vector<2x64xf32>
    %119 = arith.truncf %118 : vector<2x64xf32> to vector<2x64xbf16>
    %c8_74 = arith.constant 8 : index
    %c0_75 = arith.constant 0 : index
    %c0_76 = arith.constant 0 : index
    %120 = vector.load %arg6[%c8_74, %c0_75, %c0_76] : memref<25x64x1024xbf16, #tpu.memory_space<vmem>>, vector<1x64x1024xbf16>
    %121 = vector.shape_cast %120 : vector<1x64x1024xbf16> to vector<64x1024xbf16>
    %cst_77 = arith.constant dense<0.000000e+00> : vector<2x1024xf32>
    %122 = tpu.matmul %119, %121, %cst_77 {dimension_numbers = #tpu.dot_dimension_numbers<[1], [0], [0], [1], [0, 0, 1, 1], [], []>} : vector<2x64xbf16>, vector<64x1024xbf16>, vector<2x1024xf32> -> vector<2x1024xf32>
    %c9 = arith.constant 9 : index
    %c0_78 = arith.constant 0 : index
    %c0_79 = arith.constant 0 : index
    %123 = vector.load %arg2[%c9, %c0_78, %c0_79] : memref<25x2x576xf32, #tpu.memory_space<vmem>>, vector<1x2x576xf32>
    %124 = vector.shape_cast %123 : vector<1x2x576xf32> to vector<2x576xf32>
    %cst_80 = arith.constant dense<0.000000e+00> : vector<2x64xf32>
    %125 = tpu.matmul %124, %3, %cst_80 {dimension_numbers = #tpu.dot_dimension_numbers<[1], [0], [0], [1], [0, 0, 1, 1], [], []>} : vector<2x576xf32>, vector<576x64xf32>, vector<2x64xf32> -> vector<2x64xf32>
    %126 = vector.broadcast %4 : vector<1x64xf32> to vector<2x64xf32>
    %127 = arith.mulf %125, %126 : vector<2x64xf32>
    %128 = vector.broadcast %5 : vector<1x64xf32> to vector<2x64xf32>
    %129 = arith.addf %127, %128 : vector<2x64xf32>
    %cst_81 = arith.constant 0.000000e+00 : f32
    %130 = vector.broadcast %cst_81 : f32 to vector<2x64xf32>
    %131 = arith.maximumf %129, %130 : vector<2x64xf32>
    %132 = arith.truncf %131 : vector<2x64xf32> to vector<2x64xbf16>
    %c9_82 = arith.constant 9 : index
    %c0_83 = arith.constant 0 : index
    %c0_84 = arith.constant 0 : index
    %133 = vector.load %arg6[%c9_82, %c0_83, %c0_84] : memref<25x64x1024xbf16, #tpu.memory_space<vmem>>, vector<1x64x1024xbf16>
    %134 = vector.shape_cast %133 : vector<1x64x1024xbf16> to vector<64x1024xbf16>
    %cst_85 = arith.constant dense<0.000000e+00> : vector<2x1024xf32>
    %135 = tpu.matmul %132, %134, %cst_85 {dimension_numbers = #tpu.dot_dimension_numbers<[1], [0], [0], [1], [0, 0, 1, 1], [], []>} : vector<2x64xbf16>, vector<64x1024xbf16>, vector<2x1024xf32> -> vector<2x1024xf32>
    %c10 = arith.constant 10 : index
    %c0_86 = arith.constant 0 : index
    %c0_87 = arith.constant 0 : index
    %136 = vector.load %arg2[%c10, %c0_86, %c0_87] : memref<25x2x576xf32, #tpu.memory_space<vmem>>, vector<1x2x576xf32>
    %137 = vector.shape_cast %136 : vector<1x2x576xf32> to vector<2x576xf32>
    %cst_88 = arith.constant dense<0.000000e+00> : vector<2x64xf32>
    %138 = tpu.matmul %137, %3, %cst_88 {dimension_numbers = #tpu.dot_dimension_numbers<[1], [0], [0], [1], [0, 0, 1, 1], [], []>} : vector<2x576xf32>, vector<576x64xf32>, vector<2x64xf32> -> vector<2x64xf32>
    %139 = vector.broadcast %4 : vector<1x64xf32> to vector<2x64xf32>
    %140 = arith.mulf %138, %139 : vector<2x64xf32>
    %141 = vector.broadcast %5 : vector<1x64xf32> to vector<2x64xf32>
    %142 = arith.addf %140, %141 : vector<2x64xf32>
    %cst_89 = arith.constant 0.000000e+00 : f32
    %143 = vector.broadcast %cst_89 : f32 to vector<2x64xf32>
    %144 = arith.maximumf %142, %143 : vector<2x64xf32>
    %145 = arith.truncf %144 : vector<2x64xf32> to vector<2x64xbf16>
    %c10_90 = arith.constant 10 : index
    %c0_91 = arith.constant 0 : index
    %c0_92 = arith.constant 0 : index
    %146 = vector.load %arg6[%c10_90, %c0_91, %c0_92] : memref<25x64x1024xbf16, #tpu.memory_space<vmem>>, vector<1x64x1024xbf16>
    %147 = vector.shape_cast %146 : vector<1x64x1024xbf16> to vector<64x1024xbf16>
    %cst_93 = arith.constant dense<0.000000e+00> : vector<2x1024xf32>
    %148 = tpu.matmul %145, %147, %cst_93 {dimension_numbers = #tpu.dot_dimension_numbers<[1], [0], [0], [1], [0, 0, 1, 1], [], []>} : vector<2x64xbf16>, vector<64x1024xbf16>, vector<2x1024xf32> -> vector<2x1024xf32>
    %c11 = arith.constant 11 : index
    %c0_94 = arith.constant 0 : index
    %c0_95 = arith.constant 0 : index
    %149 = vector.load %arg2[%c11, %c0_94, %c0_95] : memref<25x2x576xf32, #tpu.memory_space<vmem>>, vector<1x2x576xf32>
    %150 = vector.shape_cast %149 : vector<1x2x576xf32> to vector<2x576xf32>
    %cst_96 = arith.constant dense<0.000000e+00> : vector<2x64xf32>
    %151 = tpu.matmul %150, %3, %cst_96 {dimension_numbers = #tpu.dot_dimension_numbers<[1], [0], [0], [1], [0, 0, 1, 1], [], []>} : vector<2x576xf32>, vector<576x64xf32>, vector<2x64xf32> -> vector<2x64xf32>
    %152 = vector.broadcast %4 : vector<1x64xf32> to vector<2x64xf32>
    %153 = arith.mulf %151, %152 : vector<2x64xf32>
    %154 = vector.broadcast %5 : vector<1x64xf32> to vector<2x64xf32>
    %155 = arith.addf %153, %154 : vector<2x64xf32>
    %cst_97 = arith.constant 0.000000e+00 : f32
    %156 = vector.broadcast %cst_97 : f32 to vector<2x64xf32>
    %157 = arith.maximumf %155, %156 : vector<2x64xf32>
    %158 = arith.truncf %157 : vector<2x64xf32> to vector<2x64xbf16>
    %c11_98 = arith.constant 11 : index
    %c0_99 = arith.constant 0 : index
    %c0_100 = arith.constant 0 : index
    %159 = vector.load %arg6[%c11_98, %c0_99, %c0_100] : memref<25x64x1024xbf16, #tpu.memory_space<vmem>>, vector<1x64x1024xbf16>
    %160 = vector.shape_cast %159 : vector<1x64x1024xbf16> to vector<64x1024xbf16>
    %cst_101 = arith.constant dense<0.000000e+00> : vector<2x1024xf32>
    %161 = tpu.matmul %158, %160, %cst_101 {dimension_numbers = #tpu.dot_dimension_numbers<[1], [0], [0], [1], [0, 0, 1, 1], [], []>} : vector<2x64xbf16>, vector<64x1024xbf16>, vector<2x1024xf32> -> vector<2x1024xf32>
    %c12 = arith.constant 12 : index
    %c0_102 = arith.constant 0 : index
    %c0_103 = arith.constant 0 : index
    %162 = vector.load %arg2[%c12, %c0_102, %c0_103] : memref<25x2x576xf32, #tpu.memory_space<vmem>>, vector<1x2x576xf32>
    %163 = vector.shape_cast %162 : vector<1x2x576xf32> to vector<2x576xf32>
    %cst_104 = arith.constant dense<0.000000e+00> : vector<2x64xf32>
    %164 = tpu.matmul %163, %3, %cst_104 {dimension_numbers = #tpu.dot_dimension_numbers<[1], [0], [0], [1], [0, 0, 1, 1], [], []>} : vector<2x576xf32>, vector<576x64xf32>, vector<2x64xf32> -> vector<2x64xf32>
    %165 = vector.broadcast %4 : vector<1x64xf32> to vector<2x64xf32>
    %166 = arith.mulf %164, %165 : vector<2x64xf32>
    %167 = vector.broadcast %5 : vector<1x64xf32> to vector<2x64xf32>
    %168 = arith.addf %166, %167 : vector<2x64xf32>
    %cst_105 = arith.constant 0.000000e+00 : f32
    %169 = vector.broadcast %cst_105 : f32 to vector<2x64xf32>
    %170 = arith.maximumf %168, %169 : vector<2x64xf32>
    %171 = arith.truncf %170 : vector<2x64xf32> to vector<2x64xbf16>
    %c12_106 = arith.constant 12 : index
    %c0_107 = arith.constant 0 : index
    %c0_108 = arith.constant 0 : index
    %172 = vector.load %arg6[%c12_106, %c0_107, %c0_108] : memref<25x64x1024xbf16, #tpu.memory_space<vmem>>, vector<1x64x1024xbf16>
    %173 = vector.shape_cast %172 : vector<1x64x1024xbf16> to vector<64x1024xbf16>
    %cst_109 = arith.constant dense<0.000000e+00> : vector<2x1024xf32>
    %174 = tpu.matmul %171, %173, %cst_109 {dimension_numbers = #tpu.dot_dimension_numbers<[1], [0], [0], [1], [0, 0, 1, 1], [], []>} : vector<2x64xbf16>, vector<64x1024xbf16>, vector<2x1024xf32> -> vector<2x1024xf32>
    %c13 = arith.constant 13 : index
    %c0_110 = arith.constant 0 : index
    %c0_111 = arith.constant 0 : index
    %175 = vector.load %arg2[%c13, %c0_110, %c0_111] : memref<25x2x576xf32, #tpu.memory_space<vmem>>, vector<1x2x576xf32>
    %176 = vector.shape_cast %175 : vector<1x2x576xf32> to vector<2x576xf32>
    %cst_112 = arith.constant dense<0.000000e+00> : vector<2x64xf32>
    %177 = tpu.matmul %176, %3, %cst_112 {dimension_numbers = #tpu.dot_dimension_numbers<[1], [0], [0], [1], [0, 0, 1, 1], [], []>} : vector<2x576xf32>, vector<576x64xf32>, vector<2x64xf32> -> vector<2x64xf32>
    %178 = vector.broadcast %4 : vector<1x64xf32> to vector<2x64xf32>
    %179 = arith.mulf %177, %178 : vector<2x64xf32>
    %180 = vector.broadcast %5 : vector<1x64xf32> to vector<2x64xf32>
    %181 = arith.addf %179, %180 : vector<2x64xf32>
    %cst_113 = arith.constant 0.000000e+00 : f32
    %182 = vector.broadcast %cst_113 : f32 to vector<2x64xf32>
    %183 = arith.maximumf %181, %182 : vector<2x64xf32>
    %184 = arith.truncf %183 : vector<2x64xf32> to vector<2x64xbf16>
    %c13_114 = arith.constant 13 : index
    %c0_115 = arith.constant 0 : index
    %c0_116 = arith.constant 0 : index
    %185 = vector.load %arg6[%c13_114, %c0_115, %c0_116] : memref<25x64x1024xbf16, #tpu.memory_space<vmem>>, vector<1x64x1024xbf16>
    %186 = vector.shape_cast %185 : vector<1x64x1024xbf16> to vector<64x1024xbf16>
    %cst_117 = arith.constant dense<0.000000e+00> : vector<2x1024xf32>
    %187 = tpu.matmul %184, %186, %cst_117 {dimension_numbers = #tpu.dot_dimension_numbers<[1], [0], [0], [1], [0, 0, 1, 1], [], []>} : vector<2x64xbf16>, vector<64x1024xbf16>, vector<2x1024xf32> -> vector<2x1024xf32>
    %c14 = arith.constant 14 : index
    %c0_118 = arith.constant 0 : index
    %c0_119 = arith.constant 0 : index
    %188 = vector.load %arg2[%c14, %c0_118, %c0_119] : memref<25x2x576xf32, #tpu.memory_space<vmem>>, vector<1x2x576xf32>
    %189 = vector.shape_cast %188 : vector<1x2x576xf32> to vector<2x576xf32>
    %cst_120 = arith.constant dense<0.000000e+00> : vector<2x64xf32>
    %190 = tpu.matmul %189, %3, %cst_120 {dimension_numbers = #tpu.dot_dimension_numbers<[1], [0], [0], [1], [0, 0, 1, 1], [], []>} : vector<2x576xf32>, vector<576x64xf32>, vector<2x64xf32> -> vector<2x64xf32>
    %191 = vector.broadcast %4 : vector<1x64xf32> to vector<2x64xf32>
    %192 = arith.mulf %190, %191 : vector<2x64xf32>
    %193 = vector.broadcast %5 : vector<1x64xf32> to vector<2x64xf32>
    %194 = arith.addf %192, %193 : vector<2x64xf32>
    %cst_121 = arith.constant 0.000000e+00 : f32
    %195 = vector.broadcast %cst_121 : f32 to vector<2x64xf32>
    %196 = arith.maximumf %194, %195 : vector<2x64xf32>
    %197 = arith.truncf %196 : vector<2x64xf32> to vector<2x64xbf16>
    %c14_122 = arith.constant 14 : index
    %c0_123 = arith.constant 0 : index
    %c0_124 = arith.constant 0 : index
    %198 = vector.load %arg6[%c14_122, %c0_123, %c0_124] : memref<25x64x1024xbf16, #tpu.memory_space<vmem>>, vector<1x64x1024xbf16>
    %199 = vector.shape_cast %198 : vector<1x64x1024xbf16> to vector<64x1024xbf16>
    %cst_125 = arith.constant dense<0.000000e+00> : vector<2x1024xf32>
    %200 = tpu.matmul %197, %199, %cst_125 {dimension_numbers = #tpu.dot_dimension_numbers<[1], [0], [0], [1], [0, 0, 1, 1], [], []>} : vector<2x64xbf16>, vector<64x1024xbf16>, vector<2x1024xf32> -> vector<2x1024xf32>
    %c15 = arith.constant 15 : index
    %c0_126 = arith.constant 0 : index
    %c0_127 = arith.constant 0 : index
    %201 = vector.load %arg2[%c15, %c0_126, %c0_127] : memref<25x2x576xf32, #tpu.memory_space<vmem>>, vector<1x2x576xf32>
    %202 = vector.shape_cast %201 : vector<1x2x576xf32> to vector<2x576xf32>
    %cst_128 = arith.constant dense<0.000000e+00> : vector<2x64xf32>
    %203 = tpu.matmul %202, %3, %cst_128 {dimension_numbers = #tpu.dot_dimension_numbers<[1], [0], [0], [1], [0, 0, 1, 1], [], []>} : vector<2x576xf32>, vector<576x64xf32>, vector<2x64xf32> -> vector<2x64xf32>
    %204 = vector.broadcast %4 : vector<1x64xf32> to vector<2x64xf32>
    %205 = arith.mulf %203, %204 : vector<2x64xf32>
    %206 = vector.broadcast %5 : vector<1x64xf32> to vector<2x64xf32>
    %207 = arith.addf %205, %206 : vector<2x64xf32>
    %cst_129 = arith.constant 0.000000e+00 : f32
    %208 = vector.broadcast %cst_129 : f32 to vector<2x64xf32>
    %209 = arith.maximumf %207, %208 : vector<2x64xf32>
    %210 = arith.truncf %209 : vector<2x64xf32> to vector<2x64xbf16>
    %c15_130 = arith.constant 15 : index
    %c0_131 = arith.constant 0 : index
    %c0_132 = arith.constant 0 : index
    %211 = vector.load %arg6[%c15_130, %c0_131, %c0_132] : memref<25x64x1024xbf16, #tpu.memory_space<vmem>>, vector<1x64x1024xbf16>
    %212 = vector.shape_cast %211 : vector<1x64x1024xbf16> to vector<64x1024xbf16>
    %cst_133 = arith.constant dense<0.000000e+00> : vector<2x1024xf32>
    %213 = tpu.matmul %210, %212, %cst_133 {dimension_numbers = #tpu.dot_dimension_numbers<[1], [0], [0], [1], [0, 0, 1, 1], [], []>} : vector<2x64xbf16>, vector<64x1024xbf16>, vector<2x1024xf32> -> vector<2x1024xf32>
    %c16 = arith.constant 16 : index
    %c0_134 = arith.constant 0 : index
    %c0_135 = arith.constant 0 : index
    %214 = vector.load %arg2[%c16, %c0_134, %c0_135] : memref<25x2x576xf32, #tpu.memory_space<vmem>>, vector<1x2x576xf32>
    %215 = vector.shape_cast %214 : vector<1x2x576xf32> to vector<2x576xf32>
    %cst_136 = arith.constant dense<0.000000e+00> : vector<2x64xf32>
    %216 = tpu.matmul %215, %3, %cst_136 {dimension_numbers = #tpu.dot_dimension_numbers<[1], [0], [0], [1], [0, 0, 1, 1], [], []>} : vector<2x576xf32>, vector<576x64xf32>, vector<2x64xf32> -> vector<2x64xf32>
    %217 = vector.broadcast %4 : vector<1x64xf32> to vector<2x64xf32>
    %218 = arith.mulf %216, %217 : vector<2x64xf32>
    %219 = vector.broadcast %5 : vector<1x64xf32> to vector<2x64xf32>
    %220 = arith.addf %218, %219 : vector<2x64xf32>
    %cst_137 = arith.constant 0.000000e+00 : f32
    %221 = vector.broadcast %cst_137 : f32 to vector<2x64xf32>
    %222 = arith.maximumf %220, %221 : vector<2x64xf32>
    %223 = arith.truncf %222 : vector<2x64xf32> to vector<2x64xbf16>
    %c16_138 = arith.constant 16 : index
    %c0_139 = arith.constant 0 : index
    %c0_140 = arith.constant 0 : index
    %224 = vector.load %arg6[%c16_138, %c0_139, %c0_140] : memref<25x64x1024xbf16, #tpu.memory_space<vmem>>, vector<1x64x1024xbf16>
    %225 = vector.shape_cast %224 : vector<1x64x1024xbf16> to vector<64x1024xbf16>
    %cst_141 = arith.constant dense<0.000000e+00> : vector<2x1024xf32>
    %226 = tpu.matmul %223, %225, %cst_141 {dimension_numbers = #tpu.dot_dimension_numbers<[1], [0], [0], [1], [0, 0, 1, 1], [], []>} : vector<2x64xbf16>, vector<64x1024xbf16>, vector<2x1024xf32> -> vector<2x1024xf32>
    %c17 = arith.constant 17 : index
    %c0_142 = arith.constant 0 : index
    %c0_143 = arith.constant 0 : index
    %227 = vector.load %arg2[%c17, %c0_142, %c0_143] : memref<25x2x576xf32, #tpu.memory_space<vmem>>, vector<1x2x576xf32>
    %228 = vector.shape_cast %227 : vector<1x2x576xf32> to vector<2x576xf32>
    %cst_144 = arith.constant dense<0.000000e+00> : vector<2x64xf32>
    %229 = tpu.matmul %228, %3, %cst_144 {dimension_numbers = #tpu.dot_dimension_numbers<[1], [0], [0], [1], [0, 0, 1, 1], [], []>} : vector<2x576xf32>, vector<576x64xf32>, vector<2x64xf32> -> vector<2x64xf32>
    %230 = vector.broadcast %4 : vector<1x64xf32> to vector<2x64xf32>
    %231 = arith.mulf %229, %230 : vector<2x64xf32>
    %232 = vector.broadcast %5 : vector<1x64xf32> to vector<2x64xf32>
    %233 = arith.addf %231, %232 : vector<2x64xf32>
    %cst_145 = arith.constant 0.000000e+00 : f32
    %234 = vector.broadcast %cst_145 : f32 to vector<2x64xf32>
    %235 = arith.maximumf %233, %234 : vector<2x64xf32>
    %236 = arith.truncf %235 : vector<2x64xf32> to vector<2x64xbf16>
    %c17_146 = arith.constant 17 : index
    %c0_147 = arith.constant 0 : index
    %c0_148 = arith.constant 0 : index
    %237 = vector.load %arg6[%c17_146, %c0_147, %c0_148] : memref<25x64x1024xbf16, #tpu.memory_space<vmem>>, vector<1x64x1024xbf16>
    %238 = vector.shape_cast %237 : vector<1x64x1024xbf16> to vector<64x1024xbf16>
    %cst_149 = arith.constant dense<0.000000e+00> : vector<2x1024xf32>
    %239 = tpu.matmul %236, %238, %cst_149 {dimension_numbers = #tpu.dot_dimension_numbers<[1], [0], [0], [1], [0, 0, 1, 1], [], []>} : vector<2x64xbf16>, vector<64x1024xbf16>, vector<2x1024xf32> -> vector<2x1024xf32>
    %c18 = arith.constant 18 : index
    %c0_150 = arith.constant 0 : index
    %c0_151 = arith.constant 0 : index
    %240 = vector.load %arg2[%c18, %c0_150, %c0_151] : memref<25x2x576xf32, #tpu.memory_space<vmem>>, vector<1x2x576xf32>
    %241 = vector.shape_cast %240 : vector<1x2x576xf32> to vector<2x576xf32>
    %cst_152 = arith.constant dense<0.000000e+00> : vector<2x64xf32>
    %242 = tpu.matmul %241, %3, %cst_152 {dimension_numbers = #tpu.dot_dimension_numbers<[1], [0], [0], [1], [0, 0, 1, 1], [], []>} : vector<2x576xf32>, vector<576x64xf32>, vector<2x64xf32> -> vector<2x64xf32>
    %243 = vector.broadcast %4 : vector<1x64xf32> to vector<2x64xf32>
    %244 = arith.mulf %242, %243 : vector<2x64xf32>
    %245 = vector.broadcast %5 : vector<1x64xf32> to vector<2x64xf32>
    %246 = arith.addf %244, %245 : vector<2x64xf32>
    %cst_153 = arith.constant 0.000000e+00 : f32
    %247 = vector.broadcast %cst_153 : f32 to vector<2x64xf32>
    %248 = arith.maximumf %246, %247 : vector<2x64xf32>
    %249 = arith.truncf %248 : vector<2x64xf32> to vector<2x64xbf16>
    %c18_154 = arith.constant 18 : index
    %c0_155 = arith.constant 0 : index
    %c0_156 = arith.constant 0 : index
    %250 = vector.load %arg6[%c18_154, %c0_155, %c0_156] : memref<25x64x1024xbf16, #tpu.memory_space<vmem>>, vector<1x64x1024xbf16>
    %251 = vector.shape_cast %250 : vector<1x64x1024xbf16> to vector<64x1024xbf16>
    %cst_157 = arith.constant dense<0.000000e+00> : vector<2x1024xf32>
    %252 = tpu.matmul %249, %251, %cst_157 {dimension_numbers = #tpu.dot_dimension_numbers<[1], [0], [0], [1], [0, 0, 1, 1], [], []>} : vector<2x64xbf16>, vector<64x1024xbf16>, vector<2x1024xf32> -> vector<2x1024xf32>
    %c19 = arith.constant 19 : index
    %c0_158 = arith.constant 0 : index
    %c0_159 = arith.constant 0 : index
    %253 = vector.load %arg2[%c19, %c0_158, %c0_159] : memref<25x2x576xf32, #tpu.memory_space<vmem>>, vector<1x2x576xf32>
    %254 = vector.shape_cast %253 : vector<1x2x576xf32> to vector<2x576xf32>
    %cst_160 = arith.constant dense<0.000000e+00> : vector<2x64xf32>
    %255 = tpu.matmul %254, %3, %cst_160 {dimension_numbers = #tpu.dot_dimension_numbers<[1], [0], [0], [1], [0, 0, 1, 1], [], []>} : vector<2x576xf32>, vector<576x64xf32>, vector<2x64xf32> -> vector<2x64xf32>
    %256 = vector.broadcast %4 : vector<1x64xf32> to vector<2x64xf32>
    %257 = arith.mulf %255, %256 : vector<2x64xf32>
    %258 = vector.broadcast %5 : vector<1x64xf32> to vector<2x64xf32>
    %259 = arith.addf %257, %258 : vector<2x64xf32>
    %cst_161 = arith.constant 0.000000e+00 : f32
    %260 = vector.broadcast %cst_161 : f32 to vector<2x64xf32>
    %261 = arith.maximumf %259, %260 : vector<2x64xf32>
    %262 = arith.truncf %261 : vector<2x64xf32> to vector<2x64xbf16>
    %c19_162 = arith.constant 19 : index
    %c0_163 = arith.constant 0 : index
    %c0_164 = arith.constant 0 : index
    %263 = vector.load %arg6[%c19_162, %c0_163, %c0_164] : memref<25x64x1024xbf16, #tpu.memory_space<vmem>>, vector<1x64x1024xbf16>
    %264 = vector.shape_cast %263 : vector<1x64x1024xbf16> to vector<64x1024xbf16>
    %cst_165 = arith.constant dense<0.000000e+00> : vector<2x1024xf32>
    %265 = tpu.matmul %262, %264, %cst_165 {dimension_numbers = #tpu.dot_dimension_numbers<[1], [0], [0], [1], [0, 0, 1, 1], [], []>} : vector<2x64xbf16>, vector<64x1024xbf16>, vector<2x1024xf32> -> vector<2x1024xf32>
    %c20 = arith.constant 20 : index
    %c0_166 = arith.constant 0 : index
    %c0_167 = arith.constant 0 : index
    %266 = vector.load %arg2[%c20, %c0_166, %c0_167] : memref<25x2x576xf32, #tpu.memory_space<vmem>>, vector<1x2x576xf32>
    %267 = vector.shape_cast %266 : vector<1x2x576xf32> to vector<2x576xf32>
    %cst_168 = arith.constant dense<0.000000e+00> : vector<2x64xf32>
    %268 = tpu.matmul %267, %3, %cst_168 {dimension_numbers = #tpu.dot_dimension_numbers<[1], [0], [0], [1], [0, 0, 1, 1], [], []>} : vector<2x576xf32>, vector<576x64xf32>, vector<2x64xf32> -> vector<2x64xf32>
    %269 = vector.broadcast %4 : vector<1x64xf32> to vector<2x64xf32>
    %270 = arith.mulf %268, %269 : vector<2x64xf32>
    %271 = vector.broadcast %5 : vector<1x64xf32> to vector<2x64xf32>
    %272 = arith.addf %270, %271 : vector<2x64xf32>
    %cst_169 = arith.constant 0.000000e+00 : f32
    %273 = vector.broadcast %cst_169 : f32 to vector<2x64xf32>
    %274 = arith.maximumf %272, %273 : vector<2x64xf32>
    %275 = arith.truncf %274 : vector<2x64xf32> to vector<2x64xbf16>
    %c20_170 = arith.constant 20 : index
    %c0_171 = arith.constant 0 : index
    %c0_172 = arith.constant 0 : index
    %276 = vector.load %arg6[%c20_170, %c0_171, %c0_172] : memref<25x64x1024xbf16, #tpu.memory_space<vmem>>, vector<1x64x1024xbf16>
    %277 = vector.shape_cast %276 : vector<1x64x1024xbf16> to vector<64x1024xbf16>
    %cst_173 = arith.constant dense<0.000000e+00> : vector<2x1024xf32>
    %278 = tpu.matmul %275, %277, %cst_173 {dimension_numbers = #tpu.dot_dimension_numbers<[1], [0], [0], [1], [0, 0, 1, 1], [], []>} : vector<2x64xbf16>, vector<64x1024xbf16>, vector<2x1024xf32> -> vector<2x1024xf32>
    %c21 = arith.constant 21 : index
    %c0_174 = arith.constant 0 : index
    %c0_175 = arith.constant 0 : index
    %279 = vector.load %arg2[%c21, %c0_174, %c0_175] : memref<25x2x576xf32, #tpu.memory_space<vmem>>, vector<1x2x576xf32>
    %280 = vector.shape_cast %279 : vector<1x2x576xf32> to vector<2x576xf32>
    %cst_176 = arith.constant dense<0.000000e+00> : vector<2x64xf32>
    %281 = tpu.matmul %280, %3, %cst_176 {dimension_numbers = #tpu.dot_dimension_numbers<[1], [0], [0], [1], [0, 0, 1, 1], [], []>} : vector<2x576xf32>, vector<576x64xf32>, vector<2x64xf32> -> vector<2x64xf32>
    %282 = vector.broadcast %4 : vector<1x64xf32> to vector<2x64xf32>
    %283 = arith.mulf %281, %282 : vector<2x64xf32>
    %284 = vector.broadcast %5 : vector<1x64xf32> to vector<2x64xf32>
    %285 = arith.addf %283, %284 : vector<2x64xf32>
    %cst_177 = arith.constant 0.000000e+00 : f32
    %286 = vector.broadcast %cst_177 : f32 to vector<2x64xf32>
    %287 = arith.maximumf %285, %286 : vector<2x64xf32>
    %288 = arith.truncf %287 : vector<2x64xf32> to vector<2x64xbf16>
    %c21_178 = arith.constant 21 : index
    %c0_179 = arith.constant 0 : index
    %c0_180 = arith.constant 0 : index
    %289 = vector.load %arg6[%c21_178, %c0_179, %c0_180] : memref<25x64x1024xbf16, #tpu.memory_space<vmem>>, vector<1x64x1024xbf16>
    %290 = vector.shape_cast %289 : vector<1x64x1024xbf16> to vector<64x1024xbf16>
    %cst_181 = arith.constant dense<0.000000e+00> : vector<2x1024xf32>
    %291 = tpu.matmul %288, %290, %cst_181 {dimension_numbers = #tpu.dot_dimension_numbers<[1], [0], [0], [1], [0, 0, 1, 1], [], []>} : vector<2x64xbf16>, vector<64x1024xbf16>, vector<2x1024xf32> -> vector<2x1024xf32>
    %c22 = arith.constant 22 : index
    %c0_182 = arith.constant 0 : index
    %c0_183 = arith.constant 0 : index
    %292 = vector.load %arg2[%c22, %c0_182, %c0_183] : memref<25x2x576xf32, #tpu.memory_space<vmem>>, vector<1x2x576xf32>
    %293 = vector.shape_cast %292 : vector<1x2x576xf32> to vector<2x576xf32>
    %cst_184 = arith.constant dense<0.000000e+00> : vector<2x64xf32>
    %294 = tpu.matmul %293, %3, %cst_184 {dimension_numbers = #tpu.dot_dimension_numbers<[1], [0], [0], [1], [0, 0, 1, 1], [], []>} : vector<2x576xf32>, vector<576x64xf32>, vector<2x64xf32> -> vector<2x64xf32>
    %295 = vector.broadcast %4 : vector<1x64xf32> to vector<2x64xf32>
    %296 = arith.mulf %294, %295 : vector<2x64xf32>
    %297 = vector.broadcast %5 : vector<1x64xf32> to vector<2x64xf32>
    %298 = arith.addf %296, %297 : vector<2x64xf32>
    %cst_185 = arith.constant 0.000000e+00 : f32
    %299 = vector.broadcast %cst_185 : f32 to vector<2x64xf32>
    %300 = arith.maximumf %298, %299 : vector<2x64xf32>
    %301 = arith.truncf %300 : vector<2x64xf32> to vector<2x64xbf16>
    %c22_186 = arith.constant 22 : index
    %c0_187 = arith.constant 0 : index
    %c0_188 = arith.constant 0 : index
    %302 = vector.load %arg6[%c22_186, %c0_187, %c0_188] : memref<25x64x1024xbf16, #tpu.memory_space<vmem>>, vector<1x64x1024xbf16>
    %303 = vector.shape_cast %302 : vector<1x64x1024xbf16> to vector<64x1024xbf16>
    %cst_189 = arith.constant dense<0.000000e+00> : vector<2x1024xf32>
    %304 = tpu.matmul %301, %303, %cst_189 {dimension_numbers = #tpu.dot_dimension_numbers<[1], [0], [0], [1], [0, 0, 1, 1], [], []>} : vector<2x64xbf16>, vector<64x1024xbf16>, vector<2x1024xf32> -> vector<2x1024xf32>
    %c23 = arith.constant 23 : index
    %c0_190 = arith.constant 0 : index
    %c0_191 = arith.constant 0 : index
    %305 = vector.load %arg2[%c23, %c0_190, %c0_191] : memref<25x2x576xf32, #tpu.memory_space<vmem>>, vector<1x2x576xf32>
    %306 = vector.shape_cast %305 : vector<1x2x576xf32> to vector<2x576xf32>
    %cst_192 = arith.constant dense<0.000000e+00> : vector<2x64xf32>
    %307 = tpu.matmul %306, %3, %cst_192 {dimension_numbers = #tpu.dot_dimension_numbers<[1], [0], [0], [1], [0, 0, 1, 1], [], []>} : vector<2x576xf32>, vector<576x64xf32>, vector<2x64xf32> -> vector<2x64xf32>
    %308 = vector.broadcast %4 : vector<1x64xf32> to vector<2x64xf32>
    %309 = arith.mulf %307, %308 : vector<2x64xf32>
    %310 = vector.broadcast %5 : vector<1x64xf32> to vector<2x64xf32>
    %311 = arith.addf %309, %310 : vector<2x64xf32>
    %cst_193 = arith.constant 0.000000e+00 : f32
    %312 = vector.broadcast %cst_193 : f32 to vector<2x64xf32>
    %313 = arith.maximumf %311, %312 : vector<2x64xf32>
    %314 = arith.truncf %313 : vector<2x64xf32> to vector<2x64xbf16>
    %c23_194 = arith.constant 23 : index
    %c0_195 = arith.constant 0 : index
    %c0_196 = arith.constant 0 : index
    %315 = vector.load %arg6[%c23_194, %c0_195, %c0_196] : memref<25x64x1024xbf16, #tpu.memory_space<vmem>>, vector<1x64x1024xbf16>
    %316 = vector.shape_cast %315 : vector<1x64x1024xbf16> to vector<64x1024xbf16>
    %cst_197 = arith.constant dense<0.000000e+00> : vector<2x1024xf32>
    %317 = tpu.matmul %314, %316, %cst_197 {dimension_numbers = #tpu.dot_dimension_numbers<[1], [0], [0], [1], [0, 0, 1, 1], [], []>} : vector<2x64xbf16>, vector<64x1024xbf16>, vector<2x1024xf32> -> vector<2x1024xf32>
    %c24 = arith.constant 24 : index
    %c0_198 = arith.constant 0 : index
    %c0_199 = arith.constant 0 : index
    %318 = vector.load %arg2[%c24, %c0_198, %c0_199] : memref<25x2x576xf32, #tpu.memory_space<vmem>>, vector<1x2x576xf32>
    %319 = vector.shape_cast %318 : vector<1x2x576xf32> to vector<2x576xf32>
    %cst_200 = arith.constant dense<0.000000e+00> : vector<2x64xf32>
    %320 = tpu.matmul %319, %3, %cst_200 {dimension_numbers = #tpu.dot_dimension_numbers<[1], [0], [0], [1], [0, 0, 1, 1], [], []>} : vector<2x576xf32>, vector<576x64xf32>, vector<2x64xf32> -> vector<2x64xf32>
    %321 = vector.broadcast %4 : vector<1x64xf32> to vector<2x64xf32>
    %322 = arith.mulf %320, %321 : vector<2x64xf32>
    %323 = vector.broadcast %5 : vector<1x64xf32> to vector<2x64xf32>
    %324 = arith.addf %322, %323 : vector<2x64xf32>
    %cst_201 = arith.constant 0.000000e+00 : f32
    %325 = vector.broadcast %cst_201 : f32 to vector<2x64xf32>
    %326 = arith.maximumf %324, %325 : vector<2x64xf32>
    %327 = arith.truncf %326 : vector<2x64xf32> to vector<2x64xbf16>
    %c24_202 = arith.constant 24 : index
    %c0_203 = arith.constant 0 : index
    %c0_204 = arith.constant 0 : index
    %328 = vector.load %arg6[%c24_202, %c0_203, %c0_204] : memref<25x64x1024xbf16, #tpu.memory_space<vmem>>, vector<1x64x1024xbf16>
    %329 = vector.shape_cast %328 : vector<1x64x1024xbf16> to vector<64x1024xbf16>
    %cst_205 = arith.constant dense<0.000000e+00> : vector<2x1024xf32>
    %330 = tpu.matmul %327, %329, %cst_205 {dimension_numbers = #tpu.dot_dimension_numbers<[1], [0], [0], [1], [0, 0, 1, 1], [], []>} : vector<2x64xbf16>, vector<64x1024xbf16>, vector<2x1024xf32> -> vector<2x1024xf32>
    %331 = arith.addf %18, %31 : vector<2x1024xf32>
    %332 = arith.addf %44, %57 : vector<2x1024xf32>
    %333 = arith.addf %70, %83 : vector<2x1024xf32>
    %334 = arith.addf %96, %109 : vector<2x1024xf32>
    %335 = arith.addf %122, %135 : vector<2x1024xf32>
    %336 = arith.addf %148, %161 : vector<2x1024xf32>
    %337 = arith.addf %174, %187 : vector<2x1024xf32>
    %338 = arith.addf %200, %213 : vector<2x1024xf32>
    %339 = arith.addf %226, %239 : vector<2x1024xf32>
    %340 = arith.addf %252, %265 : vector<2x1024xf32>
    %341 = arith.addf %278, %291 : vector<2x1024xf32>
    %342 = arith.addf %304, %317 : vector<2x1024xf32>
    %343 = arith.addf %331, %332 : vector<2x1024xf32>
    %344 = arith.addf %333, %334 : vector<2x1024xf32>
    %345 = arith.addf %335, %336 : vector<2x1024xf32>
    %346 = arith.addf %337, %338 : vector<2x1024xf32>
    %347 = arith.addf %339, %340 : vector<2x1024xf32>
    %348 = arith.addf %341, %342 : vector<2x1024xf32>
    %349 = arith.addf %343, %344 : vector<2x1024xf32>
    %350 = arith.addf %345, %346 : vector<2x1024xf32>
    %351 = arith.addf %347, %348 : vector<2x1024xf32>
    %352 = arith.addf %349, %350 : vector<2x1024xf32>
    %353 = arith.addf %351, %330 : vector<2x1024xf32>
    %354 = arith.addf %352, %353 : vector<2x1024xf32>
    %c0_206 = arith.constant 0 : index
    %c0_207 = arith.constant 0 : index
    %355 = vector.load %arg10[%c0_206, %c0_207] : memref<2x1024xf32, #tpu.memory_space<vmem>>, vector<2x1024xf32>
    %356 = arith.addf %355, %354 : vector<2x1024xf32>
    %c0_208 = arith.constant 0 : index
    %c0_209 = arith.constant 0 : index
    %357 = vector.load %arg10[%c0_208, %c0_209] : memref<2x1024xf32, #tpu.memory_space<vmem>>, vector<2x1024xf32>
    tpu.vector_store %arg10[%c0_208, %c0_209], %356 {strides = array<i32>} : memref<2x1024xf32, #tpu.memory_space<vmem>>, vector<2x1024xf32>,
    %c1_i32 = arith.constant 1 : i32
    %358 = arith.cmpi eq, %arg1, %c1_i32 : i32
    %359 = arith.extui %358 : i1 to i32
    %c0_i32_210 = arith.constant 0 : i32
    %360 = arith.cmpi ne, %359, %c0_i32_210 : i32
    scf.if %360 {
      %c0_211 = arith.constant 0 : index
      %c0_212 = arith.constant 0 : index
      %361 = vector.load %arg10[%c0_211, %c0_212] : memref<2x1024xf32, #tpu.memory_space<vmem>>, vector<2x1024xf32>
      %c0_213 = arith.constant 0 : index
      %c0_214 = arith.constant 0 : index
      %362 = vector.load %arg7[%c0_213, %c0_214] : memref<1x1024xf32, #tpu.memory_space<vmem>>, vector<1x1024xf32>
      %363 = vector.broadcast %362 : vector<1x1024xf32> to vector<2x1024xf32>
      %364 = arith.addf %361, %363 : vector<2x1024xf32>
      %365 = arith.truncf %364 : vector<2x1024xf32> to vector<2x1024xbf16>
      %c0_215 = arith.constant 0 : index
      %c0_216 = arith.constant 0 : index
      %366 = vector.load %arg8[%c0_215, %c0_216] : memref<1024x4xbf16, #tpu.memory_space<vmem>>, vector<1024x4xbf16>
      %cst_217 = arith.constant dense<0.000000e+00> : vector<2x4xf32>
      %367 = tpu.matmul %365, %366, %cst_217 {dimension_numbers = #tpu.dot_dimension_numbers<[1], [0], [0], [1], [0, 0, 1, 1], [], []>} : vector<2x1024xbf16>, vector<1024x4xbf16>, vector<2x4xf32> -> vector<2x4xf32>
      %c0_218 = arith.constant 0 : index
      %c0_219 = arith.constant 0 : index
      %c0_220 = arith.constant 0 : index
      %368 = vector.load %arg9[%c0_218, %c0_219, %c0_220] : memref<1x2x4xf32, #tpu.memory_space<vmem>>, vector<1x2x4xf32>
      %369 = vector.shape_cast %368 : vector<1x2x4xf32> to vector<2x4xf32>
      %370 = vector.shape_cast %367 : vector<2x4xf32> to vector<1x2x4xf32>
      tpu.vector_store %arg9[%c0_218, %c0_219, %c0_220], %370 {strides = array<i32>} : memref<1x2x4xf32, #tpu.memory_space<vmem>>, vector<1x2x4xf32>,
    } else {
    }
    return
  }
  func.func @transform_0(%arg0: i32, %arg1: i32) -> (i32, i32, i32) {
    %c0_i32 = arith.constant 0 : i32
    %c0_i32_0 = arith.constant 0 : i32
    %c0_i32_1 = arith.constant 0 : i32
    return %arg1, %c0_i32, %c0_i32_0 : i32, i32, i32
  }
  func.func @transform_1(%arg0: i32, %arg1: i32) -> (i32, i32) {
    %c0_i32 = arith.constant 0 : i32
    %c0_i32_0 = arith.constant 0 : i32
    %c0_i32_1 = arith.constant 0 : i32
    return %c0_i32, %c0_i32_0 : i32, i32
  }
  func.func @transform_2(%arg0: i32, %arg1: i32) -> (i32, i32) {
    %c0_i32 = arith.constant 0 : i32
    %c0_i32_0 = arith.constant 0 : i32
    %c0_i32_1 = arith.constant 0 : i32
    return %c0_i32, %c0_i32_0 : i32, i32
  }
  func.func @transform_3(%arg0: i32, %arg1: i32) -> (i32, i32) {
    %c0_i32 = arith.constant 0 : i32
    %c0_i32_0 = arith.constant 0 : i32
    %c0_i32_1 = arith.constant 0 : i32
    return %c0_i32, %c0_i32_0 : i32, i32
  }
  func.func @transform_4(%arg0: i32, %arg1: i32) -> (i32, i32, i32) {
    %c0_i32 = arith.constant 0 : i32
    %c0_i32_0 = arith.constant 0 : i32
    return %arg1, %c0_i32, %arg0 : i32, i32, i32
  }
  func.func @transform_5(%arg0: i32, %arg1: i32) -> (i32, i32) {
    %c0_i32 = arith.constant 0 : i32
    %c0_i32_0 = arith.constant 0 : i32
    return %c0_i32, %arg0 : i32, i32
  }
  func.func @transform_6(%arg0: i32, %arg1: i32) -> (i32, i32) {
    %c0_i32 = arith.constant 0 : i32
    %c0_i32_0 = arith.constant 0 : i32
    return %arg0, %c0_i32 : i32, i32
  }
  func.func @transform_7(%arg0: i32, %arg1: i32) -> (i32, i32, i32) {
    %c0_i32 = arith.constant 0 : i32
    %c0_i32_0 = arith.constant 0 : i32
    %c0_i32_1 = arith.constant 0 : i32
    return %arg0, %c0_i32, %c0_i32_0 : i32, i32, i32
  }
}

</mosaic_0001>

<bundles_post_ra>
// kernel: dqn_forward.3
= control target key start
LH: loop header
LB: loop body
LE: loop exit
PB: predicated region body
PF: predicated region fallthrough
CT: control target
= control target key end

     0   :  { %v1317_v0 = vmov 0.0|0.0   ;;  %s2591_s1 = inlined_call_operand.vmem [shape: f32[256,128], index: 1, kind: input, shape index: {}]   ;;  %s2592_s0 = inlined_call_operand.vmem [shape: f32[800,256], index: 0, kind: input, shape index: {}]   ;;  %s2593_s2 = inlined_call_operand.vmem [shape: f32[1,128], index: 2, kind: input, shape index: {}]   ;;  %s2594_s3 = inlined_call_operand.vmem [shape: f32[1,128], index: 3, kind: input, shape index: {}]   ;;  %s2595_s4 = inlined_call_operand.vmem [shape: f32[800,128], index: 4, kind: output, shape index: {}]  }
   0x1   :  { %1234 = vmatprep.subr.bf16.mxu0 %v1317_v0  ;;  %1282 = vmatprep.subr.bf16.mxu1 %v1317_v0  ;;  %v217_v1 = vld [vmem:[%s2591_s1] sm:$0xff]  ;;  %v218_v2 = vld [vmem:[%s2591_s1 + $0x8] sm:$0xff]  ;;  %v219_v3 = vld [vmem:[%s2591_s1 + $0x10] sm:$0xff] }
   0x2   :  { %v1235_v4 = vpack.c.bf16 %v218_v2, %v217_v1  ;;  %v220_v5 = vld [vmem:[%s2591_s1 + $0x18] sm:$0xff]  ;;  %v221_v7 = vld [vmem:[%s2591_s1 + $0x20] sm:$0xff]  ;;  %v222_v8 = vld [vmem:[%s2591_s1 + $0x28] sm:$0xff] }
   0x3   :  { %v1238_v6 = vpack.c.bf16 %v220_v5, %v219_v3  ;;  %v1241_v9 = vpack.c.bf16 %v222_v8, %v221_v7  ;;  %v223_v10 = vld [vmem:[%s2591_s1 + $0x30] sm:$0xff]  ;;  %v224_v11 = vld [vmem:[%s2591_s1 + $0x38] sm:$0xff]  ;;  %v18_v12 = vld [vmem:[%s2592_s0 + $0x8] sm:$0xff] }
   0x4   :  { %1236 = vmatpush1.bf16.msra.mxu0 %v1235_v4  ;;  %1298 = vmatpush1.bf16.msra.mxu1 %v1235_v4  ;;  %v1244_v13 = vpack.c.bf16 %v224_v11, %v223_v10  ;;  %v118_v14 = vld [vmem:[%s2592_s0 + $0x328] sm:$0xff]  ;;  %v225_v15 = vld [vmem:[%s2591_s1 + $0x40] sm:$0xff]  ;;  %v227_v18 = vld [vmem:[%s2591_s1 + $0x50] sm:$0xff] }
   0x5   :  { %1237 = vmatprep.subr.bf16.mxu0 %v1317_v0  ;;  %1283 = vmatprep.subr.bf16.mxu1 %v1317_v0  ;;  %v226_v16 = vld [vmem:[%s2591_s1 + $0x48] sm:$0xff]  ;;  %v228_v19 = vld [vmem:[%s2591_s1 + $0x58] sm:$0xff]  ;;  %v229_v21 = vld [vmem:[%s2591_s1 + $0x60] sm:$0xff] }
   0x6   :  { %313 = vmatprep.mubr.f32.mxu0 %v18_v12  ;;  %563 = vmatprep.mubr.f32.mxu1 %v118_v14  ;;  %v1247_v17 = vpack.c.bf16 %v226_v16, %v225_v15  ;;  %v1250_v20 = vpack.c.bf16 %v228_v19, %v227_v18  ;;  %v230_v22 = vld [vmem:[%s2591_s1 + $0x68] sm:$0xff]  ;;  %v231_v24 = vld [vmem:[%s2591_s1 + $0x70] sm:$0xff]  ;;  %v232_v25 = vld [vmem:[%s2591_s1 + $0x78] sm:$0xff] }
   0x7   :  { %v1253_v23 = vpack.c.bf16 %v230_v22, %v229_v21  ;;  %v1256_v26 = vpack.c.bf16 %v232_v25, %v231_v24  ;;  %v233_v27 = vld [vmem:[%s2591_s1 + $0x80] sm:$0xff]  ;;  %v234_v28 = vld [vmem:[%s2591_s1 + $0x88] sm:$0xff]  ;;  %v235_v30 = vld [vmem:[%s2591_s1 + $0x90] sm:$0xff] }
   0x8   :  { %1239 = vmatpush1.bf16.msra.mxu0 %v1238_v6  ;;  %1299 = vmatpush1.bf16.msra.mxu1 %v1238_v6  ;;  %v1259_v29 = vpack.c.bf16 %v234_v28, %v233_v27  ;;  %v236_v31 = vld [vmem:[%s2591_s1 + $0x98] sm:$0xff]  ;;  %v237_v33 = vld [vmem:[%s2591_s1 + $0xa0] sm:$0xff]  ;;  %v238_v34 = vld [vmem:[%s2591_s1 + $0xa8] sm:$0xff] }
   0x9   :  { %1240 = vmatprep.subr.bf16.mxu0 %v1317_v0  ;;  %1284 = vmatprep.subr.bf16.mxu1 %v1317_v0  ;;  %v1262_v32 = vpack.c.bf16 %v236_v31, %v235_v30  ;;  %v1265_v35 = vpack.c.bf16 %v238_v34, %v237_v33  ;;  %v239_v36 = vld [vmem:[%s2591_s1 + $0xb0] sm:$0xff]  ;;  %v240_v37 = vld [vmem:[%s2591_s1 + $0xb8] sm:$0xff]  ;;  %v241_v39 = vld [vmem:[%s2591_s1 + $0xc0] sm:$0xff] }
   0xa   :  { %v1268_v38 = vpack.c.bf16 %v240_v37, %v239_v36  ;;  %v242_v40 = vld [vmem:[%s2591_s1 + $0xc8] sm:$0xff]  ;;  %v243_v42 = vld [vmem:[%s2591_s1 + $0xd0] sm:$0xff]  ;;  %v244_v43 = vld [vmem:[%s2591_s1 + $0xd8] sm:$0xff] }
   0xb   :  { %v1271_v41 = vpack.c.bf16 %v242_v40, %v241_v39  ;;  %v1274_v44 = vpack.c.bf16 %v244_v43, %v243_v42  ;;  %v245_v45 = vld [vmem:[%s2591_s1 + $0xe0] sm:$0xff]  ;;  %v246_v46 = vld [vmem:[%s2591_s1 + $0xe8] sm:$0xff]  ;;  %v247_v48 = vld [vmem:[%s2591_s1 + $0xf0] sm:$0xff] }
   0xc   :  { %1242 = vmatpush1.bf16.msra.mxu0 %v1241_v9  ;;  %1300 = vmatpush1.bf16.msra.mxu1 %v1241_v9  ;;  %v1277_v47 = vpack.c.bf16 %v246_v46, %v245_v45  ;;  %v248_v49 = vld [vmem:[%s2591_s1 + $0xf8] sm:$0xff]  ;;  %v17_v51 = vld [vmem:[%s2592_s0] sm:$0xff]  ;;  %v19_v55 = vld [vmem:[%s2592_s0 + $0x10] sm:$0xff] }
   0xd   :  { %1243 = vmatprep.subr.bf16.mxu0 %v1317_v0  ;;  %1285 = vmatprep.subr.bf16.mxu1 %v1317_v0  ;;  %v1280_v50 = vpack.c.bf16 %v248_v49, %v247_v48  ;;  %v117_v52 = vld [vmem:[%s2592_s0 + $0x320] sm:$0xff]  ;;  %v20_v53 = vld [vmem:[%s2592_s0 + $0x18] sm:$0xff]  ;;  %v119_v56 = vld [vmem:[%s2592_s0 + $0x330] sm:$0xff] }
   0xe   :  { %v120_v54 = vld [vmem:[%s2592_s0 + $0x338] sm:$0xff]  ;;  %v22_v57 = vld [vmem:[%s2592_s0 + $0x28] sm:$0xff]  ;;  %v21_v59 = vld [vmem:[%s2592_s0 + $0x20] sm:$0xff] }
   0xf   :  { %v122_v58 = vld [vmem:[%s2592_s0 + $0x348] sm:$0xff]  ;;  %v121_v60 = vld [vmem:[%s2592_s0 + $0x340] sm:$0xff]  ;;  %v24_v61 = vld [vmem:[%s2592_s0 + $0x38] sm:$0xff] }
  0x10   :  { %1245 = vmatpush1.bf16.msra.mxu0 %v1244_v13  ;;  %1301 = vmatpush1.bf16.msra.mxu1 %v1244_v13  ;;  %v124_v62 = vld [vmem:[%s2592_s0 + $0x358] sm:$0xff]  ;;  %v23_v63 = vld [vmem:[%s2592_s0 + $0x30] sm:$0xff]  ;;  %v26_v1 = vld [vmem:[%s2592_s0 + $0x48] sm:$0xff] }
  0x11   :  { %1246 = vmatprep.subr.bf16.mxu0 %v1317_v0  ;;  %1286 = vmatprep.subr.bf16.mxu1 %v1317_v0  ;;  %v126_v2 = vld [vmem:[%s2592_s0 + $0x368] sm:$0xff]  ;;  %v25_v3 = vld [vmem:[%s2592_s0 + $0x40] sm:$0xff]  ;;  %v28_v5 = vld [vmem:[%s2592_s0 + $0x58] sm:$0xff] }
  0x12   :  { %v125_v4 = vld [vmem:[%s2592_s0 + $0x360] sm:$0xff]  ;;  %v128_v6 = vld [vmem:[%s2592_s0 + $0x378] sm:$0xff]  ;;  %v27_v7 = vld [vmem:[%s2592_s0 + $0x50] sm:$0xff] }
  0x13   :  { %v127_v8 = vld [vmem:[%s2592_s0 + $0x370] sm:$0xff]  ;;  %v30_v9 = vld [vmem:[%s2592_s0 + $0x68] sm:$0xff]  ;;  %v29_v11 = vld [vmem:[%s2592_s0 + $0x60] sm:$0xff] }
  0x14   :  { %1248 = vmatpush1.bf16.msra.mxu0 %v1247_v17  ;;  %1302 = vmatpush1.bf16.msra.mxu1 %v1247_v17  ;;  %v130_v10 = vld [vmem:[%s2592_s0 + $0x388] sm:$0xff]  ;;  %v129_v12 = vld [vmem:[%s2592_s0 + $0x380] sm:$0xff]  ;;  %v32_v13 = vld [vmem:[%s2592_s0 + $0x78] sm:$0xff] }
  0x15   :  { %1249 = vmatprep.subr.bf16.mxu0 %v1317_v0  ;;  %1287 = vmatprep.subr.bf16.mxu1 %v1317_v0  ;;  %v132_v14 = vld [vmem:[%s2592_s0 + $0x398] sm:$0xff]  ;;  %v31_v15 = vld [vmem:[%s2592_s0 + $0x70] sm:$0xff]  ;;  %v34_v17 = vld [vmem:[%s2592_s0 + $0x88] sm:$0xff] }
  0x16   :  { %v131_v16 = vld [vmem:[%s2592_s0 + $0x390] sm:$0xff]  ;;  %v134_v18 = vld [vmem:[%s2592_s0 + $0x3a8] sm:$0xff]  ;;  %v33_v19 = vld [vmem:[%s2592_s0 + $0x80] sm:$0xff] }
  0x17   :  { %v36_v21 = vld [vmem:[%s2592_s0 + $0x98] sm:$0xff]  ;;  %v135_v24 = vld [vmem:[%s2592_s0 + $0x3b0] sm:$0xff]  ;;  %v38_v25 = vld [vmem:[%s2592_s0 + $0xa8] sm:$0xff] }
  0x18   :  { %1251 = vmatpush1.bf16.msra.mxu0 %v1250_v20  ;;  %1303 = vmatpush1.bf16.msra.mxu1 %v1250_v20  ;;  %v133_v20 = vld [vmem:[%s2592_s0 + $0x3a0] sm:$0xff]  ;;  %v136_v22 = vld [vmem:[%s2592_s0 + $0x3b8] sm:$0xff]  ;;  %v39_v31 = vld [vmem:[%s2592_s0 + $0xb0] sm:$0xff] }
  0x19   :  { %1252 = vmatprep.subr.bf16.mxu0 %v1317_v0  ;;  %1288 = vmatprep.subr.bf16.mxu1 %v1317_v0  ;;  %v37_v27 = vld [vmem:[%s2592_s0 + $0xa0] sm:$0xff]  ;;  %v140_v30 = vld [vmem:[%s2592_s0 + $0x3d8] sm:$0xff]  ;;  %v42_v33 = vld [vmem:[%s2592_s0 + $0xc8] sm:$0xff] }
  0x1a   :  { %v137_v28 = vld [vmem:[%s2592_s0 + $0x3c0] sm:$0xff]  ;;  %v142_v34 = vld [vmem:[%s2592_s0 + $0x3e8] sm:$0xff]  ;;  %v44_v37 = vld [vmem:[%s2592_s0 + $0xd8] sm:$0xff] }
  0x1b   :  { %v141_v36 = vld [vmem:[%s2592_s0 + $0x3e0] sm:$0xff]  ;;  %v43_v39 = vld [vmem:[%s2592_s0 + $0xd0] sm:$0xff]  ;;  %v146_v42 = vld [vmem:[%s2592_s0 + $0x408] sm:$0xff] }
  0x1c   :  { %1254 = vmatpush1.bf16.msra.mxu0 %v1253_v23  ;;  %1304 = vmatpush1.bf16.msra.mxu1 %v1253_v23  ;;  %v35_v23 = vld [vmem:[%s2592_s0 + $0x90] sm:$0xff]  ;;  %v45_v43 = vld [vmem:[%s2592_s0 + $0xe0] sm:$0xff]  ;;  %v48_v45 = vld [vmem:[%s2592_s0 + $0xf8] sm:$0xff] }
  0x1d   :  { %1255 = vmatprep.subr.bf16.mxu0 %v1317_v0  ;;  %1289 = vmatprep.subr.bf16.mxu1 %v1317_v0  ;;  %v143_v40 = vld [vmem:[%s2592_s0 + $0x3f0] sm:$0xff]  ;;  %v148_v46 = vld [vmem:[%s2592_s0 + $0x418] sm:$0xff]  ;;  %v50_v49 = vld [vmem:[%s2592_s0 + $0x108] sm:$0xff] }
  0x1e   :  { %v147_v48 = vld [vmem:[%s2592_s0 + $0x410] sm:$0xff] }
  0x20   :  { %1257 = vmatpush1.bf16.msra.mxu0 %v1256_v26  ;;  %1305 = vmatpush1.bf16.msra.mxu1 %v1256_v26  ;;  %v138_v26 = vld [vmem:[%s2592_s0 + $0x3c8] sm:$0xff] }
  0x21   :  { %1258 = vmatprep.subr.bf16.mxu0 %v1317_v0  ;;  %1290 = vmatprep.subr.bf16.mxu1 %v1317_v0 }
  0x24   :  { %1260 = vmatpush1.bf16.msra.mxu0 %v1259_v29  ;;  %1306 = vmatpush1.bf16.msra.mxu1 %v1259_v29  ;;  %v40_v29 = vld [vmem:[%s2592_s0 + $0xb8] sm:$0xff] }
  0x25   :  { %1261 = vmatprep.subr.bf16.mxu0 %v1317_v0  ;;  %1291 = vmatprep.subr.bf16.mxu1 %v1317_v0 }
  0x28   :  { %1263 = vmatpush1.bf16.msra.mxu0 %v1262_v32  ;;  %1307 = vmatpush1.bf16.msra.mxu1 %v1262_v32  ;;  %v139_v32 = vld [vmem:[%s2592_s0 + $0x3d0] sm:$0xff] }
  0x29   :  { %1264 = vmatprep.subr.bf16.mxu0 %v1317_v0  ;;  %1292 = vmatprep.subr.bf16.mxu1 %v1317_v0 }
  0x2c   :  { %1266 = vmatpush1.bf16.msra.mxu0 %v1265_v35  ;;  %1308 = vmatpush1.bf16.msra.mxu1 %v1265_v35  ;;  %v41_v35 = vld [vmem:[%s2592_s0 + $0xc0] sm:$0xff] }
  0x2d   :  { %1267 = vmatprep.subr.bf16.mxu0 %v1317_v0  ;;  %1293 = vmatprep.subr.bf16.mxu1 %v1317_v0 }
  0x30   :  { %1269 = vmatpush1.bf16.msra.mxu0 %v1268_v38  ;;  %1309 = vmatpush1.bf16.msra.mxu1 %v1268_v38  ;;  %v144_v38 = vld [vmem:[%s2592_s0 + $0x3f8] sm:$0xff] }
  0x31   :  { %1270 = vmatprep.subr.bf16.mxu0 %v1317_v0  ;;  %1294 = vmatprep.subr.bf16.mxu1 %v1317_v0 }
  0x34   :  { %1272 = vmatpush1.bf16.msra.mxu0 %v1271_v41  ;;  %1310 = vmatpush1.bf16.msra.mxu1 %v1271_v41  ;;  %v46_v41 = vld [vmem:[%s2592_s0 + $0xe8] sm:$0xff] }
  0x35   :  { %1273 = vmatprep.subr.bf16.mxu0 %v1317_v0  ;;  %1295 = vmatprep.subr.bf16.mxu1 %v1317_v0 }
  0x38   :  { %1275 = vmatpush1.bf16.msra.mxu0 %v1274_v44  ;;  %1311 = vmatpush1.bf16.msra.mxu1 %v1274_v44  ;;  %v145_v44 = vld [vmem:[%s2592_s0 + $0x400] sm:$0xff] }
  0x39   :  { %1276 = vmatprep.subr.bf16.mxu0 %v1317_v0  ;;  %1296 = vmatprep.subr.bf16.mxu1 %v1317_v0 }
  0x3c   :  { %1278 = vmatpush1.bf16.msra.mxu0 %v1277_v47  ;;  %1312 = vmatpush1.bf16.msra.mxu1 %v1277_v47  ;;  %v47_v47 = vld [vmem:[%s2592_s0 + $0xf0] sm:$0xff] }
  0x3d   :  { %1279 = vmatprep.subr.bf16.mxu0 %v1317_v0  ;;  %1297 = vmatprep.subr.bf16.mxu1 %v1317_v0  ;;  %v123_v0 = vld [vmem:[%s2592_s0 + $0x350] sm:$0xff] }
  0x40   :  { %1281 = vmatpush1.bf16.msra.mxu0 %v1280_v50  ;;  %1313 = vmatpush1.bf16.msra.mxu1 %v1280_v50  ;;  %v150_v50 = vld [vmem:[%s2592_s0 + $0x428] sm:$0xff] }
  0x43   :  { %314 = vmatmul.mubr.f32.vlgmr.msra.gmra.mrb[0].mxu0 %v17_v51  ;;  %564 = vmatmul.mubr.f32.vlgmr.msra.gmra.mrb[0].mxu1 %v117_v52  ;;  %v49_v51 = vld [vmem:[%s2592_s0 + $0x100] sm:$0xff] }
  0x44   :  { %318 = vmatprep.mubr.f32.mxu0 %v20_v53  ;;  %568 = vmatprep.mubr.f32.mxu1 %v120_v54  ;;  %v149_v52 = vld [vmem:[%s2592_s0 + $0x420] sm:$0xff]  ;;  %v52_v53 = vld [vmem:[%s2592_s0 + $0x118] sm:$0xff] }
  0x45   :  { %v152_v54 = vld [vmem:[%s2592_s0 + $0x438] sm:$0xff] }
  0x47   :  { %319 = vmatmul.mubr.f32.gmra.mrb[2].mxu0 %v19_v55  ;;  %569 = vmatmul.mubr.f32.gmra.mrb[2].mxu1 %v119_v56  ;;  %v51_v55 = vld [vmem:[%s2592_s0 + $0x110] sm:$0xff] }
  0x48   :  { %323 = vmatprep.mubr.f32.mxu0 %v22_v57  ;;  %573 = vmatprep.mubr.f32.mxu1 %v122_v58  ;;  %v151_v56 = vld [vmem:[%s2592_s0 + $0x430] sm:$0xff]  ;;  %v54_v57 = vld [vmem:[%s2592_s0 + $0x128] sm:$0xff] }
  0x49   :  { %v154_v58 = vld [vmem:[%s2592_s0 + $0x448] sm:$0xff] }
  0x4b   :  { %324 = vmatmul.mubr.f32.gmra.mrb[4].mxu0 %v21_v59  ;;  %574 = vmatmul.mubr.f32.gmra.mrb[4].mxu1 %v121_v60  ;;  %v53_v59 = vld [vmem:[%s2592_s0 + $0x120] sm:$0xff] }
  0x4c   :  { %328 = vmatprep.mubr.f32.mxu0 %v24_v61  ;;  %578 = vmatprep.mubr.f32.mxu1 %v124_v62  ;;  %v153_v60 = vld [vmem:[%s2592_s0 + $0x440] sm:$0xff]  ;;  %v56_v61 = vld [vmem:[%s2592_s0 + $0x138] sm:$0xff] }
  0x4d   :  { %v156_v62 = vld [vmem:[%s2592_s0 + $0x458] sm:$0xff] }
  0x4f   :  { %329 = vmatmul.mubr.f32.gmra.mrb[6].mxu0 %v23_v63  ;;  %579 = vmatmul.mubr.f32.gmra.mrb[6].mxu1 %v123_v0  ;;  %v55_v63 = vld [vmem:[%s2592_s0 + $0x130] sm:$0xff] }
  0x50   :  { %333 = vmatprep.mubr.f32.mxu0 %v26_v1  ;;  %583 = vmatprep.mubr.f32.mxu1 %v126_v2  ;;  %v155_v0 = vld [vmem:[%s2592_s0 + $0x450] sm:$0xff]  ;;  %v58_v1 = vld [vmem:[%s2592_s0 + $0x148] sm:$0xff] }
  0x51   :  { %v158_v2 = vld [vmem:[%s2592_s0 + $0x468] sm:$0xff] }
  0x53   :  { %334 = vmatmul.mubr.f32.gmra.mrb[8].mxu0 %v25_v3  ;;  %584 = vmatmul.mubr.f32.gmra.mrb[8].mxu1 %v125_v4  ;;  %v57_v3 = vld [vmem:[%s2592_s0 + $0x140] sm:$0xff] }
  0x54   :  { %338 = vmatprep.mubr.f32.mxu0 %v28_v5  ;;  %588 = vmatprep.mubr.f32.mxu1 %v128_v6  ;;  %v157_v4 = vld [vmem:[%s2592_s0 + $0x460] sm:$0xff]  ;;  %v60_v5 = vld [vmem:[%s2592_s0 + $0x158] sm:$0xff] }
  0x55   :  { %v160_v6 = vld [vmem:[%s2592_s0 + $0x478] sm:$0xff] }
  0x57   :  { %339 = vmatmul.mubr.f32.gmra.mrb[10].mxu0 %v27_v7  ;;  %589 = vmatmul.mubr.f32.gmra.mrb[10].mxu1 %v127_v8  ;;  %v59_v7 = vld [vmem:[%s2592_s0 + $0x150] sm:$0xff] }
  0x58   :  { %343 = vmatprep.mubr.f32.mxu0 %v30_v9  ;;  %593 = vmatprep.mubr.f32.mxu1 %v130_v10  ;;  %v159_v8 = vld [vmem:[%s2592_s0 + $0x470] sm:$0xff]  ;;  %v62_v9 = vld [vmem:[%s2592_s0 + $0x168] sm:$0xff] }
  0x59   :  { %v162_v10 = vld [vmem:[%s2592_s0 + $0x488] sm:$0xff] }
  0x5b   :  { %344 = vmatmul.mubr.f32.gmra.mrb[12].mxu0 %v29_v11  ;;  %594 = vmatmul.mubr.f32.gmra.mrb[12].mxu1 %v129_v12  ;;  %v61_v11 = vld [vmem:[%s2592_s0 + $0x160] sm:$0xff] }
  0x5c   :  { %348 = vmatprep.mubr.f32.mxu0 %v32_v13  ;;  %598 = vmatprep.mubr.f32.mxu1 %v132_v14  ;;  %v161_v12 = vld [vmem:[%s2592_s0 + $0x480] sm:$0xff]  ;;  %v64_v13 = vld [vmem:[%s2592_s0 + $0x178] sm:$0xff] }
  0x5d   :  { %v164_v14 = vld [vmem:[%s2592_s0 + $0x498] sm:$0xff] }
  0x5f   :  { %349 = vmatmul.mubr.f32.gmra.mrb[14].mxu0 %v31_v15  ;;  %599 = vmatmul.mubr.f32.gmra.mrb[14].mxu1 %v131_v16  ;;  %v63_v15 = vld [vmem:[%s2592_s0 + $0x170] sm:$0xff] }
  0x60   :  { %353 = vmatprep.mubr.f32.mxu0 %v34_v17  ;;  %603 = vmatprep.mubr.f32.mxu1 %v134_v18  ;;  %v163_v16 = vld [vmem:[%s2592_s0 + $0x490] sm:$0xff]  ;;  %v66_v17 = vld [vmem:[%s2592_s0 + $0x188] sm:$0xff] }
  0x61   :  { %v166_v18 = vld [vmem:[%s2592_s0 + $0x4a8] sm:$0xff] }
  0x63   :  { %354 = vmatmul.mubr.f32.gmra.mrb[16].mxu0 %v33_v19  ;;  %604 = vmatmul.mubr.f32.gmra.mrb[16].mxu1 %v133_v20  ;;  %v65_v19 = vld [vmem:[%s2592_s0 + $0x180] sm:$0xff] }
  0x64   :  { %358 = vmatprep.mubr.f32.mxu0 %v36_v21  ;;  %608 = vmatprep.mubr.f32.mxu1 %v136_v22  ;;  %v165_v20 = vld [vmem:[%s2592_s0 + $0x4a0] sm:$0xff]  ;;  %v68_v21 = vld [vmem:[%s2592_s0 + $0x198] sm:$0xff] }
  0x65   :  { %v168_v22 = vld [vmem:[%s2592_s0 + $0x4b8] sm:$0xff] }
  0x67   :  { %359 = vmatmul.mubr.f32.gmra.mrb[18].mxu0 %v35_v23  ;;  %609 = vmatmul.mubr.f32.gmra.mrb[18].mxu1 %v135_v24  ;;  %v67_v23 = vld [vmem:[%s2592_s0 + $0x190] sm:$0xff] }
  0x68   :  { %363 = vmatprep.mubr.f32.mxu0 %v38_v25  ;;  %613 = vmatprep.mubr.f32.mxu1 %v138_v26  ;;  %v167_v24 = vld [vmem:[%s2592_s0 + $0x4b0] sm:$0xff]  ;;  %v70_v25 = vld [vmem:[%s2592_s0 + $0x1a8] sm:$0xff] }
  0x69   :  { %v170_v26 = vld [vmem:[%s2592_s0 + $0x4c8] sm:$0xff] }
  0x6b   :  { %364 = vmatmul.mubr.f32.gmra.mrb[20].mxu0 %v37_v27  ;;  %614 = vmatmul.mubr.f32.gmra.mrb[20].mxu1 %v137_v28  ;;  %v69_v27 = vld [vmem:[%s2592_s0 + $0x1a0] sm:$0xff] }
  0x6c   :  { %368 = vmatprep.mubr.f32.mxu0 %v40_v29  ;;  %618 = vmatprep.mubr.f32.mxu1 %v140_v30  ;;  %v169_v28 = vld [vmem:[%s2592_s0 + $0x4c0] sm:$0xff]  ;;  %v72_v29 = vld [vmem:[%s2592_s0 + $0x1b8] sm:$0xff] }
  0x6d   :  { %v172_v30 = vld [vmem:[%s2592_s0 + $0x4d8] sm:$0xff] }
  0x6f   :  { %369 = vmatmul.mubr.f32.gmra.mrb[22].mxu0 %v39_v31  ;;  %619 = vmatmul.mubr.f32.gmra.mrb[22].mxu1 %v139_v32  ;;  %v71_v31 = vld [vmem:[%s2592_s0 + $0x1b0] sm:$0xff] }
  0x70   :  { %373 = vmatprep.mubr.f32.mxu0 %v42_v33  ;;  %623 = vmatprep.mubr.f32.mxu1 %v142_v34  ;;  %v171_v32 = vld [vmem:[%s2592_s0 + $0x4d0] sm:$0xff]  ;;  %v74_v33 = vld [vmem:[%s2592_s0 + $0x1c8] sm:$0xff] }
  0x71   :  { %v174_v34 = vld [vmem:[%s2592_s0 + $0x4e8] sm:$0xff] }
  0x73   :  { %374 = vmatmul.mubr.f32.gmra.mrb[24].mxu0 %v41_v35  ;;  %624 = vmatmul.mubr.f32.gmra.mrb[24].mxu1 %v141_v36  ;;  %v73_v35 = vld [vmem:[%s2592_s0 + $0x1c0] sm:$0xff] }
  0x74   :  { %378 = vmatprep.mubr.f32.mxu0 %v44_v37  ;;  %628 = vmatprep.mubr.f32.mxu1 %v144_v38  ;;  %v173_v36 = vld [vmem:[%s2592_s0 + $0x4e0] sm:$0xff]  ;;  %v76_v37 = vld [vmem:[%s2592_s0 + $0x1d8] sm:$0xff] }
  0x75   :  { %v176_v38 = vld [vmem:[%s2592_s0 + $0x4f8] sm:$0xff] }
  0x77   :  { %379 = vmatmul.mubr.f32.gmra.mrb[26].mxu0 %v43_v39  ;;  %629 = vmatmul.mubr.f32.gmra.mrb[26].mxu1 %v143_v40  ;;  %v75_v39 = vld [vmem:[%s2592_s0 + $0x1d0] sm:$0xff] }
  0x78   :  { %383 = vmatprep.mubr.f32.mxu0 %v46_v41  ;;  %633 = vmatprep.mubr.f32.mxu1 %v146_v42  ;;  %v175_v40 = vld [vmem:[%s2592_s0 + $0x4f0] sm:$0xff]  ;;  %v78_v41 = vld [vmem:[%s2592_s0 + $0x1e8] sm:$0xff] }
  0x79   :  { %v178_v42 = vld [vmem:[%s2592_s0 + $0x508] sm:$0xff] }
  0x7b   :  { %384 = vmatmul.mubr.f32.gmra.mrb[28].mxu0 %v45_v43  ;;  %634 = vmatmul.mubr.f32.gmra.mrb[28].mxu1 %v145_v44  ;;  %v77_v43 = vld [vmem:[%s2592_s0 + $0x1e0] sm:$0xff] }
  0x7c   :  { %388 = vmatprep.mubr.f32.mxu0 %v48_v45  ;;  %638 = vmatprep.mubr.f32.mxu1 %v148_v46  ;;  %v177_v44 = vld [vmem:[%s2592_s0 + $0x500] sm:$0xff]  ;;  %v80_v45 = vld [vmem:[%s2592_s0 + $0x1f8] sm:$0xff] }
  0x7d   :  { %v180_v46 = vld [vmem:[%s2592_s0 + $0x518] sm:$0xff] }
  0x7f   :  { %389 = vmatmul.mubr.f32.gmra.mrb[30].mxu0 %v47_v47  ;;  %639 = vmatmul.mubr.f32.gmra.mrb[30].mxu1 %v147_v48  ;;  %v79_v47 = vld [vmem:[%s2592_s0 + $0x1f0] sm:$0xff] }
  0x80   :  { %393 = vmatprep.mubr.f32.mxu0 %v50_v49  ;;  %643 = vmatprep.mubr.f32.mxu1 %v150_v50  ;;  %v179_v48 = vld [vmem:[%s2592_s0 + $0x510] sm:$0xff]  ;;  %v82_v49 = vld [vmem:[%s2592_s0 + $0x208] sm:$0xff] }
  0x81   :  { %v182_v50 = vld [vmem:[%s2592_s0 + $0x528] sm:$0xff] }
  0x83   :  { %394 = vmatmul.mubr.f32.gmra.mrb[32].mxu0 %v49_v51  ;;  %644 = vmatmul.mubr.f32.gmra.mrb[32].mxu1 %v149_v52  ;;  %v81_v51 = vld [vmem:[%s2592_s0 + $0x200] sm:$0xff] }
  0x84   :  { %398 = vmatprep.mubr.f32.mxu0 %v52_v53  ;;  %648 = vmatprep.mubr.f32.mxu1 %v152_v54  ;;  %v181_v52 = vld [vmem:[%s2592_s0 + $0x520] sm:$0xff]  ;;  %v84_v53 = vld [vmem:[%s2592_s0 + $0x218] sm:$0xff] }
  0x85   :  { %v184_v54 = vld [vmem:[%s2592_s0 + $0x538] sm:$0xff] }
  0x87   :  { %399 = vmatmul.mubr.f32.gmra.mrb[34].mxu0 %v51_v55  ;;  %649 = vmatmul.mubr.f32.gmra.mrb[34].mxu1 %v151_v56  ;;  %v83_v55 = vld [vmem:[%s2592_s0 + $0x210] sm:$0xff] }
  0x88   :  { %403 = vmatprep.mubr.f32.mxu0 %v54_v57  ;;  %653 = vmatprep.mubr.f32.mxu1 %v154_v58  ;;  %v183_v56 = vld [vmem:[%s2592_s0 + $0x530] sm:$0xff]  ;;  %v86_v57 = vld [vmem:[%s2592_s0 + $0x228] sm:$0xff] }
  0x89   :  { %v186_v58 = vld [vmem:[%s2592_s0 + $0x548] sm:$0xff] }
  0x8b   :  { %404 = vmatmul.mubr.f32.gmra.mrb[36].mxu0 %v53_v59  ;;  %654 = vmatmul.mubr.f32.gmra.mrb[36].mxu1 %v153_v60  ;;  %v85_v59 = vld [vmem:[%s2592_s0 + $0x220] sm:$0xff] }
  0x8c   :  { %408 = vmatprep.mubr.f32.mxu0 %v56_v61  ;;  %658 = vmatprep.mubr.f32.mxu1 %v156_v62  ;;  %v185_v60 = vld [vmem:[%s2592_s0 + $0x540] sm:$0xff]  ;;  %v88_v61 = vld [vmem:[%s2592_s0 + $0x238] sm:$0xff] }
  0x8d   :  { %v188_v62 = vld [vmem:[%s2592_s0 + $0x558] sm:$0xff] }
  0x8f   :  { %409 = vmatmul.mubr.f32.gmra.mrb[38].mxu0 %v55_v63  ;;  %659 = vmatmul.mubr.f32.gmra.mrb[38].mxu1 %v155_v0  ;;  %v87_v63 = vld [vmem:[%s2592_s0 + $0x230] sm:$0xff] }
  0x90   :  { %413 = vmatprep.mubr.f32.mxu0 %v58_v1  ;;  %663 = vmatprep.mubr.f32.mxu1 %v158_v2  ;;  %v187_v0 = vld [vmem:[%s2592_s0 + $0x550] sm:$0xff]  ;;  %v90_v1 = vld [vmem:[%s2592_s0 + $0x248] sm:$0xff] }
  0x91   :  { %v190_v2 = vld [vmem:[%s2592_s0 + $0x568] sm:$0xff] }
  0x93   :  { %414 = vmatmul.mubr.f32.gmra.mrb[40].mxu0 %v57_v3  ;;  %664 = vmatmul.mubr.f32.gmra.mrb[40].mxu1 %v157_v4  ;;  %v89_v3 = vld [vmem:[%s2592_s0 + $0x240] sm:$0xff] }
  0x94   :  { %418 = vmatprep.mubr.f32.mxu0 %v60_v5  ;;  %668 = vmatprep.mubr.f32.mxu1 %v160_v6  ;;  %v189_v4 = vld [vmem:[%s2592_s0 + $0x560] sm:$0xff]  ;;  %v92_v5 = vld [vmem:[%s2592_s0 + $0x258] sm:$0xff] }
  0x95   :  { %v192_v6 = vld [vmem:[%s2592_s0 + $0x578] sm:$0xff] }
  0x97   :  { %419 = vmatmul.mubr.f32.gmra.mrb[42].mxu0 %v59_v7  ;;  %669 = vmatmul.mubr.f32.gmra.mrb[42].mxu1 %v159_v8  ;;  %v91_v7 = vld [vmem:[%s2592_s0 + $0x250] sm:$0xff] }
  0x98   :  { %423 = vmatprep.mubr.f32.mxu0 %v62_v9  ;;  %673 = vmatprep.mubr.f32.mxu1 %v162_v10  ;;  %v191_v8 = vld [vmem:[%s2592_s0 + $0x570] sm:$0xff]  ;;  %v94_v9 = vld [vmem:[%s2592_s0 + $0x268] sm:$0xff] }
  0x99   :  { %v194_v10 = vld [vmem:[%s2592_s0 + $0x588] sm:$0xff] }
  0x9b   :  { %424 = vmatmul.mubr.f32.gmra.mrb[44].mxu0 %v61_v11  ;;  %674 = vmatmul.mubr.f32.gmra.mrb[44].mxu1 %v161_v12  ;;  %v93_v11 = vld [vmem:[%s2592_s0 + $0x260] sm:$0xff] }
  0x9c   :  { %428 = vmatprep.mubr.f32.mxu0 %v64_v13  ;;  %678 = vmatprep.mubr.f32.mxu1 %v164_v14  ;;  %v193_v12 = vld [vmem:[%s2592_s0 + $0x580] sm:$0xff]  ;;  %v96_v13 = vld [vmem:[%s2592_s0 + $0x278] sm:$0xff] }
  0x9d   :  { %v196_v14 = vld [vmem:[%s2592_s0 + $0x598] sm:$0xff] }
  0x9f   :  { %429 = vmatmul.mubr.f32.gmra.mrb[46].mxu0 %v63_v15  ;;  %679 = vmatmul.mubr.f32.gmra.mrb[46].mxu1 %v163_v16  ;;  %v95_v15 = vld [vmem:[%s2592_s0 + $0x270] sm:$0xff] }
  0xa0   :  { %433 = vmatprep.mubr.f32.mxu0 %v66_v17  ;;  %683 = vmatprep.mubr.f32.mxu1 %v166_v18  ;;  %v195_v16 = vld [vmem:[%s2592_s0 + $0x590] sm:$0xff]  ;;  %v98_v17 = vld [vmem:[%s2592_s0 + $0x288] sm:$0xff] }
  0xa1   :  { %v198_v18 = vld [vmem:[%s2592_s0 + $0x5a8] sm:$0xff] }
  0xa3   :  { %434 = vmatmul.mubr.f32.gmra.mrb[48].mxu0 %v65_v19  ;;  %684 = vmatmul.mubr.f32.gmra.mrb[48].mxu1 %v165_v20  ;;  %v97_v19 = vld [vmem:[%s2592_s0 + $0x280] sm:$0xff] }
  0xa4   :  { %438 = vmatprep.mubr.f32.mxu0 %v68_v21  ;;  %688 = vmatprep.mubr.f32.mxu1 %v168_v22  ;;  %v197_v20 = vld [vmem:[%s2592_s0 + $0x5a0] sm:$0xff]  ;;  %v100_v21 = vld [vmem:[%s2592_s0 + $0x298] sm:$0xff] }
  0xa5   :  { %v200_v22 = vld [vmem:[%s2592_s0 + $0x5b8] sm:$0xff] }
  0xa7   :  { %439 = vmatmul.mubr.f32.gmra.mrb[50].mxu0 %v67_v23  ;;  %689 = vmatmul.mubr.f32.gmra.mrb[50].mxu1 %v167_v24  ;;  %v99_v23 = vld [vmem:[%s2592_s0 + $0x290] sm:$0xff] }
  0xa8   :  { %443 = vmatprep.mubr.f32.mxu0 %v70_v25  ;;  %693 = vmatprep.mubr.f32.mxu1 %v170_v26  ;;  %v199_v24 = vld [vmem:[%s2592_s0 + $0x5b0] sm:$0xff]  ;;  %v102_v25 = vld [vmem:[%s2592_s0 + $0x2a8] sm:$0xff] }
  0xa9   :  { %v202_v26 = vld [vmem:[%s2592_s0 + $0x5c8] sm:$0xff] }
  0xab   :  { %444 = vmatmul.mubr.f32.gmra.mrb[52].mxu0 %v69_v27  ;;  %694 = vmatmul.mubr.f32.gmra.mrb[52].mxu1 %v169_v28  ;;  %v101_v27 = vld [vmem:[%s2592_s0 + $0x2a0] sm:$0xff] }
  0xac   :  { %448 = vmatprep.mubr.f32.mxu0 %v72_v29  ;;  %698 = vmatprep.mubr.f32.mxu1 %v172_v30  ;;  %v201_v28 = vld [vmem:[%s2592_s0 + $0x5c0] sm:$0xff]  ;;  %v104_v29 = vld [vmem:[%s2592_s0 + $0x2b8] sm:$0xff] }
  0xad   :  { %v204_v30 = vld [vmem:[%s2592_s0 + $0x5d8] sm:$0xff] }
  0xaf   :  { %449 = vmatmul.mubr.f32.gmra.mrb[54].mxu0 %v71_v31  ;;  %699 = vmatmul.mubr.f32.gmra.mrb[54].mxu1 %v171_v32  ;;  %v103_v31 = vld [vmem:[%s2592_s0 + $0x2b0] sm:$0xff] }
  0xb0   :  { %453 = vmatprep.mubr.f32.mxu0 %v74_v33  ;;  %703 = vmatprep.mubr.f32.mxu1 %v174_v34  ;;  %v203_v32 = vld [vmem:[%s2592_s0 + $0x5d0] sm:$0xff]  ;;  %v106_v33 = vld [vmem:[%s2592_s0 + $0x2c8] sm:$0xff] }
  0xb1   :  { %v206_v34 = vld [vmem:[%s2592_s0 + $0x5e8] sm:$0xff] }
  0xb3   :  { %454 = vmatmul.mubr.f32.gmra.mrb[56].mxu0 %v73_v35  ;;  %704 = vmatmul.mubr.f32.gmra.mrb[56].mxu1 %v173_v36  ;;  %v105_v35 = vld [vmem:[%s2592_s0 + $0x2c0] sm:$0xff] }
  0xb4   :  { %458 = vmatprep.mubr.f32.mxu0 %v76_v37  ;;  %708 = vmatprep.mubr.f32.mxu1 %v176_v38  ;;  %v205_v36 = vld [vmem:[%s2592_s0 + $0x5e0] sm:$0xff]  ;;  %v108_v37 = vld [vmem:[%s2592_s0 + $0x2d8] sm:$0xff] }
  0xb5   :  { %v208_v38 = vld [vmem:[%s2592_s0 + $0x5f8] sm:$0xff] }
  0xb7   :  { %459 = vmatmul.mubr.f32.gmra.mrb[58].mxu0 %v75_v39  ;;  %709 = vmatmul.mubr.f32.gmra.mrb[58].mxu1 %v175_v40  ;;  %v107_v39 = vld [vmem:[%s2592_s0 + $0x2d0] sm:$0xff] }
  0xb8   :  { %463 = vmatprep.mubr.f32.mxu0 %v78_v41  ;;  %713 = vmatprep.mubr.f32.mxu1 %v178_v42  ;;  %v207_v40 = vld [vmem:[%s2592_s0 + $0x5f0] sm:$0xff]  ;;  %v110_v41 = vld [vmem:[%s2592_s0 + $0x2e8] sm:$0xff] }
  0xb9   :  { %v210_v42 = vld [vmem:[%s2592_s0 + $0x608] sm:$0xff] }
  0xbb   :  { %464 = vmatmul.mubr.f32.gmra.mrb[60].mxu0 %v77_v43  ;;  %714 = vmatmul.mubr.f32.gmra.mrb[60].mxu1 %v177_v44  ;;  %v109_v43 = vld [vmem:[%s2592_s0 + $0x2e0] sm:$0xff] }
  0xbc   :  { %468 = vmatprep.mubr.f32.mxu0 %v80_v45  ;;  %718 = vmatprep.mubr.f32.mxu1 %v180_v46  ;;  %v209_v44 = vld [vmem:[%s2592_s0 + $0x600] sm:$0xff]  ;;  %v112_v45 = vld [vmem:[%s2592_s0 + $0x2f8] sm:$0xff] }
  0xbd   :  { %v212_v46 = vld [vmem:[%s2592_s0 + $0x618] sm:$0xff] }
  0xbf   :  { %469 = vmatmul.mubr.f32.gmra.mrb[62].mxu0 %v79_v47  ;;  %719 = vmatmul.mubr.f32.gmra.mrb[62].mxu1 %v179_v48  ;;  %v111_v47 = vld [vmem:[%s2592_s0 + $0x2f0] sm:$0xff] }
  0xc0   :  { %473 = vmatprep.mubr.f32.mxu0 %v82_v49  ;;  %723 = vmatprep.mubr.f32.mxu1 %v182_v50  ;;  %v211_v48 = vld [vmem:[%s2592_s0 + $0x610] sm:$0xff]  ;;  %v114_v49 = vld [vmem:[%s2592_s0 + $0x308] sm:$0xff] }
  0xc1   :  { %v214_v50 = vld [vmem:[%s2592_s0 + $0x628] sm:$0xff] }
  0xc3   :  { %474 = vmatmul.mubr.f32.gmra.mrb[64].mxu0 %v81_v51  ;;  %724 = vmatmul.mubr.f32.gmra.mrb[64].mxu1 %v181_v52  ;;  %v113_v51 = vld [vmem:[%s2592_s0 + $0x300] sm:$0xff] }
  0xc4   :  { %478 = vmatprep.mubr.f32.mxu0 %v84_v53  ;;  %728 = vmatprep.mubr.f32.mxu1 %v184_v54  ;;  %v213_v52 = vld [vmem:[%s2592_s0 + $0x620] sm:$0xff]  ;;  %v116_v53 = vld [vmem:[%s2592_s0 + $0x318] sm:$0xff] }
  0xc5   :  { %v216_v54 = vld [vmem:[%s2592_s0 + $0x638] sm:$0xff] }
  0xc7   :  { %479 = vmatmul.mubr.f32.gmra.mrb[66].mxu0 %v83_v55  ;;  %729 = vmatmul.mubr.f32.gmra.mrb[66].mxu1 %v183_v56  ;;  %v115_v55 = vld [vmem:[%s2592_s0 + $0x310] sm:$0xff] }
  0xc8   :  { %483 = vmatprep.mubr.f32.mxu0 %v86_v57  ;;  %733 = vmatprep.mubr.f32.mxu1 %v186_v58  ;;  %v215_v56 = vld [vmem:[%s2592_s0 + $0x630] sm:$0xff]  ;;  %v2074_v57 = vld [vmem:[%s2593_s2] ss:$0 sm:$0xff] }
  0xcb   :  { %484 = vmatmul.mubr.f32.gmra.mrb[68].mxu0 %v85_v59  ;;  %734 = vmatmul.mubr.f32.gmra.mrb[68].mxu1 %v185_v60  ;;  %v2079_v59 = vld [vmem:[%s2594_s3] ss:$0 sm:$0xff] }
  0xcc   :  { %488 = vmatprep.mubr.f32.mxu0 %v88_v61  ;;  %738 = vmatprep.mubr.f32.mxu1 %v188_v62 }
  0xcf   :  { %489 = vmatmul.mubr.f32.gmra.mrb[70].mxu0 %v87_v63  ;;  %739 = vmatmul.mubr.f32.gmra.mrb[70].mxu1 %v187_v0 }
  0xd0   :  { %493 = vmatprep.mubr.f32.mxu0 %v90_v1  ;;  %743 = vmatprep.mubr.f32.mxu1 %v190_v2 }
  0xd3   :  { %494 = vmatmul.mubr.f32.gmra.mrb[72].mxu0 %v89_v3  ;;  %744 = vmatmul.mubr.f32.gmra.mrb[72].mxu1 %v189_v4 }
  0xd4   :  { %498 = vmatprep.mubr.f32.mxu0 %v92_v5  ;;  %748 = vmatprep.mubr.f32.mxu1 %v192_v6 }
  0xd7   :  { %499 = vmatmul.mubr.f32.gmra.mrb[74].mxu0 %v91_v7  ;;  %749 = vmatmul.mubr.f32.gmra.mrb[74].mxu1 %v191_v8 }
  0xd8   :  { %503 = vmatprep.mubr.f32.mxu0 %v94_v9  ;;  %753 = vmatprep.mubr.f32.mxu1 %v194_v10 }
  0xdb   :  { %504 = vmatmul.mubr.f32.gmra.mrb[76].mxu0 %v93_v11  ;;  %754 = vmatmul.mubr.f32.gmra.mrb[76].mxu1 %v193_v12 }
  0xdc   :  { %508 = vmatprep.mubr.f32.mxu0 %v96_v13  ;;  %758 = vmatprep.mubr.f32.mxu1 %v196_v14 }
  0xdf   :  { %509 = vmatmul.mubr.f32.gmra.mrb[78].mxu0 %v95_v15  ;;  %759 = vmatmul.mubr.f32.gmra.mrb[78].mxu1 %v195_v16 }
  0xe0   :  { %513 = vmatprep.mubr.f32.mxu0 %v98_v17  ;;  %763 = vmatprep.mubr.f32.mxu1 %v198_v18 }
  0xe3   :  { %514 = vmatmul.mubr.f32.gmra.mrb[80].mxu0 %v97_v19  ;;  %764 = vmatmul.mubr.f32.gmra.mrb[80].mxu1 %v197_v20 }
  0xe4   :  { %518 = vmatprep.mubr.f32.mxu0 %v100_v21  ;;  %768 = vmatprep.mubr.f32.mxu1 %v200_v22 }
  0xe7   :  { %519 = vmatmul.mubr.f32.gmra.mrb[82].mxu0 %v99_v23  ;;  %769 = vmatmul.mubr.f32.gmra.mrb[82].mxu1 %v199_v24 }
  0xe8   :  { %523 = vmatprep.mubr.f32.mxu0 %v102_v25  ;;  %773 = vmatprep.mubr.f32.mxu1 %v202_v26 }
  0xeb   :  { %524 = vmatmul.mubr.f32.gmra.mrb[84].mxu0 %v101_v27  ;;  %774 = vmatmul.mubr.f32.gmra.mrb[84].mxu1 %v201_v28 }
  0xec   :  { %528 = vmatprep.mubr.f32.mxu0 %v104_v29  ;;  %778 = vmatprep.mubr.f32.mxu1 %v204_v30 }
  0xef   :  { %529 = vmatmul.mubr.f32.gmra.mrb[86].mxu0 %v103_v31  ;;  %779 = vmatmul.mubr.f32.gmra.mrb[86].mxu1 %v203_v32 }
  0xf0   :  { %533 = vmatprep.mubr.f32.mxu0 %v106_v33  ;;  %783 = vmatprep.mubr.f32.mxu1 %v206_v34 }
  0xf3   :  { %534 = vmatmul.mubr.f32.gmra.mrb[88].mxu0 %v105_v35  ;;  %784 = vmatmul.mubr.f32.gmra.mrb[88].mxu1 %v205_v36 }
  0xf4   :  { %538 = vmatprep.mubr.f32.mxu0 %v108_v37  ;;  %788 = vmatprep.mubr.f32.mxu1 %v208_v38 }
  0xf7   :  { %539 = vmatmul.mubr.f32.gmra.mrb[90].mxu0 %v107_v39  ;;  %789 = vmatmul.mubr.f32.gmra.mrb[90].mxu1 %v207_v40 }
  0xf8   :  { %543 = vmatprep.mubr.f32.mxu0 %v110_v41  ;;  %793 = vmatprep.mubr.f32.mxu1 %v210_v42 }
  0xfb   :  { %544 = vmatmul.mubr.f32.gmra.mrb[92].mxu0 %v109_v43  ;;  %794 = vmatmul.mubr.f32.gmra.mrb[92].mxu1 %v209_v44 }
  0xfc   :  { %548 = vmatprep.mubr.f32.mxu0 %v112_v45  ;;  %798 = vmatprep.mubr.f32.mxu1 %v212_v46 }
  0xff   :  { %549 = vmatmul.mubr.f32.gmra.mrb[94].mxu0 %v111_v47  ;;  %799 = vmatmul.mubr.f32.gmra.mrb[94].mxu1 %v211_v48 }
 0x100   :  { %553 = vmatprep.mubr.f32.mxu0 %v114_v49  ;;  %803 = vmatprep.mubr.f32.mxu1 %v214_v50 }
 0x103   :  { %554 = vmatmul.mubr.f32.gmra.mrb[96].mxu0 %v113_v51  ;;  %804 = vmatmul.mubr.f32.gmra.mrb[96].mxu1 %v213_v52 }
 0x104   :  { %558 = vmatprep.mubr.f32.mxu0 %v116_v53  ;;  %808 = vmatprep.mubr.f32.mxu1 %v216_v54 }
 0x107   :  { %559 = vmatmul.mubr.f32.gmra.mrb[98].mxu0 %v115_v55  ;;  %809 = vmatmul.mubr.f32.gmra.mrb[98].mxu1 %v215_v56 }
 0x116   :  { %v315_v58 = vpop.f32.mrb[0].mxu0  ;;  %v565_v60 = vpop.f32.mrb[0].mxu1 }
 0x117   :  { %v821_v61 = vmul.f32 %v2074_v57, %v315_v58  ;;  %v871_v62 = vmul.f32 %v2074_v57, %v565_v60  ;;  %v317_v63 = vpop.f32.mrb[1].mxu0  ;;  %v567_v0 = vpop.f32.mrb[1].mxu1 }
 0x119   :  { %v928_v1 = vadd.f32 %v2079_v59, %v821_v61  ;;  %v978_v2 = vadd.f32 %v2079_v59, %v871_v62 }
 0x11a   :  { %v320_v3 = vpop.f32.mrb[2].mxu0  ;;  %v570_v4 = vpop.f32.mrb[2].mxu1 }
 0x11b   :  { %v1028_v5 = vmax.f32 %v928_v1, 0.0  ;;  %v1078_v6 = vmax.f32 %v978_v2, 0.0  ;;  %v822_v7 = vmul.f32 %v2074_v57, %v320_v3  ;;  %v872_v8 = vmul.f32 %v2074_v57, %v570_v4  ;;  %v322_v9 = vpop.f32.mrb[3].mxu0  ;;  %v572_v10 = vpop.f32.mrb[3].mxu1 }
 0x11d   :  { %1128 = vst [vmem:[%s2595_s4] sm:$0xff] %v1028_v5  ;;  %1178 = vst [vmem:[%s2595_s4 + $0x190] sm:$0xff] %v1078_v6  ;;  %v929_v11 = vadd.f32 %v2079_v59, %v822_v7  ;;  %v979_v12 = vadd.f32 %v2079_v59, %v872_v8 }
 0x11e   :  { %v325_v13 = vpop.f32.mrb[4].mxu0  ;;  %v575_v14 = vpop.f32.mrb[4].mxu1 }
 0x11f   :  { %v1029_v15 = vmax.f32 %v929_v11, 0.0  ;;  %v1079_v16 = vmax.f32 %v979_v12, 0.0  ;;  %v823_v17 = vmul.f32 %v2074_v57, %v325_v13  ;;  %v873_v18 = vmul.f32 %v2074_v57, %v575_v14  ;;  %v327_v19 = vpop.f32.mrb[5].mxu0  ;;  %v577_v20 = vpop.f32.mrb[5].mxu1 }
 0x121   :  { %1129 = vst [vmem:[%s2595_s4 + $0x8] sm:$0xff] %v1029_v15  ;;  %1179 = vst [vmem:[%s2595_s4 + $0x198] sm:$0xff] %v1079_v16  ;;  %v930_v21 = vadd.f32 %v2079_v59, %v823_v17  ;;  %v980_v22 = vadd.f32 %v2079_v59, %v873_v18 }
 0x122   :  { %v330_v23 = vpop.f32.mrb[6].mxu0  ;;  %v580_v24 = vpop.f32.mrb[6].mxu1 }
 0x123   :  { %v1030_v25 = vmax.f32 %v930_v21, 0.0  ;;  %v1080_v26 = vmax.f32 %v980_v22, 0.0  ;;  %v824_v27 = vmul.f32 %v2074_v57, %v330_v23  ;;  %v874_v28 = vmul.f32 %v2074_v57, %v580_v24  ;;  %v332_v29 = vpop.f32.mrb[7].mxu0  ;;  %v582_v30 = vpop.f32.mrb[7].mxu1 }
 0x125   :  { %1130 = vst [vmem:[%s2595_s4 + $0x10] sm:$0xff] %v1030_v25  ;;  %1180 = vst [vmem:[%s2595_s4 + $0x1a0] sm:$0xff] %v1080_v26  ;;  %v931_v31 = vadd.f32 %v2079_v59, %v824_v27  ;;  %v981_v32 = vadd.f32 %v2079_v59, %v874_v28 }
 0x126   :  { %v335_v33 = vpop.f32.mrb[8].mxu0  ;;  %v585_v34 = vpop.f32.mrb[8].mxu1 }
 0x127   :  { %v1031_v35 = vmax.f32 %v931_v31, 0.0  ;;  %v1081_v36 = vmax.f32 %v981_v32, 0.0  ;;  %v825_v37 = vmul.f32 %v2074_v57, %v335_v33  ;;  %v875_v38 = vmul.f32 %v2074_v57, %v585_v34  ;;  %v337_v39 = vpop.f32.mrb[9].mxu0  ;;  %v587_v40 = vpop.f32.mrb[9].mxu1 }
 0x129   :  { %1131 = vst [vmem:[%s2595_s4 + $0x18] sm:$0xff] %v1031_v35  ;;  %1181 = vst [vmem:[%s2595_s4 + $0x1a8] sm:$0xff] %v1081_v36  ;;  %v932_v41 = vadd.f32 %v2079_v59, %v825_v37  ;;  %v982_v42 = vadd.f32 %v2079_v59, %v875_v38 }
 0x12a   :  { %v340_v43 = vpop.f32.mrb[10].mxu0  ;;  %v590_v44 = vpop.f32.mrb[10].mxu1 }
 0x12b   :  { %v1032_v45 = vmax.f32 %v932_v41, 0.0  ;;  %v1082_v46 = vmax.f32 %v982_v42, 0.0  ;;  %v826_v47 = vmul.f32 %v2074_v57, %v340_v43  ;;  %v876_v48 = vmul.f32 %v2074_v57, %v590_v44  ;;  %v342_v49 = vpop.f32.mrb[11].mxu0  ;;  %v592_v50 = vpop.f32.mrb[11].mxu1 }
 0x12d   :  { %1132 = vst [vmem:[%s2595_s4 + $0x20] sm:$0xff] %v1032_v45  ;;  %1182 = vst [vmem:[%s2595_s4 + $0x1b0] sm:$0xff] %v1082_v46  ;;  %v933_v51 = vadd.f32 %v2079_v59, %v826_v47  ;;  %v983_v52 = vadd.f32 %v2079_v59, %v876_v48 }
 0x12e   :  { %v345_v53 = vpop.f32.mrb[12].mxu0  ;;  %v595_v54 = vpop.f32.mrb[12].mxu1 }
 0x12f   :  { %v1033_v55 = vmax.f32 %v933_v51, 0.0  ;;  %v1083_v56 = vmax.f32 %v983_v52, 0.0  ;;  %v827_v58 = vmul.f32 %v2074_v57, %v345_v53  ;;  %v877_v60 = vmul.f32 %v2074_v57, %v595_v54  ;;  %v347_v61 = vpop.f32.mrb[13].mxu0  ;;  %v597_v62 = vpop.f32.mrb[13].mxu1 }
 0x131   :  { %1133 = vst [vmem:[%s2595_s4 + $0x28] sm:$0xff] %v1033_v55  ;;  %1183 = vst [vmem:[%s2595_s4 + $0x1b8] sm:$0xff] %v1083_v56  ;;  %v934_v63 = vadd.f32 %v2079_v59, %v827_v58  ;;  %v984_v0 = vadd.f32 %v2079_v59, %v877_v60 }
 0x132   :  { %v350_v1 = vpop.f32.mrb[14].mxu0  ;;  %v600_v2 = vpop.f32.mrb[14].mxu1 }
 0x133   :  { %v1034_v3 = vmax.f32 %v934_v63, 0.0  ;;  %v1084_v4 = vmax.f32 %v984_v0, 0.0  ;;  %v828_v5 = vmul.f32 %v2074_v57, %v350_v1  ;;  %v878_v6 = vmul.f32 %v2074_v57, %v600_v2  ;;  %v352_v7 = vpop.f32.mrb[15].mxu0  ;;  %v602_v8 = vpop.f32.mrb[15].mxu1 }
 0x135   :  { %1134 = vst [vmem:[%s2595_s4 + $0x30] sm:$0xff] %v1034_v3  ;;  %1184 = vst [vmem:[%s2595_s4 + $0x1c0] sm:$0xff] %v1084_v4  ;;  %v935_v9 = vadd.f32 %v2079_v59, %v828_v5  ;;  %v985_v10 = vadd.f32 %v2079_v59, %v878_v6 }
 0x136   :  { %v355_v11 = vpop.f32.mrb[16].mxu0  ;;  %v605_v12 = vpop.f32.mrb[16].mxu1 }
 0x137   :  { %v1035_v13 = vmax.f32 %v935_v9, 0.0  ;;  %v1085_v14 = vmax.f32 %v985_v10, 0.0  ;;  %v829_v15 = vmul.f32 %v2074_v57, %v355_v11  ;;  %v879_v16 = vmul.f32 %v2074_v57, %v605_v12  ;;  %v357_v17 = vpop.f32.mrb[17].mxu0  ;;  %v607_v18 = vpop.f32.mrb[17].mxu1 }
 0x139   :  { %1135 = vst [vmem:[%s2595_s4 + $0x38] sm:$0xff] %v1035_v13  ;;  %1185 = vst [vmem:[%s2595_s4 + $0x1c8] sm:$0xff] %v1085_v14  ;;  %v936_v19 = vadd.f32 %v2079_v59, %v829_v15  ;;  %v986_v20 = vadd.f32 %v2079_v59, %v879_v16 }
 0x13a   :  { %v360_v21 = vpop.f32.mrb[18].mxu0  ;;  %v610_v22 = vpop.f32.mrb[18].mxu1 }
 0x13b   :  { %v1036_v23 = vmax.f32 %v936_v19, 0.0  ;;  %v1086_v24 = vmax.f32 %v986_v20, 0.0  ;;  %v830_v25 = vmul.f32 %v2074_v57, %v360_v21  ;;  %v880_v26 = vmul.f32 %v2074_v57, %v610_v22  ;;  %v362_v27 = vpop.f32.mrb[19].mxu0  ;;  %v612_v28 = vpop.f32.mrb[19].mxu1 }
 0x13d   :  { %1136 = vst [vmem:[%s2595_s4 + $0x40] sm:$0xff] %v1036_v23  ;;  %1186 = vst [vmem:[%s2595_s4 + $0x1d0] sm:$0xff] %v1086_v24  ;;  %v937_v29 = vadd.f32 %v2079_v59, %v830_v25  ;;  %v987_v30 = vadd.f32 %v2079_v59, %v880_v26 }
 0x13e   :  { %v365_v31 = vpop.f32.mrb[20].mxu0  ;;  %v615_v32 = vpop.f32.mrb[20].mxu1 }
 0x13f   :  { %v1037_v33 = vmax.f32 %v937_v29, 0.0  ;;  %v1087_v34 = vmax.f32 %v987_v30, 0.0  ;;  %v831_v35 = vmul.f32 %v2074_v57, %v365_v31  ;;  %v881_v36 = vmul.f32 %v2074_v57, %v615_v32  ;;  %v367_v37 = vpop.f32.mrb[21].mxu0  ;;  %v617_v38 = vpop.f32.mrb[21].mxu1 }
 0x141   :  { %1137 = vst [vmem:[%s2595_s4 + $0x48] sm:$0xff] %v1037_v33  ;;  %1187 = vst [vmem:[%s2595_s4 + $0x1d8] sm:$0xff] %v1087_v34  ;;  %v938_v39 = vadd.f32 %v2079_v59, %v831_v35  ;;  %v988_v40 = vadd.f32 %v2079_v59, %v881_v36 }
 0x142   :  { %v370_v41 = vpop.f32.mrb[22].mxu0  ;;  %v620_v42 = vpop.f32.mrb[22].mxu1 }
 0x143   :  { %v1038_v43 = vmax.f32 %v938_v39, 0.0  ;;  %v1088_v44 = vmax.f32 %v988_v40, 0.0  ;;  %v832_v45 = vmul.f32 %v2074_v57, %v370_v41  ;;  %v882_v46 = vmul.f32 %v2074_v57, %v620_v42  ;;  %v372_v47 = vpop.f32.mrb[23].mxu0  ;;  %v622_v48 = vpop.f32.mrb[23].mxu1 }
 0x145   :  { %1138 = vst [vmem:[%s2595_s4 + $0x50] sm:$0xff] %v1038_v43  ;;  %1188 = vst [vmem:[%s2595_s4 + $0x1e0] sm:$0xff] %v1088_v44  ;;  %v939_v49 = vadd.f32 %v2079_v59, %v832_v45  ;;  %v989_v50 = vadd.f32 %v2079_v59, %v882_v46 }
 0x146   :  { %v375_v51 = vpop.f32.mrb[24].mxu0  ;;  %v625_v52 = vpop.f32.mrb[24].mxu1 }
 0x147   :  { %v1039_v53 = vmax.f32 %v939_v49, 0.0  ;;  %v1089_v54 = vmax.f32 %v989_v50, 0.0  ;;  %v833_v55 = vmul.f32 %v2074_v57, %v375_v51  ;;  %v883_v56 = vmul.f32 %v2074_v57, %v625_v52  ;;  %v377_v58 = vpop.f32.mrb[25].mxu0  ;;  %v627_v60 = vpop.f32.mrb[25].mxu1 }
 0x149   :  { %1139 = vst [vmem:[%s2595_s4 + $0x58] sm:$0xff] %v1039_v53  ;;  %1189 = vst [vmem:[%s2595_s4 + $0x1e8] sm:$0xff] %v1089_v54  ;;  %v940_v61 = vadd.f32 %v2079_v59, %v833_v55  ;;  %v990_v62 = vadd.f32 %v2079_v59, %v883_v56 }
 0x14a   :  { %v380_v63 = vpop.f32.mrb[26].mxu0  ;;  %v630_v0 = vpop.f32.mrb[26].mxu1 }
 0x14b   :  { %v1040_v1 = vmax.f32 %v940_v61, 0.0  ;;  %v1090_v2 = vmax.f32 %v990_v62, 0.0  ;;  %v834_v3 = vmul.f32 %v2074_v57, %v380_v63  ;;  %v884_v4 = vmul.f32 %v2074_v57, %v630_v0  ;;  %v382_v5 = vpop.f32.mrb[27].mxu0  ;;  %v632_v6 = vpop.f32.mrb[27].mxu1 }
 0x14d   :  { %1140 = vst [vmem:[%s2595_s4 + $0x60] sm:$0xff] %v1040_v1  ;;  %1190 = vst [vmem:[%s2595_s4 + $0x1f0] sm:$0xff] %v1090_v2  ;;  %v941_v7 = vadd.f32 %v2079_v59, %v834_v3  ;;  %v991_v8 = vadd.f32 %v2079_v59, %v884_v4 }
 0x14e   :  { %v385_v9 = vpop.f32.mrb[28].mxu0  ;;  %v635_v10 = vpop.f32.mrb[28].mxu1 }
 0x14f   :  { %v1041_v11 = vmax.f32 %v941_v7, 0.0  ;;  %v1091_v12 = vmax.f32 %v991_v8, 0.0  ;;  %v835_v13 = vmul.f32 %v2074_v57, %v385_v9  ;;  %v885_v14 = vmul.f32 %v2074_v57, %v635_v10  ;;  %v387_v15 = vpop.f32.mrb[29].mxu0  ;;  %v637_v16 = vpop.f32.mrb[29].mxu1 }
 0x151   :  { %1141 = vst [vmem:[%s2595_s4 + $0x68] sm:$0xff] %v1041_v11  ;;  %1191 = vst [vmem:[%s2595_s4 + $0x1f8] sm:$0xff] %v1091_v12  ;;  %v942_v17 = vadd.f32 %v2079_v59, %v835_v13  ;;  %v992_v18 = vadd.f32 %v2079_v59, %v885_v14 }
 0x152   :  { %v390_v19 = vpop.f32.mrb[30].mxu0  ;;  %v640_v20 = vpop.f32.mrb[30].mxu1 }
 0x153   :  { %v1042_v21 = vmax.f32 %v942_v17, 0.0  ;;  %v1092_v22 = vmax.f32 %v992_v18, 0.0  ;;  %v836_v23 = vmul.f32 %v2074_v57, %v390_v19  ;;  %v886_v24 = vmul.f32 %v2074_v57, %v640_v20  ;;  %v392_v25 = vpop.f32.mrb[31].mxu0  ;;  %v642_v26 = vpop.f32.mrb[31].mxu1 }
 0x155   :  { %1142 = vst [vmem:[%s2595_s4 + $0x70] sm:$0xff] %v1042_v21  ;;  %1192 = vst [vmem:[%s2595_s4 + $0x200] sm:$0xff] %v1092_v22  ;;  %v943_v27 = vadd.f32 %v2079_v59, %v836_v23  ;;  %v993_v28 = vadd.f32 %v2079_v59, %v886_v24 }
 0x156   :  { %v395_v29 = vpop.f32.mrb[32].mxu0  ;;  %v645_v30 = vpop.f32.mrb[32].mxu1 }
 0x157   :  { %v1043_v31 = vmax.f32 %v943_v27, 0.0  ;;  %v1093_v32 = vmax.f32 %v993_v28, 0.0  ;;  %v837_v33 = vmul.f32 %v2074_v57, %v395_v29  ;;  %v887_v34 = vmul.f32 %v2074_v57, %v645_v30  ;;  %v397_v35 = vpop.f32.mrb[33].mxu0  ;;  %v647_v36 = vpop.f32.mrb[33].mxu1 }
 0x159   :  { %1143 = vst [vmem:[%s2595_s4 + $0x78] sm:$0xff] %v1043_v31  ;;  %1193 = vst [vmem:[%s2595_s4 + $0x208] sm:$0xff] %v1093_v32  ;;  %v944_v37 = vadd.f32 %v2079_v59, %v837_v33  ;;  %v994_v38 = vadd.f32 %v2079_v59, %v887_v34 }
 0x15a   :  { %v400_v39 = vpop.f32.mrb[34].mxu0  ;;  %v650_v40 = vpop.f32.mrb[34].mxu1 }
 0x15b   :  { %v1044_v41 = vmax.f32 %v944_v37, 0.0  ;;  %v1094_v42 = vmax.f32 %v994_v38, 0.0  ;;  %v838_v43 = vmul.f32 %v2074_v57, %v400_v39  ;;  %v888_v44 = vmul.f32 %v2074_v57, %v650_v40  ;;  %v402_v45 = vpop.f32.mrb[35].mxu0  ;;  %v652_v46 = vpop.f32.mrb[35].mxu1 }
 0x15d   :  { %1144 = vst [vmem:[%s2595_s4 + $0x80] sm:$0xff] %v1044_v41  ;;  %1194 = vst [vmem:[%s2595_s4 + $0x210] sm:$0xff] %v1094_v42  ;;  %v945_v47 = vadd.f32 %v2079_v59, %v838_v43  ;;  %v995_v48 = vadd.f32 %v2079_v59, %v888_v44 }
 0x15e   :  { %v405_v49 = vpop.f32.mrb[36].mxu0  ;;  %v655_v50 = vpop.f32.mrb[36].mxu1 }
 0x15f   :  { %v1045_v51 = vmax.f32 %v945_v47, 0.0  ;;  %v1095_v52 = vmax.f32 %v995_v48, 0.0  ;;  %v839_v53 = vmul.f32 %v2074_v57, %v405_v49  ;;  %v889_v54 = vmul.f32 %v2074_v57, %v655_v50  ;;  %v407_v55 = vpop.f32.mrb[37].mxu0  ;;  %v657_v56 = vpop.f32.mrb[37].mxu1 }
 0x161   :  { %1145 = vst [vmem:[%s2595_s4 + $0x88] sm:$0xff] %v1045_v51  ;;  %1195 = vst [vmem:[%s2595_s4 + $0x218] sm:$0xff] %v1095_v52  ;;  %v946_v58 = vadd.f32 %v2079_v59, %v839_v53  ;;  %v996_v60 = vadd.f32 %v2079_v59, %v889_v54 }
 0x162   :  { %v410_v61 = vpop.f32.mrb[38].mxu0  ;;  %v660_v62 = vpop.f32.mrb[38].mxu1 }
 0x163   :  { %v1046_v63 = vmax.f32 %v946_v58, 0.0  ;;  %v1096_v0 = vmax.f32 %v996_v60, 0.0  ;;  %v840_v1 = vmul.f32 %v2074_v57, %v410_v61  ;;  %v890_v2 = vmul.f32 %v2074_v57, %v660_v62  ;;  %v412_v3 = vpop.f32.mrb[39].mxu0  ;;  %v662_v4 = vpop.f32.mrb[39].mxu1 }
 0x165   :  { %1146 = vst [vmem:[%s2595_s4 + $0x90] sm:$0xff] %v1046_v63  ;;  %1196 = vst [vmem:[%s2595_s4 + $0x220] sm:$0xff] %v1096_v0  ;;  %v947_v5 = vadd.f32 %v2079_v59, %v840_v1  ;;  %v997_v6 = vadd.f32 %v2079_v59, %v890_v2 }
 0x166   :  { %v415_v7 = vpop.f32.mrb[40].mxu0  ;;  %v665_v8 = vpop.f32.mrb[40].mxu1 }
 0x167   :  { %v1047_v9 = vmax.f32 %v947_v5, 0.0  ;;  %v1097_v10 = vmax.f32 %v997_v6, 0.0  ;;  %v841_v11 = vmul.f32 %v2074_v57, %v415_v7  ;;  %v891_v12 = vmul.f32 %v2074_v57, %v665_v8  ;;  %v417_v13 = vpop.f32.mrb[41].mxu0  ;;  %v667_v14 = vpop.f32.mrb[41].mxu1 }
 0x169   :  { %1147 = vst [vmem:[%s2595_s4 + $0x98] sm:$0xff] %v1047_v9  ;;  %1197 = vst [vmem:[%s2595_s4 + $0x228] sm:$0xff] %v1097_v10  ;;  %v948_v15 = vadd.f32 %v2079_v59, %v841_v11  ;;  %v998_v16 = vadd.f32 %v2079_v59, %v891_v12 }
 0x16a   :  { %v420_v17 = vpop.f32.mrb[42].mxu0  ;;  %v670_v18 = vpop.f32.mrb[42].mxu1 }
 0x16b   :  { %v1048_v19 = vmax.f32 %v948_v15, 0.0  ;;  %v1098_v20 = vmax.f32 %v998_v16, 0.0  ;;  %v842_v21 = vmul.f32 %v2074_v57, %v420_v17  ;;  %v892_v22 = vmul.f32 %v2074_v57, %v670_v18  ;;  %v422_v23 = vpop.f32.mrb[43].mxu0  ;;  %v672_v24 = vpop.f32.mrb[43].mxu1 }
 0x16d   :  { %1148 = vst [vmem:[%s2595_s4 + $0xa0] sm:$0xff] %v1048_v19  ;;  %1198 = vst [vmem:[%s2595_s4 + $0x230] sm:$0xff] %v1098_v20  ;;  %v949_v25 = vadd.f32 %v2079_v59, %v842_v21  ;;  %v999_v26 = vadd.f32 %v2079_v59, %v892_v22 }
 0x16e   :  { %v425_v27 = vpop.f32.mrb[44].mxu0  ;;  %v675_v28 = vpop.f32.mrb[44].mxu1 }
 0x16f   :  { %v1049_v29 = vmax.f32 %v949_v25, 0.0  ;;  %v1099_v30 = vmax.f32 %v999_v26, 0.0  ;;  %v843_v31 = vmul.f32 %v2074_v57, %v425_v27  ;;  %v893_v32 = vmul.f32 %v2074_v57, %v675_v28  ;;  %v427_v33 = vpop.f32.mrb[45].mxu0  ;;  %v677_v34 = vpop.f32.mrb[45].mxu1 }
 0x171   :  { %1149 = vst [vmem:[%s2595_s4 + $0xa8] sm:$0xff] %v1049_v29  ;;  %1199 = vst [vmem:[%s2595_s4 + $0x238] sm:$0xff] %v1099_v30  ;;  %v950_v35 = vadd.f32 %v2079_v59, %v843_v31  ;;  %v1000_v36 = vadd.f32 %v2079_v59, %v893_v32 }
 0x172   :  { %v430_v37 = vpop.f32.mrb[46].mxu0  ;;  %v680_v38 = vpop.f32.mrb[46].mxu1 }
 0x173   :  { %v1050_v39 = vmax.f32 %v950_v35, 0.0  ;;  %v1100_v40 = vmax.f32 %v1000_v36, 0.0  ;;  %v844_v41 = vmul.f32 %v2074_v57, %v430_v37  ;;  %v894_v42 = vmul.f32 %v2074_v57, %v680_v38  ;;  %v432_v43 = vpop.f32.mrb[47].mxu0  ;;  %v682_v44 = vpop.f32.mrb[47].mxu1 }
 0x175   :  { %1150 = vst [vmem:[%s2595_s4 + $0xb0] sm:$0xff] %v1050_v39  ;;  %1200 = vst [vmem:[%s2595_s4 + $0x240] sm:$0xff] %v1100_v40  ;;  %v951_v45 = vadd.f32 %v2079_v59, %v844_v41  ;;  %v1001_v46 = vadd.f32 %v2079_v59, %v894_v42 }
 0x176   :  { %v435_v47 = vpop.f32.mrb[48].mxu0  ;;  %v685_v48 = vpop.f32.mrb[48].mxu1 }
 0x177   :  { %v1051_v49 = vmax.f32 %v951_v45, 0.0  ;;  %v1101_v50 = vmax.f32 %v1001_v46, 0.0  ;;  %v845_v51 = vmul.f32 %v2074_v57, %v435_v47  ;;  %v895_v52 = vmul.f32 %v2074_v57, %v685_v48  ;;  %v437_v53 = vpop.f32.mrb[49].mxu0  ;;  %v687_v54 = vpop.f32.mrb[49].mxu1 }
 0x179   :  { %1151 = vst [vmem:[%s2595_s4 + $0xb8] sm:$0xff] %v1051_v49  ;;  %1201 = vst [vmem:[%s2595_s4 + $0x248] sm:$0xff] %v1101_v50  ;;  %v952_v55 = vadd.f32 %v2079_v59, %v845_v51  ;;  %v1002_v56 = vadd.f32 %v2079_v59, %v895_v52 }
 0x17a   :  { %v440_v58 = vpop.f32.mrb[50].mxu0  ;;  %v690_v60 = vpop.f32.mrb[50].mxu1 }
 0x17b   :  { %v1052_v61 = vmax.f32 %v952_v55, 0.0  ;;  %v1102_v62 = vmax.f32 %v1002_v56, 0.0  ;;  %v846_v63 = vmul.f32 %v2074_v57, %v440_v58  ;;  %v896_v0 = vmul.f32 %v2074_v57, %v690_v60  ;;  %v442_v1 = vpop.f32.mrb[51].mxu0  ;;  %v692_v2 = vpop.f32.mrb[51].mxu1 }
 0x17d   :  { %1152 = vst [vmem:[%s2595_s4 + $0xc0] sm:$0xff] %v1052_v61  ;;  %1202 = vst [vmem:[%s2595_s4 + $0x250] sm:$0xff] %v1102_v62  ;;  %v953_v3 = vadd.f32 %v2079_v59, %v846_v63  ;;  %v1003_v4 = vadd.f32 %v2079_v59, %v896_v0 }
 0x17e   :  { %v445_v5 = vpop.f32.mrb[52].mxu0  ;;  %v695_v6 = vpop.f32.mrb[52].mxu1 }
 0x17f   :  { %v1053_v7 = vmax.f32 %v953_v3, 0.0  ;;  %v1103_v8 = vmax.f32 %v1003_v4, 0.0  ;;  %v847_v9 = vmul.f32 %v2074_v57, %v445_v5  ;;  %v897_v10 = vmul.f32 %v2074_v57, %v695_v6  ;;  %v447_v11 = vpop.f32.mrb[53].mxu0  ;;  %v697_v12 = vpop.f32.mrb[53].mxu1 }
 0x181   :  { %1153 = vst [vmem:[%s2595_s4 + $0xc8] sm:$0xff] %v1053_v7  ;;  %1203 = vst [vmem:[%s2595_s4 + $0x258] sm:$0xff] %v1103_v8  ;;  %v954_v13 = vadd.f32 %v2079_v59, %v847_v9  ;;  %v1004_v14 = vadd.f32 %v2079_v59, %v897_v10 }
 0x182   :  { %v450_v15 = vpop.f32.mrb[54].mxu0  ;;  %v700_v16 = vpop.f32.mrb[54].mxu1 }
 0x183   :  { %v1054_v17 = vmax.f32 %v954_v13, 0.0  ;;  %v1104_v18 = vmax.f32 %v1004_v14, 0.0  ;;  %v848_v19 = vmul.f32 %v2074_v57, %v450_v15  ;;  %v898_v20 = vmul.f32 %v2074_v57, %v700_v16  ;;  %v452_v21 = vpop.f32.mrb[55].mxu0  ;;  %v702_v22 = vpop.f32.mrb[55].mxu1 }
 0x185   :  { %1154 = vst [vmem:[%s2595_s4 + $0xd0] sm:$0xff] %v1054_v17  ;;  %1204 = vst [vmem:[%s2595_s4 + $0x260] sm:$0xff] %v1104_v18  ;;  %v955_v23 = vadd.f32 %v2079_v59, %v848_v19  ;;  %v1005_v24 = vadd.f32 %v2079_v59, %v898_v20 }
 0x186   :  { %v455_v25 = vpop.f32.mrb[56].mxu0  ;;  %v705_v26 = vpop.f32.mrb[56].mxu1 }
 0x187   :  { %v1055_v27 = vmax.f32 %v955_v23, 0.0  ;;  %v1105_v28 = vmax.f32 %v1005_v24, 0.0  ;;  %v849_v29 = vmul.f32 %v2074_v57, %v455_v25  ;;  %v899_v30 = vmul.f32 %v2074_v57, %v705_v26  ;;  %v457_v31 = vpop.f32.mrb[57].mxu0  ;;  %v707_v32 = vpop.f32.mrb[57].mxu1 }
 0x189   :  { %1155 = vst [vmem:[%s2595_s4 + $0xd8] sm:$0xff] %v1055_v27  ;;  %1205 = vst [vmem:[%s2595_s4 + $0x268] sm:$0xff] %v1105_v28  ;;  %v956_v33 = vadd.f32 %v2079_v59, %v849_v29  ;;  %v1006_v34 = vadd.f32 %v2079_v59, %v899_v30 }
 0x18a   :  { %v460_v35 = vpop.f32.mrb[58].mxu0  ;;  %v710_v36 = vpop.f32.mrb[58].mxu1 }
 0x18b   :  { %v1056_v37 = vmax.f32 %v956_v33, 0.0  ;;  %v1106_v38 = vmax.f32 %v1006_v34, 0.0  ;;  %v850_v39 = vmul.f32 %v2074_v57, %v460_v35  ;;  %v900_v40 = vmul.f32 %v2074_v57, %v710_v36  ;;  %v462_v41 = vpop.f32.mrb[59].mxu0  ;;  %v712_v42 = vpop.f32.mrb[59].mxu1 }
 0x18d   :  { %1156 = vst [vmem:[%s2595_s4 + $0xe0] sm:$0xff] %v1056_v37  ;;  %1206 = vst [vmem:[%s2595_s4 + $0x270] sm:$0xff] %v1106_v38  ;;  %v957_v43 = vadd.f32 %v2079_v59, %v850_v39  ;;  %v1007_v44 = vadd.f32 %v2079_v59, %v900_v40 }
 0x18e   :  { %v465_v45 = vpop.f32.mrb[60].mxu0  ;;  %v715_v46 = vpop.f32.mrb[60].mxu1 }
 0x18f   :  { %v1057_v47 = vmax.f32 %v957_v43, 0.0  ;;  %v1107_v48 = vmax.f32 %v1007_v44, 0.0  ;;  %v851_v49 = vmul.f32 %v2074_v57, %v465_v45  ;;  %v901_v50 = vmul.f32 %v2074_v57, %v715_v46  ;;  %v467_v51 = vpop.f32.mrb[61].mxu0  ;;  %v717_v52 = vpop.f32.mrb[61].mxu1 }
 0x191   :  { %1157 = vst [vmem:[%s2595_s4 + $0xe8] sm:$0xff] %v1057_v47  ;;  %1207 = vst [vmem:[%s2595_s4 + $0x278] sm:$0xff] %v1107_v48  ;;  %v958_v53 = vadd.f32 %v2079_v59, %v851_v49  ;;  %v1008_v54 = vadd.f32 %v2079_v59, %v901_v50 }
 0x192   :  { %v470_v55 = vpop.f32.mrb[62].mxu0  ;;  %v720_v56 = vpop.f32.mrb[62].mxu1 }
 0x193   :  { %v1058_v58 = vmax.f32 %v958_v53, 0.0  ;;  %v1108_v60 = vmax.f32 %v1008_v54, 0.0  ;;  %v852_v61 = vmul.f32 %v2074_v57, %v470_v55  ;;  %v902_v62 = vmul.f32 %v2074_v57, %v720_v56  ;;  %v472_v63 = vpop.f32.mrb[63].mxu0  ;;  %v722_v0 = vpop.f32.mrb[63].mxu1 }
 0x195   :  { %1158 = vst [vmem:[%s2595_s4 + $0xf0] sm:$0xff] %v1058_v58  ;;  %1208 = vst [vmem:[%s2595_s4 + $0x280] sm:$0xff] %v1108_v60  ;;  %v959_v1 = vadd.f32 %v2079_v59, %v852_v61  ;;  %v1009_v2 = vadd.f32 %v2079_v59, %v902_v62 }
 0x196   :  { %v475_v3 = vpop.f32.mrb[64].mxu0  ;;  %v725_v4 = vpop.f32.mrb[64].mxu1 }
 0x197   :  { %v1059_v5 = vmax.f32 %v959_v1, 0.0  ;;  %v1109_v6 = vmax.f32 %v1009_v2, 0.0  ;;  %v853_v7 = vmul.f32 %v2074_v57, %v475_v3  ;;  %v903_v8 = vmul.f32 %v2074_v57, %v725_v4  ;;  %v477_v9 = vpop.f32.mrb[65].mxu0  ;;  %v727_v10 = vpop.f32.mrb[65].mxu1 }
 0x199   :  { %1159 = vst [vmem:[%s2595_s4 + $0xf8] sm:$0xff] %v1059_v5  ;;  %1209 = vst [vmem:[%s2595_s4 + $0x288] sm:$0xff] %v1109_v6  ;;  %v960_v11 = vadd.f32 %v2079_v59, %v853_v7  ;;  %v1010_v12 = vadd.f32 %v2079_v59, %v903_v8 }
 0x19a   :  { %v480_v13 = vpop.f32.mrb[66].mxu0  ;;  %v730_v14 = vpop.f32.mrb[66].mxu1 }
 0x19b   :  { %v1060_v15 = vmax.f32 %v960_v11, 0.0  ;;  %v1110_v16 = vmax.f32 %v1010_v12, 0.0  ;;  %v854_v17 = vmul.f32 %v2074_v57, %v480_v13  ;;  %v904_v18 = vmul.f32 %v2074_v57, %v730_v14  ;;  %v482_v19 = vpop.f32.mrb[67].mxu0  ;;  %v732_v20 = vpop.f32.mrb[67].mxu1 }
 0x19d   :  { %1160 = vst [vmem:[%s2595_s4 + $0x100] sm:$0xff] %v1060_v15  ;;  %1210 = vst [vmem:[%s2595_s4 + $0x290] sm:$0xff] %v1110_v16  ;;  %v961_v21 = vadd.f32 %v2079_v59, %v854_v17  ;;  %v1011_v22 = vadd.f32 %v2079_v59, %v904_v18 }
 0x19e   :  { %v485_v23 = vpop.f32.mrb[68].mxu0  ;;  %v735_v24 = vpop.f32.mrb[68].mxu1 }
 0x19f   :  { %v1061_v25 = vmax.f32 %v961_v21, 0.0  ;;  %v1111_v26 = vmax.f32 %v1011_v22, 0.0  ;;  %v855_v27 = vmul.f32 %v2074_v57, %v485_v23  ;;  %v905_v28 = vmul.f32 %v2074_v57, %v735_v24  ;;  %v487_v29 = vpop.f32.mrb[69].mxu0  ;;  %v737_v30 = vpop.f32.mrb[69].mxu1 }
 0x1a1   :  { %1161 = vst [vmem:[%s2595_s4 + $0x108] sm:$0xff] %v1061_v25  ;;  %1211 = vst [vmem:[%s2595_s4 + $0x298] sm:$0xff] %v1111_v26  ;;  %v962_v31 = vadd.f32 %v2079_v59, %v855_v27  ;;  %v1012_v32 = vadd.f32 %v2079_v59, %v905_v28 }
 0x1a2   :  { %v490_v33 = vpop.f32.mrb[70].mxu0  ;;  %v740_v34 = vpop.f32.mrb[70].mxu1 }
 0x1a3   :  { %v1062_v35 = vmax.f32 %v962_v31, 0.0  ;;  %v1112_v36 = vmax.f32 %v1012_v32, 0.0  ;;  %v856_v37 = vmul.f32 %v2074_v57, %v490_v33  ;;  %v906_v38 = vmul.f32 %v2074_v57, %v740_v34  ;;  %v492_v39 = vpop.f32.mrb[71].mxu0  ;;  %v742_v40 = vpop.f32.mrb[71].mxu1 }
 0x1a5   :  { %1162 = vst [vmem:[%s2595_s4 + $0x110] sm:$0xff] %v1062_v35  ;;  %1212 = vst [vmem:[%s2595_s4 + $0x2a0] sm:$0xff] %v1112_v36  ;;  %v963_v41 = vadd.f32 %v2079_v59, %v856_v37  ;;  %v1013_v42 = vadd.f32 %v2079_v59, %v906_v38 }
 0x1a6   :  { %v495_v43 = vpop.f32.mrb[72].mxu0  ;;  %v745_v44 = vpop.f32.mrb[72].mxu1 }
 0x1a7   :  { %v1063_v45 = vmax.f32 %v963_v41, 0.0  ;;  %v1113_v46 = vmax.f32 %v1013_v42, 0.0  ;;  %v857_v47 = vmul.f32 %v2074_v57, %v495_v43  ;;  %v907_v48 = vmul.f32 %v2074_v57, %v745_v44  ;;  %v497_v49 = vpop.f32.mrb[73].mxu0  ;;  %v747_v50 = vpop.f32.mrb[73].mxu1 }
 0x1a8   :  { %v2507_v50 = vld [vmem:[%s2594_s3] ss:$0 sm:$0xff] }
 0x1a9   :  { %1163 = vst [vmem:[%s2595_s4 + $0x118] sm:$0xff] %v1063_v45  ;;  %1213 = vst [vmem:[%s2595_s4 + $0x2a8] sm:$0xff] %v1113_v46  ;;  %v964_v51 = vadd.f32 %v2079_v59, %v857_v47  ;;  %v1014_v52 = vadd.f32 %v2079_v59, %v907_v48 }
 0x1aa   :  { %v500_v53 = vpop.f32.mrb[74].mxu0  ;;  %v750_v54 = vpop.f32.mrb[74].mxu1 }
 0x1ab   :  { %v1064_v55 = vmax.f32 %v964_v51, 0.0  ;;  %v1114_v56 = vmax.f32 %v1014_v52, 0.0  ;;  %v858_v58 = vmul.f32 %v2074_v57, %v500_v53  ;;  %v908_v60 = vmul.f32 %v2074_v57, %v750_v54  ;;  %v502_v61 = vpop.f32.mrb[75].mxu0  ;;  %v752_v62 = vpop.f32.mrb[75].mxu1 }
 0x1ad   :  { %1164 = vst [vmem:[%s2595_s4 + $0x120] sm:$0xff] %v1064_v55  ;;  %1214 = vst [vmem:[%s2595_s4 + $0x2b0] sm:$0xff] %v1114_v56  ;;  %v965_v63 = vadd.f32 %v2079_v59, %v858_v58  ;;  %v1015_v0 = vadd.f32 %v2079_v59, %v908_v60  ;;  %v2513_v55 = vld [vmem:[%s2593_s2] ss:$0 sm:$0xff] }
 0x1ae   :  { %v505_v1 = vpop.f32.mrb[76].mxu0  ;;  %v755_v2 = vpop.f32.mrb[76].mxu1 }
 0x1af   :  { %v1065_v3 = vmax.f32 %v965_v63, 0.0  ;;  %v1115_v4 = vmax.f32 %v1015_v0, 0.0  ;;  %v859_v5 = vmul.f32 %v2074_v57, %v505_v1  ;;  %v909_v6 = vmul.f32 %v2074_v57, %v755_v2  ;;  %v507_v7 = vpop.f32.mrb[77].mxu0  ;;  %v757_v8 = vpop.f32.mrb[77].mxu1 }
 0x1b1   :  { %1165 = vst [vmem:[%s2595_s4 + $0x128] sm:$0xff] %v1065_v3  ;;  %1215 = vst [vmem:[%s2595_s4 + $0x2b8] sm:$0xff] %v1115_v4  ;;  %v966_v9 = vadd.f32 %v2079_v59, %v859_v5  ;;  %v1016_v10 = vadd.f32 %v2079_v59, %v909_v6 }
 0x1b2   :  { %v510_v11 = vpop.f32.mrb[78].mxu0  ;;  %v760_v12 = vpop.f32.mrb[78].mxu1 }
 0x1b3   :  { %v1066_v13 = vmax.f32 %v966_v9, 0.0  ;;  %v1116_v14 = vmax.f32 %v1016_v10, 0.0  ;;  %v860_v15 = vmul.f32 %v2074_v57, %v510_v11  ;;  %v910_v16 = vmul.f32 %v2074_v57, %v760_v12  ;;  %v512_v17 = vpop.f32.mrb[79].mxu0  ;;  %v762_v18 = vpop.f32.mrb[79].mxu1 }
 0x1b5   :  { %1166 = vst [vmem:[%s2595_s4 + $0x130] sm:$0xff] %v1066_v13  ;;  %1216 = vst [vmem:[%s2595_s4 + $0x2c0] sm:$0xff] %v1116_v14  ;;  %v967_v19 = vadd.f32 %v2079_v59, %v860_v15  ;;  %v1017_v20 = vadd.f32 %v2079_v59, %v910_v16 }
 0x1b6   :  { %v515_v21 = vpop.f32.mrb[80].mxu0  ;;  %v765_v22 = vpop.f32.mrb[80].mxu1 }
 0x1b7   :  { %v1067_v23 = vmax.f32 %v967_v19, 0.0  ;;  %v1117_v24 = vmax.f32 %v1017_v20, 0.0  ;;  %v861_v25 = vmul.f32 %v2074_v57, %v515_v21  ;;  %v911_v26 = vmul.f32 %v2074_v57, %v765_v22  ;;  %v517_v27 = vpop.f32.mrb[81].mxu0  ;;  %v767_v28 = vpop.f32.mrb[81].mxu1 }
 0x1b9   :  { %1167 = vst [vmem:[%s2595_s4 + $0x138] sm:$0xff] %v1067_v23  ;;  %1217 = vst [vmem:[%s2595_s4 + $0x2c8] sm:$0xff] %v1117_v24  ;;  %v968_v29 = vadd.f32 %v2079_v59, %v861_v25  ;;  %v1018_v30 = vadd.f32 %v2079_v59, %v911_v26 }
 0x1ba   :  { %v520_v31 = vpop.f32.mrb[82].mxu0  ;;  %v770_v32 = vpop.f32.mrb[82].mxu1 }
 0x1bb   :  { %v1068_v33 = vmax.f32 %v968_v29, 0.0  ;;  %v1118_v34 = vmax.f32 %v1018_v30, 0.0  ;;  %v862_v35 = vmul.f32 %v2074_v57, %v520_v31  ;;  %v912_v36 = vmul.f32 %v2074_v57, %v770_v32  ;;  %v522_v37 = vpop.f32.mrb[83].mxu0  ;;  %v772_v38 = vpop.f32.mrb[83].mxu1 }
 0x1bd   :  { %1168 = vst [vmem:[%s2595_s4 + $0x140] sm:$0xff] %v1068_v33  ;;  %1218 = vst [vmem:[%s2595_s4 + $0x2d0] sm:$0xff] %v1118_v34  ;;  %v969_v39 = vadd.f32 %v2079_v59, %v862_v35  ;;  %v1019_v40 = vadd.f32 %v2079_v59, %v912_v36 }
 0x1be   :  { %v525_v41 = vpop.f32.mrb[84].mxu0  ;;  %v775_v42 = vpop.f32.mrb[84].mxu1 }
 0x1bf   :  { %v1069_v43 = vmax.f32 %v969_v39, 0.0  ;;  %v1119_v44 = vmax.f32 %v1019_v40, 0.0  ;;  %v863_v45 = vmul.f32 %v2074_v57, %v525_v41  ;;  %v913_v46 = vmul.f32 %v2074_v57, %v775_v42  ;;  %v527_v47 = vpop.f32.mrb[85].mxu0  ;;  %v777_v48 = vpop.f32.mrb[85].mxu1 }
 0x1c1   :  { %1169 = vst [vmem:[%s2595_s4 + $0x148] sm:$0xff] %v1069_v43  ;;  %1219 = vst [vmem:[%s2595_s4 + $0x2d8] sm:$0xff] %v1119_v44  ;;  %v970_v49 = vadd.f32 %v2079_v59, %v863_v45  ;;  %v1020_v51 = vadd.f32 %v2507_v50, %v913_v46 }
 0x1c2   :  { %v530_v57 = vpop.f32.mrb[86].mxu0  ;;  %v780_v52 = vpop.f32.mrb[86].mxu1 }
 0x1c3   :  { %v1070_v53 = vmax.f32 %v970_v49, 0.0  ;;  %v1120_v54 = vmax.f32 %v1020_v51, 0.0  ;;  %v864_v56 = vmul.f32 %v2513_v55, %v530_v57  ;;  %v914_v59 = vmul.f32 %v2513_v55, %v780_v52  ;;  %v532_v58 = vpop.f32.mrb[87].mxu0  ;;  %v782_v60 = vpop.f32.mrb[87].mxu1 }
 0x1c5   :  { %1170 = vst [vmem:[%s2595_s4 + $0x150] sm:$0xff] %v1070_v53  ;;  %1220 = vst [vmem:[%s2595_s4 + $0x2e0] sm:$0xff] %v1120_v54  ;;  %v971_v61 = vadd.f32 %v2507_v50, %v864_v56  ;;  %v1021_v62 = vadd.f32 %v2507_v50, %v914_v59 }
 0x1c6   :  { %v535_v63 = vpop.f32.mrb[88].mxu0  ;;  %v785_v0 = vpop.f32.mrb[88].mxu1 }
 0x1c7   :  { %v1071_v1 = vmax.f32 %v971_v61, 0.0  ;;  %v1121_v2 = vmax.f32 %v1021_v62, 0.0  ;;  %v865_v3 = vmul.f32 %v2513_v55, %v535_v63  ;;  %v915_v4 = vmul.f32 %v2513_v55, %v785_v0  ;;  %v537_v5 = vpop.f32.mrb[89].mxu0  ;;  %v787_v6 = vpop.f32.mrb[89].mxu1 }
 0x1c9   :  { %1171 = vst [vmem:[%s2595_s4 + $0x158] sm:$0xff] %v1071_v1  ;;  %1221 = vst [vmem:[%s2595_s4 + $0x2e8] sm:$0xff] %v1121_v2  ;;  %v972_v7 = vadd.f32 %v2507_v50, %v865_v3  ;;  %v1022_v8 = vadd.f32 %v2507_v50, %v915_v4 }
 0x1ca   :  { %v540_v9 = vpop.f32.mrb[90].mxu0  ;;  %v790_v10 = vpop.f32.mrb[90].mxu1 }
 0x1cb   :  { %v1072_v11 = vmax.f32 %v972_v7, 0.0  ;;  %v1122_v12 = vmax.f32 %v1022_v8, 0.0  ;;  %v866_v13 = vmul.f32 %v2513_v55, %v540_v9  ;;  %v916_v14 = vmul.f32 %v2513_v55, %v790_v10  ;;  %v542_v15 = vpop.f32.mrb[91].mxu0  ;;  %v792_v16 = vpop.f32.mrb[91].mxu1 }
 0x1cd   :  { %1172 = vst [vmem:[%s2595_s4 + $0x160] sm:$0xff] %v1072_v11  ;;  %1222 = vst [vmem:[%s2595_s4 + $0x2f0] sm:$0xff] %v1122_v12  ;;  %v973_v17 = vadd.f32 %v2507_v50, %v866_v13  ;;  %v1023_v18 = vadd.f32 %v2507_v50, %v916_v14 }
 0x1ce   :  { %v545_v19 = vpop.f32.mrb[92].mxu0  ;;  %v795_v20 = vpop.f32.mrb[92].mxu1 }
 0x1cf   :  { %v1073_v21 = vmax.f32 %v973_v17, 0.0  ;;  %v1123_v22 = vmax.f32 %v1023_v18, 0.0  ;;  %v867_v23 = vmul.f32 %v2513_v55, %v545_v19  ;;  %v917_v24 = vmul.f32 %v2513_v55, %v795_v20  ;;  %v547_v25 = vpop.f32.mrb[93].mxu0  ;;  %v797_v26 = vpop.f32.mrb[93].mxu1 }
 0x1d1   :  { %1173 = vst [vmem:[%s2595_s4 + $0x168] sm:$0xff] %v1073_v21  ;;  %1223 = vst [vmem:[%s2595_s4 + $0x2f8] sm:$0xff] %v1123_v22  ;;  %v974_v27 = vadd.f32 %v2507_v50, %v867_v23  ;;  %v1024_v28 = vadd.f32 %v2507_v50, %v917_v24 }
 0x1d2   :  { %v550_v29 = vpop.f32.mrb[94].mxu0  ;;  %v800_v30 = vpop.f32.mrb[94].mxu1 }
 0x1d3   :  { %v1074_v31 = vmax.f32 %v974_v27, 0.0  ;;  %v1124_v32 = vmax.f32 %v1024_v28, 0.0  ;;  %v868_v33 = vmul.f32 %v2513_v55, %v550_v29  ;;  %v918_v34 = vmul.f32 %v2513_v55, %v800_v30  ;;  %v552_v35 = vpop.f32.mrb[95].mxu0  ;;  %v802_v36 = vpop.f32.mrb[95].mxu1 }
 0x1d5   :  { %1174 = vst [vmem:[%s2595_s4 + $0x170] sm:$0xff] %v1074_v31  ;;  %1224 = vst [vmem:[%s2595_s4 + $0x300] sm:$0xff] %v1124_v32  ;;  %v975_v37 = vadd.f32 %v2507_v50, %v868_v33  ;;  %v1025_v38 = vadd.f32 %v2507_v50, %v918_v34 }
 0x1d6   :  { %v555_v39 = vpop.f32.mrb[96].mxu0  ;;  %v805_v40 = vpop.f32.mrb[96].mxu1 }
 0x1d7   :  { %v1075_v41 = vmax.f32 %v975_v37, 0.0  ;;  %v1125_v42 = vmax.f32 %v1025_v38, 0.0  ;;  %v869_v43 = vmul.f32 %v2513_v55, %v555_v39  ;;  %v919_v44 = vmul.f32 %v2513_v55, %v805_v40  ;;  %v557_v45 = vpop.f32.mrb[97].mxu0  ;;  %v807_v46 = vpop.f32.mrb[97].mxu1 }
 0x1d9   :  { %1175 = vst [vmem:[%s2595_s4 + $0x178] sm:$0xff] %v1075_v41  ;;  %1225 = vst [vmem:[%s2595_s4 + $0x308] sm:$0xff] %v1125_v42  ;;  %v976_v47 = vadd.f32 %v2507_v50, %v869_v43  ;;  %v1026_v48 = vadd.f32 %v2507_v50, %v919_v44 }
 0x1da   :  { %v560_v49 = vpop.f32.mrb[98].mxu0  ;;  %v810_v51 = vpop.f32.mrb[98].mxu1 }
 0x1db   :  { %v1076_v57 = vmax.f32 %v976_v47, 0.0  ;;  %v1126_v52 = vmax.f32 %v1026_v48, 0.0  ;;  %v870_v53 = vmul.f32 %v2513_v55, %v560_v49  ;;  %v920_v54 = vmul.f32 %v2513_v55, %v810_v51  ;;  %v562_v56 = vpop.f32.mrb[99].mxu0  ;;  %v812_v59 = vpop.f32.mrb[99].mxu1 }
 0x1dd   :  { %1176 = vst [vmem:[%s2595_s4 + $0x180] sm:$0xff] %v1076_v57  ;;  %1226 = vst [vmem:[%s2595_s4 + $0x310] sm:$0xff] %v1126_v52  ;;  %v977_v58 = vadd.f32 %v2507_v50, %v870_v53  ;;  %v1027_v60 = vadd.f32 %v2507_v50, %v920_v54 }
 0x1df   :  { %v1077_v61 = vmax.f32 %v977_v58, 0.0  ;;  %v1127_v62 = vmax.f32 %v1027_v60, 0.0 }
 0x1e1   :  { %1177 = vst [vmem:[%s2595_s4 + $0x188] sm:$0xff] %v1077_v61  ;;  %1227 = vst [vmem:[%s2595_s4 + $0x318] sm:$0xff] %v1127_v62 }

// kernel: dqn_forward.4
= control target key start
LH: loop header
LB: loop body
LE: loop exit
PB: predicated region body
PF: predicated region fallthrough
CT: control target
= control target key end

     0   :  { %v727_v0 = vmov 0.0|0.0   ;;  %s1344_s1 = inlined_call_operand.vmem [shape: f32[512,128], index: 1, kind: input, shape index: {}]   ;;  %s1345_s0 = inlined_call_operand.vmem [shape: f32[168,512], index: 0, kind: input, shape index: {}]   ;;  %s1346_s2 = inlined_call_operand.vmem [shape: f32[1,128], index: 2, kind: input, shape index: {}]   ;;  %s1347_s3 = inlined_call_operand.vmem [shape: f32[1,128], index: 3, kind: input, shape index: {}]   ;;  %s1348_s4 = inlined_call_operand.vmem [shape: f32[168,128], index: 4, kind: output, shape index: {}]  }
   0x1   :  { %609 = vmatprep.subr.bf16.mxu1 %v727_v0  ;;  %657 = vmatprep.subr.bf16.mxu0 %v727_v0  ;;  %v101_v1 = vld [vmem:[%s1344_s1] sm:$0xff]  ;;  %v102_v2 = vld [vmem:[%s1344_s1 + $0x8] sm:$0xff]  ;;  %v103_v6 = vld [vmem:[%s1344_s1 + $0x10] sm:$0xff] }
   0x2   :  { %v133_v3 = vld [vmem:[%s1344_s1 + $0x100] sm:$0xff]  ;;  %v610_v4 = vpack.c.bf16 %v102_v2, %v101_v1  ;;  %v134_v5 = vld [vmem:[%s1344_s1 + $0x108] sm:$0xff]  ;;  %v104_v7 = vld [vmem:[%s1344_s1 + $0x18] sm:$0xff] }
   0x3   :  { %v658_v8 = vpack.c.bf16 %v134_v5, %v133_v3  ;;  %v135_v9 = vld [vmem:[%s1344_s1 + $0x110] sm:$0xff]  ;;  %v136_v10 = vld [vmem:[%s1344_s1 + $0x118] sm:$0xff]  ;;  %v613_v11 = vpack.c.bf16 %v104_v7, %v103_v6  ;;  %v105_v13 = vld [vmem:[%s1344_s1 + $0x20] sm:$0xff] }
   0x4   :  { %611 = vmatpush1.bf16.msra.mxu1 %v610_v4  ;;  %v661_v12 = vpack.c.bf16 %v136_v10, %v135_v9  ;;  %v106_v14 = vld [vmem:[%s1344_s1 + $0x28] sm:$0xff]  ;;  %v137_v15 = vld [vmem:[%s1344_s1 + $0x120] sm:$0xff]  ;;  %v107_v19 = vld [vmem:[%s1344_s1 + $0x30] sm:$0xff] }
   0x5   :  { %659 = vmatpush1.bf16.msra.mxu0 %v658_v8  ;;  %612 = vmatprep.subr.bf16.mxu1 %v727_v0  ;;  %v138_v16 = vld [vmem:[%s1344_s1 + $0x128] sm:$0xff]  ;;  %v616_v17 = vpack.c.bf16 %v106_v14, %v105_v13  ;;  %v108_v20 = vld [vmem:[%s1344_s1 + $0x38] sm:$0xff]  ;;  %v139_v21 = vld [vmem:[%s1344_s1 + $0x130] sm:$0xff] }
   0x6   :  { %660 = vmatprep.subr.bf16.mxu0 %v727_v0  ;;  %v664_v18 = vpack.c.bf16 %v138_v16, %v137_v15  ;;  %v140_v22 = vld [vmem:[%s1344_s1 + $0x138] sm:$0xff]  ;;  %v619_v23 = vpack.c.bf16 %v108_v20, %v107_v19  ;;  %v109_v25 = vld [vmem:[%s1344_s1 + $0x40] sm:$0xff]  ;;  %v110_v26 = vld [vmem:[%s1344_s1 + $0x48] sm:$0xff] }
   0x7   :  { %v667_v24 = vpack.c.bf16 %v140_v22, %v139_v21  ;;  %v141_v27 = vld [vmem:[%s1344_s1 + $0x140] sm:$0xff]  ;;  %v142_v28 = vld [vmem:[%s1344_s1 + $0x148] sm:$0xff]  ;;  %v622_v29 = vpack.c.bf16 %v110_v26, %v109_v25  ;;  %v111_v31 = vld [vmem:[%s1344_s1 + $0x50] sm:$0xff] }
   0x8   :  { %614 = vmatpush1.bf16.msra.mxu1 %v613_v11  ;;  %v670_v30 = vpack.c.bf16 %v142_v28, %v141_v27  ;;  %v112_v32 = vld [vmem:[%s1344_s1 + $0x58] sm:$0xff]  ;;  %v143_v33 = vld [vmem:[%s1344_s1 + $0x150] sm:$0xff]  ;;  %v113_v37 = vld [vmem:[%s1344_s1 + $0x60] sm:$0xff] }
   0x9   :  { %662 = vmatpush1.bf16.msra.mxu0 %v661_v12  ;;  %615 = vmatprep.subr.bf16.mxu1 %v727_v0  ;;  %v144_v34 = vld [vmem:[%s1344_s1 + $0x158] sm:$0xff]  ;;  %v625_v35 = vpack.c.bf16 %v112_v32, %v111_v31  ;;  %v114_v38 = vld [vmem:[%s1344_s1 + $0x68] sm:$0xff]  ;;  %v145_v39 = vld [vmem:[%s1344_s1 + $0x160] sm:$0xff] }
   0xa   :  { %663 = vmatprep.subr.bf16.mxu0 %v727_v0  ;;  %v673_v36 = vpack.c.bf16 %v144_v34, %v143_v33  ;;  %v146_v40 = vld [vmem:[%s1344_s1 + $0x168] sm:$0xff]  ;;  %v20_v42 = vld [vmem:[%s1345_s0 + $0x18] sm:$0xff]  ;;  %v628_v43 = vpack.c.bf16 %v114_v38, %v113_v37  ;;  %v115_v45 = vld [vmem:[%s1344_s1 + $0x70] sm:$0xff] }
   0xb   :  { %v18_v41 = vld [vmem:[%s1345_s0 + $0x8] sm:$0xff]  ;;  %399 = vmatprep.mubr.f32.mxu0 %v20_v42  ;;  %v676_v44 = vpack.c.bf16 %v146_v40, %v145_v39  ;;  %v116_v46 = vld [vmem:[%s1344_s1 + $0x78] sm:$0xff]  ;;  %v147_v47 = vld [vmem:[%s1344_s1 + $0x170] sm:$0xff] }
   0xc   :  { %617 = vmatpush1.bf16.msra.mxu1 %v616_v17  ;;  %229 = vmatprep.mubr.f32.mxu1 %v18_v41  ;;  %v148_v48 = vld [vmem:[%s1344_s1 + $0x178] sm:$0xff]  ;;  %v631_v49 = vpack.c.bf16 %v116_v46, %v115_v45  ;;  %v117_v51 = vld [vmem:[%s1344_s1 + $0x80] sm:$0xff]  ;;  %v118_v52 = vld [vmem:[%s1344_s1 + $0x88] sm:$0xff] }
   0xd   :  { %665 = vmatpush1.bf16.msra.mxu0 %v664_v18  ;;  %618 = vmatprep.subr.bf16.mxu1 %v727_v0  ;;  %v679_v50 = vpack.c.bf16 %v148_v48, %v147_v47  ;;  %v149_v53 = vld [vmem:[%s1344_s1 + $0x180] sm:$0xff]  ;;  %v150_v54 = vld [vmem:[%s1344_s1 + $0x188] sm:$0xff]  ;;  %v634_v55 = vpack.c.bf16 %v118_v52, %v117_v51  ;;  %v119_v57 = vld [vmem:[%s1344_s1 + $0x90] sm:$0xff] }
   0xe   :  { %666 = vmatprep.subr.bf16.mxu0 %v727_v0  ;;  %v682_v56 = vpack.c.bf16 %v150_v54, %v149_v53  ;;  %v120_v58 = vld [vmem:[%s1344_s1 + $0x98] sm:$0xff]  ;;  %v151_v59 = vld [vmem:[%s1344_s1 + $0x190] sm:$0xff]  ;;  %v121_v63 = vld [vmem:[%s1344_s1 + $0xa0] sm:$0xff] }
   0xf   :  { %v152_v60 = vld [vmem:[%s1344_s1 + $0x198] sm:$0xff]  ;;  %v637_v61 = vpack.c.bf16 %v120_v58, %v119_v57  ;;  %v122_v1 = vld [vmem:[%s1344_s1 + $0xa8] sm:$0xff]  ;;  %v153_v2 = vld [vmem:[%s1344_s1 + $0x1a0] sm:$0xff] }
  0x10   :  { %620 = vmatpush1.bf16.msra.mxu1 %v619_v23  ;;  %v685_v62 = vpack.c.bf16 %v152_v60, %v151_v59  ;;  %v154_v3 = vld [vmem:[%s1344_s1 + $0x1a8] sm:$0xff]  ;;  %v640_v4 = vpack.c.bf16 %v122_v1, %v121_v63  ;;  %v123_v6 = vld [vmem:[%s1344_s1 + $0xb0] sm:$0xff]  ;;  %v124_v7 = vld [vmem:[%s1344_s1 + $0xb8] sm:$0xff] }
  0x11   :  { %668 = vmatpush1.bf16.msra.mxu0 %v667_v24  ;;  %621 = vmatprep.subr.bf16.mxu1 %v727_v0  ;;  %v688_v5 = vpack.c.bf16 %v154_v3, %v153_v2  ;;  %v155_v8 = vld [vmem:[%s1344_s1 + $0x1b0] sm:$0xff]  ;;  %v156_v9 = vld [vmem:[%s1344_s1 + $0x1b8] sm:$0xff]  ;;  %v643_v10 = vpack.c.bf16 %v124_v7, %v123_v6  ;;  %v125_v12 = vld [vmem:[%s1344_s1 + $0xc0] sm:$0xff] }
  0x12   :  { %669 = vmatprep.subr.bf16.mxu0 %v727_v0  ;;  %v691_v11 = vpack.c.bf16 %v156_v9, %v155_v8  ;;  %v126_v13 = vld [vmem:[%s1344_s1 + $0xc8] sm:$0xff]  ;;  %v157_v14 = vld [vmem:[%s1344_s1 + $0x1c0] sm:$0xff]  ;;  %v127_v18 = vld [vmem:[%s1344_s1 + $0xd0] sm:$0xff] }
  0x13   :  { %v158_v15 = vld [vmem:[%s1344_s1 + $0x1c8] sm:$0xff]  ;;  %v646_v16 = vpack.c.bf16 %v126_v13, %v125_v12  ;;  %v128_v19 = vld [vmem:[%s1344_s1 + $0xd8] sm:$0xff]  ;;  %v159_v20 = vld [vmem:[%s1344_s1 + $0x1d0] sm:$0xff] }
  0x14   :  { %623 = vmatpush1.bf16.msra.mxu1 %v622_v29  ;;  %v694_v17 = vpack.c.bf16 %v158_v15, %v157_v14  ;;  %v160_v21 = vld [vmem:[%s1344_s1 + $0x1d8] sm:$0xff]  ;;  %v649_v22 = vpack.c.bf16 %v128_v19, %v127_v18  ;;  %v129_v24 = vld [vmem:[%s1344_s1 + $0xe0] sm:$0xff]  ;;  %v130_v25 = vld [vmem:[%s1344_s1 + $0xe8] sm:$0xff] }
  0x15   :  { %671 = vmatpush1.bf16.msra.mxu0 %v670_v30  ;;  %624 = vmatprep.subr.bf16.mxu1 %v727_v0  ;;  %v697_v23 = vpack.c.bf16 %v160_v21, %v159_v20  ;;  %v161_v26 = vld [vmem:[%s1344_s1 + $0x1e0] sm:$0xff]  ;;  %v162_v27 = vld [vmem:[%s1344_s1 + $0x1e8] sm:$0xff]  ;;  %v652_v28 = vpack.c.bf16 %v130_v25, %v129_v24  ;;  %v131_v30 = vld [vmem:[%s1344_s1 + $0xf0] sm:$0xff] }
  0x16   :  { %672 = vmatprep.subr.bf16.mxu0 %v727_v0  ;;  %v700_v29 = vpack.c.bf16 %v162_v27, %v161_v26  ;;  %v132_v31 = vld [vmem:[%s1344_s1 + $0xf8] sm:$0xff]  ;;  %v163_v32 = vld [vmem:[%s1344_s1 + $0x1f0] sm:$0xff]  ;;  %v22_v38 = vld [vmem:[%s1345_s0 + $0x28] sm:$0xff] }
  0x17   :  { %v164_v33 = vld [vmem:[%s1344_s1 + $0x1f8] sm:$0xff]  ;;  %v655_v34 = vpack.c.bf16 %v132_v31, %v131_v30  ;;  %v19_v37 = vld [vmem:[%s1345_s0 + $0x10] sm:$0xff]  ;;  %v26_v41 = vld [vmem:[%s1345_s0 + $0x48] sm:$0xff] }
  0x18   :  { %626 = vmatpush1.bf16.msra.mxu1 %v625_v35  ;;  %v703_v35 = vpack.c.bf16 %v164_v33, %v163_v32  ;;  %v24_v39 = vld [vmem:[%s1345_s0 + $0x38] sm:$0xff]  ;;  %v23_v40 = vld [vmem:[%s1345_s0 + $0x30] sm:$0xff]  ;;  %v30_v45 = vld [vmem:[%s1345_s0 + $0x68] sm:$0xff] }
  0x19   :  { %674 = vmatpush1.bf16.msra.mxu0 %v673_v36  ;;  %627 = vmatprep.subr.bf16.mxu1 %v727_v0  ;;  %v17_v36 = vld [vmem:[%s1345_s0] sm:$0xff]  ;;  %v28_v42 = vld [vmem:[%s1345_s0 + $0x58] sm:$0xff]  ;;  %v31_v48 = vld [vmem:[%s1345_s0 + $0x70] sm:$0xff] }
  0x1a   :  { %675 = vmatprep.subr.bf16.mxu0 %v727_v0  ;;  %v32_v46 = vld [vmem:[%s1345_s0 + $0x78] sm:$0xff]  ;;  %v29_v47 = vld [vmem:[%s1345_s0 + $0x60] sm:$0xff]  ;;  %v35_v52 = vld [vmem:[%s1345_s0 + $0x90] sm:$0xff] }
  0x1b   :  { %v33_v51 = vld [vmem:[%s1345_s0 + $0x80] sm:$0xff]  ;;  %v38_v53 = vld [vmem:[%s1345_s0 + $0xa8] sm:$0xff]  ;;  %v40_v54 = vld [vmem:[%s1345_s0 + $0xb8] sm:$0xff] }
  0x1c   :  { %629 = vmatpush1.bf16.msra.mxu1 %v628_v43  ;;  %v25_v43 = vld [vmem:[%s1345_s0 + $0x40] sm:$0xff]  ;;  %v42_v57 = vld [vmem:[%s1345_s0 + $0xc8] sm:$0xff]  ;;  %v44_v58 = vld [vmem:[%s1345_s0 + $0xd8] sm:$0xff] }
  0x1d   :  { %677 = vmatpush1.bf16.msra.mxu0 %v676_v44  ;;  %630 = vmatprep.subr.bf16.mxu1 %v727_v0  ;;  %v27_v44 = vld [vmem:[%s1345_s0 + $0x50] sm:$0xff]  ;;  %v41_v59 = vld [vmem:[%s1345_s0 + $0xc0] sm:$0xff]  ;;  %v50_v2 = vld [vmem:[%s1345_s0 + $0x108] sm:$0xff] }
  0x1e   :  { %678 = vmatprep.subr.bf16.mxu0 %v727_v0  ;;  %v43_v60 = vld [vmem:[%s1345_s0 + $0xd0] sm:$0xff]  ;;  %v45_v63 = vld [vmem:[%s1345_s0 + $0xe0] sm:$0xff]  ;;  %v52_v3 = vld [vmem:[%s1345_s0 + $0x118] sm:$0xff] }
  0x1f   :  { %v47_v1 = vld [vmem:[%s1345_s0 + $0xf0] sm:$0xff]  ;;  %v54_v6 = vld [vmem:[%s1345_s0 + $0x128] sm:$0xff]  ;;  %v56_v7 = vld [vmem:[%s1345_s0 + $0x138] sm:$0xff] }
  0x20   :  { %632 = vmatpush1.bf16.msra.mxu1 %v631_v49  ;;  %v34_v49 = vld [vmem:[%s1345_s0 + $0x88] sm:$0xff]  ;;  %v53_v8 = vld [vmem:[%s1345_s0 + $0x120] sm:$0xff]  ;;  %v55_v9 = vld [vmem:[%s1345_s0 + $0x130] sm:$0xff] }
  0x21   :  { %680 = vmatpush1.bf16.msra.mxu0 %v679_v50  ;;  %633 = vmatprep.subr.bf16.mxu1 %v727_v0  ;;  %v36_v50 = vld [vmem:[%s1345_s0 + $0x98] sm:$0xff]  ;;  %v57_v12 = vld [vmem:[%s1345_s0 + $0x140] sm:$0xff]  ;;  %v59_v13 = vld [vmem:[%s1345_s0 + $0x150] sm:$0xff] }
  0x22   :  { %681 = vmatprep.subr.bf16.mxu0 %v727_v0  ;;  %v62_v14 = vld [vmem:[%s1345_s0 + $0x168] sm:$0xff]  ;;  %v64_v15 = vld [vmem:[%s1345_s0 + $0x178] sm:$0xff]  ;;  %v65_v20 = vld [vmem:[%s1345_s0 + $0x180] sm:$0xff] }
  0x23   :  { %v66_v18 = vld [vmem:[%s1345_s0 + $0x188] sm:$0xff]  ;;  %v68_v19 = vld [vmem:[%s1345_s0 + $0x198] sm:$0xff]  ;;  %v67_v21 = vld [vmem:[%s1345_s0 + $0x190] sm:$0xff] }
  0x24   :  { %635 = vmatpush1.bf16.msra.mxu1 %v634_v55  ;;  %v37_v55 = vld [vmem:[%s1345_s0 + $0xa0] sm:$0xff]  ;;  %v71_v25 = vld [vmem:[%s1345_s0 + $0x1b0] sm:$0xff]  ;;  %v74_v26 = vld [vmem:[%s1345_s0 + $0x1c8] sm:$0xff] }
  0x25   :  { %683 = vmatpush1.bf16.msra.mxu0 %v682_v56  ;;  %636 = vmatprep.subr.bf16.mxu1 %v727_v0  ;;  %v39_v56 = vld [vmem:[%s1345_s0 + $0xb0] sm:$0xff]  ;;  %v69_v24 = vld [vmem:[%s1345_s0 + $0x1a0] sm:$0xff]  ;;  %v76_v27 = vld [vmem:[%s1345_s0 + $0x1d8] sm:$0xff] }
  0x26   :  { %684 = vmatprep.subr.bf16.mxu0 %v727_v0  ;;  %v78_v30 = vld [vmem:[%s1345_s0 + $0x1e8] sm:$0xff]  ;;  %v80_v31 = vld [vmem:[%s1345_s0 + $0x1f8] sm:$0xff]  ;;  %v77_v32 = vld [vmem:[%s1345_s0 + $0x1e0] sm:$0xff] }
  0x27   :  { %v79_v33 = vld [vmem:[%s1345_s0 + $0x1f0] sm:$0xff] }
  0x28   :  { %638 = vmatpush1.bf16.msra.mxu1 %v637_v61  ;;  %v46_v61 = vld [vmem:[%s1345_s0 + $0xe8] sm:$0xff] }
  0x29   :  { %686 = vmatpush1.bf16.msra.mxu0 %v685_v62  ;;  %639 = vmatprep.subr.bf16.mxu1 %v727_v0  ;;  %v48_v62 = vld [vmem:[%s1345_s0 + $0xf8] sm:$0xff] }
  0x2a   :  { %687 = vmatprep.subr.bf16.mxu0 %v727_v0 }
  0x2c   :  { %641 = vmatpush1.bf16.msra.mxu1 %v640_v4  ;;  %v49_v4 = vld [vmem:[%s1345_s0 + $0x100] sm:$0xff] }
  0x2d   :  { %689 = vmatpush1.bf16.msra.mxu0 %v688_v5  ;;  %642 = vmatprep.subr.bf16.mxu1 %v727_v0  ;;  %v51_v5 = vld [vmem:[%s1345_s0 + $0x110] sm:$0xff] }
  0x2e   :  { %690 = vmatprep.subr.bf16.mxu0 %v727_v0 }
  0x30   :  { %644 = vmatpush1.bf16.msra.mxu1 %v643_v10  ;;  %v58_v10 = vld [vmem:[%s1345_s0 + $0x148] sm:$0xff] }
  0x31   :  { %692 = vmatpush1.bf16.msra.mxu0 %v691_v11  ;;  %645 = vmatprep.subr.bf16.mxu1 %v727_v0  ;;  %v60_v11 = vld [vmem:[%s1345_s0 + $0x158] sm:$0xff] }
  0x32   :  { %693 = vmatprep.subr.bf16.mxu0 %v727_v0 }
  0x34   :  { %647 = vmatpush1.bf16.msra.mxu1 %v646_v16  ;;  %v61_v16 = vld [vmem:[%s1345_s0 + $0x160] sm:$0xff] }
  0x35   :  { %695 = vmatpush1.bf16.msra.mxu0 %v694_v17  ;;  %648 = vmatprep.subr.bf16.mxu1 %v727_v0  ;;  %v63_v17 = vld [vmem:[%s1345_s0 + $0x170] sm:$0xff] }
  0x36   :  { %696 = vmatprep.subr.bf16.mxu0 %v727_v0 }
  0x38   :  { %650 = vmatpush1.bf16.msra.mxu1 %v649_v22  ;;  %v70_v22 = vld [vmem:[%s1345_s0 + $0x1a8] sm:$0xff] }
  0x39   :  { %698 = vmatpush1.bf16.msra.mxu0 %v697_v23  ;;  %651 = vmatprep.subr.bf16.mxu1 %v727_v0  ;;  %v72_v23 = vld [vmem:[%s1345_s0 + $0x1b8] sm:$0xff] }
  0x3a   :  { %699 = vmatprep.subr.bf16.mxu0 %v727_v0 }
  0x3c   :  { %653 = vmatpush1.bf16.msra.mxu1 %v652_v28  ;;  %v73_v28 = vld [vmem:[%s1345_s0 + $0x1c0] sm:$0xff] }
  0x3d   :  { %701 = vmatpush1.bf16.msra.mxu0 %v700_v29  ;;  %654 = vmatprep.subr.bf16.mxu1 %v727_v0  ;;  %v75_v29 = vld [vmem:[%s1345_s0 + $0x1d0] sm:$0xff] }
  0x3e   :  { %702 = vmatprep.subr.bf16.mxu0 %v727_v0  ;;  %v21_v0 = vld [vmem:[%s1345_s0 + $0x20] sm:$0xff] }
  0x40   :  { %656 = vmatpush1.bf16.msra.mxu1 %v655_v34  ;;  %v82_v34 = vld [vmem:[%s1345_s0 + $0x208] sm:$0xff] }
  0x41   :  { %704 = vmatpush1.bf16.msra.mxu0 %v703_v35  ;;  %v84_v35 = vld [vmem:[%s1345_s0 + $0x218] sm:$0xff] }
  0x43   :  { %230 = vmatmul.mubr.f32.vlgmr.msra.gmra.mrb[0].mxu1 %v17_v36  ;;  %v81_v36 = vld [vmem:[%s1345_s0 + $0x200] sm:$0xff] }
  0x44   :  { %400 = vmatmul.mubr.f32.vlgmr.msra.gmra.mrb[0].mxu0 %v19_v37  ;;  %234 = vmatprep.mubr.f32.mxu1 %v22_v38  ;;  %v83_v37 = vld [vmem:[%s1345_s0 + $0x210] sm:$0xff]  ;;  %v86_v38 = vld [vmem:[%s1345_s0 + $0x228] sm:$0xff] }
  0x45   :  { %404 = vmatprep.mubr.f32.mxu0 %v24_v39  ;;  %v88_v39 = vld [vmem:[%s1345_s0 + $0x238] sm:$0xff] }
  0x47   :  { %235 = vmatmul.mubr.f32.gmra.mrb[2].mxu1 %v21_v0  ;;  %v85_v0 = vld [vmem:[%s1345_s0 + $0x220] sm:$0xff] }
  0x48   :  { %405 = vmatmul.mubr.f32.gmra.mrb[2].mxu0 %v23_v40  ;;  %239 = vmatprep.mubr.f32.mxu1 %v26_v41  ;;  %v87_v40 = vld [vmem:[%s1345_s0 + $0x230] sm:$0xff]  ;;  %v90_v41 = vld [vmem:[%s1345_s0 + $0x248] sm:$0xff] }
  0x49   :  { %409 = vmatprep.mubr.f32.mxu0 %v28_v42  ;;  %v92_v42 = vld [vmem:[%s1345_s0 + $0x258] sm:$0xff] }
  0x4b   :  { %240 = vmatmul.mubr.f32.gmra.mrb[4].mxu1 %v25_v43  ;;  %v89_v43 = vld [vmem:[%s1345_s0 + $0x240] sm:$0xff] }
  0x4c   :  { %410 = vmatmul.mubr.f32.gmra.mrb[4].mxu0 %v27_v44  ;;  %244 = vmatprep.mubr.f32.mxu1 %v30_v45  ;;  %v91_v44 = vld [vmem:[%s1345_s0 + $0x250] sm:$0xff]  ;;  %v94_v45 = vld [vmem:[%s1345_s0 + $0x268] sm:$0xff] }
  0x4d   :  { %414 = vmatprep.mubr.f32.mxu0 %v32_v46  ;;  %v96_v46 = vld [vmem:[%s1345_s0 + $0x278] sm:$0xff] }
  0x4f   :  { %245 = vmatmul.mubr.f32.gmra.mrb[6].mxu1 %v29_v47  ;;  %v93_v47 = vld [vmem:[%s1345_s0 + $0x260] sm:$0xff] }
  0x50   :  { %415 = vmatmul.mubr.f32.gmra.mrb[6].mxu0 %v31_v48  ;;  %249 = vmatprep.mubr.f32.mxu1 %v34_v49  ;;  %v95_v48 = vld [vmem:[%s1345_s0 + $0x270] sm:$0xff]  ;;  %v98_v49 = vld [vmem:[%s1345_s0 + $0x288] sm:$0xff] }
  0x51   :  { %419 = vmatprep.mubr.f32.mxu0 %v36_v50  ;;  %v100_v50 = vld [vmem:[%s1345_s0 + $0x298] sm:$0xff] }
  0x53   :  { %250 = vmatmul.mubr.f32.gmra.mrb[8].mxu1 %v33_v51  ;;  %v97_v51 = vld [vmem:[%s1345_s0 + $0x280] sm:$0xff] }
  0x54   :  { %420 = vmatmul.mubr.f32.gmra.mrb[8].mxu0 %v35_v52  ;;  %254 = vmatprep.mubr.f32.mxu1 %v38_v53  ;;  %v99_v52 = vld [vmem:[%s1345_s0 + $0x290] sm:$0xff] }
  0x55   :  { %424 = vmatprep.mubr.f32.mxu0 %v40_v54 }
  0x57   :  { %255 = vmatmul.mubr.f32.gmra.mrb[10].mxu1 %v37_v55  ;;  %v1232_v55 = vld [vmem:[%s1346_s2] ss:$0 sm:$0xff] }
  0x58   :  { %425 = vmatmul.mubr.f32.gmra.mrb[10].mxu0 %v39_v56  ;;  %259 = vmatprep.mubr.f32.mxu1 %v42_v57 }
  0x59   :  { %429 = vmatprep.mubr.f32.mxu0 %v44_v58 }
  0x5b   :  { %260 = vmatmul.mubr.f32.gmra.mrb[12].mxu1 %v41_v59  ;;  %v1237_v59 = vld [vmem:[%s1347_s3] ss:$0 sm:$0xff] }
  0x5c   :  { %430 = vmatmul.mubr.f32.gmra.mrb[12].mxu0 %v43_v60  ;;  %264 = vmatprep.mubr.f32.mxu1 %v46_v61 }
  0x5d   :  { %434 = vmatprep.mubr.f32.mxu0 %v48_v62 }
  0x5f   :  { %265 = vmatmul.mubr.f32.gmra.mrb[14].mxu1 %v45_v63 }
  0x60   :  { %435 = vmatmul.mubr.f32.gmra.mrb[14].mxu0 %v47_v1  ;;  %269 = vmatprep.mubr.f32.mxu1 %v50_v2 }
  0x61   :  { %439 = vmatprep.mubr.f32.mxu0 %v52_v3 }
  0x63   :  { %270 = vmatmul.mubr.f32.gmra.mrb[16].mxu1 %v49_v4 }
  0x64   :  { %440 = vmatmul.mubr.f32.gmra.mrb[16].mxu0 %v51_v5  ;;  %274 = vmatprep.mubr.f32.mxu1 %v54_v6 }
  0x65   :  { %444 = vmatprep.mubr.f32.mxu0 %v56_v7 }
  0x67   :  { %275 = vmatmul.mubr.f32.gmra.mrb[18].mxu1 %v53_v8 }
  0x68   :  { %445 = vmatmul.mubr.f32.gmra.mrb[18].mxu0 %v55_v9  ;;  %279 = vmatprep.mubr.f32.mxu1 %v58_v10 }
  0x69   :  { %449 = vmatprep.mubr.f32.mxu0 %v60_v11 }
  0x6b   :  { %280 = vmatmul.mubr.f32.gmra.mrb[20].mxu1 %v57_v12 }
  0x6c   :  { %450 = vmatmul.mubr.f32.gmra.mrb[20].mxu0 %v59_v13  ;;  %284 = vmatprep.mubr.f32.mxu1 %v62_v14 }
  0x6d   :  { %454 = vmatprep.mubr.f32.mxu0 %v64_v15 }
  0x6f   :  { %285 = vmatmul.mubr.f32.gmra.mrb[22].mxu1 %v61_v16 }
  0x70   :  { %455 = vmatmul.mubr.f32.gmra.mrb[22].mxu0 %v63_v17  ;;  %289 = vmatprep.mubr.f32.mxu1 %v66_v18 }
  0x71   :  { %459 = vmatprep.mubr.f32.mxu0 %v68_v19 }
  0x73   :  { %290 = vmatmul.mubr.f32.gmra.mrb[24].mxu1 %v65_v20 }
  0x74   :  { %460 = vmatmul.mubr.f32.gmra.mrb[24].mxu0 %v67_v21  ;;  %294 = vmatprep.mubr.f32.mxu1 %v70_v22 }
  0x75   :  { %464 = vmatprep.mubr.f32.mxu0 %v72_v23 }
  0x77   :  { %295 = vmatmul.mubr.f32.gmra.mrb[26].mxu1 %v69_v24 }
  0x78   :  { %465 = vmatmul.mubr.f32.gmra.mrb[26].mxu0 %v71_v25  ;;  %299 = vmatprep.mubr.f32.mxu1 %v74_v26 }
  0x79   :  { %469 = vmatprep.mubr.f32.mxu0 %v76_v27 }
  0x7b   :  { %300 = vmatmul.mubr.f32.gmra.mrb[28].mxu1 %v73_v28 }
  0x7c   :  { %470 = vmatmul.mubr.f32.gmra.mrb[28].mxu0 %v75_v29  ;;  %304 = vmatprep.mubr.f32.mxu1 %v78_v30 }
  0x7d   :  { %474 = vmatprep.mubr.f32.mxu0 %v80_v31 }
  0x7f   :  { %305 = vmatmul.mubr.f32.gmra.mrb[30].mxu1 %v77_v32 }
  0x80   :  { %475 = vmatmul.mubr.f32.gmra.mrb[30].mxu0 %v79_v33  ;;  %309 = vmatprep.mubr.f32.mxu1 %v82_v34 }
  0x81   :  { %479 = vmatprep.mubr.f32.mxu0 %v84_v35 }
  0x83   :  { %310 = vmatmul.mubr.f32.gmra.mrb[32].mxu1 %v81_v36 }
  0x84   :  { %480 = vmatmul.mubr.f32.gmra.mrb[32].mxu0 %v83_v37  ;;  %314 = vmatprep.mubr.f32.mxu1 %v86_v38 }
  0x85   :  { %484 = vmatprep.mubr.f32.mxu0 %v88_v39 }
  0x87   :  { %315 = vmatmul.mubr.f32.gmra.mrb[34].mxu1 %v85_v0 }
  0x88   :  { %485 = vmatmul.mubr.f32.gmra.mrb[34].mxu0 %v87_v40  ;;  %319 = vmatprep.mubr.f32.mxu1 %v90_v41 }
  0x89   :  { %489 = vmatprep.mubr.f32.mxu0 %v92_v42 }
  0x8b   :  { %320 = vmatmul.mubr.f32.gmra.mrb[36].mxu1 %v89_v43 }
  0x8c   :  { %490 = vmatmul.mubr.f32.gmra.mrb[36].mxu0 %v91_v44  ;;  %324 = vmatprep.mubr.f32.mxu1 %v94_v45 }
  0x8d   :  { %494 = vmatprep.mubr.f32.mxu0 %v96_v46 }
  0x8f   :  { %325 = vmatmul.mubr.f32.gmra.mrb[38].mxu1 %v93_v47 }
  0x90   :  { %495 = vmatmul.mubr.f32.gmra.mrb[38].mxu0 %v95_v48  ;;  %329 = vmatprep.mubr.f32.mxu1 %v98_v49 }
  0x91   :  { %499 = vmatprep.mubr.f32.mxu0 %v100_v50 }
  0x93   :  { %330 = vmatmul.mubr.f32.gmra.mrb[40].mxu1 %v97_v51 }
  0x94   :  { %500 = vmatmul.mubr.f32.gmra.mrb[40].mxu0 %v99_v52 }
 0x116   :  { %v231_v53 = vpop.f32.mrb[0].mxu1 }
 0x117   :  { %v401_v54 = vpop.f32.mrb[0].mxu0  ;;  %v233_v56 = vpop.f32.mrb[1].mxu1 }
 0x118   :  { %v402_v57 = vadd.f32 %v401_v54, %v231_v53  ;;  %v403_v58 = vpop.f32.mrb[1].mxu0 }
 0x11a   :  { %v512_v60 = vmul.f32 %v1232_v55, %v402_v57  ;;  %v236_v61 = vpop.f32.mrb[2].mxu1 }
 0x11b   :  { %v406_v62 = vpop.f32.mrb[2].mxu0  ;;  %v238_v63 = vpop.f32.mrb[3].mxu1 }
 0x11c   :  { %v540_v1 = vadd.f32 %v1237_v59, %v512_v60  ;;  %v407_v2 = vadd.f32 %v406_v62, %v236_v61  ;;  %v408_v3 = vpop.f32.mrb[3].mxu0 }
 0x11e   :  { %v561_v4 = vmax.f32 %v540_v1, 0.0  ;;  %v513_v5 = vmul.f32 %v1232_v55, %v407_v2  ;;  %v241_v6 = vpop.f32.mrb[4].mxu1 }
 0x11f   :  { %v411_v7 = vpop.f32.mrb[4].mxu0  ;;  %v243_v8 = vpop.f32.mrb[5].mxu1 }
 0x120   :  { %582 = vst [vmem:[%s1348_s4] sm:$0xff] %v561_v4  ;;  %v541_v9 = vadd.f32 %v1237_v59, %v513_v5  ;;  %v412_v10 = vadd.f32 %v411_v7, %v241_v6  ;;  %v413_v11 = vpop.f32.mrb[5].mxu0 }
 0x122   :  { %v562_v12 = vmax.f32 %v541_v9, 0.0  ;;  %v514_v13 = vmul.f32 %v1232_v55, %v412_v10  ;;  %v246_v14 = vpop.f32.mrb[6].mxu1 }
 0x123   :  { %v416_v15 = vpop.f32.mrb[6].mxu0  ;;  %v248_v16 = vpop.f32.mrb[7].mxu1 }
 0x124   :  { %583 = vst [vmem:[%s1348_s4 + $0x8] sm:$0xff] %v562_v12  ;;  %v542_v17 = vadd.f32 %v1237_v59, %v514_v13  ;;  %v417_v18 = vadd.f32 %v416_v15, %v246_v14  ;;  %v418_v19 = vpop.f32.mrb[7].mxu0 }
 0x126   :  { %v563_v20 = vmax.f32 %v542_v17, 0.0  ;;  %v515_v21 = vmul.f32 %v1232_v55, %v417_v18  ;;  %v251_v22 = vpop.f32.mrb[8].mxu1 }
 0x127   :  { %v421_v23 = vpop.f32.mrb[8].mxu0  ;;  %v253_v24 = vpop.f32.mrb[9].mxu1 }
 0x128   :  { %584 = vst [vmem:[%s1348_s4 + $0x10] sm:$0xff] %v563_v20  ;;  %v543_v25 = vadd.f32 %v1237_v59, %v515_v21  ;;  %v422_v26 = vadd.f32 %v421_v23, %v251_v22  ;;  %v423_v27 = vpop.f32.mrb[9].mxu0 }
 0x12a   :  { %v564_v28 = vmax.f32 %v543_v25, 0.0  ;;  %v516_v29 = vmul.f32 %v1232_v55, %v422_v26  ;;  %v256_v30 = vpop.f32.mrb[10].mxu1 }
 0x12b   :  { %v426_v31 = vpop.f32.mrb[10].mxu0  ;;  %v258_v32 = vpop.f32.mrb[11].mxu1 }
 0x12c   :  { %585 = vst [vmem:[%s1348_s4 + $0x18] sm:$0xff] %v564_v28  ;;  %v544_v33 = vadd.f32 %v1237_v59, %v516_v29  ;;  %v427_v34 = vadd.f32 %v426_v31, %v256_v30  ;;  %v428_v35 = vpop.f32.mrb[11].mxu0 }
 0x12e   :  { %v565_v36 = vmax.f32 %v544_v33, 0.0  ;;  %v517_v37 = vmul.f32 %v1232_v55, %v427_v34  ;;  %v261_v38 = vpop.f32.mrb[12].mxu1 }
 0x12f   :  { %v431_v39 = vpop.f32.mrb[12].mxu0  ;;  %v263_v0 = vpop.f32.mrb[13].mxu1 }
 0x130   :  { %586 = vst [vmem:[%s1348_s4 + $0x20] sm:$0xff] %v565_v36  ;;  %v545_v40 = vadd.f32 %v1237_v59, %v517_v37  ;;  %v432_v41 = vadd.f32 %v431_v39, %v261_v38  ;;  %v433_v42 = vpop.f32.mrb[13].mxu0 }
 0x132   :  { %v566_v43 = vmax.f32 %v545_v40, 0.0  ;;  %v518_v44 = vmul.f32 %v1232_v55, %v432_v41  ;;  %v266_v45 = vpop.f32.mrb[14].mxu1 }
 0x133   :  { %v436_v46 = vpop.f32.mrb[14].mxu0  ;;  %v268_v47 = vpop.f32.mrb[15].mxu1 }
 0x134   :  { %587 = vst [vmem:[%s1348_s4 + $0x28] sm:$0xff] %v566_v43  ;;  %v546_v48 = vadd.f32 %v1237_v59, %v518_v44  ;;  %v437_v49 = vadd.f32 %v436_v46, %v266_v45  ;;  %v438_v50 = vpop.f32.mrb[15].mxu0 }
 0x136   :  { %v567_v51 = vmax.f32 %v546_v48, 0.0  ;;  %v519_v52 = vmul.f32 %v1232_v55, %v437_v49  ;;  %v271_v53 = vpop.f32.mrb[16].mxu1 }
 0x137   :  { %v441_v54 = vpop.f32.mrb[16].mxu0  ;;  %v273_v56 = vpop.f32.mrb[17].mxu1 }
 0x138   :  { %588 = vst [vmem:[%s1348_s4 + $0x30] sm:$0xff] %v567_v51  ;;  %v547_v57 = vadd.f32 %v1237_v59, %v519_v52  ;;  %v442_v58 = vadd.f32 %v441_v54, %v271_v53  ;;  %v443_v60 = vpop.f32.mrb[17].mxu0 }
 0x13a   :  { %v568_v61 = vmax.f32 %v547_v57, 0.0  ;;  %v520_v62 = vmul.f32 %v1232_v55, %v442_v58  ;;  %v276_v63 = vpop.f32.mrb[18].mxu1 }
 0x13b   :  { %v446_v1 = vpop.f32.mrb[18].mxu0  ;;  %v278_v2 = vpop.f32.mrb[19].mxu1 }
 0x13c   :  { %589 = vst [vmem:[%s1348_s4 + $0x38] sm:$0xff] %v568_v61  ;;  %v548_v3 = vadd.f32 %v1237_v59, %v520_v62  ;;  %v447_v4 = vadd.f32 %v446_v1, %v276_v63  ;;  %v448_v5 = vpop.f32.mrb[19].mxu0 }
 0x13e   :  { %v569_v6 = vmax.f32 %v548_v3, 0.0  ;;  %v521_v7 = vmul.f32 %v1232_v55, %v447_v4  ;;  %v281_v8 = vpop.f32.mrb[20].mxu1 }
 0x13f   :  { %v451_v9 = vpop.f32.mrb[20].mxu0  ;;  %v283_v10 = vpop.f32.mrb[21].mxu1 }
 0x140   :  { %590 = vst [vmem:[%s1348_s4 + $0x40] sm:$0xff] %v569_v6  ;;  %v549_v11 = vadd.f32 %v1237_v59, %v521_v7  ;;  %v452_v12 = vadd.f32 %v451_v9, %v281_v8  ;;  %v453_v13 = vpop.f32.mrb[21].mxu0 }
 0x142   :  { %v570_v14 = vmax.f32 %v549_v11, 0.0  ;;  %v522_v15 = vmul.f32 %v1232_v55, %v452_v12  ;;  %v286_v16 = vpop.f32.mrb[22].mxu1 }
 0x143   :  { %v456_v17 = vpop.f32.mrb[22].mxu0  ;;  %v288_v18 = vpop.f32.mrb[23].mxu1 }
 0x144   :  { %591 = vst [vmem:[%s1348_s4 + $0x48] sm:$0xff] %v570_v14  ;;  %v550_v19 = vadd.f32 %v1237_v59, %v522_v15  ;;  %v457_v20 = vadd.f32 %v456_v17, %v286_v16  ;;  %v458_v21 = vpop.f32.mrb[23].mxu0 }
 0x146   :  { %v571_v22 = vmax.f32 %v550_v19, 0.0  ;;  %v523_v23 = vmul.f32 %v1232_v55, %v457_v20  ;;  %v291_v24 = vpop.f32.mrb[24].mxu1 }
 0x147   :  { %v461_v25 = vpop.f32.mrb[24].mxu0  ;;  %v293_v26 = vpop.f32.mrb[25].mxu1 }
 0x148   :  { %592 = vst [vmem:[%s1348_s4 + $0x50] sm:$0xff] %v571_v22  ;;  %v551_v27 = vadd.f32 %v1237_v59, %v523_v23  ;;  %v462_v28 = vadd.f32 %v461_v25, %v291_v24  ;;  %v463_v29 = vpop.f32.mrb[25].mxu0 }
 0x14a   :  { %v572_v30 = vmax.f32 %v551_v27, 0.0  ;;  %v524_v31 = vmul.f32 %v1232_v55, %v462_v28  ;;  %v296_v32 = vpop.f32.mrb[26].mxu1 }
 0x14b   :  { %v466_v33 = vpop.f32.mrb[26].mxu0  ;;  %v298_v34 = vpop.f32.mrb[27].mxu1 }
 0x14c   :  { %593 = vst [vmem:[%s1348_s4 + $0x58] sm:$0xff] %v572_v30  ;;  %v552_v35 = vadd.f32 %v1237_v59, %v524_v31  ;;  %v467_v36 = vadd.f32 %v466_v33, %v296_v32  ;;  %v468_v37 = vpop.f32.mrb[27].mxu0 }
 0x14e   :  { %v573_v38 = vmax.f32 %v552_v35, 0.0  ;;  %v525_v39 = vmul.f32 %v1232_v55, %v467_v36  ;;  %v301_v0 = vpop.f32.mrb[28].mxu1 }
 0x14f   :  { %v471_v40 = vpop.f32.mrb[28].mxu0  ;;  %v303_v41 = vpop.f32.mrb[29].mxu1 }
 0x150   :  { %594 = vst [vmem:[%s1348_s4 + $0x60] sm:$0xff] %v573_v38  ;;  %v553_v42 = vadd.f32 %v1237_v59, %v525_v39  ;;  %v472_v43 = vadd.f32 %v471_v40, %v301_v0  ;;  %v473_v44 = vpop.f32.mrb[29].mxu0 }
 0x152   :  { %v574_v45 = vmax.f32 %v553_v42, 0.0  ;;  %v526_v46 = vmul.f32 %v1232_v55, %v472_v43  ;;  %v306_v47 = vpop.f32.mrb[30].mxu1 }
 0x153   :  { %v476_v48 = vpop.f32.mrb[30].mxu0  ;;  %v308_v49 = vpop.f32.mrb[31].mxu1 }
 0x154   :  { %595 = vst [vmem:[%s1348_s4 + $0x68] sm:$0xff] %v574_v45  ;;  %v554_v50 = vadd.f32 %v1237_v59, %v526_v46  ;;  %v477_v51 = vadd.f32 %v476_v48, %v306_v47  ;;  %v478_v52 = vpop.f32.mrb[31].mxu0 }
 0x156   :  { %v575_v53 = vmax.f32 %v554_v50, 0.0  ;;  %v527_v54 = vmul.f32 %v1232_v55, %v477_v51  ;;  %v311_v56 = vpop.f32.mrb[32].mxu1 }
 0x157   :  { %v481_v57 = vpop.f32.mrb[32].mxu0  ;;  %v313_v58 = vpop.f32.mrb[33].mxu1 }
 0x158   :  { %596 = vst [vmem:[%s1348_s4 + $0x70] sm:$0xff] %v575_v53  ;;  %v555_v60 = vadd.f32 %v1237_v59, %v527_v54  ;;  %v482_v61 = vadd.f32 %v481_v57, %v311_v56  ;;  %v483_v62 = vpop.f32.mrb[33].mxu0 }
 0x15a   :  { %v576_v63 = vmax.f32 %v555_v60, 0.0  ;;  %v528_v1 = vmul.f32 %v1232_v55, %v482_v61  ;;  %v316_v2 = vpop.f32.mrb[34].mxu1 }
 0x15b   :  { %v486_v3 = vpop.f32.mrb[34].mxu0  ;;  %v318_v4 = vpop.f32.mrb[35].mxu1 }
 0x15c   :  { %597 = vst [vmem:[%s1348_s4 + $0x78] sm:$0xff] %v576_v63  ;;  %v556_v5 = vadd.f32 %v1237_v59, %v528_v1  ;;  %v487_v6 = vadd.f32 %v486_v3, %v316_v2  ;;  %v488_v7 = vpop.f32.mrb[35].mxu0 }
 0x15e   :  { %v577_v8 = vmax.f32 %v556_v5, 0.0  ;;  %v529_v9 = vmul.f32 %v1232_v55, %v487_v6  ;;  %v321_v10 = vpop.f32.mrb[36].mxu1 }
 0x15f   :  { %v491_v11 = vpop.f32.mrb[36].mxu0  ;;  %v323_v12 = vpop.f32.mrb[37].mxu1 }
 0x160   :  { %598 = vst [vmem:[%s1348_s4 + $0x80] sm:$0xff] %v577_v8  ;;  %v557_v13 = vadd.f32 %v1237_v59, %v529_v9  ;;  %v492_v14 = vadd.f32 %v491_v11, %v321_v10  ;;  %v493_v15 = vpop.f32.mrb[37].mxu0 }
 0x162   :  { %v578_v16 = vmax.f32 %v557_v13, 0.0  ;;  %v530_v17 = vmul.f32 %v1232_v55, %v492_v14  ;;  %v326_v18 = vpop.f32.mrb[38].mxu1 }
 0x163   :  { %v496_v19 = vpop.f32.mrb[38].mxu0  ;;  %v328_v20 = vpop.f32.mrb[39].mxu1 }
 0x164   :  { %599 = vst [vmem:[%s1348_s4 + $0x88] sm:$0xff] %v578_v16  ;;  %v558_v21 = vadd.f32 %v1237_v59, %v530_v17  ;;  %v497_v22 = vadd.f32 %v496_v19, %v326_v18  ;;  %v498_v23 = vpop.f32.mrb[39].mxu0 }
 0x166   :  { %v579_v24 = vmax.f32 %v558_v21, 0.0  ;;  %v531_v25 = vmul.f32 %v1232_v55, %v497_v22  ;;  %v331_v26 = vpop.f32.mrb[40].mxu1 }
 0x167   :  { %v501_v27 = vpop.f32.mrb[40].mxu0  ;;  %v333_v28 = vpop.f32.mrb[41].mxu1 }
 0x168   :  { %600 = vst [vmem:[%s1348_s4 + $0x90] sm:$0xff] %v579_v24  ;;  %v559_v29 = vadd.f32 %v1237_v59, %v531_v25  ;;  %v502_v30 = vadd.f32 %v501_v27, %v331_v26  ;;  %v503_v31 = vpop.f32.mrb[41].mxu0 }
 0x16a   :  { %v580_v32 = vmax.f32 %v559_v29, 0.0  ;;  %v532_v33 = vmul.f32 %v1232_v55, %v502_v30 }
 0x16c   :  { %601 = vst [vmem:[%s1348_s4 + $0x98] sm:$0xff] %v580_v32  ;;  %v560_v34 = vadd.f32 %v1237_v59, %v532_v33 }
 0x16e   :  { %v581_v35 = vmax.f32 %v560_v34, 0.0 }
 0x170   :  { %602 = vst [vmem:[%s1348_s4 + $0xa0] sm:$0xff] %v581_v35 }

// kernel: dqn_forward.5
= control target key start
LH: loop header
LB: loop body
LE: loop exit
PB: predicated region body
PF: predicated region fallthrough
CT: control target
= control target key end

     0   :  { %s23618_s24 = smov 0   ;;  %s23620_s25 = smov 0   ;;  %s26502_s0 = inlined_call_operand.vmem [shape: f32[50,2,576], index: 0, kind: input, shape index: {}]   ;;  %s26503_s1 = inlined_call_operand.vmem [shape: f32[576,64], index: 1, kind: input, shape index: {}]   ;;  %s26504_s2 = inlined_call_operand.vmem [shape: f32[1,64], index: 2, kind: input, shape index: {}]   ;;  %s26505_s3 = inlined_call_operand.vmem [shape: f32[1,64], index: 3, kind: input, shape index: {}]   ;;  %s26506_s4 = inlined_call_operand.vmem [shape: bf16[50,64,1024], index: 4, kind: input, shape index: {}]   ;;  %s26507_s5 = inlined_call_operand.vmem [shape: f32[1,1024], index: 5, kind: input, shape index: {}]   ;;  %s26508_s6 = inlined_call_operand.vmem [shape: bf16[1024,4], index: 6, kind: input, shape index: {}]   ;;  %s26509_s7 = inlined_call_operand.vmem [shape: f32[1,2,4], index: 7, kind: output, shape index: {}]  }
   0x1   :  { %s23622_s26 = smov 0  }
   0x2 LB: > { %s26_s27 = sadd.s32 1, %s23566_s25  ;;  %p16752_p0 = scmp.ge.s32.totalorder %s23570_s26, 1  ;;  %s23570_s26 = sphi %s23622_s26, %s17_s26   ;;  %s23566_s25 = sphi %s23620_s25, %s26564_s25   ;;  %s23562_s24 = sphi %s23618_s24, %s26563_s24  }
   0x3   : > { %p27_p1 = scmp.ge.s32.totalorder %s26_s27, 2  ;;  %p291_p2 = scmp.lt.s32.totalorder %s23570_s26, 3 }
   0x5   : > { %s26566_s27 = smov (%p27_p1, %s26_s27), 0  ;;  %p292_p3 = pnand %p16752_p0, %p291_p2 }
   0x7   : > { %295 = sbr.rel (%p292_p3) target bundleno = 5049 (0x13b9), region = 48 }
   0xe   : > { %s342_s28 = smul.u32 25, %s23562_s24  ;;  %p16756_p5 = scmp.ne.s32.totalorder %s23562_s24, 0 }
   0xf   : > { %v23572_v0 = vmov (!%p16756_p5), 0.0  }
  0x10   : > { %p343_p4 = scmp.lt.s32.totalorder %s342_s28, 49  ;;  %380 = sbr.rel (%p16756_p5) target bundleno = 23 (0x17), region = 52  ;;  %381 = vst [vmem:[#allocation2] sm:$0xff] (!%p16756_p5), %v23572_v0  ;;  %382 = vst [vmem:[#allocation2 + $0x8] sm:$0xff] (!%p16756_p5), %v23572_v0 }
  0x12   : > { %s26568_s28 = smov (!%p343_p4, %s342_s28), 49 }
  0x13   : > { %s23416_s29 = smul.u32 10, %s26568_s28  ;;  %s18593_s30 = sshll.u32 %s26568_s28, 8 }
  0x14   : > { %s23642_s10 = scalar_lea.vmem %s26506_s4, %s18593_s30 }
  0x15   : > { %s23647_s13 = scalar_lea.vmem %s26502_s0, %s23416_s29 }
  0x17 PF: > { %v399_v1 = vld [vmem:[%s26503_s1 + $0x80] sm:$0xff]  ;;  %v400_v2 = vld [vmem:[%s26503_s1 + $0x88] sm:$0xff]  ;;  %v401_v12 = vld [vmem:[%s26503_s1 + $0x90] sm:$0xff]  ;;  %v23573_v48 = vmov 1983009808   ;;  %v465_v50 = vlaneseq  ;;  %vm23575_vm0 = vmmov 0  }
  0x18   : > { %v431_v3 = vld [vmem:[%s26503_s1 + $0x180] sm:$0xff]  ;;  %v23659_v4 = vpack.c.bf16 %v400_v2, %v399_v1  ;;  %v432_v5 = vld [vmem:[%s26503_s1 + $0x188] sm:$0xff]  ;;  %v402_v14 = vld [vmem:[%s26503_s1 + $0x98] sm:$0xff]  ;;  %v463_v49 = vunpack.c.l.s4 %v23573_v48  ;;  %vm489_vm1 = vcmask 523264   ;;  %p18525_p6 = scmp.ne.s32.totalorder %s23562_s24, 1 }
  0x19   : > { %v383_v6 = vld [vmem:[%s26503_s1] sm:$0xff]  ;;  %v384_v7 = vld [vmem:[%s26503_s1 + $0x8] sm:$0xff]  ;;  %v23670_v8 = vpack.c.bf16 %v432_v5, %v431_v3  ;;  %v433_v15 = vld [vmem:[%s26503_s1 + $0x190] sm:$0xff]  ;;  %v23697_v17 = vpack.c.bf16 %v402_v14, %v401_v12  ;;  %v23826_v1 = vshrl.u32 %v465_v50, 7  ;;  %vm16641_vm2 = vcmask (!%p18525_p6), 25600  }
  0x1a   : > { %v23672_v9 = vpack.c.bf16 %v384_v7, %v383_v6  ;;  %v415_v10 = vld [vmem:[%s26503_s1 + $0x100] sm:$0xff]  ;;  %v416_v11 = vld [vmem:[%s26503_s1 + $0x108] sm:$0xff]  ;;  %21133 = vmatprep.subr.bf16.mxu0 %v23659_v4  ;;  %v434_v16 = vld [vmem:[%s26503_s1 + $0x198] sm:$0xff]  ;;  %v464_v0 = vunpack.c.0.s8 %v463_v49 }
  0x1b   : > { %v23684_v13 = vpack.c.bf16 %v416_v11, %v415_v10  ;;  %21165 = vmatprep.subr.bf16.mxu1 %v23670_v8  ;;  %v23699_v18 = vpack.c.bf16 %v434_v16, %v433_v15  ;;  %v385_v19 = vld [vmem:[%s26503_s1 + $0x10] sm:$0xff]  ;;  %v386_v20 = vld [vmem:[%s26503_s1 + $0x18] sm:$0xff]  ;;  %v403_v24 = vld [vmem:[%s26503_s1 + $0xa0] sm:$0xff]  ;;  %26525 = vst [vmem:[#allocation3_spill] sm:$0xff] %v23826_v1 }
  0x1c   : > { %21135 = vmatpush3.bf16.msra.mxu0 %v23672_v9  ;;  %v417_v21 = vld [vmem:[%s26503_s1 + $0x110] sm:$0xff]  ;;  %v23711_v22 = vpack.c.bf16 %v386_v20, %v385_v19  ;;  %v418_v23 = vld [vmem:[%s26503_s1 + $0x118] sm:$0xff]  ;;  %v404_v25 = vld [vmem:[%s26503_s1 + $0xa8] sm:$0xff]  ;;  %v23865_v20 = vsub.s32 %v464_v0, %v23826_v1 }
  0x1d   : > { %21167 = vmatpush3.bf16.msra.mxu1 %v23684_v13  ;;  %21137 = vmatprep.subr.bf16.mxu0 %v23697_v17  ;;  %v23724_v26 = vpack.c.bf16 %v418_v23, %v417_v21  ;;  %v23726_v27 = vpack.c.bf16 %v404_v25, %v403_v24  ;;  %v435_v28 = vld [vmem:[%s26503_s1 + $0x1a0] sm:$0xff]  ;;  %v436_v29 = vld [vmem:[%s26503_s1 + $0x1a8] sm:$0xff]  ;;  %v405_v36 = vld [vmem:[%s26503_s1 + $0xb0] sm:$0xff] }
  0x1e   : > { %21169 = vmatprep.subr.bf16.mxu1 %v23699_v18  ;;  %v387_v30 = vld [vmem:[%s26503_s1 + $0x20] sm:$0xff]  ;;  %v23737_v31 = vpack.c.bf16 %v436_v29, %v435_v28  ;;  %v388_v32 = vld [vmem:[%s26503_s1 + $0x28] sm:$0xff]  ;;  %v406_v37 = vld [vmem:[%s26503_s1 + $0xb8] sm:$0xff] }
  0x1f   : > { %v419_v33 = vld [vmem:[%s26503_s1 + $0x120] sm:$0xff]  ;;  %v420_v34 = vld [vmem:[%s26503_s1 + $0x128] sm:$0xff]  ;;  %v23749_v35 = vpack.c.bf16 %v388_v32, %v387_v30  ;;  %v437_v38 = vld [vmem:[%s26503_s1 + $0x1b0] sm:$0xff]  ;;  %v23764_v40 = vpack.c.bf16 %v406_v37, %v405_v36 }
  0x20   : > { %21139 = vmatpush3.bf16.msra.mxu0 %v23711_v22  ;;  %v23762_v39 = vpack.c.bf16 %v420_v34, %v419_v33  ;;  %v438_v41 = vld [vmem:[%s26503_s1 + $0x1b8] sm:$0xff]  ;;  %v389_v42 = vld [vmem:[%s26503_s1 + $0x30] sm:$0xff]  ;;  %v407_v47 = vld [vmem:[%s26503_s1 + $0xc0] sm:$0xff] }
  0x21   : > { %21171 = vmatpush3.bf16.msra.mxu1 %v23724_v26  ;;  %21141 = vmatprep.subr.bf16.mxu0 %v23726_v27  ;;  %v390_v43 = vld [vmem:[%s26503_s1 + $0x38] sm:$0xff]  ;;  %v23776_v44 = vpack.c.bf16 %v438_v41, %v437_v38  ;;  %v421_v45 = vld [vmem:[%s26503_s1 + $0x130] sm:$0xff]  ;;  %v408_v51 = vld [vmem:[%s26503_s1 + $0xc8] sm:$0xff] }
  0x22   : > { %21173 = vmatprep.subr.bf16.mxu1 %v23737_v31  ;;  %v422_v46 = vld [vmem:[%s26503_s1 + $0x138] sm:$0xff]  ;;  %v439_v52 = vld [vmem:[%s26503_s1 + $0x1c0] sm:$0xff]  ;;  %v440_v53 = vld [vmem:[%s26503_s1 + $0x1c8] sm:$0xff]  ;;  %v23797_v54 = vpack.c.bf16 %v390_v43, %v389_v42  ;;  %v23803_v56 = vpack.c.bf16 %v408_v51, %v407_v47 }
  0x23   : > { %v23801_v55 = vpack.c.bf16 %v422_v46, %v421_v45  ;;  %v391_v57 = vld [vmem:[%s26503_s1 + $0x40] sm:$0xff]  ;;  %v392_v58 = vld [vmem:[%s26503_s1 + $0x48] sm:$0xff]  ;;  %v23815_v60 = vpack.c.bf16 %v440_v53, %v439_v52  ;;  %v409_v62 = vld [vmem:[%s26503_s1 + $0xd0] sm:$0xff] }
  0x24   : > { %21143 = vmatpush3.bf16.msra.mxu0 %v23749_v35  ;;  %v423_v59 = vld [vmem:[%s26503_s1 + $0x140] sm:$0xff]  ;;  %v424_v61 = vld [vmem:[%s26503_s1 + $0x148] sm:$0xff]  ;;  %v410_v63 = vld [vmem:[%s26503_s1 + $0xd8] sm:$0xff]  ;;  %v23835_v5 = vpack.c.bf16 %v392_v58, %v391_v57 }
  0x25   : > { %21175 = vmatpush3.bf16.msra.mxu1 %v23762_v39  ;;  %21145 = vmatprep.subr.bf16.mxu0 %v23764_v40  ;;  %v441_v2 = vld [vmem:[%s26503_s1 + $0x1d0] sm:$0xff]  ;;  %v442_v3 = vld [vmem:[%s26503_s1 + $0x1d8] sm:$0xff]  ;;  %v23839_v6 = vpack.c.bf16 %v424_v61, %v423_v59  ;;  %v23841_v7 = vpack.c.bf16 %v410_v63, %v409_v62  ;;  %v411_v16 = vld [vmem:[%s26503_s1 + $0xe0] sm:$0xff] }
  0x26   : > { %21177 = vmatprep.subr.bf16.mxu1 %v23776_v44  ;;  %v393_v10 = vld [vmem:[%s26503_s1 + $0x50] sm:$0xff]  ;;  %v394_v11 = vld [vmem:[%s26503_s1 + $0x58] sm:$0xff]  ;;  %v23853_v14 = vpack.c.bf16 %v442_v3, %v441_v2  ;;  %v412_v19 = vld [vmem:[%s26503_s1 + $0xe8] sm:$0xff] }
  0x27   : > { %v425_v12 = vld [vmem:[%s26503_s1 + $0x150] sm:$0xff]  ;;  %v426_v15 = vld [vmem:[%s26503_s1 + $0x158] sm:$0xff]  ;;  %v443_v21 = vld [vmem:[%s26503_s1 + $0x1e0] sm:$0xff]  ;;  %v23874_v24 = vpack.c.bf16 %v394_v11, %v393_v10  ;;  %v23883_v29 = vpack.c.bf16 %v412_v19, %v411_v16  ;;  %v26512_v11 = vmov 0.0|0.0  }
  0x28   : > { %21147 = vmatpush3.bf16.msra.mxu0 %v23797_v54  ;;  %v444_v23 = vld [vmem:[%s26503_s1 + $0x1e8] sm:$0xff]  ;;  %v395_v25 = vld [vmem:[%s26503_s1 + $0x60] sm:$0xff]  ;;  %v23881_v28 = vpack.c.bf16 %v426_v15, %v425_v12  ;;  %v413_v37 = vld [vmem:[%s26503_s1 + $0xf0] sm:$0xff] }
  0x29   : > { %21179 = vmatpush3.bf16.msra.mxu1 %v23801_v55  ;;  %21149 = vmatprep.subr.bf16.mxu0 %v23803_v56  ;;  %v396_v30 = vld [vmem:[%s26503_s1 + $0x68] sm:$0xff]  ;;  %v427_v32 = vld [vmem:[%s26503_s1 + $0x160] sm:$0xff]  ;;  %v23893_v34 = vpack.c.bf16 %v444_v23, %v443_v21  ;;  %v414_v38 = vld [vmem:[%s26503_s1 + $0xf8] sm:$0xff] }
  0x2a   : > { %21181 = vmatprep.subr.bf16.mxu1 %v23815_v60  ;;  %v457_v33 = vld [vmem:[%s23647_s13] sm:$0xff]  ;;  %v428_v36 = vld [vmem:[%s26503_s1 + $0x168] sm:$0xff]  ;;  %v445_v43 = vld [vmem:[%s26503_s1 + $0x1f0] sm:$0xff]  ;;  %v23912_v46 = vpack.c.bf16 %v396_v30, %v395_v25  ;;  %v23919_v50 = vpack.c.bf16 %v414_v38, %v413_v37  ;;  %v26510_v25 = vmov 0.0  }
  0x2b   : > { %v468_v41 = vrot.slane %v457_v33, %v23865_v20  ;;  %v461_v42 = vcombine.high %v457_v33, %v457_v33  ;;  %v446_v45 = vld [vmem:[%s26503_s1 + $0x1f8] sm:$0xff]  ;;  %v23917_v49 = vpack.c.bf16 %v428_v36, %v427_v32  ;;  %v397_v51 = vld [vmem:[%s26503_s1 + $0x70] sm:$0xff]  ;;  %v447_v0 = vld [vmem:[%s26503_s1 + $0x200] sm:$0xff] }
  0x2c   : > { %21151 = vmatpush3.bf16.msra.mxu0 %v23835_v5  ;;  %v398_v52 = vld [vmem:[%s26503_s1 + $0x78] sm:$0xff]  ;;  %v23928_v53 = vpack.c.bf16 %v446_v45, %v445_v43  ;;  %v429_v57 = vld [vmem:[%s26503_s1 + $0x170] sm:$0xff]  ;;  %v448_v2 = vld [vmem:[%s26503_s1 + $0x208] sm:$0xff] }
  0x2d   : > { %21183 = vmatpush3.bf16.msra.mxu1 %v23839_v6  ;;  %21153 = vmatprep.subr.bf16.mxu0 %v23841_v7  ;;  %v476_v47 = vcombine.high %v468_v41, %v468_v41  ;;  %v475_v48 = vrot.slane %v461_v42, %v23865_v20  ;;  %v430_v58 = vld [vmem:[%s26503_s1 + $0x178] sm:$0xff]  ;;  %v23937_v61 = vpack.c.bf16 %v398_v52, %v397_v51  ;;  %v16761_v62 = vld [vmem:[%s23647_s13 + $0xa] sm:$0xff]  ;;  %v451_v21 = vld [vmem:[%s26503_s1 + $0x220] sm:$0xff] }
  0x2e   : > { %21185 = vmatprep.subr.bf16.mxu1 %v23853_v14  ;;  %v23942_v63 = vpack.c.bf16 %v430_v58, %v429_v57  ;;  %v762_v3 = vrot.slane %v16761_v62, %v23865_v20  ;;  %v23953_v10 = vpack.c.bf16 %v448_v2, %v447_v0  ;;  %v449_v12 = vld [vmem:[%s26503_s1 + $0x210] sm:$0xff]  ;;  %v450_v15 = vld [vmem:[%s26503_s1 + $0x218] sm:$0xff]  ;;  %v452_v23 = vld [vmem:[%s26503_s1 + $0x228] sm:$0xff]  ;;  %v755_v32 = vcombine.high %v16761_v62, %v16761_v62 }
  0x2f   : > { %556 = vmatprep.mubr.f32.mxu0 %v476_v47  ;;  %v477_v59 = vcombine.high %v475_v48, %v475_v48  ;;  %v23965_v19 = vpack.c.bf16 %v450_v15, %v449_v12  ;;  %v23979_v30 = vpack.c.bf16 %v452_v23, %v451_v21  ;;  %v453_v33 = vld [vmem:[%s26503_s1 + $0x230] sm:$0xff]  ;;  %v454_v36 = vld [vmem:[%s26503_s1 + $0x238] sm:$0xff]  ;;  %v16765_v45 = vld [vmem:[%s23642_s10 + $0x100] sm:$0xff] }
  0x30   : > { %21155 = vmatpush3.bf16.msra.mxu0 %v23874_v24  ;;  %v770_v16 = vcombine.high %v762_v3, %v762_v3  ;;  %v23991_v37 = vpack.c.bf16 %v454_v36, %v453_v33  ;;  %v769_v38 = vrot.slane %v755_v32, %v23865_v20  ;;  %v16763_v43 = vld.sshfl [vmem:[%s23647_s13 + $0x12] sm:$0x3 pattern:$0x76325410]  ;;  %v16769_v47 = vld [vmem:[%s23642_s10 + $0x120] sm:$0xff]  ;;  %v16770_v57 = vld [vmem:[%s23642_s10 + $0x128] sm:$0xff] }
  0x31   : > { %21187 = vmatpush3.bf16.msra.mxu1 %v23881_v28  ;;  %21157 = vmatprep.subr.bf16.mxu0 %v23883_v29  ;;  %v16797_v51 = vcombine.low %v16765_v45, %v16769_v47  ;;  %v16798_v52 = vcombine.high %v16765_v45, %v16769_v47  ;;  %v16773_v62 = vld [vmem:[%s23642_s10 + $0x140] sm:$0xff]  ;;  %v16774_v2 = vld [vmem:[%s23642_s10 + $0x148] sm:$0xff] }
  0x32   : > { %21189 = vmatprep.subr.bf16.mxu1 %v23893_v34  ;;  %626 = vmatprep.mubr.f32.mxu1 %v477_v59  ;;  %v771_v42 = vcombine.high %v769_v38, %v769_v38  ;;  %v16777_v0 = vld [vmem:[%s23642_s10 + $0x160] sm:$0xff]  ;;  %v16778_v15 = vld [vmem:[%s23642_s10 + $0x168] sm:$0xff] }
  0x33   : > { %v16806_v12 = vcombine.high %v16773_v62, %v16777_v0  ;;  %v16808_v21 = vcombine.high %v16774_v2, %v16778_v15  ;;  %v16781_v23 = vld [vmem:[%s23642_s10 + $0x180] sm:$0xff]  ;;  %v16782_v33 = vld [vmem:[%s23642_s10 + $0x188] sm:$0xff] }
  0x34   : > { %21159 = vmatpush3.bf16.msra.mxu0 %v23912_v46  ;;  %v16785_v32 = vld [vmem:[%s23642_s10 + $0x1a0] sm:$0xff] }
  0x35   : > { %21191 = vmatpush3.bf16.msra.mxu1 %v23917_v49  ;;  %21161 = vmatprep.subr.bf16.mxu0 %v23919_v50  ;;  %v16814_v36 = vcombine.high %v16781_v23, %v16785_v32  ;;  %v16789_v45 = vld [vmem:[%s23642_s10 + $0x1c0] sm:$0xff] }
  0x36   : > { %21193 = vmatprep.subr.bf16.mxu1 %v23928_v53  ;;  %v16793_v47 = vld [vmem:[%s23642_s10 + $0x1e0] sm:$0xff] }
  0x38   : > { %21163 = vmatpush3.bf16.msra.mxu0 %v23937_v61 }
  0x39   : > { %21195 = vmatpush3.bf16.msra.mxu1 %v23942_v63  ;;  %21196 = vmatprep.subr.bf16.mxu0 %v26512_v11 }
  0x3a   : > { %21209 = vmatprep.subr.bf16.mxu1 %v23659_v4 }
  0x3b   : > { %557 = vmatmul.mubr.f32.vlgmr.msra.gmra.mrb[0].mxu0 %v468_v41  ;;  %v16757_v41 = vld.sshfl [vmem:[%s23647_s13 + $0x8] sm:$0x3 pattern:$0x76325410] }
  0x3c   : > { %627 = vmatmul.mubr.f32.vlgmr.msra.gmra.mrb[0].mxu1 %v475_v48  ;;  %21198 = vmatpush3.bf16.msra.mxu0 %v23953_v10  ;;  %v16766_v48 = vld [vmem:[%s23642_s10 + $0x108] sm:$0xff] }
  0x3d   : > { %21199 = vmatprep.subr.bf16.mxu0 %v26512_v11  ;;  %21211 = vmatpush3.bf16.msra.mxu1 %v23672_v9  ;;  %v16799_v58 = vcombine.low %v16766_v48, %v16770_v57  ;;  %v16800_v59 = vcombine.high %v16766_v48, %v16770_v57  ;;  %v16790_v48 = vld [vmem:[%s23642_s10 + $0x1c8] sm:$0xff]  ;;  %v16821_v57 = vcombine.low %v16789_v45, %v16793_v47 }
  0x3e   : > { %21213 = vmatprep.subr.bf16.mxu1 %v23697_v17  ;;  %20673 = vmatprep.mubr.msk.f32.mxu0 %vm23575_vm0, %v26510_v25 }
  0x3f   : > { %849 = vmatprep.mubr.f32.mxu1 %v770_v16  ;;  %v16807_v16 = vcombine.low %v16774_v2, %v16778_v15  ;;  %v16768_v2 = vld [vmem:[%s23642_s10 + $0x118] sm:$0xff] }
  0x40   : > { %21201 = vmatpush3.bf16.msra.mxu0 %v23965_v19  ;;  %v16772_v15 = vld [vmem:[%s23642_s10 + $0x138] sm:$0xff] }
  0x41   : > { %21202 = vmatprep.subr.bf16.mxu0 %v26512_v11  ;;  %21215 = vmatpush3.bf16.msra.mxu1 %v23711_v22 }
  0x42   : > { %21217 = vmatprep.subr.bf16.mxu1 %v23726_v27 }
  0x44   : > { %21204 = vmatpush3.bf16.msra.mxu0 %v23979_v30 }
  0x45   : > { %21205 = vmatprep.subr.bf16.mxu0 %v26512_v11  ;;  %21219 = vmatpush3.bf16.msra.mxu1 %v23749_v35 }
  0x46   : > { %21221 = vmatprep.subr.bf16.mxu1 %v23764_v40 }
  0x48   : > { %21207 = vmatpush3.bf16.msra.mxu0 %v23991_v37 }
  0x49   : > { %21241 = vmatprep.subr.bf16.mxu0 %v23670_v8  ;;  %21223 = vmatpush3.bf16.msra.mxu1 %v23797_v54 }
  0x4a   : > { %21225 = vmatprep.subr.bf16.mxu1 %v23803_v56 }
  0x4b   : > { %20674 = vmatmul.mubr.msk.f32.vlgmr.msra.gmra.mrb[2].mxu0 %vm489_vm1, %v16757_v41  ;;  %v16813_v41 = vcombine.low %v16781_v23, %v16785_v32  ;;  %v16804_v23 = vcombine.high %v16768_v2, %v16772_v15 }
  0x4c   : > { %21243 = vmatpush3.bf16.msra.mxu0 %v23684_v13  ;;  %919 = vmatprep.mubr.f32.mxu0 %v771_v42 }
  0x4d   : > { %21245 = vmatprep.subr.bf16.mxu0 %v23699_v18  ;;  %21227 = vmatpush3.bf16.msra.mxu1 %v23835_v5 }
  0x4e   : > { %21229 = vmatprep.subr.bf16.mxu1 %v23841_v7 }
  0x50   : > { %21247 = vmatpush3.bf16.msra.mxu0 %v23724_v26 }
  0x51   : > { %21249 = vmatprep.subr.bf16.mxu0 %v23737_v31  ;;  %21231 = vmatpush3.bf16.msra.mxu1 %v23874_v24 }
  0x52   : > { %21233 = vmatprep.subr.bf16.mxu1 %v23883_v29 }
  0x54   : > { %21251 = vmatpush3.bf16.msra.mxu0 %v23762_v39 }
  0x55   : > { %21253 = vmatprep.subr.bf16.mxu0 %v23776_v44  ;;  %21235 = vmatpush3.bf16.msra.mxu1 %v23912_v46 }
  0x56   : > { %21237 = vmatprep.subr.bf16.mxu1 %v23919_v50 }
  0x58   : > { %21255 = vmatpush3.bf16.msra.mxu0 %v23801_v55 }
  0x59   : > { %21257 = vmatprep.subr.bf16.mxu0 %v23815_v60  ;;  %21239 = vmatpush3.bf16.msra.mxu1 %v23937_v61 }
  0x5a   : > { %21272 = vmatprep.subr.bf16.mxu1 %v26512_v11 }
  0x5c   : > { %21259 = vmatpush3.bf16.msra.mxu0 %v23839_v6  ;;  %850 = vmatmul.mubr.f32.vlgmr.msra.gmra.mrb[2].mxu1 %v762_v3  ;;  %v16805_v3 = vcombine.low %v16773_v62, %v16777_v0  ;;  %v16767_v62 = vld [vmem:[%s23642_s10 + $0x110] sm:$0xff] }
  0x5d   : > { %21261 = vmatprep.subr.bf16.mxu0 %v23853_v14  ;;  %21274 = vmatpush3.bf16.msra.mxu1 %v23953_v10  ;;  %v16771_v0 = vld [vmem:[%s23642_s10 + $0x130] sm:$0xff] }
  0x5e   : > { %21275 = vmatprep.subr.bf16.mxu1 %v26512_v11  ;;  %20692 = vmatprep.mubr.msk.f32.mxu1 %vm23575_vm0, %v26510_v25  ;;  %v16796_v25 = vld [vmem:[%s23642_s10 + $0x1f8] sm:$0xff] }
  0x60   : > { %21263 = vmatpush3.bf16.msra.mxu0 %v23881_v28 }
  0x61   : > { %21265 = vmatprep.subr.bf16.mxu0 %v23893_v34  ;;  %21277 = vmatpush3.bf16.msra.mxu1 %v23965_v19 }
  0x62   : > { %21278 = vmatprep.subr.bf16.mxu1 %v26512_v11 }
  0x64   : > { %21267 = vmatpush3.bf16.msra.mxu0 %v23917_v49 }
  0x65   : > { %21269 = vmatprep.subr.bf16.mxu0 %v23928_v53  ;;  %21280 = vmatpush3.bf16.msra.mxu1 %v23979_v30 }
  0x66   : > { %21281 = vmatprep.subr.bf16.mxu1 %v26512_v11  ;;  %v16833_v11 = vld [vmem:[%s23647_s13 + $0x14] sm:$0xff] }
  0x68   : > { %21271 = vmatpush3.bf16.msra.mxu0 %v23942_v63 }
  0x69   : > { %21283 = vmatpush3.bf16.msra.mxu1 %v23991_v37  ;;  %1195 = vmatprep.subr.bf16.mxu0 %v16798_v52  ;;  %v16794_v52 = vld [vmem:[%s23642_s10 + $0x1e8] sm:$0xff] }
  0x6a   : > { %1236 = vmatprep.subr.bf16.mxu1 %v16800_v59  ;;  %v16824_v59 = vcombine.high %v16790_v48, %v16794_v52 }
  0x6b   : > { %920 = vmatmul.mubr.f32.vlgmr.msra.gmra.mrb[4].mxu0 %v769_v38  ;;  %v16786_v38 = vld [vmem:[%s23642_s10 + $0x1a8] sm:$0xff] }
  0x6c   : > { %20693 = vmatmul.mubr.msk.f32.vlgmr.msra.gmra.mrb[4].mxu1 %vm489_vm1, %v16763_v43  ;;  %1196 = vmatpush1.bf16.msra.mxu0 %v16797_v51  ;;  %v16815_v42 = vcombine.low %v16782_v33, %v16786_v38  ;;  %v16816_v43 = vcombine.high %v16782_v33, %v16786_v38  ;;  %v16822_v51 = vcombine.high %v16789_v45, %v16793_v47 }
  0x6d   : > { %1237 = vmatpush1.bf16.msra.mxu1 %v16799_v58  ;;  %1197 = vmatprep.subr.bf16.mxu0 %v16806_v12  ;;  %v16823_v58 = vcombine.low %v16790_v48, %v16794_v52  ;;  %v16802_v12 = vcombine.high %v16767_v62, %v16771_v0 }
  0x6e   : > { %1238 = vmatprep.subr.bf16.mxu1 %v16808_v21  ;;  %v16803_v21 = vcombine.low %v16768_v2, %v16772_v15 }
  0x70   : > { %1198 = vmatpush1.bf16.msra.mxu0 %v16805_v3  ;;  %v16801_v3 = vcombine.low %v16767_v62, %v16771_v0 }
  0x71   : > { %1239 = vmatpush1.bf16.msra.mxu1 %v16807_v16  ;;  %1199 = vmatprep.subr.bf16.mxu0 %v16814_v36  ;;  %v26516_v16 = vmov 0  }
  0x72   : > { %1240 = vmatprep.subr.bf16.mxu1 %v16816_v43  ;;  %1227 = vmatprep.mubr.bf16.mxu0 %v26516_v16 }
  0x73   : > { %1268 = vmatprep.mubr.bf16.mxu1 %v26516_v16 }
  0x74   : > { %1200 = vmatpush1.bf16.msra.mxu0 %v16813_v41 }
  0x75   : > { %1241 = vmatpush1.bf16.msra.mxu1 %v16815_v42  ;;  %1201 = vmatprep.subr.bf16.mxu0 %v16822_v51 }
  0x76   : > { %1242 = vmatprep.subr.bf16.mxu1 %v16824_v59 }
  0x78   : > { %1202 = vmatpush1.bf16.msra.mxu0 %v16821_v57 }
  0x79   : > { %1243 = vmatpush1.bf16.msra.mxu1 %v16823_v58  ;;  %1277 = vmatprep.subr.bf16.mxu0 %v16802_v12 }
  0x7a   : > { %1318 = vmatprep.subr.bf16.mxu1 %v16804_v23  ;;  %v24064_v23 = vld [vmem:[%s26504_s2] ss:$0 sm:$0xff] }
 0x10e   : > { %v18626_v32 = vpop.f32.mrb[0].mxu0 }
 0x10f   : > { %v18661_v33 = vpop.f32.mrb[0].mxu1  ;;  %v18627_v36 = vpop.f32.mrb[1].mxu0 }
 0x110   : > { %v18628_v38 = vadd.f32 %v18627_v36, %v18626_v32  ;;  %v18662_v41 = vpop.f32.mrb[1].mxu1 }
 0x111   : > { %v18663_v42 = vadd.f32 %v18662_v41, %v18661_v33  ;;  %v24070_v33 = vld [vmem:[%s26505_s3] ss:$0 sm:$0xff]  ;;  %v16779_v41 = vld [vmem:[%s23642_s10 + $0x170] sm:$0xff] }
 0x112   : > { %26527 = vst [vmem:[#allocation5_spill] sm:$0xff] %v24070_v33 }
 0x113   : > { %v629_v43 = vadd.f32 %v18663_v42, %v18628_v38  ;;  %v16775_v38 = vld [vmem:[%s23642_s10 + $0x150] sm:$0xff]  ;;  %v16776_v42 = vld [vmem:[%s23642_s10 + $0x158] sm:$0xff] }
 0x11e   : > { %v698_v45 = vpop.f32.mrb[2].mxu0 }
 0x11f   : > { %v24059_v47 = vadd.f32 %v698_v45, %v629_v43  ;;  %v20675_v48 = vpop.f32.mrb[3].mxu0  ;;  %v16780_v43 = vld [vmem:[%s23642_s10 + $0x178] sm:$0xff] }
 0x121   : > { %26526 = vst [vmem:[#allocation4_spill] sm:$0xff] %v24059_v47  ;;  %v16941_v47 = vld [vmem:[%s23647_s13 + $0x28] sm:$0xff] }
 0x12f   : > { %v18705_v51 = vpop.f32.mrb[2].mxu1 }
 0x130   : > { %v18706_v52 = vpop.f32.mrb[3].mxu1 }
 0x131   : > { %v18707_v57 = vadd.f32 %v18706_v52, %v18705_v51  ;;  %v16810_v51 = vcombine.high %v16775_v38, %v16779_v41  ;;  %v16812_v52 = vcombine.high %v16776_v42, %v16780_v43 }
 0x13e   : > { %v18740_v58 = vpop.f32.mrb[4].mxu0 }
 0x13f   : > { %v18741_v59 = vpop.f32.mrb[5].mxu0  ;;  %v991_v62 = vpop.f32.mrb[4].mxu1 }
 0x140   : > { %v18742_v0 = vadd.f32 %v18741_v59, %v18740_v58  ;;  %v20694_v2 = vpop.f32.mrb[5].mxu1  ;;  %v16787_v58 = vld [vmem:[%s23642_s10 + $0x1b0] sm:$0xff]  ;;  %v16784_v59 = vld [vmem:[%s23642_s10 + $0x198] sm:$0xff] }
 0x141   : > { %v16811_v2 = vcombine.low %v16776_v42, %v16780_v43 }
 0x142   : > { %v922_v12 = vadd.f32 %v18742_v0, %v18707_v57  ;;  %v16783_v57 = vld [vmem:[%s23642_s10 + $0x190] sm:$0xff]  ;;  %v16809_v0 = vcombine.low %v16775_v38, %v16779_v41  ;;  %v1364_v41 = vcombine.high %v16833_v11, %v16833_v11 }
 0x143   : > { %v16817_v1 = vcombine.low %v16783_v57, %v16787_v58 }
 0x144   : > { %v992_v15 = vadd.f32 %v991_v62, %v922_v12  ;;  %v16788_v62 = vld [vmem:[%s23642_s10 + $0x1b8] sm:$0xff]  ;;  %v16818_v12 = vcombine.high %v16783_v57, %v16787_v58 }
 0x146   : > { %v995_v32 = vmul.f32 %v24064_v23, %v992_v15  ;;  %v16820_v15 = vcombine.high %v16784_v59, %v16788_v62 }
 0x148   : > { %v996_v36 = vadd.f32 %v24070_v33, %v995_v32  ;;  %v16791_v32 = vld [vmem:[%s23642_s10 + $0x1d0] sm:$0xff] }
 0x14a   : > { %v997_v45 = vmax.f32 %v996_v36, 0.0  ;;  %v16795_v36 = vld [vmem:[%s23642_s10 + $0x1f0] sm:$0xff] }
 0x14b   : > { %v16825_v42 = vcombine.low %v16791_v32, %v16795_v36 }
 0x14c   : > { %v998_v48 = vpack.c.bf16 %v997_v45, %v997_v45  ;;  %v16792_v45 = vld [vmem:[%s23642_s10 + $0x1d8] sm:$0xff] }
 0x14d   : > { %v16828_v38 = vcombine.high %v16792_v45, %v16796_v25  ;;  %v16827_v43 = vcombine.low %v16792_v45, %v16796_v25  ;;  %v26528_v25 = vmov 0.0|0.0   ;;  %v16874_v45 = vld [vmem:[%s23642_s10 + $0x308] sm:$0xff] }
 0x14e   : > { %16829 = vmatmul.mubr.msk.bf16.vlgmr.msra.gmra.mrb[8].mxu0 %vm489_vm1, %v998_v48  ;;  %16830 = vmatmul.mubr.msk.bf16.vlgmr.msra.gmra.mrb[8].mxu1 %vm489_vm1, %v998_v48 }
 0x14f   : > { %1278 = vmatpush1.bf16.msra.mxu0 %v16801_v3  ;;  %1319 = vmatpush1.bf16.msra.mxu1 %v16803_v21  ;;  %v16819_v3 = vcombine.low %v16784_v59, %v16788_v62  ;;  %v16826_v21 = vcombine.high %v16791_v32, %v16795_v36  ;;  %v26529_v59 = vmov 0.0   ;;  %v16873_v32 = vld [vmem:[%s23642_s10 + $0x300] sm:$0xff] }
 0x150   : > { %1279 = vmatprep.subr.bf16.mxu0 %v16810_v51  ;;  %1320 = vmatprep.subr.bf16.mxu1 %v16812_v52  ;;  %v1371_v51 = vrot.slane %v16833_v11, %v23865_v20  ;;  %v1378_v52 = vrot.slane %v1364_v41, %v23865_v20  ;;  %v16877_v36 = vld [vmem:[%s23642_s10 + $0x320] sm:$0xff] }
 0x151   : > { %1309 = vmatprep.mubr.bf16.mxu0 %v26516_v16  ;;  %1350 = vmatprep.mubr.bf16.mxu1 %v26516_v16 }
 0x152   : > { %v1379_v57 = vcombine.high %v1371_v51, %v1371_v51  ;;  %v1380_v58 = vcombine.high %v1378_v52, %v1378_v52 }
 0x153   : > { %1280 = vmatpush1.bf16.msra.mxu0 %v16809_v0  ;;  %1321 = vmatpush1.bf16.msra.mxu1 %v16811_v2  ;;  %v16835_v2 = vld.sshfl [vmem:[%s23647_s13 + $0x1c] sm:$0x3 pattern:$0x76325410] }
 0x154   : > { %1281 = vmatprep.subr.bf16.mxu0 %v16818_v12  ;;  %1322 = vmatprep.subr.bf16.mxu1 %v16820_v15  ;;  %v16871_v15 = vld.sshfl [vmem:[%s23647_s13 + $0x26] sm:$0x3 pattern:$0x76325410] }
 0x157   : > { %1282 = vmatpush1.bf16.msra.mxu0 %v16817_v1  ;;  %1323 = vmatpush1.bf16.msra.mxu1 %v16819_v3  ;;  %v16869_v1 = vld [vmem:[%s23647_s13 + $0x1e] sm:$0xff]  ;;  %v16905_v3 = vcombine.low %v16873_v32, %v16877_v36 }
 0x158   : > { %1283 = vmatprep.subr.bf16.mxu0 %v16826_v21  ;;  %1324 = vmatprep.subr.bf16.mxu1 %v16828_v38  ;;  %v1653_v11 = vrot.slane %v16869_v1, %v23865_v20  ;;  %v1646_v62 = vcombine.high %v16869_v1, %v16869_v1  ;;  %v16906_v21 = vcombine.high %v16873_v32, %v16877_v36  ;;  %v16878_v38 = vld [vmem:[%s23642_s10 + $0x328] sm:$0xff] }
 0x159   : > { %v16907_v41 = vcombine.low %v16874_v45, %v16878_v38 }
 0x15a   : > { %v1660_v0 = vrot.slane %v1646_v62, %v23865_v20  ;;  %v16889_v62 = vld [vmem:[%s23642_s10 + $0x380] sm:$0xff] }
 0x15b   : > { %1284 = vmatpush1.bf16.msra.mxu0 %v16825_v42  ;;  %1325 = vmatpush1.bf16.msra.mxu1 %v16827_v43  ;;  %v16908_v42 = vcombine.high %v16874_v45, %v16878_v38  ;;  %v16881_v43 = vld [vmem:[%s23642_s10 + $0x340] sm:$0xff]  ;;  %v16898_v38 = vld [vmem:[%s23642_s10 + $0x3c8] sm:$0xff] }
 0x15c   : > { %21285 = vmatprep.subr.bf16.mxu0 %v23659_v4  ;;  %21317 = vmatprep.subr.bf16.mxu1 %v23670_v8  ;;  %v1662_v12 = vcombine.high %v1660_v0, %v1660_v0 }
 0x15e   : > { %16831 = vmatmul.mubr.msk.bf16.vlgmr.msra.gmra.mrb[12].mxu0 %vm489_vm1, %v998_v48  ;;  %16832 = vmatmul.mubr.msk.bf16.vlgmr.msra.gmra.mrb[12].mxu1 %vm489_vm1, %v998_v48  ;;  %v1661_v48 = vcombine.high %v1653_v11, %v1653_v11 }
 0x15f   : > { %21287 = vmatpush3.bf16.msra.mxu0 %v23672_v9  ;;  %21319 = vmatpush3.bf16.msra.mxu1 %v23684_v13 }
 0x160   : > { %21289 = vmatprep.subr.bf16.mxu0 %v23697_v17  ;;  %21321 = vmatprep.subr.bf16.mxu1 %v23699_v18 }
 0x161   : > { %1458 = vmatprep.mubr.f32.mxu0 %v1379_v57  ;;  %1528 = vmatprep.mubr.f32.mxu1 %v1380_v58  ;;  %v16886_v58 = vld [vmem:[%s23642_s10 + $0x368] sm:$0xff] }
 0x163   : > { %21291 = vmatpush3.bf16.msra.mxu0 %v23711_v22  ;;  %21323 = vmatpush3.bf16.msra.mxu1 %v23724_v26 }
 0x164   : > { %21293 = vmatprep.subr.bf16.mxu0 %v23726_v27  ;;  %21325 = vmatprep.subr.bf16.mxu1 %v23737_v31 }
 0x167   : > { %21295 = vmatpush3.bf16.msra.mxu0 %v23749_v35  ;;  %21327 = vmatpush3.bf16.msra.mxu1 %v23762_v39 }
 0x168   : > { %21297 = vmatprep.subr.bf16.mxu0 %v23764_v40  ;;  %21329 = vmatprep.subr.bf16.mxu1 %v23776_v44 }
 0x16b   : > { %21299 = vmatpush3.bf16.msra.mxu0 %v23797_v54  ;;  %21331 = vmatpush3.bf16.msra.mxu1 %v23801_v55 }
 0x16c   : > { %21301 = vmatprep.subr.bf16.mxu0 %v23803_v56  ;;  %21333 = vmatprep.subr.bf16.mxu1 %v23815_v60 }
 0x16f   : > { %21303 = vmatpush3.bf16.msra.mxu0 %v23835_v5  ;;  %21335 = vmatpush3.bf16.msra.mxu1 %v23839_v6 }
 0x170   : > { %21305 = vmatprep.subr.bf16.mxu0 %v23841_v7  ;;  %21337 = vmatprep.subr.bf16.mxu1 %v23853_v14 }
 0x173   : > { %21307 = vmatpush3.bf16.msra.mxu0 %v23874_v24  ;;  %21339 = vmatpush3.bf16.msra.mxu1 %v23881_v28 }
 0x174   : > { %21309 = vmatprep.subr.bf16.mxu0 %v23883_v29  ;;  %21341 = vmatprep.subr.bf16.mxu1 %v23893_v34 }
 0x177   : > { %21311 = vmatpush3.bf16.msra.mxu0 %v23912_v46  ;;  %21343 = vmatpush3.bf16.msra.mxu1 %v23917_v49 }
 0x178   : > { %21313 = vmatprep.subr.bf16.mxu0 %v23919_v50  ;;  %21345 = vmatprep.subr.bf16.mxu1 %v23928_v53 }
 0x17b   : > { %21315 = vmatpush3.bf16.msra.mxu0 %v23937_v61  ;;  %21347 = vmatpush3.bf16.msra.mxu1 %v23942_v63 }
 0x17c   : > { %21348 = vmatprep.subr.bf16.mxu0 %v26528_v25  ;;  %21361 = vmatprep.subr.bf16.mxu1 %v23659_v4 }
 0x17e   : > { %1459 = vmatmul.mubr.f32.vlgmr.msra.gmra.mrb[6].mxu0 %v1371_v51  ;;  %1529 = vmatmul.mubr.f32.vlgmr.msra.gmra.mrb[6].mxu1 %v1378_v52  ;;  %v16885_v51 = vld [vmem:[%s23642_s10 + $0x360] sm:$0xff]  ;;  %v16882_v52 = vld [vmem:[%s23642_s10 + $0x348] sm:$0xff] }
 0x17f   : > { %21350 = vmatpush3.bf16.msra.mxu0 %v23953_v10  ;;  %21363 = vmatpush3.bf16.msra.mxu1 %v23672_v9  ;;  %v16914_v57 = vcombine.high %v16881_v43, %v16885_v51  ;;  %v16913_v1 = vcombine.low %v16881_v43, %v16885_v51 }
 0x180   : > { %21351 = vmatprep.subr.bf16.mxu0 %v26528_v25  ;;  %21365 = vmatprep.subr.bf16.mxu1 %v23697_v17 }
 0x181   : > { %20711 = vmatprep.mubr.msk.f32.mxu0 %vm23575_vm0, %v26529_v59  ;;  %1740 = vmatprep.mubr.f32.mxu1 %v1661_v48  ;;  %v16916_v48 = vcombine.high %v16882_v52, %v16886_v58 }
 0x183   : > { %21353 = vmatpush3.bf16.msra.mxu0 %v23965_v19  ;;  %21367 = vmatpush3.bf16.msra.mxu1 %v23711_v22 }
 0x184   : > { %21354 = vmatprep.subr.bf16.mxu0 %v26528_v25  ;;  %21369 = vmatprep.subr.bf16.mxu1 %v23726_v27 }
 0x187   : > { %21356 = vmatpush3.bf16.msra.mxu0 %v23979_v30  ;;  %21371 = vmatpush3.bf16.msra.mxu1 %v23749_v35 }
 0x188   : > { %21357 = vmatprep.subr.bf16.mxu0 %v26528_v25  ;;  %21373 = vmatprep.subr.bf16.mxu1 %v23764_v40 }
 0x18b   : > { %21359 = vmatpush3.bf16.msra.mxu0 %v23991_v37  ;;  %21375 = vmatpush3.bf16.msra.mxu1 %v23797_v54 }
 0x18c   : > { %21393 = vmatprep.subr.bf16.mxu0 %v23670_v8  ;;  %21377 = vmatprep.subr.bf16.mxu1 %v23803_v56 }
 0x18e   : > { %20712 = vmatmul.mubr.msk.f32.vlgmr.msra.gmra.mrb[16].mxu0 %vm489_vm1, %v16835_v2  ;;  %v16890_v2 = vld [vmem:[%s23642_s10 + $0x388] sm:$0xff] }
 0x18f   : > { %21395 = vmatpush3.bf16.msra.mxu0 %v23684_v13  ;;  %21379 = vmatpush3.bf16.msra.mxu1 %v23835_v5 }
 0x190   : > { %21397 = vmatprep.subr.bf16.mxu0 %v23699_v18  ;;  %21381 = vmatprep.subr.bf16.mxu1 %v23841_v7 }
 0x191   : > { %1810 = vmatprep.mubr.f32.mxu0 %v1662_v12 }
 0x193   : > { %21399 = vmatpush3.bf16.msra.mxu0 %v23724_v26  ;;  %21383 = vmatpush3.bf16.msra.mxu1 %v23874_v24 }
 0x194   : > { %21401 = vmatprep.subr.bf16.mxu0 %v23737_v31  ;;  %21385 = vmatprep.subr.bf16.mxu1 %v23883_v29 }
 0x197   : > { %21403 = vmatpush3.bf16.msra.mxu0 %v23762_v39  ;;  %21387 = vmatpush3.bf16.msra.mxu1 %v23912_v46 }
 0x198   : > { %21405 = vmatprep.subr.bf16.mxu0 %v23776_v44  ;;  %21389 = vmatprep.subr.bf16.mxu1 %v23919_v50 }
 0x19b   : > { %21407 = vmatpush3.bf16.msra.mxu0 %v23801_v55  ;;  %21391 = vmatpush3.bf16.msra.mxu1 %v23937_v61 }
 0x19c   : > { %21409 = vmatprep.subr.bf16.mxu0 %v23815_v60  ;;  %21424 = vmatprep.subr.bf16.mxu1 %v26528_v25 }
 0x19e   : > { %1741 = vmatmul.mubr.f32.vlgmr.msra.gmra.mrb[16].mxu1 %v1653_v11  ;;  %v16915_v11 = vcombine.low %v16882_v52, %v16886_v58  ;;  %v16879_v58 = vld [vmem:[%s23642_s10 + $0x330] sm:$0xff] }
 0x19f   : > { %21411 = vmatpush3.bf16.msra.mxu0 %v23839_v6  ;;  %21426 = vmatpush3.bf16.msra.mxu1 %v23953_v10 }
 0x1a0   : > { %21413 = vmatprep.subr.bf16.mxu0 %v23853_v14  ;;  %21427 = vmatprep.subr.bf16.mxu1 %v26528_v25 }
 0x1a1   : > { %20730 = vmatprep.mubr.msk.f32.mxu1 %vm23575_vm0, %v26529_v59 }
 0x1a3   : > { %21415 = vmatpush3.bf16.msra.mxu0 %v23881_v28  ;;  %21429 = vmatpush3.bf16.msra.mxu1 %v23965_v19 }
 0x1a4   : > { %21417 = vmatprep.subr.bf16.mxu0 %v23893_v34  ;;  %21430 = vmatprep.subr.bf16.mxu1 %v26528_v25 }
 0x1a7   : > { %21419 = vmatpush3.bf16.msra.mxu0 %v23917_v49  ;;  %21432 = vmatpush3.bf16.msra.mxu1 %v23979_v30 }
 0x1a8   : > { %21421 = vmatprep.subr.bf16.mxu0 %v23928_v53  ;;  %21433 = vmatprep.subr.bf16.mxu1 %v26528_v25 }
 0x1ab   : > { %21423 = vmatpush3.bf16.msra.mxu0 %v23942_v63  ;;  %21435 = vmatpush3.bf16.msra.mxu1 %v23991_v37 }
 0x1ac   : > { %2086 = vmatprep.subr.bf16.mxu0 %v16906_v21  ;;  %2127 = vmatprep.subr.bf16.mxu1 %v16908_v42  ;;  %v16901_v21 = vld [vmem:[%s23642_s10 + $0x3e0] sm:$0xff]  ;;  %v16902_v42 = vld [vmem:[%s23642_s10 + $0x3e8] sm:$0xff] }
 0x1ad   : > { %v16931_v51 = vcombine.low %v16898_v38, %v16902_v42  ;;  %v16932_v52 = vcombine.high %v16898_v38, %v16902_v42 }
 0x1ae   : > { %1811 = vmatmul.mubr.f32.vlgmr.msra.gmra.mrb[18].mxu0 %v1660_v0  ;;  %20731 = vmatmul.mubr.msk.f32.vlgmr.msra.gmra.mrb[18].mxu1 %vm489_vm1, %v16871_v15  ;;  %v16893_v0 = vld [vmem:[%s23642_s10 + $0x3a0] sm:$0xff]  ;;  %v16894_v15 = vld [vmem:[%s23642_s10 + $0x3a8] sm:$0xff] }
 0x1af   : > { %2118 = vmatprep.mubr.bf16.mxu0 %v26516_v16  ;;  %2159 = vmatprep.mubr.bf16.mxu1 %v26516_v16  ;;  %v16922_v12 = vcombine.high %v16889_v62, %v16893_v0  ;;  %v16921_v32 = vcombine.low %v16889_v62, %v16893_v0  ;;  %v16923_v36 = vcombine.low %v16890_v2, %v16894_v15  ;;  %v16904_v16 = vld [vmem:[%s23642_s10 + $0x3f8] sm:$0xff] }
 0x1b0   : > { %2087 = vmatpush1.bf16.msra.mxu0 %v16905_v3  ;;  %2128 = vmatpush1.bf16.msra.mxu1 %v16907_v41  ;;  %v16924_v45 = vcombine.high %v16890_v2, %v16894_v15  ;;  %v16897_v3 = vld [vmem:[%s23642_s10 + $0x3c0] sm:$0xff] }
 0x1b1   : > { %2088 = vmatprep.subr.bf16.mxu0 %v16914_v57  ;;  %2129 = vmatprep.subr.bf16.mxu1 %v16916_v48  ;;  %v16930_v41 = vcombine.high %v16897_v3, %v16901_v21  ;;  %v16929_v43 = vcombine.low %v16897_v3, %v16901_v21  ;;  %v16875_v57 = vld [vmem:[%s23642_s10 + $0x310] sm:$0xff]  ;;  %v16880_v48 = vld [vmem:[%s23642_s10 + $0x338] sm:$0xff] }
 0x1b2   : > { %v16909_v62 = vcombine.low %v16875_v57, %v16879_v58 }
 0x1b4   : > { %2089 = vmatpush1.bf16.msra.mxu0 %v16913_v1  ;;  %2130 = vmatpush1.bf16.msra.mxu1 %v16915_v11  ;;  %v16876_v1 = vld [vmem:[%s23642_s10 + $0x318] sm:$0xff]  ;;  %v16910_v11 = vcombine.high %v16875_v57, %v16879_v58 }
 0x1b5   : > { %2090 = vmatprep.subr.bf16.mxu0 %v16922_v12  ;;  %2131 = vmatprep.subr.bf16.mxu1 %v16924_v45  ;;  %v16911_v0 = vcombine.low %v16876_v1, %v16880_v48  ;;  %v16912_v2 = vcombine.high %v16876_v1, %v16880_v48 }
 0x1b8   : > { %2091 = vmatpush1.bf16.msra.mxu0 %v16921_v32  ;;  %2132 = vmatpush1.bf16.msra.mxu1 %v16923_v36 }
 0x1b9   : > { %2092 = vmatprep.subr.bf16.mxu0 %v16930_v41  ;;  %2133 = vmatprep.subr.bf16.mxu1 %v16932_v52 }
 0x1bc   : > { %2093 = vmatpush1.bf16.msra.mxu0 %v16929_v43  ;;  %2134 = vmatpush1.bf16.msra.mxu1 %v16931_v51 }
 0x1bd   : > { %2168 = vmatprep.subr.bf16.mxu0 %v16910_v11  ;;  %2209 = vmatprep.subr.bf16.mxu1 %v16912_v2 }
 0x251   : > { %v18784_v12 = vpop.f32.mrb[6].mxu0  ;;  %v18819_v15 = vpop.f32.mrb[6].mxu1 }
 0x252   : > { %v18785_v32 = vpop.f32.mrb[7].mxu0  ;;  %v18820_v36 = vpop.f32.mrb[7].mxu1 }
 0x253   : > { %v18786_v45 = vadd.f32 %v18785_v32, %v18784_v12  ;;  %v18821_v3 = vadd.f32 %v18820_v36, %v18819_v15  ;;  %v16883_v36 = vld [vmem:[%s23642_s10 + $0x350] sm:$0xff] }
 0x255   : > { %v1531_v21 = vadd.f32 %v18821_v3, %v18786_v45  ;;  %v16887_v45 = vld [vmem:[%s23642_s10 + $0x370] sm:$0xff]  ;;  %v16884_v3 = vld [vmem:[%s23642_s10 + $0x358] sm:$0xff] }
 0x261   : > { %v1600_v38 = vpop.f32.mrb[16].mxu0 }
 0x262   : > { %v24207_v41 = vadd.f32 %v1600_v38, %v1531_v21  ;;  %v20713_v42 = vpop.f32.mrb[17].mxu0  ;;  %v16888_v21 = vld [vmem:[%s23642_s10 + $0x378] sm:$0xff] }
 0x264   : > { %26530 = vst [vmem:[#allocation6_spill] sm:$0xff] %v24207_v41  ;;  %v26531_v41 = vmov 0  }
 0x271   : > { %v18863_v43 = vpop.f32.mrb[16].mxu1 }
 0x272   : > { %v18864_v51 = vpop.f32.mrb[17].mxu1 }
 0x273   : > { %v18865_v52 = vadd.f32 %v18864_v51, %v18863_v43  ;;  %v16918_v43 = vcombine.high %v16883_v36, %v16887_v45  ;;  %v16920_v51 = vcombine.high %v16884_v3, %v16888_v21 }
 0x281   : > { %v18898_v57 = vpop.f32.mrb[18].mxu0  ;;  %v1882_v58 = vpop.f32.mrb[18].mxu1 }
 0x282   : > { %v18899_v1 = vpop.f32.mrb[19].mxu0  ;;  %v20732_v11 = vpop.f32.mrb[19].mxu1 }
 0x283   : > { %v18900_v48 = vadd.f32 %v18899_v1, %v18898_v57  ;;  %v16891_v11 = vld [vmem:[%s23642_s10 + $0x390] sm:$0xff]  ;;  %v16917_v1 = vcombine.low %v16883_v36, %v16887_v45  ;;  %v2255_v45 = vcombine.high %v16941_v47, %v16941_v47 }
 0x284   : > { %v16895_v57 = vld [vmem:[%s23642_s10 + $0x3b0] sm:$0xff] }
 0x285   : > { %v1813_v2 = vadd.f32 %v18900_v48, %v18865_v52  ;;  %v16892_v52 = vld [vmem:[%s23642_s10 + $0x398] sm:$0xff]  ;;  %v16919_v48 = vcombine.low %v16884_v3, %v16888_v21 }
 0x287   : > { %v1883_v12 = vadd.f32 %v1882_v58, %v1813_v2  ;;  %v16896_v58 = vld [vmem:[%s23642_s10 + $0x3b8] sm:$0xff]  ;;  %v16926_v2 = vcombine.high %v16891_v11, %v16895_v57 }
 0x289   : > { %v1886_v15 = vmul.f32 %v24064_v23, %v1883_v12  ;;  %v16928_v12 = vcombine.high %v16892_v52, %v16896_v58 }
 0x28b   : > { %v1887_v32 = vadd.f32 %v24070_v33, %v1886_v15  ;;  %v16899_v15 = vld [vmem:[%s23642_s10 + $0x3d0] sm:$0xff]  ;;  %v16925_v33 = vcombine.low %v16891_v11, %v16895_v57 }
 0x28d   : > { %v1888_v38 = vmax.f32 %v1887_v32, 0.0  ;;  %v16903_v32 = vld [vmem:[%s23642_s10 + $0x3f0] sm:$0xff] }
 0x28e   : > { %v16933_v3 = vcombine.low %v16899_v15, %v16903_v32 }
 0x28f   : > { %v1889_v42 = vpack.c.bf16 %v1888_v38, %v1888_v38  ;;  %v16900_v38 = vld [vmem:[%s23642_s10 + $0x3d8] sm:$0xff] }
 0x290   : > { %v16936_v36 = vcombine.high %v16900_v38, %v16904_v16  ;;  %v16935_v21 = vcombine.low %v16900_v38, %v16904_v16  ;;  %v16977_v16 = vld [vmem:[%s23647_s13 + $0x32] sm:$0xff] }
 0x291   : > { %16937 = vmatmul.mubr.msk.bf16.vlgmr.msra.gmra.mrb[8].mxu0 %vm489_vm1, %v1889_v42  ;;  %16938 = vmatmul.mubr.msk.bf16.vlgmr.msra.gmra.mrb[8].mxu1 %vm489_vm1, %v1889_v42 }
 0x292   : > { %2169 = vmatpush1.bf16.msra.mxu0 %v16909_v62  ;;  %2210 = vmatpush1.bf16.msra.mxu1 %v16911_v0  ;;  %v16927_v62 = vcombine.low %v16892_v52, %v16896_v58  ;;  %v16934_v0 = vcombine.high %v16899_v15, %v16903_v32  ;;  %v16943_v58 = vld.sshfl [vmem:[%s23647_s13 + $0x30] sm:$0x3 pattern:$0x76325410]  ;;  %v16982_v15 = vld [vmem:[%s23642_s10 + $0x508] sm:$0xff] }
 0x293   : > { %2170 = vmatprep.subr.bf16.mxu0 %v16918_v43  ;;  %2211 = vmatprep.subr.bf16.mxu1 %v16920_v51  ;;  %v2262_v43 = vrot.slane %v16941_v47, %v23865_v20  ;;  %v2269_v51 = vrot.slane %v2255_v45, %v23865_v20  ;;  %v2544_v47 = vrot.slane %v16977_v16, %v23865_v20  ;;  %v16989_v45 = vld [vmem:[%s23642_s10 + $0x540] sm:$0xff] }
 0x294   : > { %2200 = vmatprep.mubr.bf16.mxu0 %v26531_v41  ;;  %2241 = vmatprep.mubr.bf16.mxu1 %v26531_v41 }
 0x295   : > { %v2270_v11 = vcombine.high %v2262_v43, %v2262_v43  ;;  %v2271_v57 = vcombine.high %v2269_v51, %v2269_v51 }
 0x296   : > { %2171 = vmatpush1.bf16.msra.mxu0 %v16917_v1  ;;  %2212 = vmatpush1.bf16.msra.mxu1 %v16919_v48  ;;  %v16979_v48 = vld.sshfl [vmem:[%s23647_s13 + $0x3a] sm:$0x3 pattern:$0x76325410] }
 0x297   : > { %2172 = vmatprep.subr.bf16.mxu0 %v16926_v2  ;;  %2213 = vmatprep.subr.bf16.mxu1 %v16928_v12  ;;  %v16981_v2 = vld [vmem:[%s23642_s10 + $0x500] sm:$0xff] }
 0x298   : > { %v16985_v12 = vld [vmem:[%s23642_s10 + $0x520] sm:$0xff] }
 0x299   : > { %v17013_v32 = vcombine.low %v16981_v2, %v16985_v12  ;;  %v17014_v38 = vcombine.high %v16981_v2, %v16985_v12  ;;  %v17005_v12 = vld [vmem:[%s23642_s10 + $0x5c0] sm:$0xff] }
 0x29a   : > { %2173 = vmatpush1.bf16.msra.mxu0 %v16925_v33  ;;  %2214 = vmatpush1.bf16.msra.mxu1 %v16927_v62  ;;  %v2552_v33 = vcombine.high %v2544_v47, %v2544_v47  ;;  %v16986_v62 = vld [vmem:[%s23642_s10 + $0x528] sm:$0xff] }
 0x29b   : > { %2174 = vmatprep.subr.bf16.mxu0 %v16934_v0  ;;  %2215 = vmatprep.subr.bf16.mxu1 %v16936_v36  ;;  %v17015_v0 = vcombine.low %v16982_v15, %v16986_v62  ;;  %v17016_v36 = vcombine.high %v16982_v15, %v16986_v62  ;;  %v17009_v15 = vld [vmem:[%s23642_s10 + $0x5e0] sm:$0xff]  ;;  %v17010_v62 = vld [vmem:[%s23642_s10 + $0x5e8] sm:$0xff] }
 0x29e   : > { %2175 = vmatpush1.bf16.msra.mxu0 %v16933_v3  ;;  %2216 = vmatpush1.bf16.msra.mxu1 %v16935_v21  ;;  %v16993_v3 = vld [vmem:[%s23642_s10 + $0x560] sm:$0xff]  ;;  %v16990_v21 = vld [vmem:[%s23642_s10 + $0x548] sm:$0xff] }
 0x29f   : > { %21437 = vmatprep.subr.bf16.mxu0 %v23659_v4  ;;  %21469 = vmatprep.subr.bf16.mxu1 %v23670_v8 }
 0x2a1   : > { %16939 = vmatmul.mubr.msk.bf16.vlgmr.msra.gmra.mrb[12].mxu0 %vm489_vm1, %v1889_v42  ;;  %16940 = vmatmul.mubr.msk.bf16.vlgmr.msra.gmra.mrb[12].mxu1 %vm489_vm1, %v1889_v42  ;;  %v2537_v42 = vcombine.high %v16977_v16, %v16977_v16 }
 0x2a2   : > { %21439 = vmatpush3.bf16.msra.mxu0 %v23672_v9  ;;  %21471 = vmatpush3.bf16.msra.mxu1 %v23684_v13 }
 0x2a3   : > { %21441 = vmatprep.subr.bf16.mxu0 %v23697_v17  ;;  %21473 = vmatprep.subr.bf16.mxu1 %v23699_v18  ;;  %v2551_v52 = vrot.slane %v2537_v42, %v23865_v20  ;;  %v16998_v42 = vld [vmem:[%s23642_s10 + $0x588] sm:$0xff] }
 0x2a4   : > { %2349 = vmatprep.mubr.f32.mxu0 %v2270_v11  ;;  %2419 = vmatprep.mubr.f32.mxu1 %v2271_v57  ;;  %v17021_v11 = vcombine.low %v16989_v45, %v16993_v3 }
 0x2a5   : > { %v2553_v1 = vcombine.high %v2551_v52, %v2551_v52 }
 0x2a6   : > { %21443 = vmatpush3.bf16.msra.mxu0 %v23711_v22  ;;  %21475 = vmatpush3.bf16.msra.mxu1 %v23724_v26 }
 0x2a7   : > { %21445 = vmatprep.subr.bf16.mxu0 %v23726_v27  ;;  %21477 = vmatprep.subr.bf16.mxu1 %v23737_v31 }
 0x2aa   : > { %21447 = vmatpush3.bf16.msra.mxu0 %v23749_v35  ;;  %21479 = vmatpush3.bf16.msra.mxu1 %v23762_v39 }
 0x2ab   : > { %21449 = vmatprep.subr.bf16.mxu0 %v23764_v40  ;;  %21481 = vmatprep.subr.bf16.mxu1 %v23776_v44 }
 0x2ae   : > { %21451 = vmatpush3.bf16.msra.mxu0 %v23797_v54  ;;  %21483 = vmatpush3.bf16.msra.mxu1 %v23801_v55 }
 0x2af   : > { %21453 = vmatprep.subr.bf16.mxu0 %v23803_v56  ;;  %21485 = vmatprep.subr.bf16.mxu1 %v23815_v60 }
 0x2b2   : > { %21455 = vmatpush3.bf16.msra.mxu0 %v23835_v5  ;;  %21487 = vmatpush3.bf16.msra.mxu1 %v23839_v6 }
 0x2b3   : > { %21457 = vmatprep.subr.bf16.mxu0 %v23841_v7  ;;  %21489 = vmatprep.subr.bf16.mxu1 %v23853_v14 }
 0x2b6   : > { %21459 = vmatpush3.bf16.msra.mxu0 %v23874_v24  ;;  %21491 = vmatpush3.bf16.msra.mxu1 %v23881_v28 }
 0x2b7   : > { %21461 = vmatprep.subr.bf16.mxu0 %v23883_v29  ;;  %21493 = vmatprep.subr.bf16.mxu1 %v23893_v34 }
 0x2ba   : > { %21463 = vmatpush3.bf16.msra.mxu0 %v23912_v46  ;;  %21495 = vmatpush3.bf16.msra.mxu1 %v23917_v49 }
 0x2bb   : > { %21465 = vmatprep.subr.bf16.mxu0 %v23919_v50  ;;  %21497 = vmatprep.subr.bf16.mxu1 %v23928_v53 }
 0x2be   : > { %21467 = vmatpush3.bf16.msra.mxu0 %v23937_v61  ;;  %21499 = vmatpush3.bf16.msra.mxu1 %v23942_v63 }
 0x2bf   : > { %21500 = vmatprep.subr.bf16.mxu0 %v26528_v25  ;;  %21513 = vmatprep.subr.bf16.mxu1 %v23659_v4 }
 0x2c1   : > { %2350 = vmatmul.mubr.f32.vlgmr.msra.gmra.mrb[20].mxu0 %v2262_v43  ;;  %2420 = vmatmul.mubr.f32.vlgmr.msra.gmra.mrb[20].mxu1 %v2269_v51  ;;  %v17022_v43 = vcombine.high %v16989_v45, %v16993_v3  ;;  %v16994_v51 = vld [vmem:[%s23642_s10 + $0x568] sm:$0xff]  ;;  %v16983_v3 = vld [vmem:[%s23642_s10 + $0x510] sm:$0xff] }
 0x2c2   : > { %21502 = vmatpush3.bf16.msra.mxu0 %v23953_v10  ;;  %21515 = vmatpush3.bf16.msra.mxu1 %v23672_v9  ;;  %v17023_v57 = vcombine.low %v16990_v21, %v16994_v51  ;;  %v17024_v16 = vcombine.high %v16990_v21, %v16994_v51  ;;  %v16987_v21 = vld [vmem:[%s23642_s10 + $0x530] sm:$0xff] }
 0x2c3   : > { %21503 = vmatprep.subr.bf16.mxu0 %v26528_v25  ;;  %21517 = vmatprep.subr.bf16.mxu1 %v23697_v17  ;;  %v17018_v51 = vcombine.high %v16983_v3, %v16987_v21 }
 0x2c4   : > { %20749 = vmatprep.mubr.msk.f32.mxu0 %vm23575_vm0, %v26529_v59  ;;  %2631 = vmatprep.mubr.f32.mxu1 %v2552_v33  ;;  %v17001_v33 = vld [vmem:[%s23642_s10 + $0x5a0] sm:$0xff] }
 0x2c6   : > { %21505 = vmatpush3.bf16.msra.mxu0 %v23965_v19  ;;  %21519 = vmatpush3.bf16.msra.mxu1 %v23711_v22 }
 0x2c7   : > { %21506 = vmatprep.subr.bf16.mxu0 %v26528_v25  ;;  %21521 = vmatprep.subr.bf16.mxu1 %v23726_v27 }
 0x2ca   : > { %21508 = vmatpush3.bf16.msra.mxu0 %v23979_v30  ;;  %21523 = vmatpush3.bf16.msra.mxu1 %v23749_v35 }
 0x2cb   : > { %21509 = vmatprep.subr.bf16.mxu0 %v26528_v25  ;;  %21525 = vmatprep.subr.bf16.mxu1 %v23764_v40 }
 0x2ce   : > { %21511 = vmatpush3.bf16.msra.mxu0 %v23991_v37  ;;  %21527 = vmatpush3.bf16.msra.mxu1 %v23797_v54 }
 0x2cf   : > { %21545 = vmatprep.subr.bf16.mxu0 %v23670_v8  ;;  %21529 = vmatprep.subr.bf16.mxu1 %v23803_v56 }
 0x2d1   : > { %20750 = vmatmul.mubr.msk.f32.vlgmr.msra.gmra.mrb[22].mxu0 %vm489_vm1, %v16943_v58  ;;  %v17002_v58 = vld [vmem:[%s23642_s10 + $0x5a8] sm:$0xff] }
 0x2d2   : > { %21547 = vmatpush3.bf16.msra.mxu0 %v23684_v13  ;;  %21531 = vmatpush3.bf16.msra.mxu1 %v23835_v5  ;;  %v17032_v2 = vcombine.high %v16998_v42, %v17002_v58 }
 0x2d3   : > { %21549 = vmatprep.subr.bf16.mxu0 %v23699_v18  ;;  %21533 = vmatprep.subr.bf16.mxu1 %v23841_v7 }
 0x2d4   : > { %2701 = vmatprep.mubr.f32.mxu0 %v2553_v1 }
 0x2d6   : > { %21551 = vmatpush3.bf16.msra.mxu0 %v23724_v26  ;;  %21535 = vmatpush3.bf16.msra.mxu1 %v23874_v24 }
 0x2d7   : > { %21553 = vmatprep.subr.bf16.mxu0 %v23737_v31  ;;  %21537 = vmatprep.subr.bf16.mxu1 %v23883_v29 }
 0x2da   : > { %21555 = vmatpush3.bf16.msra.mxu0 %v23762_v39  ;;  %21539 = vmatpush3.bf16.msra.mxu1 %v23912_v46 }
 0x2db   : > { %21557 = vmatprep.subr.bf16.mxu0 %v23776_v44  ;;  %21541 = vmatprep.subr.bf16.mxu1 %v23919_v50 }
 0x2de   : > { %21559 = vmatpush3.bf16.msra.mxu0 %v23801_v55  ;;  %21543 = vmatpush3.bf16.msra.mxu1 %v23937_v61 }
 0x2df   : > { %21561 = vmatprep.subr.bf16.mxu0 %v23815_v60  ;;  %21576 = vmatprep.subr.bf16.mxu1 %v26528_v25 }
 0x2e1   : > { %2632 = vmatmul.mubr.f32.vlgmr.msra.gmra.mrb[22].mxu1 %v2544_v47  ;;  %v16997_v47 = vld [vmem:[%s23642_s10 + $0x580] sm:$0xff] }
 0x2e2   : > { %21563 = vmatpush3.bf16.msra.mxu0 %v23839_v6  ;;  %21578 = vmatpush3.bf16.msra.mxu1 %v23953_v10  ;;  %v17029_v1 = vcombine.low %v16997_v47, %v17001_v33 }
 0x2e3   : > { %21565 = vmatprep.subr.bf16.mxu0 %v23853_v14  ;;  %21579 = vmatprep.subr.bf16.mxu1 %v26528_v25 }
 0x2e4   : > { %20768 = vmatprep.mubr.msk.f32.mxu1 %vm23575_vm0, %v26529_v59 }
 0x2e6   : > { %21567 = vmatpush3.bf16.msra.mxu0 %v23881_v28  ;;  %21581 = vmatpush3.bf16.msra.mxu1 %v23965_v19 }
 0x2e7   : > { %21569 = vmatprep.subr.bf16.mxu0 %v23893_v34  ;;  %21582 = vmatprep.subr.bf16.mxu1 %v26528_v25 }
 0x2ea   : > { %21571 = vmatpush3.bf16.msra.mxu0 %v23917_v49  ;;  %21584 = vmatpush3.bf16.msra.mxu1 %v23979_v30 }
 0x2eb   : > { %21573 = vmatprep.subr.bf16.mxu0 %v23928_v53  ;;  %21585 = vmatprep.subr.bf16.mxu1 %v26528_v25 }
 0x2ee   : > { %21575 = vmatpush3.bf16.msra.mxu0 %v23942_v63  ;;  %21587 = vmatpush3.bf16.msra.mxu1 %v23991_v37 }
 0x2ef   : > { %2977 = vmatprep.subr.bf16.mxu0 %v17014_v38  ;;  %3018 = vmatprep.subr.bf16.mxu1 %v17016_v36  ;;  %v17038_v38 = vcombine.high %v17005_v12, %v17009_v15 }
 0x2f1   : > { %2702 = vmatmul.mubr.f32.vlgmr.msra.gmra.mrb[24].mxu0 %v2551_v52  ;;  %20769 = vmatmul.mubr.msk.f32.vlgmr.msra.gmra.mrb[24].mxu1 %vm489_vm1, %v16979_v48  ;;  %v17030_v52 = vcombine.high %v16997_v47, %v17001_v33  ;;  %v17031_v48 = vcombine.low %v16998_v42, %v17002_v58 }
 0x2f2   : > { %3009 = vmatprep.mubr.bf16.mxu0 %v26531_v41  ;;  %3050 = vmatprep.mubr.bf16.mxu1 %v26531_v41 }
 0x2f3   : > { %2978 = vmatpush1.bf16.msra.mxu0 %v17013_v32  ;;  %3019 = vmatpush1.bf16.msra.mxu1 %v17015_v0  ;;  %v17006_v32 = vld [vmem:[%s23642_s10 + $0x5c8] sm:$0xff]  ;;  %v17037_v0 = vcombine.low %v17005_v12, %v17009_v15 }
 0x2f4   : > { %2979 = vmatprep.subr.bf16.mxu0 %v17022_v43  ;;  %3020 = vmatprep.subr.bf16.mxu1 %v17024_v16  ;;  %v17039_v36 = vcombine.low %v17006_v32, %v17010_v62  ;;  %v17040_v45 = vcombine.high %v17006_v32, %v17010_v62  ;;  %v16984_v43 = vld [vmem:[%s23642_s10 + $0x518] sm:$0xff] }
 0x2f7   : > { %2980 = vmatpush1.bf16.msra.mxu0 %v17021_v11  ;;  %3021 = vmatpush1.bf16.msra.mxu1 %v17023_v57  ;;  %v16988_v11 = vld [vmem:[%s23642_s10 + $0x538] sm:$0xff]  ;;  %v17017_v57 = vcombine.low %v16983_v3, %v16987_v21 }
 0x2f8   : > { %2981 = vmatprep.subr.bf16.mxu0 %v17030_v52  ;;  %3022 = vmatprep.subr.bf16.mxu1 %v17032_v2  ;;  %v17019_v16 = vcombine.low %v16984_v43, %v16988_v11  ;;  %v17020_v47 = vcombine.high %v16984_v43, %v16988_v11 }
 0x2fb   : > { %2982 = vmatpush1.bf16.msra.mxu0 %v17029_v1  ;;  %3023 = vmatpush1.bf16.msra.mxu1 %v17031_v48 }
 0x2fc   : > { %2983 = vmatprep.subr.bf16.mxu0 %v17038_v38  ;;  %3024 = vmatprep.subr.bf16.mxu1 %v17040_v45 }
 0x2ff   : > { %2984 = vmatpush1.bf16.msra.mxu0 %v17037_v0  ;;  %3025 = vmatpush1.bf16.msra.mxu1 %v17039_v36 }
 0x300   : > { %3059 = vmatprep.subr.bf16.mxu0 %v17018_v51  ;;  %3100 = vmatprep.subr.bf16.mxu1 %v17020_v47 }
 0x394   : > { %v18942_v33 = vpop.f32.mrb[20].mxu0  ;;  %v18977_v42 = vpop.f32.mrb[20].mxu1 }
 0x395   : > { %v18943_v52 = vpop.f32.mrb[21].mxu0  ;;  %v18978_v58 = vpop.f32.mrb[21].mxu1 }
 0x396   : > { %v18944_v1 = vadd.f32 %v18943_v52, %v18942_v33  ;;  %v18979_v48 = vadd.f32 %v18978_v58, %v18977_v42  ;;  %v26533_v33 = vld [vmem:[#allocation5_spill] sm:$0xff]  ;;  %v16991_v52 = vld [vmem:[%s23642_s10 + $0x550] sm:$0xff] }
 0x397   : > { %v16995_v58 = vld [vmem:[%s23642_s10 + $0x570] sm:$0xff] }
 0x398   : > { %v2422_v2 = vadd.f32 %v18979_v48, %v18944_v1  ;;  %v16992_v1 = vld [vmem:[%s23642_s10 + $0x558] sm:$0xff] }
 0x399   : > { %v16996_v48 = vld [vmem:[%s23642_s10 + $0x578] sm:$0xff] }
 0x3a4   : > { %v2491_v12 = vpop.f32.mrb[22].mxu0 }
 0x3a5   : > { %v24345_v15 = vadd.f32 %v2491_v12, %v2422_v2  ;;  %v20751_v32 = vpop.f32.mrb[23].mxu0 }
 0x3a6   : > { %v17026_v32 = vcombine.high %v16991_v52, %v16995_v58 }
 0x3a7   : > { %26532 = vst [vmem:[#allocation7_spill] sm:$0xff] %v24345_v15  ;;  %v17157_v15 = vld [vmem:[%s23647_s13 + $0x50] sm:$0xff] }
 0x3b4   : > { %v19021_v38 = vpop.f32.mrb[22].mxu1 }
 0x3b5   : > { %v19022_v62 = vpop.f32.mrb[23].mxu1 }
 0x3b6   : > { %v19023_v0 = vadd.f32 %v19022_v62, %v19021_v38  ;;  %v17028_v38 = vcombine.high %v16992_v1, %v16996_v48  ;;  %v16999_v62 = vld [vmem:[%s23642_s10 + $0x590] sm:$0xff] }
 0x3c4   : > { %v19056_v36 = vpop.f32.mrb[24].mxu0  ;;  %v2773_v45 = vpop.f32.mrb[24].mxu1 }
 0x3c5   : > { %v19057_v3 = vpop.f32.mrb[25].mxu0  ;;  %v20770_v21 = vpop.f32.mrb[25].mxu1 }
 0x3c6   : > { %v19058_v43 = vadd.f32 %v19057_v3, %v19056_v36  ;;  %v17003_v36 = vld [vmem:[%s23642_s10 + $0x5b0] sm:$0xff]  ;;  %v17027_v3 = vcombine.low %v16992_v1, %v16996_v48 }
 0x3c7   : > { %v17034_v21 = vcombine.high %v16999_v62, %v17003_v36 }
 0x3c8   : > { %v2704_v51 = vadd.f32 %v19058_v43, %v19023_v0  ;;  %v17000_v0 = vld [vmem:[%s23642_s10 + $0x598] sm:$0xff] }
 0x3ca   : > { %v2774_v11 = vadd.f32 %v2773_v45, %v2704_v51  ;;  %v17004_v45 = vld [vmem:[%s23642_s10 + $0x5b8] sm:$0xff]  ;;  %v17007_v51 = vld [vmem:[%s23642_s10 + $0x5d0] sm:$0xff] }
 0x3cb   : > { %v17036_v43 = vcombine.high %v17000_v0, %v17004_v45 }
 0x3cc   : > { %v2777_v47 = vmul.f32 %v24064_v23, %v2774_v11  ;;  %v17025_v23 = vcombine.low %v16991_v52, %v16995_v58  ;;  %v17011_v11 = vld [vmem:[%s23642_s10 + $0x5f0] sm:$0xff] }
 0x3cd   : > { %v17041_v1 = vcombine.low %v17007_v51, %v17011_v11 }
 0x3ce   : > { %v2778_v42 = vadd.f32 %v26533_v33, %v2777_v47  ;;  %v17008_v47 = vld [vmem:[%s23642_s10 + $0x5d8] sm:$0xff] }
 0x3cf   : > { %v17012_v33 = vld [vmem:[%s23642_s10 + $0x5f8] sm:$0xff] }
 0x3d0   : > { %v2779_v2 = vmax.f32 %v2778_v42, 0.0  ;;  %v17049_v42 = vld [vmem:[%s23647_s13 + $0x3c] sm:$0xff]  ;;  %v17044_v52 = vcombine.high %v17008_v47, %v17012_v33  ;;  %v17043_v48 = vcombine.low %v17008_v47, %v17012_v33  ;;  %v17090_v33 = vld [vmem:[%s23642_s10 + $0x708] sm:$0xff] }
 0x3d1   : > { %v3146_v58 = vcombine.high %v17049_v42, %v17049_v42  ;;  %v17093_v47 = vld [vmem:[%s23642_s10 + $0x720] sm:$0xff] }
 0x3d2   : > { %v2780_v12 = vpack.c.bf16 %v2779_v2, %v2779_v2  ;;  %v17033_v2 = vcombine.low %v16999_v62, %v17003_v36 }
 0x3d4   : > { %17045 = vmatmul.mubr.msk.bf16.vlgmr.msra.gmra.mrb[8].mxu0 %vm489_vm1, %v2780_v12  ;;  %17046 = vmatmul.mubr.msk.bf16.vlgmr.msra.gmra.mrb[8].mxu1 %vm489_vm1, %v2780_v12 }
 0x3d5   : > { %3060 = vmatpush1.bf16.msra.mxu0 %v17017_v57  ;;  %3101 = vmatpush1.bf16.msra.mxu1 %v17019_v16  ;;  %v17035_v57 = vcombine.low %v17000_v0, %v17004_v45  ;;  %v17042_v16 = vcombine.high %v17007_v51, %v17011_v11  ;;  %v17087_v51 = vld.sshfl [vmem:[%s23647_s13 + $0x4e] sm:$0x3 pattern:$0x76325410]  ;;  %v17089_v11 = vld [vmem:[%s23642_s10 + $0x700] sm:$0xff] }
 0x3d6   : > { %3061 = vmatprep.subr.bf16.mxu0 %v17026_v32  ;;  %3102 = vmatprep.subr.bf16.mxu1 %v17028_v38  ;;  %v3153_v32 = vrot.slane %v17049_v42, %v23865_v20  ;;  %v3160_v38 = vrot.slane %v3146_v58, %v23865_v20  ;;  %v17121_v42 = vcombine.low %v17089_v11, %v17093_v47  ;;  %v17097_v58 = vld [vmem:[%s23642_s10 + $0x740] sm:$0xff] }
 0x3d7   : > { %3091 = vmatprep.mubr.bf16.mxu0 %v26531_v41  ;;  %3132 = vmatprep.mubr.bf16.mxu1 %v26531_v41 }
 0x3d8   : > { %v3161_v62 = vcombine.high %v3153_v32, %v3153_v32  ;;  %v3162_v36 = vcombine.high %v3160_v38, %v3160_v38 }
 0x3d9   : > { %3062 = vmatpush1.bf16.msra.mxu0 %v17025_v23  ;;  %3103 = vmatpush1.bf16.msra.mxu1 %v17027_v3 }
 0x3da   : > { %3063 = vmatprep.subr.bf16.mxu0 %v17034_v21  ;;  %3104 = vmatprep.subr.bf16.mxu1 %v17036_v43  ;;  %v17051_v21 = vld.sshfl [vmem:[%s23647_s13 + $0x44] sm:$0x3 pattern:$0x76325410] }
 0x3dd   : > { %3064 = vmatpush1.bf16.msra.mxu0 %v17033_v2  ;;  %3105 = vmatpush1.bf16.msra.mxu1 %v17035_v57  ;;  %v17122_v2 = vcombine.high %v17089_v11, %v17093_v47  ;;  %v17094_v57 = vld [vmem:[%s23642_s10 + $0x728] sm:$0xff]  ;;  %v17113_v47 = vld [vmem:[%s23642_s10 + $0x7c0] sm:$0xff] }
 0x3de   : > { %3065 = vmatprep.subr.bf16.mxu0 %v17042_v16  ;;  %3106 = vmatprep.subr.bf16.mxu1 %v17044_v52  ;;  %v17123_v16 = vcombine.low %v17090_v33, %v17094_v57  ;;  %v17124_v52 = vcombine.high %v17090_v33, %v17094_v57  ;;  %v17117_v33 = vld [vmem:[%s23642_s10 + $0x7e0] sm:$0xff]  ;;  %v17118_v57 = vld [vmem:[%s23642_s10 + $0x7e8] sm:$0xff] }
 0x3e1   : > { %3066 = vmatpush1.bf16.msra.mxu0 %v17041_v1  ;;  %3107 = vmatpush1.bf16.msra.mxu1 %v17043_v48  ;;  %v17101_v1 = vld [vmem:[%s23642_s10 + $0x760] sm:$0xff]  ;;  %v17098_v48 = vld [vmem:[%s23642_s10 + $0x748] sm:$0xff] }
 0x3e2   : > { %21589 = vmatprep.subr.bf16.mxu0 %v23659_v4  ;;  %21621 = vmatprep.subr.bf16.mxu1 %v23670_v8 }
 0x3e4   : > { %17047 = vmatmul.mubr.msk.bf16.vlgmr.msra.gmra.mrb[12].mxu0 %vm489_vm1, %v2780_v12  ;;  %17048 = vmatmul.mubr.msk.bf16.vlgmr.msra.gmra.mrb[12].mxu1 %vm489_vm1, %v2780_v12  ;;  %v17085_v12 = vld [vmem:[%s23647_s13 + $0x46] sm:$0xff] }
 0x3e5   : > { %21591 = vmatpush3.bf16.msra.mxu0 %v23672_v9  ;;  %21623 = vmatpush3.bf16.msra.mxu1 %v23684_v13  ;;  %v3435_v0 = vrot.slane %v17085_v12, %v23865_v20  ;;  %v3428_v23 = vcombine.high %v17085_v12, %v17085_v12 }
 0x3e6   : > { %21593 = vmatprep.subr.bf16.mxu0 %v23697_v17  ;;  %21625 = vmatprep.subr.bf16.mxu1 %v23699_v18 }
 0x3e7   : > { %3240 = vmatprep.mubr.f32.mxu0 %v3161_v62  ;;  %3310 = vmatprep.mubr.f32.mxu1 %v3162_v36  ;;  %v3443_v45 = vcombine.high %v3435_v0, %v3435_v0  ;;  %v3442_v3 = vrot.slane %v3428_v23, %v23865_v20  ;;  %v17129_v62 = vcombine.low %v17097_v58, %v17101_v1  ;;  %v17106_v23 = vld [vmem:[%s23642_s10 + $0x788] sm:$0xff] }
 0x3e9   : > { %21595 = vmatpush3.bf16.msra.mxu0 %v23711_v22  ;;  %21627 = vmatpush3.bf16.msra.mxu1 %v23724_v26  ;;  %v3444_v43 = vcombine.high %v3442_v3, %v3442_v3 }
 0x3ea   : > { %21597 = vmatprep.subr.bf16.mxu0 %v23726_v27  ;;  %21629 = vmatprep.subr.bf16.mxu1 %v23737_v31 }
 0x3ed   : > { %21599 = vmatpush3.bf16.msra.mxu0 %v23749_v35  ;;  %21631 = vmatpush3.bf16.msra.mxu1 %v23762_v39 }
 0x3ee   : > { %21601 = vmatprep.subr.bf16.mxu0 %v23764_v40  ;;  %21633 = vmatprep.subr.bf16.mxu1 %v23776_v44 }
 0x3f1   : > { %21603 = vmatpush3.bf16.msra.mxu0 %v23797_v54  ;;  %21635 = vmatpush3.bf16.msra.mxu1 %v23801_v55 }
 0x3f2   : > { %21605 = vmatprep.subr.bf16.mxu0 %v23803_v56  ;;  %21637 = vmatprep.subr.bf16.mxu1 %v23815_v60 }
 0x3f5   : > { %21607 = vmatpush3.bf16.msra.mxu0 %v23835_v5  ;;  %21639 = vmatpush3.bf16.msra.mxu1 %v23839_v6 }
 0x3f6   : > { %21609 = vmatprep.subr.bf16.mxu0 %v23841_v7  ;;  %21641 = vmatprep.subr.bf16.mxu1 %v23853_v14 }
 0x3f9   : > { %21611 = vmatpush3.bf16.msra.mxu0 %v23874_v24  ;;  %21643 = vmatpush3.bf16.msra.mxu1 %v23881_v28 }
 0x3fa   : > { %21613 = vmatprep.subr.bf16.mxu0 %v23883_v29  ;;  %21645 = vmatprep.subr.bf16.mxu1 %v23893_v34 }
 0x3fd   : > { %21615 = vmatpush3.bf16.msra.mxu0 %v23912_v46  ;;  %21647 = vmatpush3.bf16.msra.mxu1 %v23917_v49 }
 0x3fe   : > { %21617 = vmatprep.subr.bf16.mxu0 %v23919_v50  ;;  %21649 = vmatprep.subr.bf16.mxu1 %v23928_v53 }
 0x401   : > { %21619 = vmatpush3.bf16.msra.mxu0 %v23937_v61  ;;  %21651 = vmatpush3.bf16.msra.mxu1 %v23942_v63 }
 0x402   : > { %21652 = vmatprep.subr.bf16.mxu0 %v26528_v25  ;;  %21665 = vmatprep.subr.bf16.mxu1 %v23659_v4 }
 0x404   : > { %3241 = vmatmul.mubr.f32.vlgmr.msra.gmra.mrb[26].mxu0 %v3153_v32  ;;  %3311 = vmatmul.mubr.f32.vlgmr.msra.gmra.mrb[26].mxu1 %v3160_v38  ;;  %v17130_v32 = vcombine.high %v17097_v58, %v17101_v1  ;;  %v17102_v38 = vld [vmem:[%s23642_s10 + $0x768] sm:$0xff]  ;;  %v17091_v1 = vld [vmem:[%s23642_s10 + $0x710] sm:$0xff] }
 0x405   : > { %21654 = vmatpush3.bf16.msra.mxu0 %v23953_v10  ;;  %21667 = vmatpush3.bf16.msra.mxu1 %v23672_v9  ;;  %v17131_v36 = vcombine.low %v17098_v48, %v17102_v38  ;;  %v17132_v12 = vcombine.high %v17098_v48, %v17102_v38  ;;  %v17095_v48 = vld [vmem:[%s23642_s10 + $0x730] sm:$0xff] }
 0x406   : > { %21655 = vmatprep.subr.bf16.mxu0 %v26528_v25  ;;  %21669 = vmatprep.subr.bf16.mxu1 %v23697_v17  ;;  %v17126_v38 = vcombine.high %v17091_v1, %v17095_v48 }
 0x407   : > { %20787 = vmatprep.mubr.msk.f32.mxu0 %vm23575_vm0, %v26529_v59  ;;  %3522 = vmatprep.mubr.f32.mxu1 %v3443_v45  ;;  %v17109_v45 = vld [vmem:[%s23642_s10 + $0x7a0] sm:$0xff] }
 0x409   : > { %21657 = vmatpush3.bf16.msra.mxu0 %v23965_v19  ;;  %21671 = vmatpush3.bf16.msra.mxu1 %v23711_v22 }
 0x40a   : > { %21658 = vmatprep.subr.bf16.mxu0 %v26528_v25  ;;  %21673 = vmatprep.subr.bf16.mxu1 %v23726_v27 }
 0x40d   : > { %21660 = vmatpush3.bf16.msra.mxu0 %v23979_v30  ;;  %21675 = vmatpush3.bf16.msra.mxu1 %v23749_v35 }
 0x40e   : > { %21661 = vmatprep.subr.bf16.mxu0 %v26528_v25  ;;  %21677 = vmatprep.subr.bf16.mxu1 %v23764_v40 }
 0x411   : > { %21663 = vmatpush3.bf16.msra.mxu0 %v23991_v37  ;;  %21679 = vmatpush3.bf16.msra.mxu1 %v23797_v54 }
 0x412   : > { %21697 = vmatprep.subr.bf16.mxu0 %v23670_v8  ;;  %21681 = vmatprep.subr.bf16.mxu1 %v23803_v56 }
 0x414   : > { %20788 = vmatmul.mubr.msk.f32.vlgmr.msra.gmra.mrb[28].mxu0 %vm489_vm1, %v17051_v21  ;;  %v17110_v21 = vld [vmem:[%s23642_s10 + $0x7a8] sm:$0xff] }
 0x415   : > { %21699 = vmatpush3.bf16.msra.mxu0 %v23684_v13  ;;  %21683 = vmatpush3.bf16.msra.mxu1 %v23835_v5  ;;  %v17140_v11 = vcombine.high %v17106_v23, %v17110_v21 }
 0x416   : > { %21701 = vmatprep.subr.bf16.mxu0 %v23699_v18  ;;  %21685 = vmatprep.subr.bf16.mxu1 %v23841_v7 }
 0x417   : > { %3592 = vmatprep.mubr.f32.mxu0 %v3444_v43 }
 0x419   : > { %21703 = vmatpush3.bf16.msra.mxu0 %v23724_v26  ;;  %21687 = vmatpush3.bf16.msra.mxu1 %v23874_v24 }
 0x41a   : > { %21705 = vmatprep.subr.bf16.mxu0 %v23737_v31  ;;  %21689 = vmatprep.subr.bf16.mxu1 %v23883_v29 }
 0x41d   : > { %21707 = vmatpush3.bf16.msra.mxu0 %v23762_v39  ;;  %21691 = vmatpush3.bf16.msra.mxu1 %v23912_v46 }
 0x41e   : > { %21709 = vmatprep.subr.bf16.mxu0 %v23776_v44  ;;  %21693 = vmatprep.subr.bf16.mxu1 %v23919_v50 }
 0x421   : > { %21711 = vmatpush3.bf16.msra.mxu0 %v23801_v55  ;;  %21695 = vmatpush3.bf16.msra.mxu1 %v23937_v61 }
 0x422   : > { %21713 = vmatprep.subr.bf16.mxu0 %v23815_v60  ;;  %21728 = vmatprep.subr.bf16.mxu1 %v26528_v25 }
 0x424   : > { %3523 = vmatmul.mubr.f32.vlgmr.msra.gmra.mrb[28].mxu1 %v3435_v0  ;;  %v17105_v0 = vld [vmem:[%s23642_s10 + $0x780] sm:$0xff] }
 0x425   : > { %21715 = vmatpush3.bf16.msra.mxu0 %v23839_v6  ;;  %21730 = vmatpush3.bf16.msra.mxu1 %v23953_v10  ;;  %v17137_v43 = vcombine.low %v17105_v0, %v17109_v45 }
 0x426   : > { %21717 = vmatprep.subr.bf16.mxu0 %v23853_v14  ;;  %21731 = vmatprep.subr.bf16.mxu1 %v26528_v25 }
 0x427   : > { %20806 = vmatprep.mubr.msk.f32.mxu1 %vm23575_vm0, %v26529_v59 }
 0x429   : > { %21719 = vmatpush3.bf16.msra.mxu0 %v23881_v28  ;;  %21733 = vmatpush3.bf16.msra.mxu1 %v23965_v19 }
 0x42a   : > { %21721 = vmatprep.subr.bf16.mxu0 %v23893_v34  ;;  %21734 = vmatprep.subr.bf16.mxu1 %v26528_v25 }
 0x42d   : > { %21723 = vmatpush3.bf16.msra.mxu0 %v23917_v49  ;;  %21736 = vmatpush3.bf16.msra.mxu1 %v23979_v30 }
 0x42e   : > { %21725 = vmatprep.subr.bf16.mxu0 %v23928_v53  ;;  %21737 = vmatprep.subr.bf16.mxu1 %v26528_v25 }
 0x431   : > { %21727 = vmatpush3.bf16.msra.mxu0 %v23942_v63  ;;  %21739 = vmatpush3.bf16.msra.mxu1 %v23991_v37 }
 0x432   : > { %3868 = vmatprep.subr.bf16.mxu0 %v17122_v2  ;;  %3909 = vmatprep.subr.bf16.mxu1 %v17124_v52  ;;  %v17146_v2 = vcombine.high %v17113_v47, %v17117_v33 }
 0x434   : > { %3593 = vmatmul.mubr.f32.vlgmr.msra.gmra.mrb[30].mxu0 %v3442_v3  ;;  %20807 = vmatmul.mubr.msk.f32.vlgmr.msra.gmra.mrb[30].mxu1 %vm489_vm1, %v17087_v51  ;;  %v17138_v3 = vcombine.high %v17105_v0, %v17109_v45  ;;  %v17139_v51 = vcombine.low %v17106_v23, %v17110_v21 }
 0x435   : > { %3900 = vmatprep.mubr.bf16.mxu0 %v26531_v41  ;;  %3941 = vmatprep.mubr.bf16.mxu1 %v26531_v41 }
 0x436   : > { %3869 = vmatpush1.bf16.msra.mxu0 %v17121_v42  ;;  %3910 = vmatpush1.bf16.msra.mxu1 %v17123_v16  ;;  %v17114_v42 = vld [vmem:[%s23642_s10 + $0x7c8] sm:$0xff]  ;;  %v17145_v16 = vcombine.low %v17113_v47, %v17117_v33 }
 0x437   : > { %3870 = vmatprep.subr.bf16.mxu0 %v17130_v32  ;;  %3911 = vmatprep.subr.bf16.mxu1 %v17132_v12  ;;  %v17147_v52 = vcombine.low %v17114_v42, %v17118_v57  ;;  %v17148_v58 = vcombine.high %v17114_v42, %v17118_v57  ;;  %v17092_v32 = vld [vmem:[%s23642_s10 + $0x718] sm:$0xff] }
 0x43a   : > { %3871 = vmatpush1.bf16.msra.mxu0 %v17129_v62  ;;  %3912 = vmatpush1.bf16.msra.mxu1 %v17131_v36  ;;  %v17096_v62 = vld [vmem:[%s23642_s10 + $0x738] sm:$0xff]  ;;  %v17125_v36 = vcombine.low %v17091_v1, %v17095_v48 }
 0x43b   : > { %3872 = vmatprep.subr.bf16.mxu0 %v17138_v3  ;;  %3913 = vmatprep.subr.bf16.mxu1 %v17140_v11  ;;  %v17127_v12 = vcombine.low %v17092_v32, %v17096_v62  ;;  %v17128_v0 = vcombine.high %v17092_v32, %v17096_v62 }
 0x43e   : > { %3873 = vmatpush1.bf16.msra.mxu0 %v17137_v43  ;;  %3914 = vmatpush1.bf16.msra.mxu1 %v17139_v51 }
 0x43f   : > { %3874 = vmatprep.subr.bf16.mxu0 %v17146_v2  ;;  %3915 = vmatprep.subr.bf16.mxu1 %v17148_v58 }
 0x442   : > { %3875 = vmatpush1.bf16.msra.mxu0 %v17145_v16  ;;  %3916 = vmatpush1.bf16.msra.mxu1 %v17147_v52 }
 0x443   : > { %3950 = vmatprep.subr.bf16.mxu0 %v17126_v38  ;;  %3991 = vmatprep.subr.bf16.mxu1 %v17128_v0  ;;  %v24488_v0 = vld [vmem:[%s26504_s2] ss:$0 sm:$0xff] }
 0x4d7   : > { %v19100_v45 = vpop.f32.mrb[26].mxu0  ;;  %v19135_v23 = vpop.f32.mrb[26].mxu1 }
 0x4d8   : > { %v19101_v3 = vpop.f32.mrb[27].mxu0  ;;  %v19136_v21 = vpop.f32.mrb[27].mxu1 }
 0x4d9   : > { %v19102_v43 = vadd.f32 %v19101_v3, %v19100_v45  ;;  %v19137_v51 = vadd.f32 %v19136_v21, %v19135_v23  ;;  %v24494_v23 = vld [vmem:[%s26505_s3] ss:$0 sm:$0xff]  ;;  %v17099_v21 = vld [vmem:[%s23642_s10 + $0x750] sm:$0xff] }
 0x4da   : > { %26535 = vst [vmem:[#allocation8_spill] sm:$0xff] %v24494_v23 }
 0x4db   : > { %v3313_v11 = vadd.f32 %v19137_v51, %v19102_v43  ;;  %v17103_v43 = vld [vmem:[%s23642_s10 + $0x770] sm:$0xff]  ;;  %v17100_v51 = vld [vmem:[%s23642_s10 + $0x758] sm:$0xff] }
 0x4e7   : > { %v3382_v47 = vpop.f32.mrb[28].mxu0 }
 0x4e8   : > { %v24483_v33 = vadd.f32 %v3382_v47, %v3313_v11  ;;  %v20789_v42 = vpop.f32.mrb[29].mxu0  ;;  %v17104_v11 = vld [vmem:[%s23642_s10 + $0x778] sm:$0xff] }
 0x4ea   : > { %26534 = vst [vmem:[#allocation5_spill] sm:$0xff] %v24483_v33  ;;  %v17120_v33 = vld [vmem:[%s23642_s10 + $0x7f8] sm:$0xff] }
 0x4f7   : > { %v19179_v2 = vpop.f32.mrb[28].mxu1 }
 0x4f8   : > { %v19180_v57 = vpop.f32.mrb[29].mxu1 }
 0x4f9   : > { %v19181_v16 = vadd.f32 %v19180_v57, %v19179_v2  ;;  %v17134_v2 = vcombine.high %v17099_v21, %v17103_v43  ;;  %v17136_v57 = vcombine.high %v17100_v51, %v17104_v11 }
 0x507   : > { %v19214_v52 = vpop.f32.mrb[30].mxu0  ;;  %v3664_v58 = vpop.f32.mrb[30].mxu1 }
 0x508   : > { %v19215_v1 = vpop.f32.mrb[31].mxu0  ;;  %v20808_v48 = vpop.f32.mrb[31].mxu1 }
 0x509   : > { %v19216_v32 = vadd.f32 %v19215_v1, %v19214_v52  ;;  %v17111_v52 = vld [vmem:[%s23642_s10 + $0x7b0] sm:$0xff]  ;;  %v17112_v1 = vld [vmem:[%s23642_s10 + $0x7b8] sm:$0xff]  ;;  %v17133_v48 = vcombine.low %v17099_v21, %v17103_v43  ;;  %v4037_v43 = vcombine.high %v17157_v15, %v17157_v15 }
 0x50b   : > { %v3595_v38 = vadd.f32 %v19216_v32, %v19181_v16  ;;  %v17107_v16 = vld [vmem:[%s23642_s10 + $0x790] sm:$0xff]  ;;  %v17135_v32 = vcombine.low %v17100_v51, %v17104_v11 }
 0x50d   : > { %v3665_v62 = vadd.f32 %v3664_v58, %v3595_v38  ;;  %v17108_v58 = vld [vmem:[%s23642_s10 + $0x798] sm:$0xff]  ;;  %v17142_v38 = vcombine.high %v17107_v16, %v17111_v52 }
 0x50f   : > { %v3668_v45 = vmul.f32 %v24488_v0, %v3665_v62  ;;  %v17144_v62 = vcombine.high %v17108_v58, %v17112_v1 }
 0x511   : > { %v3669_v3 = vadd.f32 %v24494_v23, %v3668_v45  ;;  %v17115_v45 = vld [vmem:[%s23642_s10 + $0x7d0] sm:$0xff]  ;;  %v17141_v23 = vcombine.low %v17107_v16, %v17111_v52 }
 0x513   : > { %v3670_v47 = vmax.f32 %v3669_v3, 0.0  ;;  %v17119_v3 = vld [vmem:[%s23642_s10 + $0x7f0] sm:$0xff] }
 0x514   : > { %v17149_v51 = vcombine.low %v17115_v45, %v17119_v3 }
 0x515   : > { %v3671_v42 = vpack.c.bf16 %v3670_v47, %v3670_v47  ;;  %v17116_v47 = vld [vmem:[%s23642_s10 + $0x7d8] sm:$0xff] }
 0x516   : > { %v17152_v21 = vcombine.high %v17116_v47, %v17120_v33  ;;  %v17151_v11 = vcombine.low %v17116_v47, %v17120_v33 }
 0x517   : > { %17153 = vmatmul.mubr.msk.bf16.vlgmr.msra.gmra.mrb[8].mxu0 %vm489_vm1, %v3671_v42  ;;  %17154 = vmatmul.mubr.msk.bf16.vlgmr.msra.gmra.mrb[8].mxu1 %vm489_vm1, %v3671_v42 }
 0x518   : > { %3951 = vmatpush1.bf16.msra.mxu0 %v17125_v36  ;;  %3992 = vmatpush1.bf16.msra.mxu1 %v17127_v12  ;;  %v17143_v36 = vcombine.low %v17108_v58, %v17112_v1  ;;  %v17150_v12 = vcombine.high %v17115_v45, %v17119_v3  ;;  %v17159_v1 = vld.sshfl [vmem:[%s23647_s13 + $0x58] sm:$0x3 pattern:$0x76325410]  ;;  %v17198_v45 = vld [vmem:[%s23642_s10 + $0x908] sm:$0xff] }
 0x519   : > { %3952 = vmatprep.subr.bf16.mxu0 %v17134_v2  ;;  %3993 = vmatprep.subr.bf16.mxu1 %v17136_v57  ;;  %v4044_v2 = vrot.slane %v17157_v15, %v23865_v20  ;;  %v4051_v57 = vrot.slane %v4037_v43, %v23865_v20  ;;  %v17193_v15 = vld [vmem:[%s23647_s13 + $0x5a] sm:$0xff] }
 0x51a   : > { %3982 = vmatprep.mubr.bf16.mxu0 %v26531_v41  ;;  %4023 = vmatprep.mubr.bf16.mxu1 %v26531_v41  ;;  %v4326_v33 = vrot.slane %v17193_v15, %v23865_v20  ;;  %v17205_v43 = vld [vmem:[%s23642_s10 + $0x940] sm:$0xff] }
 0x51b   : > { %v4052_v16 = vcombine.high %v4044_v2, %v4044_v2  ;;  %v4053_v52 = vcombine.high %v4051_v57, %v4051_v57 }
 0x51c   : > { %3953 = vmatpush1.bf16.msra.mxu0 %v17133_v48  ;;  %3994 = vmatpush1.bf16.msra.mxu1 %v17135_v32  ;;  %v17195_v32 = vld.sshfl [vmem:[%s23647_s13 + $0x62] sm:$0x3 pattern:$0x76325410] }
 0x51d   : > { %3954 = vmatprep.subr.bf16.mxu0 %v17142_v38  ;;  %3995 = vmatprep.subr.bf16.mxu1 %v17144_v62  ;;  %v17197_v38 = vld [vmem:[%s23642_s10 + $0x900] sm:$0xff] }
 0x51e   : > { %v17201_v62 = vld [vmem:[%s23642_s10 + $0x920] sm:$0xff] }
 0x51f   : > { %v17229_v3 = vcombine.low %v17197_v38, %v17201_v62  ;;  %v17230_v47 = vcombine.high %v17197_v38, %v17201_v62  ;;  %v17221_v62 = vld [vmem:[%s23642_s10 + $0x9c0] sm:$0xff] }
 0x520   : > { %3955 = vmatpush1.bf16.msra.mxu0 %v17141_v23  ;;  %3996 = vmatpush1.bf16.msra.mxu1 %v17143_v36  ;;  %v4334_v23 = vcombine.high %v4326_v33, %v4326_v33  ;;  %v17202_v36 = vld [vmem:[%s23642_s10 + $0x928] sm:$0xff] }
 0x521   : > { %3956 = vmatprep.subr.bf16.mxu0 %v17150_v12  ;;  %3997 = vmatprep.subr.bf16.mxu1 %v17152_v21  ;;  %v17231_v12 = vcombine.low %v17198_v45, %v17202_v36  ;;  %v17232_v21 = vcombine.high %v17198_v45, %v17202_v36  ;;  %v17225_v45 = vld [vmem:[%s23642_s10 + $0x9e0] sm:$0xff]  ;;  %v17226_v36 = vld [vmem:[%s23642_s10 + $0x9e8] sm:$0xff] }
 0x524   : > { %3957 = vmatpush1.bf16.msra.mxu0 %v17149_v51  ;;  %3998 = vmatpush1.bf16.msra.mxu1 %v17151_v11  ;;  %v17209_v51 = vld [vmem:[%s23642_s10 + $0x960] sm:$0xff]  ;;  %v17206_v11 = vld [vmem:[%s23642_s10 + $0x948] sm:$0xff] }
 0x525   : > { %21741 = vmatprep.subr.bf16.mxu0 %v23659_v4  ;;  %21773 = vmatprep.subr.bf16.mxu1 %v23670_v8 }
 0x527   : > { %17155 = vmatmul.mubr.msk.bf16.vlgmr.msra.gmra.mrb[12].mxu0 %vm489_vm1, %v3671_v42  ;;  %17156 = vmatmul.mubr.msk.bf16.vlgmr.msra.gmra.mrb[12].mxu1 %vm489_vm1, %v3671_v42  ;;  %v4319_v42 = vcombine.high %v17193_v15, %v17193_v15 }
 0x528   : > { %21743 = vmatpush3.bf16.msra.mxu0 %v23672_v9  ;;  %21775 = vmatpush3.bf16.msra.mxu1 %v23684_v13 }
 0x529   : > { %21745 = vmatprep.subr.bf16.mxu0 %v23697_v17  ;;  %21777 = vmatprep.subr.bf16.mxu1 %v23699_v18  ;;  %v4333_v58 = vrot.slane %v4319_v42, %v23865_v20  ;;  %v17214_v42 = vld [vmem:[%s23642_s10 + $0x988] sm:$0xff] }
 0x52a   : > { %4131 = vmatprep.mubr.f32.mxu0 %v4052_v16  ;;  %4201 = vmatprep.mubr.f32.mxu1 %v4053_v52  ;;  %v17237_v16 = vcombine.low %v17205_v43, %v17209_v51 }
 0x52b   : > { %v4335_v48 = vcombine.high %v4333_v58, %v4333_v58 }
 0x52c   : > { %21747 = vmatpush3.bf16.msra.mxu0 %v23711_v22  ;;  %21779 = vmatpush3.bf16.msra.mxu1 %v23724_v26 }
 0x52d   : > { %21749 = vmatprep.subr.bf16.mxu0 %v23726_v27  ;;  %21781 = vmatprep.subr.bf16.mxu1 %v23737_v31 }
 0x530   : > { %21751 = vmatpush3.bf16.msra.mxu0 %v23749_v35  ;;  %21783 = vmatpush3.bf16.msra.mxu1 %v23762_v39 }
 0x531   : > { %21753 = vmatprep.subr.bf16.mxu0 %v23764_v40  ;;  %21785 = vmatprep.subr.bf16.mxu1 %v23776_v44 }
 0x534   : > { %21755 = vmatpush3.bf16.msra.mxu0 %v23797_v54  ;;  %21787 = vmatpush3.bf16.msra.mxu1 %v23801_v55 }
 0x535   : > { %21757 = vmatprep.subr.bf16.mxu0 %v23803_v56  ;;  %21789 = vmatprep.subr.bf16.mxu1 %v23815_v60 }
 0x538   : > { %21759 = vmatpush3.bf16.msra.mxu0 %v23835_v5  ;;  %21791 = vmatpush3.bf16.msra.mxu1 %v23839_v6 }
 0x539   : > { %21761 = vmatprep.subr.bf16.mxu0 %v23841_v7  ;;  %21793 = vmatprep.subr.bf16.mxu1 %v23853_v14 }
 0x53c   : > { %21763 = vmatpush3.bf16.msra.mxu0 %v23874_v24  ;;  %21795 = vmatpush3.bf16.msra.mxu1 %v23881_v28 }
 0x53d   : > { %21765 = vmatprep.subr.bf16.mxu0 %v23883_v29  ;;  %21797 = vmatprep.subr.bf16.mxu1 %v23893_v34 }
 0x540   : > { %21767 = vmatpush3.bf16.msra.mxu0 %v23912_v46  ;;  %21799 = vmatpush3.bf16.msra.mxu1 %v23917_v49 }
 0x541   : > { %21769 = vmatprep.subr.bf16.mxu0 %v23919_v50  ;;  %21801 = vmatprep.subr.bf16.mxu1 %v23928_v53 }
 0x544   : > { %21771 = vmatpush3.bf16.msra.mxu0 %v23937_v61  ;;  %21803 = vmatpush3.bf16.msra.mxu1 %v23942_v63 }
 0x545   : > { %21804 = vmatprep.subr.bf16.mxu0 %v26528_v25  ;;  %21817 = vmatprep.subr.bf16.mxu1 %v23659_v4 }
 0x547   : > { %4132 = vmatmul.mubr.f32.vlgmr.msra.gmra.mrb[32].mxu0 %v4044_v2  ;;  %4202 = vmatmul.mubr.f32.vlgmr.msra.gmra.mrb[32].mxu1 %v4051_v57  ;;  %v17238_v2 = vcombine.high %v17205_v43, %v17209_v51  ;;  %v17210_v57 = vld [vmem:[%s23642_s10 + $0x968] sm:$0xff]  ;;  %v17199_v51 = vld [vmem:[%s23642_s10 + $0x910] sm:$0xff] }
 0x548   : > { %21806 = vmatpush3.bf16.msra.mxu0 %v23953_v10  ;;  %21819 = vmatpush3.bf16.msra.mxu1 %v23672_v9  ;;  %v17239_v52 = vcombine.low %v17206_v11, %v17210_v57  ;;  %v17240_v15 = vcombine.high %v17206_v11, %v17210_v57  ;;  %v17203_v11 = vld [vmem:[%s23642_s10 + $0x930] sm:$0xff] }
 0x549   : > { %21807 = vmatprep.subr.bf16.mxu0 %v26528_v25  ;;  %21821 = vmatprep.subr.bf16.mxu1 %v23697_v17  ;;  %v17234_v57 = vcombine.high %v17199_v51, %v17203_v11 }
 0x54a   : > { %20825 = vmatprep.mubr.msk.f32.mxu0 %vm23575_vm0, %v26529_v59  ;;  %4413 = vmatprep.mubr.f32.mxu1 %v4334_v23  ;;  %v17217_v23 = vld [vmem:[%s23642_s10 + $0x9a0] sm:$0xff] }
 0x54c   : > { %21809 = vmatpush3.bf16.msra.mxu0 %v23965_v19  ;;  %21823 = vmatpush3.bf16.msra.mxu1 %v23711_v22 }
 0x54d   : > { %21810 = vmatprep.subr.bf16.mxu0 %v26528_v25  ;;  %21825 = vmatprep.subr.bf16.mxu1 %v23726_v27 }
 0x550   : > { %21812 = vmatpush3.bf16.msra.mxu0 %v23979_v30  ;;  %21827 = vmatpush3.bf16.msra.mxu1 %v23749_v35 }
 0x551   : > { %21813 = vmatprep.subr.bf16.mxu0 %v26528_v25  ;;  %21829 = vmatprep.subr.bf16.mxu1 %v23764_v40 }
 0x554   : > { %21815 = vmatpush3.bf16.msra.mxu0 %v23991_v37  ;;  %21831 = vmatpush3.bf16.msra.mxu1 %v23797_v54 }
 0x555   : > { %21849 = vmatprep.subr.bf16.mxu0 %v23670_v8  ;;  %21833 = vmatprep.subr.bf16.mxu1 %v23803_v56 }
 0x557   : > { %20826 = vmatmul.mubr.msk.f32.vlgmr.msra.gmra.mrb[34].mxu0 %vm489_vm1, %v17159_v1  ;;  %v17218_v1 = vld [vmem:[%s23642_s10 + $0x9a8] sm:$0xff] }
 0x558   : > { %21851 = vmatpush3.bf16.msra.mxu0 %v23684_v13  ;;  %21835 = vmatpush3.bf16.msra.mxu1 %v23835_v5  ;;  %v17248_v38 = vcombine.high %v17214_v42, %v17218_v1 }
 0x559   : > { %21853 = vmatprep.subr.bf16.mxu0 %v23699_v18  ;;  %21837 = vmatprep.subr.bf16.mxu1 %v23841_v7 }
 0x55a   : > { %4483 = vmatprep.mubr.f32.mxu0 %v4335_v48 }
 0x55c   : > { %21855 = vmatpush3.bf16.msra.mxu0 %v23724_v26  ;;  %21839 = vmatpush3.bf16.msra.mxu1 %v23874_v24 }
 0x55d   : > { %21857 = vmatprep.subr.bf16.mxu0 %v23737_v31  ;;  %21841 = vmatprep.subr.bf16.mxu1 %v23883_v29 }
 0x560   : > { %21859 = vmatpush3.bf16.msra.mxu0 %v23762_v39  ;;  %21843 = vmatpush3.bf16.msra.mxu1 %v23912_v46 }
 0x561   : > { %21861 = vmatprep.subr.bf16.mxu0 %v23776_v44  ;;  %21845 = vmatprep.subr.bf16.mxu1 %v23919_v50 }
 0x564   : > { %21863 = vmatpush3.bf16.msra.mxu0 %v23801_v55  ;;  %21847 = vmatpush3.bf16.msra.mxu1 %v23937_v61 }
 0x565   : > { %21865 = vmatprep.subr.bf16.mxu0 %v23815_v60  ;;  %21880 = vmatprep.subr.bf16.mxu1 %v26528_v25 }
 0x567   : > { %4414 = vmatmul.mubr.f32.vlgmr.msra.gmra.mrb[34].mxu1 %v4326_v33  ;;  %v17213_v33 = vld [vmem:[%s23642_s10 + $0x980] sm:$0xff] }
 0x568   : > { %21867 = vmatpush3.bf16.msra.mxu0 %v23839_v6  ;;  %21882 = vmatpush3.bf16.msra.mxu1 %v23953_v10  ;;  %v17245_v48 = vcombine.low %v17213_v33, %v17217_v23 }
 0x569   : > { %21869 = vmatprep.subr.bf16.mxu0 %v23853_v14  ;;  %21883 = vmatprep.subr.bf16.mxu1 %v26528_v25 }
 0x56a   : > { %20844 = vmatprep.mubr.msk.f32.mxu1 %vm23575_vm0, %v26529_v59 }
 0x56c   : > { %21871 = vmatpush3.bf16.msra.mxu0 %v23881_v28  ;;  %21885 = vmatpush3.bf16.msra.mxu1 %v23965_v19 }
 0x56d   : > { %21873 = vmatprep.subr.bf16.mxu0 %v23893_v34  ;;  %21886 = vmatprep.subr.bf16.mxu1 %v26528_v25 }
 0x570   : > { %21875 = vmatpush3.bf16.msra.mxu0 %v23917_v49  ;;  %21888 = vmatpush3.bf16.msra.mxu1 %v23979_v30 }
 0x571   : > { %21877 = vmatprep.subr.bf16.mxu0 %v23928_v53  ;;  %21889 = vmatprep.subr.bf16.mxu1 %v26528_v25 }
 0x574   : > { %21879 = vmatpush3.bf16.msra.mxu0 %v23942_v63  ;;  %21891 = vmatpush3.bf16.msra.mxu1 %v23991_v37 }
 0x575   : > { %4759 = vmatprep.subr.bf16.mxu0 %v17230_v47  ;;  %4800 = vmatprep.subr.bf16.mxu1 %v17232_v21  ;;  %v17254_v47 = vcombine.high %v17221_v62, %v17225_v45 }
 0x577   : > { %4484 = vmatmul.mubr.f32.vlgmr.msra.gmra.mrb[36].mxu0 %v4333_v58  ;;  %20845 = vmatmul.mubr.msk.f32.vlgmr.msra.gmra.mrb[36].mxu1 %vm489_vm1, %v17195_v32  ;;  %v17246_v58 = vcombine.high %v17213_v33, %v17217_v23  ;;  %v17247_v32 = vcombine.low %v17214_v42, %v17218_v1 }
 0x578   : > { %4791 = vmatprep.mubr.bf16.mxu0 %v26531_v41  ;;  %4832 = vmatprep.mubr.bf16.mxu1 %v26531_v41 }
 0x579   : > { %4760 = vmatpush1.bf16.msra.mxu0 %v17229_v3  ;;  %4801 = vmatpush1.bf16.msra.mxu1 %v17231_v12  ;;  %v17222_v3 = vld [vmem:[%s23642_s10 + $0x9c8] sm:$0xff]  ;;  %v17253_v12 = vcombine.low %v17221_v62, %v17225_v45 }
 0x57a   : > { %4761 = vmatprep.subr.bf16.mxu0 %v17238_v2  ;;  %4802 = vmatprep.subr.bf16.mxu1 %v17240_v15  ;;  %v17255_v21 = vcombine.low %v17222_v3, %v17226_v36  ;;  %v17256_v43 = vcombine.high %v17222_v3, %v17226_v36  ;;  %v17200_v2 = vld [vmem:[%s23642_s10 + $0x918] sm:$0xff] }
 0x57d   : > { %4762 = vmatpush1.bf16.msra.mxu0 %v17237_v16  ;;  %4803 = vmatpush1.bf16.msra.mxu1 %v17239_v52  ;;  %v17204_v16 = vld [vmem:[%s23642_s10 + $0x938] sm:$0xff]  ;;  %v17233_v52 = vcombine.low %v17199_v51, %v17203_v11 }
 0x57e   : > { %4763 = vmatprep.subr.bf16.mxu0 %v17246_v58  ;;  %4804 = vmatprep.subr.bf16.mxu1 %v17248_v38  ;;  %v17235_v15 = vcombine.low %v17200_v2, %v17204_v16  ;;  %v17236_v33 = vcombine.high %v17200_v2, %v17204_v16 }
 0x581   : > { %4764 = vmatpush1.bf16.msra.mxu0 %v17245_v48  ;;  %4805 = vmatpush1.bf16.msra.mxu1 %v17247_v32 }
 0x582   : > { %4765 = vmatprep.subr.bf16.mxu0 %v17254_v47  ;;  %4806 = vmatprep.subr.bf16.mxu1 %v17256_v43 }
 0x585   : > { %4766 = vmatpush1.bf16.msra.mxu0 %v17253_v12  ;;  %4807 = vmatpush1.bf16.msra.mxu1 %v17255_v21 }
 0x586   : > { %4841 = vmatprep.subr.bf16.mxu0 %v17234_v57  ;;  %4882 = vmatprep.subr.bf16.mxu1 %v17236_v33 }
 0x61a   : > { %v19258_v23 = vpop.f32.mrb[32].mxu0  ;;  %v19293_v42 = vpop.f32.mrb[32].mxu1 }
 0x61b   : > { %v19259_v58 = vpop.f32.mrb[33].mxu0  ;;  %v19294_v1 = vpop.f32.mrb[33].mxu1 }
 0x61c   : > { %v19260_v48 = vadd.f32 %v19259_v58, %v19258_v23  ;;  %v19295_v32 = vadd.f32 %v19294_v1, %v19293_v42  ;;  %v26537_v23 = vld [vmem:[#allocation8_spill] sm:$0xff]  ;;  %v17207_v58 = vld [vmem:[%s23642_s10 + $0x950] sm:$0xff] }
 0x61d   : > { %v17211_v1 = vld [vmem:[%s23642_s10 + $0x970] sm:$0xff] }
 0x61e   : > { %v4204_v38 = vadd.f32 %v19295_v32, %v19260_v48  ;;  %v17208_v48 = vld [vmem:[%s23642_s10 + $0x958] sm:$0xff] }
 0x61f   : > { %v17212_v32 = vld [vmem:[%s23642_s10 + $0x978] sm:$0xff] }
 0x62a   : > { %v4273_v62 = vpop.f32.mrb[34].mxu0 }
 0x62b   : > { %v24631_v45 = vadd.f32 %v4273_v62, %v4204_v38  ;;  %v20827_v3 = vpop.f32.mrb[35].mxu0 }
 0x62c   : > { %v17242_v3 = vcombine.high %v17207_v58, %v17211_v1 }
 0x62d   : > { %26536 = vst [vmem:[#allocation9_spill] sm:$0xff] %v24631_v45  ;;  %v17265_v45 = vld [vmem:[%s23647_s13 + $0x64] sm:$0xff] }
 0x63a   : > { %v19337_v47 = vpop.f32.mrb[34].mxu1 }
 0x63b   : > { %v19338_v36 = vpop.f32.mrb[35].mxu1 }
 0x63c   : > { %v19339_v12 = vadd.f32 %v19338_v36, %v19337_v47  ;;  %v17244_v47 = vcombine.high %v17208_v48, %v17212_v32  ;;  %v17215_v36 = vld [vmem:[%s23642_s10 + $0x990] sm:$0xff] }
 0x64a   : > { %v19372_v21 = vpop.f32.mrb[36].mxu0  ;;  %v4555_v43 = vpop.f32.mrb[36].mxu1 }
 0x64b   : > { %v19373_v51 = vpop.f32.mrb[37].mxu0  ;;  %v20846_v11 = vpop.f32.mrb[37].mxu1 }
 0x64c   : > { %v19374_v2 = vadd.f32 %v19373_v51, %v19372_v21  ;;  %v17219_v21 = vld [vmem:[%s23642_s10 + $0x9b0] sm:$0xff]  ;;  %v17241_v51 = vcombine.low %v17207_v58, %v17211_v1  ;;  %v17243_v11 = vcombine.low %v17208_v48, %v17212_v32  ;;  %v4928_v1 = vcombine.high %v17265_v45, %v17265_v45 }
 0x64e   : > { %v4486_v57 = vadd.f32 %v19374_v2, %v19339_v12  ;;  %v17216_v12 = vld [vmem:[%s23642_s10 + $0x998] sm:$0xff]  ;;  %v17250_v2 = vcombine.high %v17215_v36, %v17219_v21 }
 0x650   : > { %v4556_v16 = vadd.f32 %v4555_v43, %v4486_v57  ;;  %v17220_v43 = vld [vmem:[%s23642_s10 + $0x9b8] sm:$0xff] }
 0x651   : > { %v17252_v57 = vcombine.high %v17216_v12, %v17220_v43 }
 0x652   : > { %v4559_v33 = vmul.f32 %v24488_v0, %v4556_v16  ;;  %v17223_v16 = vld [vmem:[%s23642_s10 + $0x9d0] sm:$0xff] }
 0x654   : > { %v4560_v42 = vadd.f32 %v26537_v23, %v4559_v33  ;;  %v17227_v33 = vld [vmem:[%s23642_s10 + $0x9f0] sm:$0xff]  ;;  %v17249_v23 = vcombine.low %v17215_v36, %v17219_v21 }
 0x655   : > { %v17257_v48 = vcombine.low %v17223_v16, %v17227_v33 }
 0x656   : > { %v4561_v38 = vmax.f32 %v4560_v42, 0.0  ;;  %v17224_v42 = vld [vmem:[%s23642_s10 + $0x9d8] sm:$0xff] }
 0x658   : > { %v4562_v62 = vpack.c.bf16 %v4561_v38, %v4561_v38  ;;  %v17228_v38 = vld [vmem:[%s23642_s10 + $0x9f8] sm:$0xff] }
 0x659   : > { %v17260_v58 = vcombine.high %v17224_v42, %v17228_v38  ;;  %v17259_v32 = vcombine.low %v17224_v42, %v17228_v38 }
 0x65a   : > { %17261 = vmatmul.mubr.msk.bf16.vlgmr.msra.gmra.mrb[8].mxu0 %vm489_vm1, %v4562_v62  ;;  %17262 = vmatmul.mubr.msk.bf16.vlgmr.msra.gmra.mrb[8].mxu1 %vm489_vm1, %v4562_v62 }
 0x65b   : > { %4842 = vmatpush1.bf16.msra.mxu0 %v17233_v52  ;;  %4883 = vmatpush1.bf16.msra.mxu1 %v17235_v15  ;;  %v17251_v52 = vcombine.low %v17216_v12, %v17220_v43  ;;  %v17258_v15 = vcombine.high %v17223_v16, %v17227_v33  ;;  %v17309_v16 = vld [vmem:[%s23642_s10 + $0xb20] sm:$0xff]  ;;  %v17306_v33 = vld [vmem:[%s23642_s10 + $0xb08] sm:$0xff] }
 0x65c   : > { %4843 = vmatprep.subr.bf16.mxu0 %v17242_v3  ;;  %4884 = vmatprep.subr.bf16.mxu1 %v17244_v47  ;;  %v4935_v3 = vrot.slane %v17265_v45, %v23865_v20  ;;  %v4942_v47 = vrot.slane %v4928_v1, %v23865_v20  ;;  %v17301_v45 = vld [vmem:[%s23647_s13 + $0x6e] sm:$0xff]  ;;  %v17313_v1 = vld [vmem:[%s23642_s10 + $0xb40] sm:$0xff] }
 0x65d   : > { %4873 = vmatprep.mubr.bf16.mxu0 %v26531_v41  ;;  %4914 = vmatprep.mubr.bf16.mxu1 %v26531_v41  ;;  %v5210_v12 = vcombine.high %v17301_v45, %v17301_v45 }
 0x65e   : > { %v4943_v36 = vcombine.high %v4935_v3, %v4935_v3  ;;  %v4944_v21 = vcombine.high %v4942_v47, %v4942_v47 }
 0x65f   : > { %4844 = vmatpush1.bf16.msra.mxu0 %v17241_v51  ;;  %4885 = vmatpush1.bf16.msra.mxu1 %v17243_v11  ;;  %v5224_v43 = vrot.slane %v5210_v12, %v23865_v20  ;;  %v17267_v51 = vld.sshfl [vmem:[%s23647_s13 + $0x6c] sm:$0x3 pattern:$0x76325410] }
 0x660   : > { %4845 = vmatprep.subr.bf16.mxu0 %v17250_v2  ;;  %4886 = vmatprep.subr.bf16.mxu1 %v17252_v57  ;;  %v17303_v2 = vld.sshfl [vmem:[%s23647_s13 + $0x76] sm:$0x3 pattern:$0x76325410]  ;;  %v17305_v57 = vld [vmem:[%s23642_s10 + $0xb00] sm:$0xff]  ;;  %v17322_v12 = vld [vmem:[%s23642_s10 + $0xb88] sm:$0xff] }
 0x661   : > { %v5226_v11 = vcombine.high %v5224_v43, %v5224_v43  ;;  %v17337_v42 = vcombine.low %v17305_v57, %v17309_v16  ;;  %v17338_v38 = vcombine.high %v17305_v57, %v17309_v16  ;;  %v17329_v16 = vld [vmem:[%s23642_s10 + $0xbc0] sm:$0xff] }
 0x663   : > { %4846 = vmatpush1.bf16.msra.mxu0 %v17249_v23  ;;  %4887 = vmatpush1.bf16.msra.mxu1 %v17251_v52  ;;  %v5217_v23 = vrot.slane %v17301_v45, %v23865_v20  ;;  %v17310_v52 = vld [vmem:[%s23642_s10 + $0xb28] sm:$0xff] }
 0x664   : > { %4847 = vmatprep.subr.bf16.mxu0 %v17258_v15  ;;  %4888 = vmatprep.subr.bf16.mxu1 %v17260_v58  ;;  %v17339_v15 = vcombine.low %v17306_v33, %v17310_v52  ;;  %v17340_v58 = vcombine.high %v17306_v33, %v17310_v52  ;;  %v17333_v33 = vld [vmem:[%s23642_s10 + $0xbe0] sm:$0xff]  ;;  %v17334_v52 = vld [vmem:[%s23642_s10 + $0xbe8] sm:$0xff] }
 0x667   : > { %4848 = vmatpush1.bf16.msra.mxu0 %v17257_v48  ;;  %4889 = vmatpush1.bf16.msra.mxu1 %v17259_v32  ;;  %v17317_v48 = vld [vmem:[%s23642_s10 + $0xb60] sm:$0xff]  ;;  %v17314_v32 = vld [vmem:[%s23642_s10 + $0xb48] sm:$0xff] }
 0x668   : > { %21893 = vmatprep.subr.bf16.mxu0 %v23659_v4  ;;  %21925 = vmatprep.subr.bf16.mxu1 %v23670_v8 }
 0x66a   : > { %17263 = vmatmul.mubr.msk.bf16.vlgmr.msra.gmra.mrb[12].mxu0 %vm489_vm1, %v4562_v62  ;;  %17264 = vmatmul.mubr.msk.bf16.vlgmr.msra.gmra.mrb[12].mxu1 %vm489_vm1, %v4562_v62  ;;  %v5225_v62 = vcombine.high %v5217_v23, %v5217_v23 }
 0x66b   : > { %21895 = vmatpush3.bf16.msra.mxu0 %v23672_v9  ;;  %21927 = vmatpush3.bf16.msra.mxu1 %v23684_v13 }
 0x66c   : > { %21897 = vmatprep.subr.bf16.mxu0 %v23697_v17  ;;  %21929 = vmatprep.subr.bf16.mxu1 %v23699_v18 }
 0x66d   : > { %5022 = vmatprep.mubr.f32.mxu0 %v4943_v36  ;;  %5092 = vmatprep.mubr.f32.mxu1 %v4944_v21  ;;  %v17345_v36 = vcombine.low %v17313_v1, %v17317_v48 }
 0x66f   : > { %21899 = vmatpush3.bf16.msra.mxu0 %v23711_v22  ;;  %21931 = vmatpush3.bf16.msra.mxu1 %v23724_v26 }
 0x670   : > { %21901 = vmatprep.subr.bf16.mxu0 %v23726_v27  ;;  %21933 = vmatprep.subr.bf16.mxu1 %v23737_v31 }
 0x673   : > { %21903 = vmatpush3.bf16.msra.mxu0 %v23749_v35  ;;  %21935 = vmatpush3.bf16.msra.mxu1 %v23762_v39 }
 0x674   : > { %21905 = vmatprep.subr.bf16.mxu0 %v23764_v40  ;;  %21937 = vmatprep.subr.bf16.mxu1 %v23776_v44 }
 0x677   : > { %21907 = vmatpush3.bf16.msra.mxu0 %v23797_v54  ;;  %21939 = vmatpush3.bf16.msra.mxu1 %v23801_v55 }
 0x678   : > { %21909 = vmatprep.subr.bf16.mxu0 %v23803_v56  ;;  %21941 = vmatprep.subr.bf16.mxu1 %v23815_v60 }
 0x67b   : > { %21911 = vmatpush3.bf16.msra.mxu0 %v23835_v5  ;;  %21943 = vmatpush3.bf16.msra.mxu1 %v23839_v6 }
 0x67c   : > { %21913 = vmatprep.subr.bf16.mxu0 %v23841_v7  ;;  %21945 = vmatprep.subr.bf16.mxu1 %v23853_v14 }
 0x67f   : > { %21915 = vmatpush3.bf16.msra.mxu0 %v23874_v24  ;;  %21947 = vmatpush3.bf16.msra.mxu1 %v23881_v28 }
 0x680   : > { %21917 = vmatprep.subr.bf16.mxu0 %v23883_v29  ;;  %21949 = vmatprep.subr.bf16.mxu1 %v23893_v34 }
 0x683   : > { %21919 = vmatpush3.bf16.msra.mxu0 %v23912_v46  ;;  %21951 = vmatpush3.bf16.msra.mxu1 %v23917_v49 }
 0x684   : > { %21921 = vmatprep.subr.bf16.mxu0 %v23919_v50  ;;  %21953 = vmatprep.subr.bf16.mxu1 %v23928_v53 }
 0x687   : > { %21923 = vmatpush3.bf16.msra.mxu0 %v23937_v61  ;;  %21955 = vmatpush3.bf16.msra.mxu1 %v23942_v63 }
 0x688   : > { %21956 = vmatprep.subr.bf16.mxu0 %v26528_v25  ;;  %21969 = vmatprep.subr.bf16.mxu1 %v23659_v4 }
 0x68a   : > { %5023 = vmatmul.mubr.f32.vlgmr.msra.gmra.mrb[38].mxu0 %v4935_v3  ;;  %5093 = vmatmul.mubr.f32.vlgmr.msra.gmra.mrb[38].mxu1 %v4942_v47  ;;  %v17346_v3 = vcombine.high %v17313_v1, %v17317_v48  ;;  %v17318_v47 = vld [vmem:[%s23642_s10 + $0xb68] sm:$0xff]  ;;  %v17307_v48 = vld [vmem:[%s23642_s10 + $0xb10] sm:$0xff] }
 0x68b   : > { %21958 = vmatpush3.bf16.msra.mxu0 %v23953_v10  ;;  %21971 = vmatpush3.bf16.msra.mxu1 %v23672_v9  ;;  %v17347_v21 = vcombine.low %v17314_v32, %v17318_v47  ;;  %v17348_v45 = vcombine.high %v17314_v32, %v17318_v47  ;;  %v17311_v32 = vld [vmem:[%s23642_s10 + $0xb30] sm:$0xff] }
 0x68c   : > { %21959 = vmatprep.subr.bf16.mxu0 %v26528_v25  ;;  %21973 = vmatprep.subr.bf16.mxu1 %v23697_v17  ;;  %v17342_v47 = vcombine.high %v17307_v48, %v17311_v32 }
 0x68d   : > { %20863 = vmatprep.mubr.msk.f32.mxu0 %vm23575_vm0, %v26529_v59  ;;  %5304 = vmatprep.mubr.f32.mxu1 %v5225_v62  ;;  %v17325_v62 = vld [vmem:[%s23642_s10 + $0xba0] sm:$0xff] }
 0x68f   : > { %21961 = vmatpush3.bf16.msra.mxu0 %v23965_v19  ;;  %21975 = vmatpush3.bf16.msra.mxu1 %v23711_v22 }
 0x690   : > { %21962 = vmatprep.subr.bf16.mxu0 %v26528_v25  ;;  %21977 = vmatprep.subr.bf16.mxu1 %v23726_v27 }
 0x693   : > { %21964 = vmatpush3.bf16.msra.mxu0 %v23979_v30  ;;  %21979 = vmatpush3.bf16.msra.mxu1 %v23749_v35 }
 0x694   : > { %21965 = vmatprep.subr.bf16.mxu0 %v26528_v25  ;;  %21981 = vmatprep.subr.bf16.mxu1 %v23764_v40 }
 0x697   : > { %21967 = vmatpush3.bf16.msra.mxu0 %v23991_v37  ;;  %21983 = vmatpush3.bf16.msra.mxu1 %v23797_v54 }
 0x698   : > { %22001 = vmatprep.subr.bf16.mxu0 %v23670_v8  ;;  %21985 = vmatprep.subr.bf16.mxu1 %v23803_v56 }
 0x69a   : > { %20864 = vmatmul.mubr.msk.f32.vlgmr.msra.gmra.mrb[40].mxu0 %vm489_vm1, %v17267_v51  ;;  %v17326_v51 = vld [vmem:[%s23642_s10 + $0xba8] sm:$0xff] }
 0x69b   : > { %22003 = vmatpush3.bf16.msra.mxu0 %v23684_v13  ;;  %21987 = vmatpush3.bf16.msra.mxu1 %v23835_v5  ;;  %v17356_v57 = vcombine.high %v17322_v12, %v17326_v51 }
 0x69c   : > { %22005 = vmatprep.subr.bf16.mxu0 %v23699_v18  ;;  %21989 = vmatprep.subr.bf16.mxu1 %v23841_v7 }
 0x69d   : > { %5374 = vmatprep.mubr.f32.mxu0 %v5226_v11 }
 0x69f   : > { %22007 = vmatpush3.bf16.msra.mxu0 %v23724_v26  ;;  %21991 = vmatpush3.bf16.msra.mxu1 %v23874_v24 }
 0x6a0   : > { %22009 = vmatprep.subr.bf16.mxu0 %v23737_v31  ;;  %21993 = vmatprep.subr.bf16.mxu1 %v23883_v29 }
 0x6a3   : > { %22011 = vmatpush3.bf16.msra.mxu0 %v23762_v39  ;;  %21995 = vmatpush3.bf16.msra.mxu1 %v23912_v46 }
 0x6a4   : > { %22013 = vmatprep.subr.bf16.mxu0 %v23776_v44  ;;  %21997 = vmatprep.subr.bf16.mxu1 %v23919_v50 }
 0x6a7   : > { %22015 = vmatpush3.bf16.msra.mxu0 %v23801_v55  ;;  %21999 = vmatpush3.bf16.msra.mxu1 %v23937_v61 }
 0x6a8   : > { %22017 = vmatprep.subr.bf16.mxu0 %v23815_v60  ;;  %22032 = vmatprep.subr.bf16.mxu1 %v26528_v25 }
 0x6aa   : > { %5305 = vmatmul.mubr.f32.vlgmr.msra.gmra.mrb[40].mxu1 %v5217_v23  ;;  %v17321_v23 = vld [vmem:[%s23642_s10 + $0xb80] sm:$0xff] }
 0x6ab   : > { %22019 = vmatpush3.bf16.msra.mxu0 %v23839_v6  ;;  %22034 = vmatpush3.bf16.msra.mxu1 %v23953_v10  ;;  %v17353_v11 = vcombine.low %v17321_v23, %v17325_v62 }
 0x6ac   : > { %22021 = vmatprep.subr.bf16.mxu0 %v23853_v14  ;;  %22035 = vmatprep.subr.bf16.mxu1 %v26528_v25 }
 0x6ad   : > { %20882 = vmatprep.mubr.msk.f32.mxu1 %vm23575_vm0, %v26529_v59 }
 0x6af   : > { %22023 = vmatpush3.bf16.msra.mxu0 %v23881_v28  ;;  %22037 = vmatpush3.bf16.msra.mxu1 %v23965_v19 }
 0x6b0   : > { %22025 = vmatprep.subr.bf16.mxu0 %v23893_v34  ;;  %22038 = vmatprep.subr.bf16.mxu1 %v26528_v25 }
 0x6b3   : > { %22027 = vmatpush3.bf16.msra.mxu0 %v23917_v49  ;;  %22040 = vmatpush3.bf16.msra.mxu1 %v23979_v30 }
 0x6b4   : > { %22029 = vmatprep.subr.bf16.mxu0 %v23928_v53  ;;  %22041 = vmatprep.subr.bf16.mxu1 %v26528_v25 }
 0x6b7   : > { %22031 = vmatpush3.bf16.msra.mxu0 %v23942_v63  ;;  %22043 = vmatpush3.bf16.msra.mxu1 %v23991_v37 }
 0x6b8   : > { %5650 = vmatprep.subr.bf16.mxu0 %v17338_v38  ;;  %5691 = vmatprep.subr.bf16.mxu1 %v17340_v58  ;;  %v17362_v38 = vcombine.high %v17329_v16, %v17333_v33 }
 0x6ba   : > { %5375 = vmatmul.mubr.f32.vlgmr.msra.gmra.mrb[42].mxu0 %v5224_v43  ;;  %20883 = vmatmul.mubr.msk.f32.vlgmr.msra.gmra.mrb[42].mxu1 %vm489_vm1, %v17303_v2  ;;  %v17354_v43 = vcombine.high %v17321_v23, %v17325_v62  ;;  %v17355_v2 = vcombine.low %v17322_v12, %v17326_v51 }
 0x6bb   : > { %5682 = vmatprep.mubr.bf16.mxu0 %v26531_v41  ;;  %5723 = vmatprep.mubr.bf16.mxu1 %v26531_v41 }
 0x6bc   : > { %5651 = vmatpush1.bf16.msra.mxu0 %v17337_v42  ;;  %5692 = vmatpush1.bf16.msra.mxu1 %v17339_v15  ;;  %v17330_v42 = vld [vmem:[%s23642_s10 + $0xbc8] sm:$0xff]  ;;  %v17361_v15 = vcombine.low %v17329_v16, %v17333_v33 }
 0x6bd   : > { %5652 = vmatprep.subr.bf16.mxu0 %v17346_v3  ;;  %5693 = vmatprep.subr.bf16.mxu1 %v17348_v45  ;;  %v17363_v58 = vcombine.low %v17330_v42, %v17334_v52  ;;  %v17364_v1 = vcombine.high %v17330_v42, %v17334_v52  ;;  %v17308_v3 = vld [vmem:[%s23642_s10 + $0xb18] sm:$0xff] }
 0x6c0   : > { %5653 = vmatpush1.bf16.msra.mxu0 %v17345_v36  ;;  %5694 = vmatpush1.bf16.msra.mxu1 %v17347_v21  ;;  %v17312_v36 = vld [vmem:[%s23642_s10 + $0xb38] sm:$0xff]  ;;  %v17341_v21 = vcombine.low %v17307_v48, %v17311_v32 }
 0x6c1   : > { %5654 = vmatprep.subr.bf16.mxu0 %v17354_v43  ;;  %5695 = vmatprep.subr.bf16.mxu1 %v17356_v57  ;;  %v17343_v45 = vcombine.low %v17308_v3, %v17312_v36  ;;  %v17344_v23 = vcombine.high %v17308_v3, %v17312_v36 }
 0x6c4   : > { %5655 = vmatpush1.bf16.msra.mxu0 %v17353_v11  ;;  %5696 = vmatpush1.bf16.msra.mxu1 %v17355_v2 }
 0x6c5   : > { %5656 = vmatprep.subr.bf16.mxu0 %v17362_v38  ;;  %5697 = vmatprep.subr.bf16.mxu1 %v17364_v1 }
 0x6c8   : > { %5657 = vmatpush1.bf16.msra.mxu0 %v17361_v15  ;;  %5698 = vmatpush1.bf16.msra.mxu1 %v17363_v58 }
 0x6c9   : > { %5732 = vmatprep.subr.bf16.mxu0 %v17342_v47  ;;  %5773 = vmatprep.subr.bf16.mxu1 %v17344_v23 }
 0x75d   : > { %v19416_v62 = vpop.f32.mrb[38].mxu0  ;;  %v19451_v12 = vpop.f32.mrb[38].mxu1 }
 0x75e   : > { %v19417_v43 = vpop.f32.mrb[39].mxu0  ;;  %v19452_v51 = vpop.f32.mrb[39].mxu1 }
 0x75f   : > { %v19418_v11 = vadd.f32 %v19417_v43, %v19416_v62  ;;  %v19453_v2 = vadd.f32 %v19452_v51, %v19451_v12  ;;  %v26539_v62 = vld [vmem:[#allocation8_spill] sm:$0xff]  ;;  %v17315_v43 = vld [vmem:[%s23642_s10 + $0xb50] sm:$0xff] }
 0x760   : > { %v17319_v51 = vld [vmem:[%s23642_s10 + $0xb70] sm:$0xff] }
 0x761   : > { %v5095_v57 = vadd.f32 %v19453_v2, %v19418_v11  ;;  %v17316_v11 = vld [vmem:[%s23642_s10 + $0xb58] sm:$0xff] }
 0x762   : > { %v17320_v2 = vld [vmem:[%s23642_s10 + $0xb78] sm:$0xff] }
 0x76d   : > { %v5164_v16 = vpop.f32.mrb[40].mxu0 }
 0x76e   : > { %v24769_v33 = vadd.f32 %v5164_v16, %v5095_v57  ;;  %v20865_v42 = vpop.f32.mrb[41].mxu0 }
 0x76f   : > { %v17350_v42 = vcombine.high %v17315_v43, %v17319_v51 }
 0x770   : > { %26538 = vst [vmem:[#allocation10_spill] sm:$0xff] %v24769_v33  ;;  %v17481_v33 = vld [vmem:[%s23647_s13 + $0x8c] sm:$0xff] }
 0x77d   : > { %v19495_v38 = vpop.f32.mrb[40].mxu1 }
 0x77e   : > { %v19496_v52 = vpop.f32.mrb[41].mxu1 }
 0x77f   : > { %v19497_v15 = vadd.f32 %v19496_v52, %v19495_v38  ;;  %v17352_v38 = vcombine.high %v17316_v11, %v17320_v2  ;;  %v17323_v52 = vld [vmem:[%s23642_s10 + $0xb90] sm:$0xff] }
 0x78d   : > { %v19530_v58 = vpop.f32.mrb[42].mxu0  ;;  %v5446_v1 = vpop.f32.mrb[42].mxu1 }
 0x78e   : > { %v19531_v48 = vpop.f32.mrb[43].mxu0  ;;  %v20884_v32 = vpop.f32.mrb[43].mxu1 }
 0x78f   : > { %v19532_v3 = vadd.f32 %v19531_v48, %v19530_v58  ;;  %v17327_v58 = vld [vmem:[%s23642_s10 + $0xbb0] sm:$0xff]  ;;  %v17351_v48 = vcombine.low %v17316_v11, %v17320_v2 }
 0x790   : > { %v17358_v32 = vcombine.high %v17323_v52, %v17327_v58 }
 0x791   : > { %v5377_v47 = vadd.f32 %v19532_v3, %v19497_v15  ;;  %v17324_v15 = vld [vmem:[%s23642_s10 + $0xb98] sm:$0xff] }
 0x793   : > { %v5447_v36 = vadd.f32 %v5446_v1, %v5377_v47  ;;  %v17328_v1 = vld [vmem:[%s23642_s10 + $0xbb8] sm:$0xff]  ;;  %v17331_v47 = vld [vmem:[%s23642_s10 + $0xbd0] sm:$0xff] }
 0x794   : > { %v17360_v3 = vcombine.high %v17324_v15, %v17328_v1 }
 0x795   : > { %v5450_v23 = vmul.f32 %v24488_v0, %v5447_v36  ;;  %v17349_v0 = vcombine.low %v17315_v43, %v17319_v51  ;;  %v17335_v36 = vld [vmem:[%s23642_s10 + $0xbf0] sm:$0xff] }
 0x796   : > { %v17365_v11 = vcombine.low %v17331_v47, %v17335_v36 }
 0x797   : > { %v5451_v12 = vadd.f32 %v26539_v62, %v5450_v23  ;;  %v17332_v23 = vld [vmem:[%s23642_s10 + $0xbd8] sm:$0xff] }
 0x798   : > { %v17336_v62 = vld [vmem:[%s23642_s10 + $0xbf8] sm:$0xff] }
 0x799   : > { %v5452_v57 = vmax.f32 %v5451_v12, 0.0  ;;  %v17373_v12 = vld [vmem:[%s23647_s13 + $0x78] sm:$0xff]  ;;  %v17368_v43 = vcombine.high %v17332_v23, %v17336_v62  ;;  %v17367_v2 = vcombine.low %v17332_v23, %v17336_v62  ;;  %v17417_v23 = vld [vmem:[%s23642_s10 + $0xd20] sm:$0xff]  ;;  %v17414_v62 = vld [vmem:[%s23642_s10 + $0xd08] sm:$0xff] }
 0x79a   : > { %v5819_v51 = vcombine.high %v17373_v12, %v17373_v12 }
 0x79b   : > { %v5453_v16 = vpack.c.bf16 %v5452_v57, %v5452_v57  ;;  %v17357_v57 = vcombine.low %v17323_v52, %v17327_v58 }
 0x79d   : > { %17369 = vmatmul.mubr.msk.bf16.vlgmr.msra.gmra.mrb[8].mxu0 %vm489_vm1, %v5453_v16  ;;  %17370 = vmatmul.mubr.msk.bf16.vlgmr.msra.gmra.mrb[8].mxu1 %vm489_vm1, %v5453_v16 }
 0x79e   : > { %5733 = vmatpush1.bf16.msra.mxu0 %v17341_v21  ;;  %5774 = vmatpush1.bf16.msra.mxu1 %v17343_v45  ;;  %v17359_v21 = vcombine.low %v17324_v15, %v17328_v1  ;;  %v17366_v45 = vcombine.high %v17331_v47, %v17335_v36  ;;  %v17411_v47 = vld.sshfl [vmem:[%s23647_s13 + $0x8a] sm:$0x3 pattern:$0x76325410]  ;;  %v17413_v36 = vld [vmem:[%s23642_s10 + $0xd00] sm:$0xff] }
 0x79f   : > { %5734 = vmatprep.subr.bf16.mxu0 %v17350_v42  ;;  %5775 = vmatprep.subr.bf16.mxu1 %v17352_v38  ;;  %v5826_v42 = vrot.slane %v17373_v12, %v23865_v20  ;;  %v5833_v38 = vrot.slane %v5819_v51, %v23865_v20  ;;  %v17445_v12 = vcombine.low %v17413_v36, %v17417_v23  ;;  %v17421_v51 = vld [vmem:[%s23642_s10 + $0xd40] sm:$0xff] }
 0x7a0   : > { %5764 = vmatprep.mubr.bf16.mxu0 %v26531_v41  ;;  %5805 = vmatprep.mubr.bf16.mxu1 %v26531_v41 }
 0x7a1   : > { %v5834_v52 = vcombine.high %v5826_v42, %v5826_v42  ;;  %v5835_v58 = vcombine.high %v5833_v38, %v5833_v38 }
 0x7a2   : > { %5735 = vmatpush1.bf16.msra.mxu0 %v17349_v0  ;;  %5776 = vmatpush1.bf16.msra.mxu1 %v17351_v48 }
 0x7a3   : > { %5736 = vmatprep.subr.bf16.mxu0 %v17358_v32  ;;  %5777 = vmatprep.subr.bf16.mxu1 %v17360_v3  ;;  %v17375_v32 = vld.sshfl [vmem:[%s23647_s13 + $0x80] sm:$0x3 pattern:$0x76325410] }
 0x7a6   : > { %5737 = vmatpush1.bf16.msra.mxu0 %v17357_v57  ;;  %5778 = vmatpush1.bf16.msra.mxu1 %v17359_v21  ;;  %v17446_v57 = vcombine.high %v17413_v36, %v17417_v23  ;;  %v17418_v21 = vld [vmem:[%s23642_s10 + $0xd28] sm:$0xff]  ;;  %v17437_v23 = vld [vmem:[%s23642_s10 + $0xdc0] sm:$0xff] }
 0x7a7   : > { %5738 = vmatprep.subr.bf16.mxu0 %v17366_v45  ;;  %5779 = vmatprep.subr.bf16.mxu1 %v17368_v43  ;;  %v17447_v45 = vcombine.low %v17414_v62, %v17418_v21  ;;  %v17448_v43 = vcombine.high %v17414_v62, %v17418_v21  ;;  %v17441_v62 = vld [vmem:[%s23642_s10 + $0xde0] sm:$0xff]  ;;  %v17442_v21 = vld [vmem:[%s23642_s10 + $0xde8] sm:$0xff] }
 0x7aa   : > { %5739 = vmatpush1.bf16.msra.mxu0 %v17365_v11  ;;  %5780 = vmatpush1.bf16.msra.mxu1 %v17367_v2  ;;  %v17425_v11 = vld [vmem:[%s23642_s10 + $0xd60] sm:$0xff]  ;;  %v17422_v2 = vld [vmem:[%s23642_s10 + $0xd48] sm:$0xff] }
 0x7ab   : > { %22045 = vmatprep.subr.bf16.mxu0 %v23659_v4  ;;  %22077 = vmatprep.subr.bf16.mxu1 %v23670_v8 }
 0x7ad   : > { %17371 = vmatmul.mubr.msk.bf16.vlgmr.msra.gmra.mrb[12].mxu0 %vm489_vm1, %v5453_v16  ;;  %17372 = vmatmul.mubr.msk.bf16.vlgmr.msra.gmra.mrb[12].mxu1 %vm489_vm1, %v5453_v16  ;;  %v17409_v16 = vld [vmem:[%s23647_s13 + $0x82] sm:$0xff] }
 0x7ae   : > { %22047 = vmatpush3.bf16.msra.mxu0 %v23672_v9  ;;  %22079 = vmatpush3.bf16.msra.mxu1 %v23684_v13  ;;  %v6108_v15 = vrot.slane %v17409_v16, %v23865_v20  ;;  %v6101_v0 = vcombine.high %v17409_v16, %v17409_v16 }
 0x7af   : > { %22049 = vmatprep.subr.bf16.mxu0 %v23697_v17  ;;  %22081 = vmatprep.subr.bf16.mxu1 %v23699_v18 }
 0x7b0   : > { %5913 = vmatprep.mubr.f32.mxu0 %v5834_v52  ;;  %5983 = vmatprep.mubr.f32.mxu1 %v5835_v58  ;;  %v6116_v1 = vcombine.high %v6108_v15, %v6108_v15  ;;  %v6115_v48 = vrot.slane %v6101_v0, %v23865_v20  ;;  %v17453_v52 = vcombine.low %v17421_v51, %v17425_v11  ;;  %v17430_v0 = vld [vmem:[%s23642_s10 + $0xd88] sm:$0xff] }
 0x7b2   : > { %22051 = vmatpush3.bf16.msra.mxu0 %v23711_v22  ;;  %22083 = vmatpush3.bf16.msra.mxu1 %v23724_v26  ;;  %v6117_v3 = vcombine.high %v6115_v48, %v6115_v48 }
 0x7b3   : > { %22053 = vmatprep.subr.bf16.mxu0 %v23726_v27  ;;  %22085 = vmatprep.subr.bf16.mxu1 %v23737_v31 }
 0x7b6   : > { %22055 = vmatpush3.bf16.msra.mxu0 %v23749_v35  ;;  %22087 = vmatpush3.bf16.msra.mxu1 %v23762_v39 }
 0x7b7   : > { %22057 = vmatprep.subr.bf16.mxu0 %v23764_v40  ;;  %22089 = vmatprep.subr.bf16.mxu1 %v23776_v44 }
 0x7ba   : > { %22059 = vmatpush3.bf16.msra.mxu0 %v23797_v54  ;;  %22091 = vmatpush3.bf16.msra.mxu1 %v23801_v55 }
 0x7bb   : > { %22061 = vmatprep.subr.bf16.mxu0 %v23803_v56  ;;  %22093 = vmatprep.subr.bf16.mxu1 %v23815_v60 }
 0x7be   : > { %22063 = vmatpush3.bf16.msra.mxu0 %v23835_v5  ;;  %22095 = vmatpush3.bf16.msra.mxu1 %v23839_v6 }
 0x7bf   : > { %22065 = vmatprep.subr.bf16.mxu0 %v23841_v7  ;;  %22097 = vmatprep.subr.bf16.mxu1 %v23853_v14 }
 0x7c2   : > { %22067 = vmatpush3.bf16.msra.mxu0 %v23874_v24  ;;  %22099 = vmatpush3.bf16.msra.mxu1 %v23881_v28 }
 0x7c3   : > { %22069 = vmatprep.subr.bf16.mxu0 %v23883_v29  ;;  %22101 = vmatprep.subr.bf16.mxu1 %v23893_v34 }
 0x7c6   : > { %22071 = vmatpush3.bf16.msra.mxu0 %v23912_v46  ;;  %22103 = vmatpush3.bf16.msra.mxu1 %v23917_v49 }
 0x7c7   : > { %22073 = vmatprep.subr.bf16.mxu0 %v23919_v50  ;;  %22105 = vmatprep.subr.bf16.mxu1 %v23928_v53 }
 0x7ca   : > { %22075 = vmatpush3.bf16.msra.mxu0 %v23937_v61  ;;  %22107 = vmatpush3.bf16.msra.mxu1 %v23942_v63 }
 0x7cb   : > { %22108 = vmatprep.subr.bf16.mxu0 %v26528_v25  ;;  %22121 = vmatprep.subr.bf16.mxu1 %v23659_v4 }
 0x7cd   : > { %5914 = vmatmul.mubr.f32.vlgmr.msra.gmra.mrb[44].mxu0 %v5826_v42  ;;  %5984 = vmatmul.mubr.f32.vlgmr.msra.gmra.mrb[44].mxu1 %v5833_v38  ;;  %v17454_v42 = vcombine.high %v17421_v51, %v17425_v11  ;;  %v17426_v38 = vld [vmem:[%s23642_s10 + $0xd68] sm:$0xff]  ;;  %v17415_v11 = vld [vmem:[%s23642_s10 + $0xd10] sm:$0xff] }
 0x7ce   : > { %22110 = vmatpush3.bf16.msra.mxu0 %v23953_v10  ;;  %22123 = vmatpush3.bf16.msra.mxu1 %v23672_v9  ;;  %v17455_v58 = vcombine.low %v17422_v2, %v17426_v38  ;;  %v17456_v16 = vcombine.high %v17422_v2, %v17426_v38  ;;  %v17419_v2 = vld [vmem:[%s23642_s10 + $0xd30] sm:$0xff] }
 0x7cf   : > { %22111 = vmatprep.subr.bf16.mxu0 %v26528_v25  ;;  %22125 = vmatprep.subr.bf16.mxu1 %v23697_v17  ;;  %v17450_v38 = vcombine.high %v17415_v11, %v17419_v2 }
 0x7d0   : > { %20901 = vmatprep.mubr.msk.f32.mxu0 %vm23575_vm0, %v26529_v59  ;;  %6195 = vmatprep.mubr.f32.mxu1 %v6116_v1  ;;  %v17433_v1 = vld [vmem:[%s23642_s10 + $0xda0] sm:$0xff] }
 0x7d2   : > { %22113 = vmatpush3.bf16.msra.mxu0 %v23965_v19  ;;  %22127 = vmatpush3.bf16.msra.mxu1 %v23711_v22 }
 0x7d3   : > { %22114 = vmatprep.subr.bf16.mxu0 %v26528_v25  ;;  %22129 = vmatprep.subr.bf16.mxu1 %v23726_v27 }
 0x7d6   : > { %22116 = vmatpush3.bf16.msra.mxu0 %v23979_v30  ;;  %22131 = vmatpush3.bf16.msra.mxu1 %v23749_v35 }
 0x7d7   : > { %22117 = vmatprep.subr.bf16.mxu0 %v26528_v25  ;;  %22133 = vmatprep.subr.bf16.mxu1 %v23764_v40 }
 0x7da   : > { %22119 = vmatpush3.bf16.msra.mxu0 %v23991_v37  ;;  %22135 = vmatpush3.bf16.msra.mxu1 %v23797_v54 }
 0x7db   : > { %22153 = vmatprep.subr.bf16.mxu0 %v23670_v8  ;;  %22137 = vmatprep.subr.bf16.mxu1 %v23803_v56 }
 0x7dd   : > { %20902 = vmatmul.mubr.msk.f32.vlgmr.msra.gmra.mrb[46].mxu0 %vm489_vm1, %v17375_v32  ;;  %v17434_v32 = vld [vmem:[%s23642_s10 + $0xda8] sm:$0xff] }
 0x7de   : > { %22155 = vmatpush3.bf16.msra.mxu0 %v23684_v13  ;;  %22139 = vmatpush3.bf16.msra.mxu1 %v23835_v5  ;;  %v17464_v36 = vcombine.high %v17430_v0, %v17434_v32 }
 0x7df   : > { %22157 = vmatprep.subr.bf16.mxu0 %v23699_v18  ;;  %22141 = vmatprep.subr.bf16.mxu1 %v23841_v7 }
 0x7e0   : > { %6265 = vmatprep.mubr.f32.mxu0 %v6117_v3 }
 0x7e2   : > { %22159 = vmatpush3.bf16.msra.mxu0 %v23724_v26  ;;  %22143 = vmatpush3.bf16.msra.mxu1 %v23874_v24 }
 0x7e3   : > { %22161 = vmatprep.subr.bf16.mxu0 %v23737_v31  ;;  %22145 = vmatprep.subr.bf16.mxu1 %v23883_v29 }
 0x7e6   : > { %22163 = vmatpush3.bf16.msra.mxu0 %v23762_v39  ;;  %22147 = vmatpush3.bf16.msra.mxu1 %v23912_v46 }
 0x7e7   : > { %22165 = vmatprep.subr.bf16.mxu0 %v23776_v44  ;;  %22149 = vmatprep.subr.bf16.mxu1 %v23919_v50 }
 0x7ea   : > { %22167 = vmatpush3.bf16.msra.mxu0 %v23801_v55  ;;  %22151 = vmatpush3.bf16.msra.mxu1 %v23937_v61 }
 0x7eb   : > { %22169 = vmatprep.subr.bf16.mxu0 %v23815_v60  ;;  %22184 = vmatprep.subr.bf16.mxu1 %v26528_v25 }
 0x7ed   : > { %6196 = vmatmul.mubr.f32.vlgmr.msra.gmra.mrb[46].mxu1 %v6108_v15  ;;  %v17429_v15 = vld [vmem:[%s23642_s10 + $0xd80] sm:$0xff] }
 0x7ee   : > { %22171 = vmatpush3.bf16.msra.mxu0 %v23839_v6  ;;  %22186 = vmatpush3.bf16.msra.mxu1 %v23953_v10  ;;  %v17461_v3 = vcombine.low %v17429_v15, %v17433_v1 }
 0x7ef   : > { %22173 = vmatprep.subr.bf16.mxu0 %v23853_v14  ;;  %22187 = vmatprep.subr.bf16.mxu1 %v26528_v25 }
 0x7f0   : > { %20920 = vmatprep.mubr.msk.f32.mxu1 %vm23575_vm0, %v26529_v59 }
 0x7f2   : > { %22175 = vmatpush3.bf16.msra.mxu0 %v23881_v28  ;;  %22189 = vmatpush3.bf16.msra.mxu1 %v23965_v19 }
 0x7f3   : > { %22177 = vmatprep.subr.bf16.mxu0 %v23893_v34  ;;  %22190 = vmatprep.subr.bf16.mxu1 %v26528_v25 }
 0x7f6   : > { %22179 = vmatpush3.bf16.msra.mxu0 %v23917_v49  ;;  %22192 = vmatpush3.bf16.msra.mxu1 %v23979_v30 }
 0x7f7   : > { %22181 = vmatprep.subr.bf16.mxu0 %v23928_v53  ;;  %22193 = vmatprep.subr.bf16.mxu1 %v26528_v25 }
 0x7fa   : > { %22183 = vmatpush3.bf16.msra.mxu0 %v23942_v63  ;;  %22195 = vmatpush3.bf16.msra.mxu1 %v23991_v37 }
 0x7fb   : > { %6541 = vmatprep.subr.bf16.mxu0 %v17446_v57  ;;  %6582 = vmatprep.subr.bf16.mxu1 %v17448_v43  ;;  %v17470_v57 = vcombine.high %v17437_v23, %v17441_v62 }
 0x7fd   : > { %6266 = vmatmul.mubr.f32.vlgmr.msra.gmra.mrb[48].mxu0 %v6115_v48  ;;  %20921 = vmatmul.mubr.msk.f32.vlgmr.msra.gmra.mrb[48].mxu1 %vm489_vm1, %v17411_v47  ;;  %v17462_v48 = vcombine.high %v17429_v15, %v17433_v1  ;;  %v17463_v47 = vcombine.low %v17430_v0, %v17434_v32 }
 0x7fe   : > { %6573 = vmatprep.mubr.bf16.mxu0 %v26531_v41  ;;  %6614 = vmatprep.mubr.bf16.mxu1 %v26531_v41 }
 0x7ff   : > { %6542 = vmatpush1.bf16.msra.mxu0 %v17445_v12  ;;  %6583 = vmatpush1.bf16.msra.mxu1 %v17447_v45  ;;  %v17438_v12 = vld [vmem:[%s23642_s10 + $0xdc8] sm:$0xff]  ;;  %v17469_v45 = vcombine.low %v17437_v23, %v17441_v62 }
 0x800   : > { %6543 = vmatprep.subr.bf16.mxu0 %v17454_v42  ;;  %6584 = vmatprep.subr.bf16.mxu1 %v17456_v16  ;;  %v17471_v43 = vcombine.low %v17438_v12, %v17442_v21  ;;  %v17472_v51 = vcombine.high %v17438_v12, %v17442_v21  ;;  %v17416_v42 = vld [vmem:[%s23642_s10 + $0xd18] sm:$0xff] }
 0x803   : > { %6544 = vmatpush1.bf16.msra.mxu0 %v17453_v52  ;;  %6585 = vmatpush1.bf16.msra.mxu1 %v17455_v58  ;;  %v17420_v52 = vld [vmem:[%s23642_s10 + $0xd38] sm:$0xff]  ;;  %v17449_v58 = vcombine.low %v17415_v11, %v17419_v2 }
 0x804   : > { %6545 = vmatprep.subr.bf16.mxu0 %v17462_v48  ;;  %6586 = vmatprep.subr.bf16.mxu1 %v17464_v36  ;;  %v17451_v16 = vcombine.low %v17416_v42, %v17420_v52  ;;  %v17452_v15 = vcombine.high %v17416_v42, %v17420_v52 }
 0x807   : > { %6546 = vmatpush1.bf16.msra.mxu0 %v17461_v3  ;;  %6587 = vmatpush1.bf16.msra.mxu1 %v17463_v47 }
 0x808   : > { %6547 = vmatprep.subr.bf16.mxu0 %v17470_v57  ;;  %6588 = vmatprep.subr.bf16.mxu1 %v17472_v51 }
 0x80b   : > { %6548 = vmatpush1.bf16.msra.mxu0 %v17469_v45  ;;  %6589 = vmatpush1.bf16.msra.mxu1 %v17471_v43 }
 0x80c   : > { %6623 = vmatprep.subr.bf16.mxu0 %v17450_v38  ;;  %6664 = vmatprep.subr.bf16.mxu1 %v17452_v15  ;;  %v24912_v15 = vld [vmem:[%s26504_s2] ss:$0 sm:$0xff] }
 0x8a0   : > { %v19574_v1 = vpop.f32.mrb[44].mxu0  ;;  %v19609_v0 = vpop.f32.mrb[44].mxu1 }
 0x8a1   : > { %v19575_v48 = vpop.f32.mrb[45].mxu0  ;;  %v19610_v32 = vpop.f32.mrb[45].mxu1 }
 0x8a2   : > { %v19576_v3 = vadd.f32 %v19575_v48, %v19574_v1  ;;  %v19611_v47 = vadd.f32 %v19610_v32, %v19609_v0  ;;  %v24918_v0 = vld [vmem:[%s26505_s3] ss:$0 sm:$0xff]  ;;  %v17423_v32 = vld [vmem:[%s23642_s10 + $0xd50] sm:$0xff] }
 0x8a3   : > { %26541 = vst [vmem:[#allocation11_spill] sm:$0xff] %v24918_v0 }
 0x8a4   : > { %v5986_v36 = vadd.f32 %v19611_v47, %v19576_v3  ;;  %v17427_v3 = vld [vmem:[%s23642_s10 + $0xd70] sm:$0xff]  ;;  %v17424_v47 = vld [vmem:[%s23642_s10 + $0xd58] sm:$0xff] }
 0x8b0   : > { %v6055_v23 = vpop.f32.mrb[46].mxu0 }
 0x8b1   : > { %v24907_v62 = vadd.f32 %v6055_v23, %v5986_v36  ;;  %v20903_v12 = vpop.f32.mrb[47].mxu0  ;;  %v17428_v36 = vld [vmem:[%s23642_s10 + $0xd78] sm:$0xff] }
 0x8b3   : > { %26540 = vst [vmem:[#allocation8_spill] sm:$0xff] %v24907_v62  ;;  %v17444_v62 = vld [vmem:[%s23642_s10 + $0xdf8] sm:$0xff] }
 0x8c0   : > { %v19653_v57 = vpop.f32.mrb[46].mxu1 }
 0x8c1   : > { %v19654_v21 = vpop.f32.mrb[47].mxu1 }
 0x8c2   : > { %v19655_v45 = vadd.f32 %v19654_v21, %v19653_v57  ;;  %v17458_v57 = vcombine.high %v17423_v32, %v17427_v3  ;;  %v17460_v21 = vcombine.high %v17424_v47, %v17428_v36 }
 0x8d0   : > { %v19688_v43 = vpop.f32.mrb[48].mxu0  ;;  %v6337_v51 = vpop.f32.mrb[48].mxu1 }
 0x8d1   : > { %v19689_v11 = vpop.f32.mrb[49].mxu0  ;;  %v20922_v2 = vpop.f32.mrb[49].mxu1 }
 0x8d2   : > { %v19690_v42 = vadd.f32 %v19689_v11, %v19688_v43  ;;  %v17435_v43 = vld [vmem:[%s23642_s10 + $0xdb0] sm:$0xff]  ;;  %v17436_v11 = vld [vmem:[%s23642_s10 + $0xdb8] sm:$0xff]  ;;  %v17457_v2 = vcombine.low %v17423_v32, %v17427_v3  ;;  %v6710_v3 = vcombine.high %v17481_v33, %v17481_v33 }
 0x8d4   : > { %v6268_v38 = vadd.f32 %v19690_v42, %v19655_v45  ;;  %v17431_v45 = vld [vmem:[%s23642_s10 + $0xd90] sm:$0xff]  ;;  %v17459_v42 = vcombine.low %v17424_v47, %v17428_v36 }
 0x8d6   : > { %v6338_v52 = vadd.f32 %v6337_v51, %v6268_v38  ;;  %v17432_v51 = vld [vmem:[%s23642_s10 + $0xd98] sm:$0xff]  ;;  %v17466_v38 = vcombine.high %v17431_v45, %v17435_v43 }
 0x8d8   : > { %v6341_v1 = vmul.f32 %v24912_v15, %v6338_v52  ;;  %v17468_v52 = vcombine.high %v17432_v51, %v17436_v11 }
 0x8da   : > { %v6342_v48 = vadd.f32 %v24918_v0, %v6341_v1  ;;  %v17439_v1 = vld [vmem:[%s23642_s10 + $0xdd0] sm:$0xff]  ;;  %v17465_v0 = vcombine.low %v17431_v45, %v17435_v43 }
 0x8dc   : > { %v6343_v23 = vmax.f32 %v6342_v48, 0.0  ;;  %v17443_v48 = vld [vmem:[%s23642_s10 + $0xdf0] sm:$0xff] }
 0x8dd   : > { %v17473_v47 = vcombine.low %v17439_v1, %v17443_v48 }
 0x8de   : > { %v6344_v12 = vpack.c.bf16 %v6343_v23, %v6343_v23  ;;  %v17440_v23 = vld [vmem:[%s23642_s10 + $0xdd8] sm:$0xff] }
 0x8df   : > { %v17476_v32 = vcombine.high %v17440_v23, %v17444_v62  ;;  %v17475_v36 = vcombine.low %v17440_v23, %v17444_v62 }
 0x8e0   : > { %17477 = vmatmul.mubr.msk.bf16.vlgmr.msra.gmra.mrb[8].mxu0 %vm489_vm1, %v6344_v12  ;;  %17478 = vmatmul.mubr.msk.bf16.vlgmr.msra.gmra.mrb[8].mxu1 %vm489_vm1, %v6344_v12 }
 0x8e1   : > { %6624 = vmatpush1.bf16.msra.mxu0 %v17449_v58  ;;  %6665 = vmatpush1.bf16.msra.mxu1 %v17451_v16  ;;  %v17467_v58 = vcombine.low %v17432_v51, %v17436_v11  ;;  %v17474_v16 = vcombine.high %v17439_v1, %v17443_v48  ;;  %v17483_v11 = vld.sshfl [vmem:[%s23647_s13 + $0x94] sm:$0x3 pattern:$0x76325410]  ;;  %v17522_v1 = vld [vmem:[%s23642_s10 + $0xf08] sm:$0xff] }
 0x8e2   : > { %6625 = vmatprep.subr.bf16.mxu0 %v17458_v57  ;;  %6666 = vmatprep.subr.bf16.mxu1 %v17460_v21  ;;  %v6717_v57 = vrot.slane %v17481_v33, %v23865_v20  ;;  %v6724_v21 = vrot.slane %v6710_v3, %v23865_v20  ;;  %v17517_v33 = vld [vmem:[%s23647_s13 + $0x96] sm:$0xff]  ;;  %v17529_v3 = vld [vmem:[%s23642_s10 + $0xf40] sm:$0xff] }
 0x8e3   : > { %6655 = vmatprep.mubr.bf16.mxu0 %v26531_v41  ;;  %6696 = vmatprep.mubr.bf16.mxu1 %v26531_v41  ;;  %v6999_v62 = vrot.slane %v17517_v33, %v23865_v20 }
 0x8e4   : > { %v6725_v45 = vcombine.high %v6717_v57, %v6717_v57  ;;  %v6726_v43 = vcombine.high %v6724_v21, %v6724_v21 }
 0x8e5   : > { %6626 = vmatpush1.bf16.msra.mxu0 %v17457_v2  ;;  %6667 = vmatpush1.bf16.msra.mxu1 %v17459_v42  ;;  %v17519_v42 = vld.sshfl [vmem:[%s23647_s13 + $0x9e] sm:$0x3 pattern:$0x76325410] }
 0x8e6   : > { %6627 = vmatprep.subr.bf16.mxu0 %v17466_v38  ;;  %6668 = vmatprep.subr.bf16.mxu1 %v17468_v52  ;;  %v17521_v38 = vld [vmem:[%s23642_s10 + $0xf00] sm:$0xff] }
 0x8e7   : > { %v17525_v52 = vld [vmem:[%s23642_s10 + $0xf20] sm:$0xff] }
 0x8e8   : > { %v17553_v48 = vcombine.low %v17521_v38, %v17525_v52  ;;  %v17554_v23 = vcombine.high %v17521_v38, %v17525_v52  ;;  %v17545_v52 = vld [vmem:[%s23642_s10 + $0xfc0] sm:$0xff] }
 0x8e9   : > { %6628 = vmatpush1.bf16.msra.mxu0 %v17465_v0  ;;  %6669 = vmatpush1.bf16.msra.mxu1 %v17467_v58  ;;  %v7007_v0 = vcombine.high %v6999_v62, %v6999_v62  ;;  %v17526_v58 = vld [vmem:[%s23642_s10 + $0xf28] sm:$0xff] }
 0x8ea   : > { %6629 = vmatprep.subr.bf16.mxu0 %v17474_v16  ;;  %6670 = vmatprep.subr.bf16.mxu1 %v17476_v32  ;;  %v17555_v16 = vcombine.low %v17522_v1, %v17526_v58  ;;  %v17556_v32 = vcombine.high %v17522_v1, %v17526_v58  ;;  %v17549_v1 = vld [vmem:[%s23642_s10 + $0xfe0] sm:$0xff]  ;;  %v17550_v58 = vld [vmem:[%s23642_s10 + $0xfe8] sm:$0xff] }
 0x8ed   : > { %6630 = vmatpush1.bf16.msra.mxu0 %v17473_v47  ;;  %6671 = vmatpush1.bf16.msra.mxu1 %v17475_v36  ;;  %v17533_v47 = vld [vmem:[%s23642_s10 + $0xf60] sm:$0xff]  ;;  %v17530_v36 = vld [vmem:[%s23642_s10 + $0xf48] sm:$0xff] }
 0x8ee   : > { %22197 = vmatprep.subr.bf16.mxu0 %v23659_v4  ;;  %22229 = vmatprep.subr.bf16.mxu1 %v23670_v8 }
 0x8f0   : > { %17479 = vmatmul.mubr.msk.bf16.vlgmr.msra.gmra.mrb[12].mxu0 %vm489_vm1, %v6344_v12  ;;  %17480 = vmatmul.mubr.msk.bf16.vlgmr.msra.gmra.mrb[12].mxu1 %vm489_vm1, %v6344_v12  ;;  %v6992_v12 = vcombine.high %v17517_v33, %v17517_v33 }
 0x8f1   : > { %22199 = vmatpush3.bf16.msra.mxu0 %v23672_v9  ;;  %22231 = vmatpush3.bf16.msra.mxu1 %v23684_v13 }
 0x8f2   : > { %22201 = vmatprep.subr.bf16.mxu0 %v23697_v17  ;;  %22233 = vmatprep.subr.bf16.mxu1 %v23699_v18  ;;  %v7006_v51 = vrot.slane %v6992_v12, %v23865_v20  ;;  %v17538_v12 = vld [vmem:[%s23642_s10 + $0xf88] sm:$0xff] }
 0x8f3   : > { %6804 = vmatprep.mubr.f32.mxu0 %v6725_v45  ;;  %6874 = vmatprep.mubr.f32.mxu1 %v6726_v43  ;;  %v17561_v45 = vcombine.low %v17529_v3, %v17533_v47 }
 0x8f4   : > { %v7008_v2 = vcombine.high %v7006_v51, %v7006_v51 }
 0x8f5   : > { %22203 = vmatpush3.bf16.msra.mxu0 %v23711_v22  ;;  %22235 = vmatpush3.bf16.msra.mxu1 %v23724_v26 }
 0x8f6   : > { %22205 = vmatprep.subr.bf16.mxu0 %v23726_v27  ;;  %22237 = vmatprep.subr.bf16.mxu1 %v23737_v31 }
 0x8f9   : > { %22207 = vmatpush3.bf16.msra.mxu0 %v23749_v35  ;;  %22239 = vmatpush3.bf16.msra.mxu1 %v23762_v39 }
 0x8fa   : > { %22209 = vmatprep.subr.bf16.mxu0 %v23764_v40  ;;  %22241 = vmatprep.subr.bf16.mxu1 %v23776_v44 }
 0x8fd   : > { %22211 = vmatpush3.bf16.msra.mxu0 %v23797_v54  ;;  %22243 = vmatpush3.bf16.msra.mxu1 %v23801_v55 }
 0x8fe   : > { %22213 = vmatprep.subr.bf16.mxu0 %v23803_v56  ;;  %22245 = vmatprep.subr.bf16.mxu1 %v23815_v60 }
 0x901   : > { %22215 = vmatpush3.bf16.msra.mxu0 %v23835_v5  ;;  %22247 = vmatpush3.bf16.msra.mxu1 %v23839_v6 }
 0x902   : > { %22217 = vmatprep.subr.bf16.mxu0 %v23841_v7  ;;  %22249 = vmatprep.subr.bf16.mxu1 %v23853_v14 }
 0x905   : > { %22219 = vmatpush3.bf16.msra.mxu0 %v23874_v24  ;;  %22251 = vmatpush3.bf16.msra.mxu1 %v23881_v28 }
 0x906   : > { %22221 = vmatprep.subr.bf16.mxu0 %v23883_v29  ;;  %22253 = vmatprep.subr.bf16.mxu1 %v23893_v34 }
 0x909   : > { %22223 = vmatpush3.bf16.msra.mxu0 %v23912_v46  ;;  %22255 = vmatpush3.bf16.msra.mxu1 %v23917_v49 }
 0x90a   : > { %22225 = vmatprep.subr.bf16.mxu0 %v23919_v50  ;;  %22257 = vmatprep.subr.bf16.mxu1 %v23928_v53 }
 0x90d   : > { %22227 = vmatpush3.bf16.msra.mxu0 %v23937_v61  ;;  %22259 = vmatpush3.bf16.msra.mxu1 %v23942_v63 }
 0x90e   : > { %22260 = vmatprep.subr.bf16.mxu0 %v26528_v25  ;;  %22273 = vmatprep.subr.bf16.mxu1 %v23659_v4 }
 0x910   : > { %6805 = vmatmul.mubr.f32.vlgmr.msra.gmra.mrb[50].mxu0 %v6717_v57  ;;  %6875 = vmatmul.mubr.f32.vlgmr.msra.gmra.mrb[50].mxu1 %v6724_v21  ;;  %v17562_v57 = vcombine.high %v17529_v3, %v17533_v47  ;;  %v17534_v21 = vld [vmem:[%s23642_s10 + $0xf68] sm:$0xff]  ;;  %v17523_v47 = vld [vmem:[%s23642_s10 + $0xf10] sm:$0xff] }
 0x911   : > { %22262 = vmatpush3.bf16.msra.mxu0 %v23953_v10  ;;  %22275 = vmatpush3.bf16.msra.mxu1 %v23672_v9  ;;  %v17563_v43 = vcombine.low %v17530_v36, %v17534_v21  ;;  %v17564_v33 = vcombine.high %v17530_v36, %v17534_v21  ;;  %v17527_v36 = vld [vmem:[%s23642_s10 + $0xf30] sm:$0xff] }
 0x912   : > { %22263 = vmatprep.subr.bf16.mxu0 %v26528_v25  ;;  %22277 = vmatprep.subr.bf16.mxu1 %v23697_v17  ;;  %v17558_v21 = vcombine.high %v17523_v47, %v17527_v36 }
 0x913   : > { %20939 = vmatprep.mubr.msk.f32.mxu0 %vm23575_vm0, %v26529_v59  ;;  %7086 = vmatprep.mubr.f32.mxu1 %v7007_v0  ;;  %v17541_v0 = vld [vmem:[%s23642_s10 + $0xfa0] sm:$0xff] }
 0x915   : > { %22265 = vmatpush3.bf16.msra.mxu0 %v23965_v19  ;;  %22279 = vmatpush3.bf16.msra.mxu1 %v23711_v22 }
 0x916   : > { %22266 = vmatprep.subr.bf16.mxu0 %v26528_v25  ;;  %22281 = vmatprep.subr.bf16.mxu1 %v23726_v27 }
 0x919   : > { %22268 = vmatpush3.bf16.msra.mxu0 %v23979_v30  ;;  %22283 = vmatpush3.bf16.msra.mxu1 %v23749_v35 }
 0x91a   : > { %22269 = vmatprep.subr.bf16.mxu0 %v26528_v25  ;;  %22285 = vmatprep.subr.bf16.mxu1 %v23764_v40 }
 0x91d   : > { %22271 = vmatpush3.bf16.msra.mxu0 %v23991_v37  ;;  %22287 = vmatpush3.bf16.msra.mxu1 %v23797_v54 }
 0x91e   : > { %22305 = vmatprep.subr.bf16.mxu0 %v23670_v8  ;;  %22289 = vmatprep.subr.bf16.mxu1 %v23803_v56 }
 0x920   : > { %20940 = vmatmul.mubr.msk.f32.vlgmr.msra.gmra.mrb[52].mxu0 %vm489_vm1, %v17483_v11  ;;  %v17542_v11 = vld [vmem:[%s23642_s10 + $0xfa8] sm:$0xff] }
 0x921   : > { %22307 = vmatpush3.bf16.msra.mxu0 %v23684_v13  ;;  %22291 = vmatpush3.bf16.msra.mxu1 %v23835_v5  ;;  %v17572_v38 = vcombine.high %v17538_v12, %v17542_v11 }
 0x922   : > { %22309 = vmatprep.subr.bf16.mxu0 %v23699_v18  ;;  %22293 = vmatprep.subr.bf16.mxu1 %v23841_v7 }
 0x923   : > { %7156 = vmatprep.mubr.f32.mxu0 %v7008_v2 }
 0x925   : > { %22311 = vmatpush3.bf16.msra.mxu0 %v23724_v26  ;;  %22295 = vmatpush3.bf16.msra.mxu1 %v23874_v24 }
 0x926   : > { %22313 = vmatprep.subr.bf16.mxu0 %v23737_v31  ;;  %22297 = vmatprep.subr.bf16.mxu1 %v23883_v29 }
 0x929   : > { %22315 = vmatpush3.bf16.msra.mxu0 %v23762_v39  ;;  %22299 = vmatpush3.bf16.msra.mxu1 %v23912_v46 }
 0x92a   : > { %22317 = vmatprep.subr.bf16.mxu0 %v23776_v44  ;;  %22301 = vmatprep.subr.bf16.mxu1 %v23919_v50 }
 0x92d   : > { %22319 = vmatpush3.bf16.msra.mxu0 %v23801_v55  ;;  %22303 = vmatpush3.bf16.msra.mxu1 %v23937_v61 }
 0x92e   : > { %22321 = vmatprep.subr.bf16.mxu0 %v23815_v60  ;;  %22336 = vmatprep.subr.bf16.mxu1 %v26528_v25 }
 0x930   : > { %7087 = vmatmul.mubr.f32.vlgmr.msra.gmra.mrb[52].mxu1 %v6999_v62  ;;  %v17537_v62 = vld [vmem:[%s23642_s10 + $0xf80] sm:$0xff] }
 0x931   : > { %22323 = vmatpush3.bf16.msra.mxu0 %v23839_v6  ;;  %22338 = vmatpush3.bf16.msra.mxu1 %v23953_v10  ;;  %v17569_v2 = vcombine.low %v17537_v62, %v17541_v0 }
 0x932   : > { %22325 = vmatprep.subr.bf16.mxu0 %v23853_v14  ;;  %22339 = vmatprep.subr.bf16.mxu1 %v26528_v25 }
 0x933   : > { %20958 = vmatprep.mubr.msk.f32.mxu1 %vm23575_vm0, %v26529_v59 }
 0x935   : > { %22327 = vmatpush3.bf16.msra.mxu0 %v23881_v28  ;;  %22341 = vmatpush3.bf16.msra.mxu1 %v23965_v19 }
 0x936   : > { %22329 = vmatprep.subr.bf16.mxu0 %v23893_v34  ;;  %22342 = vmatprep.subr.bf16.mxu1 %v26528_v25 }
 0x939   : > { %22331 = vmatpush3.bf16.msra.mxu0 %v23917_v49  ;;  %22344 = vmatpush3.bf16.msra.mxu1 %v23979_v30 }
 0x93a   : > { %22333 = vmatprep.subr.bf16.mxu0 %v23928_v53  ;;  %22345 = vmatprep.subr.bf16.mxu1 %v26528_v25 }
 0x93d   : > { %22335 = vmatpush3.bf16.msra.mxu0 %v23942_v63  ;;  %22347 = vmatpush3.bf16.msra.mxu1 %v23991_v37 }
 0x93e   : > { %7432 = vmatprep.subr.bf16.mxu0 %v17554_v23  ;;  %7473 = vmatprep.subr.bf16.mxu1 %v17556_v32  ;;  %v17578_v23 = vcombine.high %v17545_v52, %v17549_v1 }
 0x940   : > { %7157 = vmatmul.mubr.f32.vlgmr.msra.gmra.mrb[54].mxu0 %v7006_v51  ;;  %20959 = vmatmul.mubr.msk.f32.vlgmr.msra.gmra.mrb[54].mxu1 %vm489_vm1, %v17519_v42  ;;  %v17570_v51 = vcombine.high %v17537_v62, %v17541_v0  ;;  %v17571_v42 = vcombine.low %v17538_v12, %v17542_v11 }
 0x941   : > { %7464 = vmatprep.mubr.bf16.mxu0 %v26531_v41  ;;  %7505 = vmatprep.mubr.bf16.mxu1 %v26531_v41 }
 0x942   : > { %7433 = vmatpush1.bf16.msra.mxu0 %v17553_v48  ;;  %7474 = vmatpush1.bf16.msra.mxu1 %v17555_v16  ;;  %v17546_v48 = vld [vmem:[%s23642_s10 + $0xfc8] sm:$0xff]  ;;  %v17577_v16 = vcombine.low %v17545_v52, %v17549_v1 }
 0x943   : > { %7434 = vmatprep.subr.bf16.mxu0 %v17562_v57  ;;  %7475 = vmatprep.subr.bf16.mxu1 %v17564_v33  ;;  %v17579_v32 = vcombine.low %v17546_v48, %v17550_v58  ;;  %v17580_v3 = vcombine.high %v17546_v48, %v17550_v58  ;;  %v17524_v57 = vld [vmem:[%s23642_s10 + $0xf18] sm:$0xff] }
 0x946   : > { %7435 = vmatpush1.bf16.msra.mxu0 %v17561_v45  ;;  %7476 = vmatpush1.bf16.msra.mxu1 %v17563_v43  ;;  %v17528_v45 = vld [vmem:[%s23642_s10 + $0xf38] sm:$0xff]  ;;  %v17557_v43 = vcombine.low %v17523_v47, %v17527_v36 }
 0x947   : > { %7436 = vmatprep.subr.bf16.mxu0 %v17570_v51  ;;  %7477 = vmatprep.subr.bf16.mxu1 %v17572_v38  ;;  %v17559_v33 = vcombine.low %v17524_v57, %v17528_v45  ;;  %v17560_v62 = vcombine.high %v17524_v57, %v17528_v45 }
 0x94a   : > { %7437 = vmatpush1.bf16.msra.mxu0 %v17569_v2  ;;  %7478 = vmatpush1.bf16.msra.mxu1 %v17571_v42 }
 0x94b   : > { %7438 = vmatprep.subr.bf16.mxu0 %v17578_v23  ;;  %7479 = vmatprep.subr.bf16.mxu1 %v17580_v3 }
 0x94e   : > { %7439 = vmatpush1.bf16.msra.mxu0 %v17577_v16  ;;  %7480 = vmatpush1.bf16.msra.mxu1 %v17579_v32 }
 0x94f   : > { %7514 = vmatprep.subr.bf16.mxu0 %v17558_v21  ;;  %7555 = vmatprep.subr.bf16.mxu1 %v17560_v62 }
 0x9e3   : > { %v19732_v0 = vpop.f32.mrb[50].mxu0  ;;  %v19767_v12 = vpop.f32.mrb[50].mxu1 }
 0x9e4   : > { %v19733_v51 = vpop.f32.mrb[51].mxu0  ;;  %v19768_v11 = vpop.f32.mrb[51].mxu1 }
 0x9e5   : > { %v19734_v2 = vadd.f32 %v19733_v51, %v19732_v0  ;;  %v19769_v42 = vadd.f32 %v19768_v11, %v19767_v12  ;;  %v26543_v0 = vld [vmem:[#allocation11_spill] sm:$0xff] }
 0x9e6   : > { %v17531_v51 = vld [vmem:[%s23642_s10 + $0xf50] sm:$0xff] }
 0x9e7   : > { %v6877_v38 = vadd.f32 %v19769_v42, %v19734_v2  ;;  %v17535_v11 = vld [vmem:[%s23642_s10 + $0xf70] sm:$0xff]  ;;  %v17532_v2 = vld [vmem:[%s23642_s10 + $0xf58] sm:$0xff] }
 0x9e8   : > { %v17536_v42 = vld [vmem:[%s23642_s10 + $0xf78] sm:$0xff] }
 0x9f3   : > { %v6946_v52 = vpop.f32.mrb[52].mxu0 }
 0x9f4   : > { %v25055_v1 = vadd.f32 %v6946_v52, %v6877_v38  ;;  %v20941_v48 = vpop.f32.mrb[53].mxu0 }
 0x9f5   : > { %v17566_v48 = vcombine.high %v17531_v51, %v17535_v11 }
 0x9f6   : > { %26542 = vst [vmem:[#allocation12_spill] sm:$0xff] %v25055_v1  ;;  %v17589_v1 = vld [vmem:[%s23647_s13 + $0xa0] sm:$0xff] }
 0xa03   : > { %v19811_v23 = vpop.f32.mrb[52].mxu1 }
 0xa04   : > { %v19812_v58 = vpop.f32.mrb[53].mxu1 }
 0xa05   : > { %v19813_v16 = vadd.f32 %v19812_v58, %v19811_v23  ;;  %v17568_v23 = vcombine.high %v17532_v2, %v17536_v42  ;;  %v17539_v58 = vld [vmem:[%s23642_s10 + $0xf90] sm:$0xff] }
 0xa13   : > { %v19846_v32 = vpop.f32.mrb[54].mxu0  ;;  %v7228_v3 = vpop.f32.mrb[54].mxu1 }
 0xa14   : > { %v19847_v47 = vpop.f32.mrb[55].mxu0  ;;  %v20960_v36 = vpop.f32.mrb[55].mxu1 }
 0xa15   : > { %v19848_v57 = vadd.f32 %v19847_v47, %v19846_v32  ;;  %v17543_v32 = vld [vmem:[%s23642_s10 + $0xfb0] sm:$0xff]  ;;  %v17565_v47 = vcombine.low %v17531_v51, %v17535_v11  ;;  %v17567_v36 = vcombine.low %v17532_v2, %v17536_v42  ;;  %v7601_v11 = vcombine.high %v17589_v1, %v17589_v1 }
 0xa17   : > { %v7159_v21 = vadd.f32 %v19848_v57, %v19813_v16  ;;  %v17540_v16 = vld [vmem:[%s23642_s10 + $0xf98] sm:$0xff]  ;;  %v17574_v57 = vcombine.high %v17539_v58, %v17543_v32 }
 0xa19   : > { %v7229_v45 = vadd.f32 %v7228_v3, %v7159_v21  ;;  %v17544_v3 = vld [vmem:[%s23642_s10 + $0xfb8] sm:$0xff] }
 0xa1a   : > { %v17576_v21 = vcombine.high %v17540_v16, %v17544_v3 }
 0xa1b   : > { %v7232_v62 = vmul.f32 %v24912_v15, %v7229_v45  ;;  %v17547_v45 = vld [vmem:[%s23642_s10 + $0xfd0] sm:$0xff] }
 0xa1d   : > { %v7233_v12 = vadd.f32 %v26543_v0, %v7232_v62  ;;  %v17551_v62 = vld [vmem:[%s23642_s10 + $0xff0] sm:$0xff]  ;;  %v17573_v0 = vcombine.low %v17539_v58, %v17543_v32 }
 0xa1e   : > { %v17581_v2 = vcombine.low %v17547_v45, %v17551_v62 }
 0xa1f   : > { %v7234_v38 = vmax.f32 %v7233_v12, 0.0  ;;  %v17548_v12 = vld [vmem:[%s23642_s10 + $0xfd8] sm:$0xff] }
 0xa21   : > { %v7235_v52 = vpack.c.bf16 %v7234_v38, %v7234_v38  ;;  %v17552_v38 = vld [vmem:[%s23642_s10 + $0xff8] sm:$0xff] }
 0xa22   : > { %v17584_v51 = vcombine.high %v17548_v12, %v17552_v38  ;;  %v17583_v42 = vcombine.low %v17548_v12, %v17552_v38 }
 0xa23   : > { %17585 = vmatmul.mubr.msk.bf16.vlgmr.msra.gmra.mrb[8].mxu0 %vm489_vm1, %v7235_v52  ;;  %17586 = vmatmul.mubr.msk.bf16.vlgmr.msra.gmra.mrb[8].mxu1 %vm489_vm1, %v7235_v52 }
 0xa24   : > { %7515 = vmatpush1.bf16.msra.mxu0 %v17557_v43  ;;  %7556 = vmatpush1.bf16.msra.mxu1 %v17559_v33  ;;  %v17575_v43 = vcombine.low %v17540_v16, %v17544_v3  ;;  %v17582_v33 = vcombine.high %v17547_v45, %v17551_v62  ;;  %v17633_v45 = vld [vmem:[%s23642_s10 + $0x1120] sm:$0xff]  ;;  %v17630_v62 = vld [vmem:[%s23642_s10 + $0x1108] sm:$0xff] }
 0xa25   : > { %7516 = vmatprep.subr.bf16.mxu0 %v17566_v48  ;;  %7557 = vmatprep.subr.bf16.mxu1 %v17568_v23  ;;  %v7608_v48 = vrot.slane %v17589_v1, %v23865_v20  ;;  %v7615_v23 = vrot.slane %v7601_v11, %v23865_v20  ;;  %v17625_v1 = vld [vmem:[%s23647_s13 + $0xaa] sm:$0xff]  ;;  %v17637_v11 = vld [vmem:[%s23642_s10 + $0x1140] sm:$0xff] }
 0xa26   : > { %7546 = vmatprep.mubr.bf16.mxu0 %v26531_v41  ;;  %7587 = vmatprep.mubr.bf16.mxu1 %v26531_v41  ;;  %v7883_v16 = vcombine.high %v17625_v1, %v17625_v1 }
 0xa27   : > { %v7616_v58 = vcombine.high %v7608_v48, %v7608_v48  ;;  %v7617_v32 = vcombine.high %v7615_v23, %v7615_v23 }
 0xa28   : > { %7517 = vmatpush1.bf16.msra.mxu0 %v17565_v47  ;;  %7558 = vmatpush1.bf16.msra.mxu1 %v17567_v36  ;;  %v7897_v3 = vrot.slane %v7883_v16, %v23865_v20  ;;  %v17591_v47 = vld.sshfl [vmem:[%s23647_s13 + $0xa8] sm:$0x3 pattern:$0x76325410] }
 0xa29   : > { %7518 = vmatprep.subr.bf16.mxu0 %v17574_v57  ;;  %7559 = vmatprep.subr.bf16.mxu1 %v17576_v21  ;;  %v17627_v57 = vld.sshfl [vmem:[%s23647_s13 + $0xb2] sm:$0x3 pattern:$0x76325410]  ;;  %v17629_v21 = vld [vmem:[%s23642_s10 + $0x1100] sm:$0xff]  ;;  %v17646_v16 = vld [vmem:[%s23642_s10 + $0x1188] sm:$0xff] }
 0xa2a   : > { %v7899_v36 = vcombine.high %v7897_v3, %v7897_v3  ;;  %v17661_v12 = vcombine.low %v17629_v21, %v17633_v45  ;;  %v17662_v38 = vcombine.high %v17629_v21, %v17633_v45  ;;  %v17653_v45 = vld [vmem:[%s23642_s10 + $0x11c0] sm:$0xff] }
 0xa2c   : > { %7519 = vmatpush1.bf16.msra.mxu0 %v17573_v0  ;;  %7560 = vmatpush1.bf16.msra.mxu1 %v17575_v43  ;;  %v7890_v0 = vrot.slane %v17625_v1, %v23865_v20  ;;  %v17634_v43 = vld [vmem:[%s23642_s10 + $0x1128] sm:$0xff] }
 0xa2d   : > { %7520 = vmatprep.subr.bf16.mxu0 %v17582_v33  ;;  %7561 = vmatprep.subr.bf16.mxu1 %v17584_v51  ;;  %v17663_v33 = vcombine.low %v17630_v62, %v17634_v43  ;;  %v17664_v51 = vcombine.high %v17630_v62, %v17634_v43  ;;  %v17657_v62 = vld [vmem:[%s23642_s10 + $0x11e0] sm:$0xff]  ;;  %v17658_v43 = vld [vmem:[%s23642_s10 + $0x11e8] sm:$0xff] }
 0xa30   : > { %7521 = vmatpush1.bf16.msra.mxu0 %v17581_v2  ;;  %7562 = vmatpush1.bf16.msra.mxu1 %v17583_v42  ;;  %v17641_v2 = vld [vmem:[%s23642_s10 + $0x1160] sm:$0xff]  ;;  %v17638_v42 = vld [vmem:[%s23642_s10 + $0x1148] sm:$0xff] }
 0xa31   : > { %22349 = vmatprep.subr.bf16.mxu0 %v23659_v4  ;;  %22381 = vmatprep.subr.bf16.mxu1 %v23670_v8 }
 0xa33   : > { %17587 = vmatmul.mubr.msk.bf16.vlgmr.msra.gmra.mrb[12].mxu0 %vm489_vm1, %v7235_v52  ;;  %17588 = vmatmul.mubr.msk.bf16.vlgmr.msra.gmra.mrb[12].mxu1 %vm489_vm1, %v7235_v52  ;;  %v7898_v52 = vcombine.high %v7890_v0, %v7890_v0 }
 0xa34   : > { %22351 = vmatpush3.bf16.msra.mxu0 %v23672_v9  ;;  %22383 = vmatpush3.bf16.msra.mxu1 %v23684_v13 }
 0xa35   : > { %22353 = vmatprep.subr.bf16.mxu0 %v23697_v17  ;;  %22385 = vmatprep.subr.bf16.mxu1 %v23699_v18 }
 0xa36   : > { %7695 = vmatprep.mubr.f32.mxu0 %v7616_v58  ;;  %7765 = vmatprep.mubr.f32.mxu1 %v7617_v32  ;;  %v17669_v58 = vcombine.low %v17637_v11, %v17641_v2 }
 0xa38   : > { %22355 = vmatpush3.bf16.msra.mxu0 %v23711_v22  ;;  %22387 = vmatpush3.bf16.msra.mxu1 %v23724_v26 }
 0xa39   : > { %22357 = vmatprep.subr.bf16.mxu0 %v23726_v27  ;;  %22389 = vmatprep.subr.bf16.mxu1 %v23737_v31 }
 0xa3c   : > { %22359 = vmatpush3.bf16.msra.mxu0 %v23749_v35  ;;  %22391 = vmatpush3.bf16.msra.mxu1 %v23762_v39 }
 0xa3d   : > { %22361 = vmatprep.subr.bf16.mxu0 %v23764_v40  ;;  %22393 = vmatprep.subr.bf16.mxu1 %v23776_v44 }
 0xa40   : > { %22363 = vmatpush3.bf16.msra.mxu0 %v23797_v54  ;;  %22395 = vmatpush3.bf16.msra.mxu1 %v23801_v55 }
 0xa41   : > { %22365 = vmatprep.subr.bf16.mxu0 %v23803_v56  ;;  %22397 = vmatprep.subr.bf16.mxu1 %v23815_v60 }
 0xa44   : > { %22367 = vmatpush3.bf16.msra.mxu0 %v23835_v5  ;;  %22399 = vmatpush3.bf16.msra.mxu1 %v23839_v6 }
 0xa45   : > { %22369 = vmatprep.subr.bf16.mxu0 %v23841_v7  ;;  %22401 = vmatprep.subr.bf16.mxu1 %v23853_v14 }
 0xa48   : > { %22371 = vmatpush3.bf16.msra.mxu0 %v23874_v24  ;;  %22403 = vmatpush3.bf16.msra.mxu1 %v23881_v28 }
 0xa49   : > { %22373 = vmatprep.subr.bf16.mxu0 %v23883_v29  ;;  %22405 = vmatprep.subr.bf16.mxu1 %v23893_v34 }
 0xa4c   : > { %22375 = vmatpush3.bf16.msra.mxu0 %v23912_v46  ;;  %22407 = vmatpush3.bf16.msra.mxu1 %v23917_v49 }
 0xa4d   : > { %22377 = vmatprep.subr.bf16.mxu0 %v23919_v50  ;;  %22409 = vmatprep.subr.bf16.mxu1 %v23928_v53 }
 0xa50   : > { %22379 = vmatpush3.bf16.msra.mxu0 %v23937_v61  ;;  %22411 = vmatpush3.bf16.msra.mxu1 %v23942_v63 }
 0xa51   : > { %22412 = vmatprep.subr.bf16.mxu0 %v26528_v25  ;;  %22425 = vmatprep.subr.bf16.mxu1 %v23659_v4 }
 0xa53   : > { %7696 = vmatmul.mubr.f32.vlgmr.msra.gmra.mrb[56].mxu0 %v7608_v48  ;;  %7766 = vmatmul.mubr.f32.vlgmr.msra.gmra.mrb[56].mxu1 %v7615_v23  ;;  %v17670_v48 = vcombine.high %v17637_v11, %v17641_v2  ;;  %v17642_v23 = vld [vmem:[%s23642_s10 + $0x1168] sm:$0xff]  ;;  %v17631_v2 = vld [vmem:[%s23642_s10 + $0x1110] sm:$0xff] }
 0xa54   : > { %22414 = vmatpush3.bf16.msra.mxu0 %v23953_v10  ;;  %22427 = vmatpush3.bf16.msra.mxu1 %v23672_v9  ;;  %v17671_v32 = vcombine.low %v17638_v42, %v17642_v23  ;;  %v17672_v1 = vcombine.high %v17638_v42, %v17642_v23  ;;  %v17635_v42 = vld [vmem:[%s23642_s10 + $0x1130] sm:$0xff] }
 0xa55   : > { %22415 = vmatprep.subr.bf16.mxu0 %v26528_v25  ;;  %22429 = vmatprep.subr.bf16.mxu1 %v23697_v17  ;;  %v17666_v23 = vcombine.high %v17631_v2, %v17635_v42 }
 0xa56   : > { %20977 = vmatprep.mubr.msk.f32.mxu0 %vm23575_vm0, %v26529_v59  ;;  %7977 = vmatprep.mubr.f32.mxu1 %v7898_v52  ;;  %v17649_v52 = vld [vmem:[%s23642_s10 + $0x11a0] sm:$0xff] }
 0xa58   : > { %22417 = vmatpush3.bf16.msra.mxu0 %v23965_v19  ;;  %22431 = vmatpush3.bf16.msra.mxu1 %v23711_v22 }
 0xa59   : > { %22418 = vmatprep.subr.bf16.mxu0 %v26528_v25  ;;  %22433 = vmatprep.subr.bf16.mxu1 %v23726_v27 }
 0xa5c   : > { %22420 = vmatpush3.bf16.msra.mxu0 %v23979_v30  ;;  %22435 = vmatpush3.bf16.msra.mxu1 %v23749_v35 }
 0xa5d   : > { %22421 = vmatprep.subr.bf16.mxu0 %v26528_v25  ;;  %22437 = vmatprep.subr.bf16.mxu1 %v23764_v40 }
 0xa60   : > { %22423 = vmatpush3.bf16.msra.mxu0 %v23991_v37  ;;  %22439 = vmatpush3.bf16.msra.mxu1 %v23797_v54 }
 0xa61   : > { %22457 = vmatprep.subr.bf16.mxu0 %v23670_v8  ;;  %22441 = vmatprep.subr.bf16.mxu1 %v23803_v56 }
 0xa63   : > { %20978 = vmatmul.mubr.msk.f32.vlgmr.msra.gmra.mrb[58].mxu0 %vm489_vm1, %v17591_v47  ;;  %v17650_v47 = vld [vmem:[%s23642_s10 + $0x11a8] sm:$0xff] }
 0xa64   : > { %22459 = vmatpush3.bf16.msra.mxu0 %v23684_v13  ;;  %22443 = vmatpush3.bf16.msra.mxu1 %v23835_v5  ;;  %v17680_v21 = vcombine.high %v17646_v16, %v17650_v47 }
 0xa65   : > { %22461 = vmatprep.subr.bf16.mxu0 %v23699_v18  ;;  %22445 = vmatprep.subr.bf16.mxu1 %v23841_v7 }
 0xa66   : > { %8047 = vmatprep.mubr.f32.mxu0 %v7899_v36 }
 0xa68   : > { %22463 = vmatpush3.bf16.msra.mxu0 %v23724_v26  ;;  %22447 = vmatpush3.bf16.msra.mxu1 %v23874_v24 }
 0xa69   : > { %22465 = vmatprep.subr.bf16.mxu0 %v23737_v31  ;;  %22449 = vmatprep.subr.bf16.mxu1 %v23883_v29 }
 0xa6c   : > { %22467 = vmatpush3.bf16.msra.mxu0 %v23762_v39  ;;  %22451 = vmatpush3.bf16.msra.mxu1 %v23912_v46 }
 0xa6d   : > { %22469 = vmatprep.subr.bf16.mxu0 %v23776_v44  ;;  %22453 = vmatprep.subr.bf16.mxu1 %v23919_v50 }
 0xa70   : > { %22471 = vmatpush3.bf16.msra.mxu0 %v23801_v55  ;;  %22455 = vmatpush3.bf16.msra.mxu1 %v23937_v61 }
 0xa71   : > { %22473 = vmatprep.subr.bf16.mxu0 %v23815_v60  ;;  %22488 = vmatprep.subr.bf16.mxu1 %v26528_v25 }
 0xa73   : > { %7978 = vmatmul.mubr.f32.vlgmr.msra.gmra.mrb[58].mxu1 %v7890_v0  ;;  %v17645_v0 = vld [vmem:[%s23642_s10 + $0x1180] sm:$0xff] }
 0xa74   : > { %22475 = vmatpush3.bf16.msra.mxu0 %v23839_v6  ;;  %22490 = vmatpush3.bf16.msra.mxu1 %v23953_v10  ;;  %v17677_v36 = vcombine.low %v17645_v0, %v17649_v52 }
 0xa75   : > { %22477 = vmatprep.subr.bf16.mxu0 %v23853_v14  ;;  %22491 = vmatprep.subr.bf16.mxu1 %v26528_v25 }
 0xa76   : > { %20996 = vmatprep.mubr.msk.f32.mxu1 %vm23575_vm0, %v26529_v59 }
 0xa78   : > { %22479 = vmatpush3.bf16.msra.mxu0 %v23881_v28  ;;  %22493 = vmatpush3.bf16.msra.mxu1 %v23965_v19 }
 0xa79   : > { %22481 = vmatprep.subr.bf16.mxu0 %v23893_v34  ;;  %22494 = vmatprep.subr.bf16.mxu1 %v26528_v25 }
 0xa7c   : > { %22483 = vmatpush3.bf16.msra.mxu0 %v23917_v49  ;;  %22496 = vmatpush3.bf16.msra.mxu1 %v23979_v30 }
 0xa7d   : > { %22485 = vmatprep.subr.bf16.mxu0 %v23928_v53  ;;  %22497 = vmatprep.subr.bf16.mxu1 %v26528_v25 }
 0xa80   : > { %22487 = vmatpush3.bf16.msra.mxu0 %v23942_v63  ;;  %22499 = vmatpush3.bf16.msra.mxu1 %v23991_v37 }
 0xa81   : > { %8323 = vmatprep.subr.bf16.mxu0 %v17662_v38  ;;  %8364 = vmatprep.subr.bf16.mxu1 %v17664_v51  ;;  %v17686_v38 = vcombine.high %v17653_v45, %v17657_v62 }
 0xa83   : > { %8048 = vmatmul.mubr.f32.vlgmr.msra.gmra.mrb[60].mxu0 %v7897_v3  ;;  %20997 = vmatmul.mubr.msk.f32.vlgmr.msra.gmra.mrb[60].mxu1 %vm489_vm1, %v17627_v57  ;;  %v17678_v3 = vcombine.high %v17645_v0, %v17649_v52  ;;  %v17679_v57 = vcombine.low %v17646_v16, %v17650_v47 }
 0xa84   : > { %8355 = vmatprep.mubr.bf16.mxu0 %v26531_v41  ;;  %8396 = vmatprep.mubr.bf16.mxu1 %v26531_v41 }
 0xa85   : > { %8324 = vmatpush1.bf16.msra.mxu0 %v17661_v12  ;;  %8365 = vmatpush1.bf16.msra.mxu1 %v17663_v33  ;;  %v17654_v12 = vld [vmem:[%s23642_s10 + $0x11c8] sm:$0xff]  ;;  %v17685_v33 = vcombine.low %v17653_v45, %v17657_v62 }
 0xa86   : > { %8325 = vmatprep.subr.bf16.mxu0 %v17670_v48  ;;  %8366 = vmatprep.subr.bf16.mxu1 %v17672_v1  ;;  %v17687_v51 = vcombine.low %v17654_v12, %v17658_v43  ;;  %v17688_v11 = vcombine.high %v17654_v12, %v17658_v43  ;;  %v17632_v48 = vld [vmem:[%s23642_s10 + $0x1118] sm:$0xff] }
 0xa89   : > { %8326 = vmatpush1.bf16.msra.mxu0 %v17669_v58  ;;  %8367 = vmatpush1.bf16.msra.mxu1 %v17671_v32  ;;  %v17636_v58 = vld [vmem:[%s23642_s10 + $0x1138] sm:$0xff]  ;;  %v17665_v32 = vcombine.low %v17631_v2, %v17635_v42 }
 0xa8a   : > { %8327 = vmatprep.subr.bf16.mxu0 %v17678_v3  ;;  %8368 = vmatprep.subr.bf16.mxu1 %v17680_v21  ;;  %v17667_v1 = vcombine.low %v17632_v48, %v17636_v58  ;;  %v17668_v0 = vcombine.high %v17632_v48, %v17636_v58 }
 0xa8d   : > { %8328 = vmatpush1.bf16.msra.mxu0 %v17677_v36  ;;  %8369 = vmatpush1.bf16.msra.mxu1 %v17679_v57 }
 0xa8e   : > { %8329 = vmatprep.subr.bf16.mxu0 %v17686_v38  ;;  %8370 = vmatprep.subr.bf16.mxu1 %v17688_v11 }
 0xa91   : > { %8330 = vmatpush1.bf16.msra.mxu0 %v17685_v33  ;;  %8371 = vmatpush1.bf16.msra.mxu1 %v17687_v51 }
 0xa92   : > { %8405 = vmatprep.subr.bf16.mxu0 %v17666_v23  ;;  %8446 = vmatprep.subr.bf16.mxu1 %v17668_v0 }
 0xb26   : > { %v19890_v52 = vpop.f32.mrb[56].mxu0  ;;  %v19925_v16 = vpop.f32.mrb[56].mxu1 }
 0xb27   : > { %v19891_v3 = vpop.f32.mrb[57].mxu0  ;;  %v19926_v47 = vpop.f32.mrb[57].mxu1 }
 0xb28   : > { %v19892_v36 = vadd.f32 %v19891_v3, %v19890_v52  ;;  %v19927_v57 = vadd.f32 %v19926_v47, %v19925_v16  ;;  %v26545_v52 = vld [vmem:[#allocation11_spill] sm:$0xff] }
 0xb29   : > { %v17639_v3 = vld [vmem:[%s23642_s10 + $0x1150] sm:$0xff] }
 0xb2a   : > { %v7768_v21 = vadd.f32 %v19927_v57, %v19892_v36  ;;  %v17643_v47 = vld [vmem:[%s23642_s10 + $0x1170] sm:$0xff]  ;;  %v17640_v36 = vld [vmem:[%s23642_s10 + $0x1158] sm:$0xff] }
 0xb2b   : > { %v17644_v57 = vld [vmem:[%s23642_s10 + $0x1178] sm:$0xff] }
 0xb36   : > { %v7837_v45 = vpop.f32.mrb[58].mxu0 }
 0xb37   : > { %v25193_v62 = vadd.f32 %v7837_v45, %v7768_v21  ;;  %v20979_v12 = vpop.f32.mrb[59].mxu0 }
 0xb38   : > { %v17674_v12 = vcombine.high %v17639_v3, %v17643_v47 }
 0xb39   : > { %26544 = vst [vmem:[#allocation13_spill] sm:$0xff] %v25193_v62  ;;  %v17805_v62 = vld [vmem:[%s23647_s13 + $0xc8] sm:$0xff] }
 0xb46   : > { %v19969_v38 = vpop.f32.mrb[58].mxu1 }
 0xb47   : > { %v19970_v43 = vpop.f32.mrb[59].mxu1 }
 0xb48   : > { %v19971_v33 = vadd.f32 %v19970_v43, %v19969_v38  ;;  %v17676_v38 = vcombine.high %v17640_v36, %v17644_v57  ;;  %v17647_v43 = vld [vmem:[%s23642_s10 + $0x1190] sm:$0xff] }
 0xb56   : > { %v20004_v51 = vpop.f32.mrb[60].mxu0  ;;  %v8119_v11 = vpop.f32.mrb[60].mxu1 }
 0xb57   : > { %v20005_v2 = vpop.f32.mrb[61].mxu0  ;;  %v20998_v42 = vpop.f32.mrb[61].mxu1 }
 0xb58   : > { %v20006_v48 = vadd.f32 %v20005_v2, %v20004_v51  ;;  %v17651_v51 = vld [vmem:[%s23642_s10 + $0x11b0] sm:$0xff]  ;;  %v17675_v2 = vcombine.low %v17640_v36, %v17644_v57 }
 0xb59   : > { %v17682_v42 = vcombine.high %v17647_v43, %v17651_v51 }
 0xb5a   : > { %v8050_v23 = vadd.f32 %v20006_v48, %v19971_v33  ;;  %v17648_v33 = vld [vmem:[%s23642_s10 + $0x1198] sm:$0xff] }
 0xb5c   : > { %v8120_v58 = vadd.f32 %v8119_v11, %v8050_v23  ;;  %v17652_v11 = vld [vmem:[%s23642_s10 + $0x11b8] sm:$0xff]  ;;  %v17655_v23 = vld [vmem:[%s23642_s10 + $0x11d0] sm:$0xff] }
 0xb5d   : > { %v17684_v48 = vcombine.high %v17648_v33, %v17652_v11 }
 0xb5e   : > { %v8123_v0 = vmul.f32 %v24912_v15, %v8120_v58  ;;  %v17673_v15 = vcombine.low %v17639_v3, %v17643_v47  ;;  %v17659_v58 = vld [vmem:[%s23642_s10 + $0x11f0] sm:$0xff] }
 0xb5f   : > { %v17689_v36 = vcombine.low %v17655_v23, %v17659_v58 }
 0xb60   : > { %v8124_v16 = vadd.f32 %v26545_v52, %v8123_v0  ;;  %v17656_v0 = vld [vmem:[%s23642_s10 + $0x11d8] sm:$0xff] }
 0xb61   : > { %v17660_v52 = vld [vmem:[%s23642_s10 + $0x11f8] sm:$0xff] }
 0xb62   : > { %v8125_v21 = vmax.f32 %v8124_v16, 0.0  ;;  %v17697_v16 = vld [vmem:[%s23647_s13 + $0xb4] sm:$0xff]  ;;  %v17692_v3 = vcombine.high %v17656_v0, %v17660_v52  ;;  %v17691_v57 = vcombine.low %v17656_v0, %v17660_v52  ;;  %v17741_v0 = vld [vmem:[%s23642_s10 + $0x1320] sm:$0xff]  ;;  %v17738_v52 = vld [vmem:[%s23642_s10 + $0x1308] sm:$0xff] }
 0xb63   : > { %v8492_v47 = vcombine.high %v17697_v16, %v17697_v16 }
 0xb64   : > { %v8126_v45 = vpack.c.bf16 %v8125_v21, %v8125_v21  ;;  %v17681_v21 = vcombine.low %v17647_v43, %v17651_v51 }
 0xb66   : > { %17693 = vmatmul.mubr.msk.bf16.vlgmr.msra.gmra.mrb[8].mxu0 %vm489_vm1, %v8126_v45  ;;  %17694 = vmatmul.mubr.msk.bf16.vlgmr.msra.gmra.mrb[8].mxu1 %vm489_vm1, %v8126_v45 }
 0xb67   : > { %8406 = vmatpush1.bf16.msra.mxu0 %v17665_v32  ;;  %8447 = vmatpush1.bf16.msra.mxu1 %v17667_v1  ;;  %v17683_v32 = vcombine.low %v17648_v33, %v17652_v11  ;;  %v17690_v1 = vcombine.high %v17655_v23, %v17659_v58  ;;  %v17735_v23 = vld.sshfl [vmem:[%s23647_s13 + $0xc6] sm:$0x3 pattern:$0x76325410] }
 0xb68   : > { %8407 = vmatprep.subr.bf16.mxu0 %v17674_v12  ;;  %8448 = vmatprep.subr.bf16.mxu1 %v17676_v38  ;;  %v8499_v12 = vrot.slane %v17697_v16, %v23865_v20  ;;  %v8506_v38 = vrot.slane %v8492_v47, %v23865_v20  ;;  %v17737_v58 = vld [vmem:[%s23642_s10 + $0x1300] sm:$0xff] }
 0xb69   : > { %8437 = vmatprep.mubr.bf16.mxu0 %v26531_v41  ;;  %8478 = vmatprep.mubr.bf16.mxu1 %v26531_v41  ;;  %v17769_v16 = vcombine.low %v17737_v58, %v17741_v0  ;;  %v17745_v47 = vld [vmem:[%s23642_s10 + $0x1340] sm:$0xff] }
 0xb6a   : > { %v8507_v43 = vcombine.high %v8499_v12, %v8499_v12  ;;  %v8508_v51 = vcombine.high %v8506_v38, %v8506_v38 }
 0xb6b   : > { %8408 = vmatpush1.bf16.msra.mxu0 %v17673_v15  ;;  %8449 = vmatpush1.bf16.msra.mxu1 %v17675_v2 }
 0xb6c   : > { %8409 = vmatprep.subr.bf16.mxu0 %v17682_v42  ;;  %8450 = vmatprep.subr.bf16.mxu1 %v17684_v48  ;;  %v17699_v42 = vld.sshfl [vmem:[%s23647_s13 + $0xbc] sm:$0x3 pattern:$0x76325410] }
 0xb6f   : > { %8410 = vmatpush1.bf16.msra.mxu0 %v17681_v21  ;;  %8451 = vmatpush1.bf16.msra.mxu1 %v17683_v32  ;;  %v17770_v21 = vcombine.high %v17737_v58, %v17741_v0  ;;  %v17742_v32 = vld [vmem:[%s23642_s10 + $0x1328] sm:$0xff]  ;;  %v17761_v0 = vld [vmem:[%s23642_s10 + $0x13c0] sm:$0xff] }
 0xb70   : > { %8411 = vmatprep.subr.bf16.mxu0 %v17690_v1  ;;  %8452 = vmatprep.subr.bf16.mxu1 %v17692_v3  ;;  %v17771_v1 = vcombine.low %v17738_v52, %v17742_v32  ;;  %v17772_v3 = vcombine.high %v17738_v52, %v17742_v32  ;;  %v17765_v52 = vld [vmem:[%s23642_s10 + $0x13e0] sm:$0xff]  ;;  %v17766_v32 = vld [vmem:[%s23642_s10 + $0x13e8] sm:$0xff] }
 0xb73   : > { %8412 = vmatpush1.bf16.msra.mxu0 %v17689_v36  ;;  %8453 = vmatpush1.bf16.msra.mxu1 %v17691_v57  ;;  %v17749_v36 = vld [vmem:[%s23642_s10 + $0x1360] sm:$0xff]  ;;  %v17746_v57 = vld [vmem:[%s23642_s10 + $0x1348] sm:$0xff] }
 0xb74   : > { %22501 = vmatprep.subr.bf16.mxu0 %v23659_v4  ;;  %22533 = vmatprep.subr.bf16.mxu1 %v23670_v8 }
 0xb76   : > { %17695 = vmatmul.mubr.msk.bf16.vlgmr.msra.gmra.mrb[12].mxu0 %vm489_vm1, %v8126_v45  ;;  %17696 = vmatmul.mubr.msk.bf16.vlgmr.msra.gmra.mrb[12].mxu1 %vm489_vm1, %v8126_v45  ;;  %v17733_v45 = vld [vmem:[%s23647_s13 + $0xbe] sm:$0xff] }
 0xb77   : > { %22503 = vmatpush3.bf16.msra.mxu0 %v23672_v9  ;;  %22535 = vmatpush3.bf16.msra.mxu1 %v23684_v13  ;;  %v8781_v33 = vrot.slane %v17733_v45, %v23865_v20  ;;  %v8774_v15 = vcombine.high %v17733_v45, %v17733_v45 }
 0xb78   : > { %22505 = vmatprep.subr.bf16.mxu0 %v23697_v17  ;;  %22537 = vmatprep.subr.bf16.mxu1 %v23699_v18 }
 0xb79   : > { %8586 = vmatprep.mubr.f32.mxu0 %v8507_v43  ;;  %8656 = vmatprep.mubr.f32.mxu1 %v8508_v51  ;;  %v8789_v11 = vcombine.high %v8781_v33, %v8781_v33  ;;  %v8788_v2 = vrot.slane %v8774_v15, %v23865_v20  ;;  %v17777_v43 = vcombine.low %v17745_v47, %v17749_v36  ;;  %v17754_v15 = vld [vmem:[%s23642_s10 + $0x1388] sm:$0xff] }
 0xb7b   : > { %22507 = vmatpush3.bf16.msra.mxu0 %v23711_v22  ;;  %22539 = vmatpush3.bf16.msra.mxu1 %v23724_v26  ;;  %v8790_v48 = vcombine.high %v8788_v2, %v8788_v2 }
 0xb7c   : > { %22509 = vmatprep.subr.bf16.mxu0 %v23726_v27  ;;  %22541 = vmatprep.subr.bf16.mxu1 %v23737_v31 }
 0xb7f   : > { %22511 = vmatpush3.bf16.msra.mxu0 %v23749_v35  ;;  %22543 = vmatpush3.bf16.msra.mxu1 %v23762_v39 }
 0xb80   : > { %22513 = vmatprep.subr.bf16.mxu0 %v23764_v40  ;;  %22545 = vmatprep.subr.bf16.mxu1 %v23776_v44 }
 0xb83   : > { %22515 = vmatpush3.bf16.msra.mxu0 %v23797_v54  ;;  %22547 = vmatpush3.bf16.msra.mxu1 %v23801_v55 }
 0xb84   : > { %22517 = vmatprep.subr.bf16.mxu0 %v23803_v56  ;;  %22549 = vmatprep.subr.bf16.mxu1 %v23815_v60 }
 0xb87   : > { %22519 = vmatpush3.bf16.msra.mxu0 %v23835_v5  ;;  %22551 = vmatpush3.bf16.msra.mxu1 %v23839_v6 }
 0xb88   : > { %22521 = vmatprep.subr.bf16.mxu0 %v23841_v7  ;;  %22553 = vmatprep.subr.bf16.mxu1 %v23853_v14 }
 0xb8b   : > { %22523 = vmatpush3.bf16.msra.mxu0 %v23874_v24  ;;  %22555 = vmatpush3.bf16.msra.mxu1 %v23881_v28 }
 0xb8c   : > { %22525 = vmatprep.subr.bf16.mxu0 %v23883_v29  ;;  %22557 = vmatprep.subr.bf16.mxu1 %v23893_v34 }
 0xb8f   : > { %22527 = vmatpush3.bf16.msra.mxu0 %v23912_v46  ;;  %22559 = vmatpush3.bf16.msra.mxu1 %v23917_v49 }
 0xb90   : > { %22529 = vmatprep.subr.bf16.mxu0 %v23919_v50  ;;  %22561 = vmatprep.subr.bf16.mxu1 %v23928_v53 }
 0xb93   : > { %22531 = vmatpush3.bf16.msra.mxu0 %v23937_v61  ;;  %22563 = vmatpush3.bf16.msra.mxu1 %v23942_v63 }
 0xb94   : > { %22564 = vmatprep.subr.bf16.mxu0 %v26528_v25  ;;  %22577 = vmatprep.subr.bf16.mxu1 %v23659_v4 }
 0xb96   : > { %8587 = vmatmul.mubr.f32.vlgmr.msra.gmra.mrb[62].mxu0 %v8499_v12  ;;  %8657 = vmatmul.mubr.f32.vlgmr.msra.gmra.mrb[62].mxu1 %v8506_v38  ;;  %v17778_v12 = vcombine.high %v17745_v47, %v17749_v36  ;;  %v17750_v38 = vld [vmem:[%s23642_s10 + $0x1368] sm:$0xff]  ;;  %v17739_v36 = vld [vmem:[%s23642_s10 + $0x1310] sm:$0xff] }
 0xb97   : > { %22566 = vmatpush3.bf16.msra.mxu0 %v23953_v10  ;;  %22579 = vmatpush3.bf16.msra.mxu1 %v23672_v9  ;;  %v17779_v51 = vcombine.low %v17746_v57, %v17750_v38  ;;  %v17780_v45 = vcombine.high %v17746_v57, %v17750_v38  ;;  %v17743_v57 = vld [vmem:[%s23642_s10 + $0x1330] sm:$0xff] }
 0xb98   : > { %22567 = vmatprep.subr.bf16.mxu0 %v26528_v25  ;;  %22581 = vmatprep.subr.bf16.mxu1 %v23697_v17  ;;  %v17774_v38 = vcombine.high %v17739_v36, %v17743_v57 }
 0xb99   : > { %21015 = vmatprep.mubr.msk.f32.mxu0 %vm23575_vm0, %v26529_v59  ;;  %8868 = vmatprep.mubr.f32.mxu1 %v8789_v11  ;;  %v17757_v11 = vld [vmem:[%s23642_s10 + $0x13a0] sm:$0xff] }
 0xb9b   : > { %22569 = vmatpush3.bf16.msra.mxu0 %v23965_v19  ;;  %22583 = vmatpush3.bf16.msra.mxu1 %v23711_v22 }
 0xb9c   : > { %22570 = vmatprep.subr.bf16.mxu0 %v26528_v25  ;;  %22585 = vmatprep.subr.bf16.mxu1 %v23726_v27 }
 0xb9f   : > { %22572 = vmatpush3.bf16.msra.mxu0 %v23979_v30  ;;  %22587 = vmatpush3.bf16.msra.mxu1 %v23749_v35 }
 0xba0   : > { %22573 = vmatprep.subr.bf16.mxu0 %v26528_v25  ;;  %22589 = vmatprep.subr.bf16.mxu1 %v23764_v40 }
 0xba3   : > { %22575 = vmatpush3.bf16.msra.mxu0 %v23991_v37  ;;  %22591 = vmatpush3.bf16.msra.mxu1 %v23797_v54 }
 0xba4   : > { %22609 = vmatprep.subr.bf16.mxu0 %v23670_v8  ;;  %22593 = vmatprep.subr.bf16.mxu1 %v23803_v56 }
 0xba6   : > { %21016 = vmatmul.mubr.msk.f32.vlgmr.msra.gmra.mrb[64].mxu0 %vm489_vm1, %v17699_v42  ;;  %v17758_v42 = vld [vmem:[%s23642_s10 + $0x13a8] sm:$0xff] }
 0xba7   : > { %22611 = vmatpush3.bf16.msra.mxu0 %v23684_v13  ;;  %22595 = vmatpush3.bf16.msra.mxu1 %v23835_v5  ;;  %v17788_v58 = vcombine.high %v17754_v15, %v17758_v42 }
 0xba8   : > { %22613 = vmatprep.subr.bf16.mxu0 %v23699_v18  ;;  %22597 = vmatprep.subr.bf16.mxu1 %v23841_v7 }
 0xba9   : > { %8938 = vmatprep.mubr.f32.mxu0 %v8790_v48 }
 0xbab   : > { %22615 = vmatpush3.bf16.msra.mxu0 %v23724_v26  ;;  %22599 = vmatpush3.bf16.msra.mxu1 %v23874_v24 }
 0xbac   : > { %22617 = vmatprep.subr.bf16.mxu0 %v23737_v31  ;;  %22601 = vmatprep.subr.bf16.mxu1 %v23883_v29 }
 0xbaf   : > { %22619 = vmatpush3.bf16.msra.mxu0 %v23762_v39  ;;  %22603 = vmatpush3.bf16.msra.mxu1 %v23912_v46 }
 0xbb0   : > { %22621 = vmatprep.subr.bf16.mxu0 %v23776_v44  ;;  %22605 = vmatprep.subr.bf16.mxu1 %v23919_v50 }
 0xbb3   : > { %22623 = vmatpush3.bf16.msra.mxu0 %v23801_v55  ;;  %22607 = vmatpush3.bf16.msra.mxu1 %v23937_v61 }
 0xbb4   : > { %22625 = vmatprep.subr.bf16.mxu0 %v23815_v60  ;;  %22640 = vmatprep.subr.bf16.mxu1 %v26528_v25 }
 0xbb6   : > { %8869 = vmatmul.mubr.f32.vlgmr.msra.gmra.mrb[64].mxu1 %v8781_v33  ;;  %v17753_v33 = vld [vmem:[%s23642_s10 + $0x1380] sm:$0xff] }
 0xbb7   : > { %22627 = vmatpush3.bf16.msra.mxu0 %v23839_v6  ;;  %22642 = vmatpush3.bf16.msra.mxu1 %v23953_v10  ;;  %v17785_v48 = vcombine.low %v17753_v33, %v17757_v11 }
 0xbb8   : > { %22629 = vmatprep.subr.bf16.mxu0 %v23853_v14  ;;  %22643 = vmatprep.subr.bf16.mxu1 %v26528_v25 }
 0xbb9   : > { %21034 = vmatprep.mubr.msk.f32.mxu1 %vm23575_vm0, %v26529_v59 }
 0xbbb   : > { %22631 = vmatpush3.bf16.msra.mxu0 %v23881_v28  ;;  %22645 = vmatpush3.bf16.msra.mxu1 %v23965_v19 }
 0xbbc   : > { %22633 = vmatprep.subr.bf16.mxu0 %v23893_v34  ;;  %22646 = vmatprep.subr.bf16.mxu1 %v26528_v25 }
 0xbbf   : > { %22635 = vmatpush3.bf16.msra.mxu0 %v23917_v49  ;;  %22648 = vmatpush3.bf16.msra.mxu1 %v23979_v30 }
 0xbc0   : > { %22637 = vmatprep.subr.bf16.mxu0 %v23928_v53  ;;  %22649 = vmatprep.subr.bf16.mxu1 %v26528_v25 }
 0xbc3   : > { %22639 = vmatpush3.bf16.msra.mxu0 %v23942_v63  ;;  %22651 = vmatpush3.bf16.msra.mxu1 %v23991_v37 }
 0xbc4   : > { %9214 = vmatprep.subr.bf16.mxu0 %v17770_v21  ;;  %9255 = vmatprep.subr.bf16.mxu1 %v17772_v3  ;;  %v17794_v21 = vcombine.high %v17761_v0, %v17765_v52 }
 0xbc6   : > { %8939 = vmatmul.mubr.f32.vlgmr.msra.gmra.mrb[66].mxu0 %v8788_v2  ;;  %21035 = vmatmul.mubr.msk.f32.vlgmr.msra.gmra.mrb[66].mxu1 %vm489_vm1, %v17735_v23  ;;  %v17786_v2 = vcombine.high %v17753_v33, %v17757_v11  ;;  %v17787_v23 = vcombine.low %v17754_v15, %v17758_v42 }
 0xbc7   : > { %9246 = vmatprep.mubr.bf16.mxu0 %v26531_v41  ;;  %9287 = vmatprep.mubr.bf16.mxu1 %v26531_v41 }
 0xbc8   : > { %9215 = vmatpush1.bf16.msra.mxu0 %v17769_v16  ;;  %9256 = vmatpush1.bf16.msra.mxu1 %v17771_v1  ;;  %v17762_v16 = vld [vmem:[%s23642_s10 + $0x13c8] sm:$0xff]  ;;  %v17793_v1 = vcombine.low %v17761_v0, %v17765_v52 }
 0xbc9   : > { %9216 = vmatprep.subr.bf16.mxu0 %v17778_v12  ;;  %9257 = vmatprep.subr.bf16.mxu1 %v17780_v45  ;;  %v17795_v3 = vcombine.low %v17762_v16, %v17766_v32  ;;  %v17796_v47 = vcombine.high %v17762_v16, %v17766_v32  ;;  %v17740_v12 = vld [vmem:[%s23642_s10 + $0x1318] sm:$0xff] }
 0xbcc   : > { %9217 = vmatpush1.bf16.msra.mxu0 %v17777_v43  ;;  %9258 = vmatpush1.bf16.msra.mxu1 %v17779_v51  ;;  %v17744_v43 = vld [vmem:[%s23642_s10 + $0x1338] sm:$0xff]  ;;  %v17773_v51 = vcombine.low %v17739_v36, %v17743_v57 }
 0xbcd   : > { %9218 = vmatprep.subr.bf16.mxu0 %v17786_v2  ;;  %9259 = vmatprep.subr.bf16.mxu1 %v17788_v58  ;;  %v17775_v45 = vcombine.low %v17740_v12, %v17744_v43  ;;  %v17776_v33 = vcombine.high %v17740_v12, %v17744_v43 }
 0xbd0   : > { %9219 = vmatpush1.bf16.msra.mxu0 %v17785_v48  ;;  %9260 = vmatpush1.bf16.msra.mxu1 %v17787_v23 }
 0xbd1   : > { %9220 = vmatprep.subr.bf16.mxu0 %v17794_v21  ;;  %9261 = vmatprep.subr.bf16.mxu1 %v17796_v47 }
 0xbd4   : > { %9221 = vmatpush1.bf16.msra.mxu0 %v17793_v1  ;;  %9262 = vmatpush1.bf16.msra.mxu1 %v17795_v3 }
 0xbd5   : > { %9296 = vmatprep.subr.bf16.mxu0 %v17774_v38  ;;  %9337 = vmatprep.subr.bf16.mxu1 %v17776_v33  ;;  %v25336_v33 = vld [vmem:[%s26504_s2] ss:$0 sm:$0xff] }
 0xc69   : > { %v20048_v11 = vpop.f32.mrb[62].mxu0  ;;  %v20083_v15 = vpop.f32.mrb[62].mxu1 }
 0xc6a   : > { %v20049_v2 = vpop.f32.mrb[63].mxu0  ;;  %v20084_v42 = vpop.f32.mrb[63].mxu1 }
 0xc6b   : > { %v20050_v48 = vadd.f32 %v20049_v2, %v20048_v11  ;;  %v20085_v23 = vadd.f32 %v20084_v42, %v20083_v15  ;;  %v25342_v15 = vld [vmem:[%s26505_s3] ss:$0 sm:$0xff]  ;;  %v17747_v42 = vld [vmem:[%s23642_s10 + $0x1350] sm:$0xff] }
 0xc6c   : > { %26547 = vst [vmem:[#allocation14_spill] sm:$0xff] %v25342_v15 }
 0xc6d   : > { %v8659_v58 = vadd.f32 %v20085_v23, %v20050_v48  ;;  %v17751_v48 = vld [vmem:[%s23642_s10 + $0x1370] sm:$0xff]  ;;  %v17748_v23 = vld [vmem:[%s23642_s10 + $0x1358] sm:$0xff] }
 0xc79   : > { %v8728_v0 = vpop.f32.mrb[64].mxu0 }
 0xc7a   : > { %v25331_v52 = vadd.f32 %v8728_v0, %v8659_v58  ;;  %v21017_v16 = vpop.f32.mrb[65].mxu0  ;;  %v17752_v58 = vld [vmem:[%s23642_s10 + $0x1378] sm:$0xff] }
 0xc7c   : > { %26546 = vst [vmem:[#allocation11_spill] sm:$0xff] %v25331_v52  ;;  %v17768_v52 = vld [vmem:[%s23642_s10 + $0x13f8] sm:$0xff] }
 0xc89   : > { %v20127_v21 = vpop.f32.mrb[64].mxu1 }
 0xc8a   : > { %v20128_v32 = vpop.f32.mrb[65].mxu1 }
 0xc8b   : > { %v20129_v1 = vadd.f32 %v20128_v32, %v20127_v21  ;;  %v17782_v21 = vcombine.high %v17747_v42, %v17751_v48  ;;  %v17784_v32 = vcombine.high %v17748_v23, %v17752_v58 }
 0xc99   : > { %v20162_v3 = vpop.f32.mrb[66].mxu0  ;;  %v9010_v47 = vpop.f32.mrb[66].mxu1 }
 0xc9a   : > { %v20163_v36 = vpop.f32.mrb[67].mxu0  ;;  %v21036_v57 = vpop.f32.mrb[67].mxu1 }
 0xc9b   : > { %v20164_v12 = vadd.f32 %v20163_v36, %v20162_v3  ;;  %v17759_v3 = vld [vmem:[%s23642_s10 + $0x13b0] sm:$0xff]  ;;  %v17760_v36 = vld [vmem:[%s23642_s10 + $0x13b8] sm:$0xff]  ;;  %v17781_v57 = vcombine.low %v17747_v42, %v17751_v48  ;;  %v9383_v48 = vcombine.high %v17805_v62, %v17805_v62 }
 0xc9d   : > { %v8941_v38 = vadd.f32 %v20164_v12, %v20129_v1  ;;  %v17755_v1 = vld [vmem:[%s23642_s10 + $0x1390] sm:$0xff]  ;;  %v17783_v12 = vcombine.low %v17748_v23, %v17752_v58 }
 0xc9f   : > { %v9011_v43 = vadd.f32 %v9010_v47, %v8941_v38  ;;  %v17756_v47 = vld [vmem:[%s23642_s10 + $0x1398] sm:$0xff]  ;;  %v17790_v38 = vcombine.high %v17755_v1, %v17759_v3 }
 0xca1   : > { %v9014_v11 = vmul.f32 %v25336_v33, %v9011_v43  ;;  %v17792_v43 = vcombine.high %v17756_v47, %v17760_v36 }
 0xca3   : > { %v9015_v2 = vadd.f32 %v25342_v15, %v9014_v11  ;;  %v17763_v11 = vld [vmem:[%s23642_s10 + $0x13d0] sm:$0xff]  ;;  %v17789_v15 = vcombine.low %v17755_v1, %v17759_v3 }
 0xca5   : > { %v9016_v0 = vmax.f32 %v9015_v2, 0.0  ;;  %v17767_v2 = vld [vmem:[%s23642_s10 + $0x13f0] sm:$0xff] }
 0xca6   : > { %v17797_v23 = vcombine.low %v17763_v11, %v17767_v2 }
 0xca7   : > { %v9017_v16 = vpack.c.bf16 %v9016_v0, %v9016_v0  ;;  %v17764_v0 = vld [vmem:[%s23642_s10 + $0x13d8] sm:$0xff] }
 0xca8   : > { %v17800_v42 = vcombine.high %v17764_v0, %v17768_v52  ;;  %v17799_v58 = vcombine.low %v17764_v0, %v17768_v52 }
 0xca9   : > { %17801 = vmatmul.mubr.msk.bf16.vlgmr.msra.gmra.mrb[8].mxu0 %vm489_vm1, %v9017_v16  ;;  %17802 = vmatmul.mubr.msk.bf16.vlgmr.msra.gmra.mrb[8].mxu1 %vm489_vm1, %v9017_v16 }
 0xcaa   : > { %9297 = vmatpush1.bf16.msra.mxu0 %v17773_v51  ;;  %9338 = vmatpush1.bf16.msra.mxu1 %v17775_v45  ;;  %v17791_v51 = vcombine.low %v17756_v47, %v17760_v36  ;;  %v17798_v45 = vcombine.high %v17763_v11, %v17767_v2  ;;  %v17807_v36 = vld.sshfl [vmem:[%s23647_s13 + $0xd0] sm:$0x3 pattern:$0x76325410]  ;;  %v17846_v11 = vld [vmem:[%s23642_s10 + $0x1508] sm:$0xff] }
 0xcab   : > { %9298 = vmatprep.subr.bf16.mxu0 %v17782_v21  ;;  %9339 = vmatprep.subr.bf16.mxu1 %v17784_v32  ;;  %v9390_v21 = vrot.slane %v17805_v62, %v23865_v20  ;;  %v9397_v32 = vrot.slane %v9383_v48, %v23865_v20  ;;  %v17841_v62 = vld [vmem:[%s23647_s13 + $0xd2] sm:$0xff]  ;;  %v17853_v48 = vld [vmem:[%s23642_s10 + $0x1540] sm:$0xff] }
 0xcac   : > { %9328 = vmatprep.mubr.bf16.mxu0 %v26531_v41  ;;  %9369 = vmatprep.mubr.bf16.mxu1 %v26531_v41  ;;  %v9672_v52 = vrot.slane %v17841_v62, %v23865_v20 }
 0xcad   : > { %v9398_v1 = vcombine.high %v9390_v21, %v9390_v21  ;;  %v9399_v3 = vcombine.high %v9397_v32, %v9397_v32 }
 0xcae   : > { %9299 = vmatpush1.bf16.msra.mxu0 %v17781_v57  ;;  %9340 = vmatpush1.bf16.msra.mxu1 %v17783_v12  ;;  %v17843_v12 = vld.sshfl [vmem:[%s23647_s13 + $0xda] sm:$0x3 pattern:$0x76325410] }
 0xcaf   : > { %9300 = vmatprep.subr.bf16.mxu0 %v17790_v38  ;;  %9341 = vmatprep.subr.bf16.mxu1 %v17792_v43  ;;  %v17845_v38 = vld [vmem:[%s23642_s10 + $0x1500] sm:$0xff] }
 0xcb0   : > { %v17849_v43 = vld [vmem:[%s23642_s10 + $0x1520] sm:$0xff] }
 0xcb1   : > { %v17877_v2 = vcombine.low %v17845_v38, %v17849_v43  ;;  %v17878_v0 = vcombine.high %v17845_v38, %v17849_v43  ;;  %v17869_v43 = vld [vmem:[%s23642_s10 + $0x15c0] sm:$0xff] }
 0xcb2   : > { %9301 = vmatpush1.bf16.msra.mxu0 %v17789_v15  ;;  %9342 = vmatpush1.bf16.msra.mxu1 %v17791_v51  ;;  %v9680_v15 = vcombine.high %v9672_v52, %v9672_v52  ;;  %v17850_v51 = vld [vmem:[%s23642_s10 + $0x1528] sm:$0xff] }
 0xcb3   : > { %9302 = vmatprep.subr.bf16.mxu0 %v17798_v45  ;;  %9343 = vmatprep.subr.bf16.mxu1 %v17800_v42  ;;  %v17879_v45 = vcombine.low %v17846_v11, %v17850_v51  ;;  %v17880_v42 = vcombine.high %v17846_v11, %v17850_v51  ;;  %v17873_v11 = vld [vmem:[%s23642_s10 + $0x15e0] sm:$0xff]  ;;  %v17874_v51 = vld [vmem:[%s23642_s10 + $0x15e8] sm:$0xff] }
 0xcb6   : > { %9303 = vmatpush1.bf16.msra.mxu0 %v17797_v23  ;;  %9344 = vmatpush1.bf16.msra.mxu1 %v17799_v58  ;;  %v17857_v23 = vld [vmem:[%s23642_s10 + $0x1560] sm:$0xff]  ;;  %v17854_v58 = vld [vmem:[%s23642_s10 + $0x1548] sm:$0xff] }
 0xcb7   : > { %22653 = vmatprep.subr.bf16.mxu0 %v23659_v4  ;;  %22685 = vmatprep.subr.bf16.mxu1 %v23670_v8 }
 0xcb9   : > { %17803 = vmatmul.mubr.msk.bf16.vlgmr.msra.gmra.mrb[12].mxu0 %vm489_vm1, %v9017_v16  ;;  %17804 = vmatmul.mubr.msk.bf16.vlgmr.msra.gmra.mrb[12].mxu1 %vm489_vm1, %v9017_v16  ;;  %v9665_v16 = vcombine.high %v17841_v62, %v17841_v62 }
 0xcba   : > { %22655 = vmatpush3.bf16.msra.mxu0 %v23672_v9  ;;  %22687 = vmatpush3.bf16.msra.mxu1 %v23684_v13 }
 0xcbb   : > { %22657 = vmatprep.subr.bf16.mxu0 %v23697_v17  ;;  %22689 = vmatprep.subr.bf16.mxu1 %v23699_v18  ;;  %v9679_v47 = vrot.slane %v9665_v16, %v23865_v20  ;;  %v17862_v16 = vld [vmem:[%s23642_s10 + $0x1588] sm:$0xff] }
 0xcbc   : > { %9477 = vmatprep.mubr.f32.mxu0 %v9398_v1  ;;  %9547 = vmatprep.mubr.f32.mxu1 %v9399_v3  ;;  %v17885_v1 = vcombine.low %v17853_v48, %v17857_v23 }
 0xcbd   : > { %v9681_v57 = vcombine.high %v9679_v47, %v9679_v47 }
 0xcbe   : > { %22659 = vmatpush3.bf16.msra.mxu0 %v23711_v22  ;;  %22691 = vmatpush3.bf16.msra.mxu1 %v23724_v26 }
 0xcbf   : > { %22661 = vmatprep.subr.bf16.mxu0 %v23726_v27  ;;  %22693 = vmatprep.subr.bf16.mxu1 %v23737_v31 }
 0xcc2   : > { %22663 = vmatpush3.bf16.msra.mxu0 %v23749_v35  ;;  %22695 = vmatpush3.bf16.msra.mxu1 %v23762_v39 }
 0xcc3   : > { %22665 = vmatprep.subr.bf16.mxu0 %v23764_v40  ;;  %22697 = vmatprep.subr.bf16.mxu1 %v23776_v44 }
 0xcc6   : > { %22667 = vmatpush3.bf16.msra.mxu0 %v23797_v54  ;;  %22699 = vmatpush3.bf16.msra.mxu1 %v23801_v55 }
 0xcc7   : > { %22669 = vmatprep.subr.bf16.mxu0 %v23803_v56  ;;  %22701 = vmatprep.subr.bf16.mxu1 %v23815_v60 }
 0xcca   : > { %22671 = vmatpush3.bf16.msra.mxu0 %v23835_v5  ;;  %22703 = vmatpush3.bf16.msra.mxu1 %v23839_v6 }
 0xccb   : > { %22673 = vmatprep.subr.bf16.mxu0 %v23841_v7  ;;  %22705 = vmatprep.subr.bf16.mxu1 %v23853_v14 }
 0xcce   : > { %22675 = vmatpush3.bf16.msra.mxu0 %v23874_v24  ;;  %22707 = vmatpush3.bf16.msra.mxu1 %v23881_v28 }
 0xccf   : > { %22677 = vmatprep.subr.bf16.mxu0 %v23883_v29  ;;  %22709 = vmatprep.subr.bf16.mxu1 %v23893_v34 }
 0xcd2   : > { %22679 = vmatpush3.bf16.msra.mxu0 %v23912_v46  ;;  %22711 = vmatpush3.bf16.msra.mxu1 %v23917_v49 }
 0xcd3   : > { %22681 = vmatprep.subr.bf16.mxu0 %v23919_v50  ;;  %22713 = vmatprep.subr.bf16.mxu1 %v23928_v53 }
 0xcd6   : > { %22683 = vmatpush3.bf16.msra.mxu0 %v23937_v61  ;;  %22715 = vmatpush3.bf16.msra.mxu1 %v23942_v63 }
 0xcd7   : > { %22716 = vmatprep.subr.bf16.mxu0 %v26528_v25  ;;  %22729 = vmatprep.subr.bf16.mxu1 %v23659_v4 }
 0xcd9   : > { %9478 = vmatmul.mubr.f32.vlgmr.msra.gmra.mrb[68].mxu0 %v9390_v21  ;;  %9548 = vmatmul.mubr.f32.vlgmr.msra.gmra.mrb[68].mxu1 %v9397_v32  ;;  %v17886_v21 = vcombine.high %v17853_v48, %v17857_v23  ;;  %v17858_v32 = vld [vmem:[%s23642_s10 + $0x1568] sm:$0xff]  ;;  %v17847_v23 = vld [vmem:[%s23642_s10 + $0x1510] sm:$0xff] }
 0xcda   : > { %22718 = vmatpush3.bf16.msra.mxu0 %v23953_v10  ;;  %22731 = vmatpush3.bf16.msra.mxu1 %v23672_v9  ;;  %v17887_v3 = vcombine.low %v17854_v58, %v17858_v32  ;;  %v17888_v62 = vcombine.high %v17854_v58, %v17858_v32  ;;  %v17851_v58 = vld [vmem:[%s23642_s10 + $0x1530] sm:$0xff] }
 0xcdb   : > { %22719 = vmatprep.subr.bf16.mxu0 %v26528_v25  ;;  %22733 = vmatprep.subr.bf16.mxu1 %v23697_v17  ;;  %v17882_v32 = vcombine.high %v17847_v23, %v17851_v58 }
 0xcdc   : > { %21053 = vmatprep.mubr.msk.f32.mxu0 %vm23575_vm0, %v26529_v59  ;;  %9759 = vmatprep.mubr.f32.mxu1 %v9680_v15  ;;  %v17865_v15 = vld [vmem:[%s23642_s10 + $0x15a0] sm:$0xff] }
 0xcde   : > { %22721 = vmatpush3.bf16.msra.mxu0 %v23965_v19  ;;  %22735 = vmatpush3.bf16.msra.mxu1 %v23711_v22 }
 0xcdf   : > { %22722 = vmatprep.subr.bf16.mxu0 %v26528_v25  ;;  %22737 = vmatprep.subr.bf16.mxu1 %v23726_v27 }
 0xce2   : > { %22724 = vmatpush3.bf16.msra.mxu0 %v23979_v30  ;;  %22739 = vmatpush3.bf16.msra.mxu1 %v23749_v35 }
 0xce3   : > { %22725 = vmatprep.subr.bf16.mxu0 %v26528_v25  ;;  %22741 = vmatprep.subr.bf16.mxu1 %v23764_v40 }
 0xce6   : > { %22727 = vmatpush3.bf16.msra.mxu0 %v23991_v37  ;;  %22743 = vmatpush3.bf16.msra.mxu1 %v23797_v54 }
 0xce7   : > { %22761 = vmatprep.subr.bf16.mxu0 %v23670_v8  ;;  %22745 = vmatprep.subr.bf16.mxu1 %v23803_v56 }
 0xce9   : > { %21054 = vmatmul.mubr.msk.f32.vlgmr.msra.gmra.mrb[70].mxu0 %vm489_vm1, %v17807_v36  ;;  %v17866_v36 = vld [vmem:[%s23642_s10 + $0x15a8] sm:$0xff] }
 0xcea   : > { %22763 = vmatpush3.bf16.msra.mxu0 %v23684_v13  ;;  %22747 = vmatpush3.bf16.msra.mxu1 %v23835_v5  ;;  %v17896_v38 = vcombine.high %v17862_v16, %v17866_v36 }
 0xceb   : > { %22765 = vmatprep.subr.bf16.mxu0 %v23699_v18  ;;  %22749 = vmatprep.subr.bf16.mxu1 %v23841_v7 }
 0xcec   : > { %9829 = vmatprep.mubr.f32.mxu0 %v9681_v57 }
 0xcee   : > { %22767 = vmatpush3.bf16.msra.mxu0 %v23724_v26  ;;  %22751 = vmatpush3.bf16.msra.mxu1 %v23874_v24 }
 0xcef   : > { %22769 = vmatprep.subr.bf16.mxu0 %v23737_v31  ;;  %22753 = vmatprep.subr.bf16.mxu1 %v23883_v29 }
 0xcf2   : > { %22771 = vmatpush3.bf16.msra.mxu0 %v23762_v39  ;;  %22755 = vmatpush3.bf16.msra.mxu1 %v23912_v46 }
 0xcf3   : > { %22773 = vmatprep.subr.bf16.mxu0 %v23776_v44  ;;  %22757 = vmatprep.subr.bf16.mxu1 %v23919_v50 }
 0xcf6   : > { %22775 = vmatpush3.bf16.msra.mxu0 %v23801_v55  ;;  %22759 = vmatpush3.bf16.msra.mxu1 %v23937_v61 }
 0xcf7   : > { %22777 = vmatprep.subr.bf16.mxu0 %v23815_v60  ;;  %22792 = vmatprep.subr.bf16.mxu1 %v26528_v25 }
 0xcf9   : > { %9760 = vmatmul.mubr.f32.vlgmr.msra.gmra.mrb[70].mxu1 %v9672_v52  ;;  %v17861_v52 = vld [vmem:[%s23642_s10 + $0x1580] sm:$0xff] }
 0xcfa   : > { %22779 = vmatpush3.bf16.msra.mxu0 %v23839_v6  ;;  %22794 = vmatpush3.bf16.msra.mxu1 %v23953_v10  ;;  %v17893_v57 = vcombine.low %v17861_v52, %v17865_v15 }
 0xcfb   : > { %22781 = vmatprep.subr.bf16.mxu0 %v23853_v14  ;;  %22795 = vmatprep.subr.bf16.mxu1 %v26528_v25 }
 0xcfc   : > { %21072 = vmatprep.mubr.msk.f32.mxu1 %vm23575_vm0, %v26529_v59 }
 0xcfe   : > { %22783 = vmatpush3.bf16.msra.mxu0 %v23881_v28  ;;  %22797 = vmatpush3.bf16.msra.mxu1 %v23965_v19 }
 0xcff   : > { %22785 = vmatprep.subr.bf16.mxu0 %v23893_v34  ;;  %22798 = vmatprep.subr.bf16.mxu1 %v26528_v25 }
 0xd02   : > { %22787 = vmatpush3.bf16.msra.mxu0 %v23917_v49  ;;  %22800 = vmatpush3.bf16.msra.mxu1 %v23979_v30 }
 0xd03   : > { %22789 = vmatprep.subr.bf16.mxu0 %v23928_v53  ;;  %22801 = vmatprep.subr.bf16.mxu1 %v26528_v25 }
 0xd06   : > { %22791 = vmatpush3.bf16.msra.mxu0 %v23942_v63  ;;  %22803 = vmatpush3.bf16.msra.mxu1 %v23991_v37 }
 0xd07   : > { %10105 = vmatprep.subr.bf16.mxu0 %v17878_v0  ;;  %10146 = vmatprep.subr.bf16.mxu1 %v17880_v42  ;;  %v17902_v0 = vcombine.high %v17869_v43, %v17873_v11 }
 0xd09   : > { %9830 = vmatmul.mubr.f32.vlgmr.msra.gmra.mrb[72].mxu0 %v9679_v47  ;;  %21073 = vmatmul.mubr.msk.f32.vlgmr.msra.gmra.mrb[72].mxu1 %vm489_vm1, %v17843_v12  ;;  %v17894_v47 = vcombine.high %v17861_v52, %v17865_v15  ;;  %v17895_v12 = vcombine.low %v17862_v16, %v17866_v36 }
 0xd0a   : > { %10137 = vmatprep.mubr.bf16.mxu0 %v26531_v41  ;;  %10178 = vmatprep.mubr.bf16.mxu1 %v26531_v41 }
 0xd0b   : > { %10106 = vmatpush1.bf16.msra.mxu0 %v17877_v2  ;;  %10147 = vmatpush1.bf16.msra.mxu1 %v17879_v45  ;;  %v17870_v2 = vld [vmem:[%s23642_s10 + $0x15c8] sm:$0xff]  ;;  %v17901_v45 = vcombine.low %v17869_v43, %v17873_v11 }
 0xd0c   : > { %10107 = vmatprep.subr.bf16.mxu0 %v17886_v21  ;;  %10148 = vmatprep.subr.bf16.mxu1 %v17888_v62  ;;  %v17903_v42 = vcombine.low %v17870_v2, %v17874_v51  ;;  %v17904_v48 = vcombine.high %v17870_v2, %v17874_v51  ;;  %v17848_v21 = vld [vmem:[%s23642_s10 + $0x1518] sm:$0xff] }
 0xd0f   : > { %10108 = vmatpush1.bf16.msra.mxu0 %v17885_v1  ;;  %10149 = vmatpush1.bf16.msra.mxu1 %v17887_v3  ;;  %v17852_v1 = vld [vmem:[%s23642_s10 + $0x1538] sm:$0xff]  ;;  %v17881_v3 = vcombine.low %v17847_v23, %v17851_v58 }
 0xd10   : > { %10109 = vmatprep.subr.bf16.mxu0 %v17894_v47  ;;  %10150 = vmatprep.subr.bf16.mxu1 %v17896_v38  ;;  %v17883_v62 = vcombine.low %v17848_v21, %v17852_v1  ;;  %v17884_v52 = vcombine.high %v17848_v21, %v17852_v1 }
 0xd13   : > { %10110 = vmatpush1.bf16.msra.mxu0 %v17893_v57  ;;  %10151 = vmatpush1.bf16.msra.mxu1 %v17895_v12 }
 0xd14   : > { %10111 = vmatprep.subr.bf16.mxu0 %v17902_v0  ;;  %10152 = vmatprep.subr.bf16.mxu1 %v17904_v48 }
 0xd17   : > { %10112 = vmatpush1.bf16.msra.mxu0 %v17901_v45  ;;  %10153 = vmatpush1.bf16.msra.mxu1 %v17903_v42 }
 0xd18   : > { %10187 = vmatprep.subr.bf16.mxu0 %v17882_v32  ;;  %10228 = vmatprep.subr.bf16.mxu1 %v17884_v52 }
 0xdac   : > { %v20206_v15 = vpop.f32.mrb[68].mxu0  ;;  %v20241_v16 = vpop.f32.mrb[68].mxu1 }
 0xdad   : > { %v20207_v47 = vpop.f32.mrb[69].mxu0  ;;  %v20242_v36 = vpop.f32.mrb[69].mxu1 }
 0xdae   : > { %v20208_v57 = vadd.f32 %v20207_v47, %v20206_v15  ;;  %v20243_v12 = vadd.f32 %v20242_v36, %v20241_v16  ;;  %v26549_v15 = vld [vmem:[#allocation14_spill] sm:$0xff]  ;;  %v17855_v47 = vld [vmem:[%s23642_s10 + $0x1550] sm:$0xff] }
 0xdaf   : > { %v17859_v36 = vld [vmem:[%s23642_s10 + $0x1570] sm:$0xff] }
 0xdb0   : > { %v9550_v38 = vadd.f32 %v20243_v12, %v20208_v57  ;;  %v17856_v57 = vld [vmem:[%s23642_s10 + $0x1558] sm:$0xff] }
 0xdb1   : > { %v17860_v12 = vld [vmem:[%s23642_s10 + $0x1578] sm:$0xff] }
 0xdbc   : > { %v9619_v43 = vpop.f32.mrb[70].mxu0 }
 0xdbd   : > { %v25479_v11 = vadd.f32 %v9619_v43, %v9550_v38  ;;  %v21055_v2 = vpop.f32.mrb[71].mxu0 }
 0xdbe   : > { %v17890_v2 = vcombine.high %v17855_v47, %v17859_v36 }
 0xdbf   : > { %26548 = vst [vmem:[#allocation15_spill] sm:$0xff] %v25479_v11  ;;  %v17913_v11 = vld [vmem:[%s23647_s13 + $0xdc] sm:$0xff] }
 0xdcc   : > { %v20285_v0 = vpop.f32.mrb[70].mxu1 }
 0xdcd   : > { %v20286_v51 = vpop.f32.mrb[71].mxu1 }
 0xdce   : > { %v20287_v45 = vadd.f32 %v20286_v51, %v20285_v0  ;;  %v17892_v0 = vcombine.high %v17856_v57, %v17860_v12  ;;  %v17863_v51 = vld [vmem:[%s23642_s10 + $0x1590] sm:$0xff] }
 0xddc   : > { %v20320_v42 = vpop.f32.mrb[72].mxu0  ;;  %v9901_v48 = vpop.f32.mrb[72].mxu1 }
 0xddd   : > { %v20321_v23 = vpop.f32.mrb[73].mxu0  ;;  %v21074_v58 = vpop.f32.mrb[73].mxu1 }
 0xdde   : > { %v20322_v21 = vadd.f32 %v20321_v23, %v20320_v42  ;;  %v17867_v42 = vld [vmem:[%s23642_s10 + $0x15b0] sm:$0xff]  ;;  %v17889_v23 = vcombine.low %v17855_v47, %v17859_v36  ;;  %v17891_v58 = vcombine.low %v17856_v57, %v17860_v12  ;;  %v10274_v36 = vcombine.high %v17913_v11, %v17913_v11 }
 0xde0   : > { %v9832_v32 = vadd.f32 %v20322_v21, %v20287_v45  ;;  %v17864_v45 = vld [vmem:[%s23642_s10 + $0x1598] sm:$0xff]  ;;  %v17898_v21 = vcombine.high %v17863_v51, %v17867_v42 }
 0xde2   : > { %v9902_v1 = vadd.f32 %v9901_v48, %v9832_v32  ;;  %v17868_v48 = vld [vmem:[%s23642_s10 + $0x15b8] sm:$0xff] }
 0xde3   : > { %v17900_v32 = vcombine.high %v17864_v45, %v17868_v48 }
 0xde4   : > { %v9905_v52 = vmul.f32 %v25336_v33, %v9902_v1  ;;  %v17871_v1 = vld [vmem:[%s23642_s10 + $0x15d0] sm:$0xff] }
 0xde6   : > { %v9906_v16 = vadd.f32 %v26549_v15, %v9905_v52  ;;  %v17875_v52 = vld [vmem:[%s23642_s10 + $0x15f0] sm:$0xff]  ;;  %v17897_v15 = vcombine.low %v17863_v51, %v17867_v42 }
 0xde7   : > { %v17905_v57 = vcombine.low %v17871_v1, %v17875_v52 }
 0xde8   : > { %v9907_v38 = vmax.f32 %v9906_v16, 0.0  ;;  %v17872_v16 = vld [vmem:[%s23642_s10 + $0x15d8] sm:$0xff] }
 0xdea   : > { %v9908_v43 = vpack.c.bf16 %v9907_v38, %v9907_v38  ;;  %v17876_v38 = vld [vmem:[%s23642_s10 + $0x15f8] sm:$0xff] }
 0xdeb   : > { %v17908_v47 = vcombine.high %v17872_v16, %v17876_v38  ;;  %v17907_v12 = vcombine.low %v17872_v16, %v17876_v38 }
 0xdec   : > { %17909 = vmatmul.mubr.msk.bf16.vlgmr.msra.gmra.mrb[8].mxu0 %vm489_vm1, %v9908_v43  ;;  %17910 = vmatmul.mubr.msk.bf16.vlgmr.msra.gmra.mrb[8].mxu1 %vm489_vm1, %v9908_v43 }
 0xded   : > { %10188 = vmatpush1.bf16.msra.mxu0 %v17881_v3  ;;  %10229 = vmatpush1.bf16.msra.mxu1 %v17883_v62  ;;  %v17899_v3 = vcombine.low %v17864_v45, %v17868_v48  ;;  %v17906_v62 = vcombine.high %v17871_v1, %v17875_v52  ;;  %v17957_v1 = vld [vmem:[%s23642_s10 + $0x1720] sm:$0xff]  ;;  %v17954_v52 = vld [vmem:[%s23642_s10 + $0x1708] sm:$0xff] }
 0xdee   : > { %10189 = vmatprep.subr.bf16.mxu0 %v17890_v2  ;;  %10230 = vmatprep.subr.bf16.mxu1 %v17892_v0  ;;  %v10281_v2 = vrot.slane %v17913_v11, %v23865_v20  ;;  %v10288_v0 = vrot.slane %v10274_v36, %v23865_v20  ;;  %v17949_v11 = vld [vmem:[%s23647_s13 + $0xe6] sm:$0xff] }
 0xdef   : > { %10219 = vmatprep.mubr.bf16.mxu0 %v26531_v41  ;;  %10260 = vmatprep.mubr.bf16.mxu1 %v26531_v41  ;;  %v10556_v45 = vcombine.high %v17949_v11, %v17949_v11  ;;  %v17961_v36 = vld [vmem:[%s23642_s10 + $0x1740] sm:$0xff] }
 0xdf0   : > { %v10289_v51 = vcombine.high %v10281_v2, %v10281_v2  ;;  %v10290_v42 = vcombine.high %v10288_v0, %v10288_v0 }
 0xdf1   : > { %10190 = vmatpush1.bf16.msra.mxu0 %v17889_v23  ;;  %10231 = vmatpush1.bf16.msra.mxu1 %v17891_v58  ;;  %v10570_v48 = vrot.slane %v10556_v45, %v23865_v20  ;;  %v17915_v23 = vld.sshfl [vmem:[%s23647_s13 + $0xe4] sm:$0x3 pattern:$0x76325410]  ;;  %v17970_v45 = vld [vmem:[%s23642_s10 + $0x1788] sm:$0xff] }
 0xdf2   : > { %10191 = vmatprep.subr.bf16.mxu0 %v17898_v21  ;;  %10232 = vmatprep.subr.bf16.mxu1 %v17900_v32  ;;  %v17951_v21 = vld.sshfl [vmem:[%s23647_s13 + $0xee] sm:$0x3 pattern:$0x76325410]  ;;  %v17953_v32 = vld [vmem:[%s23642_s10 + $0x1700] sm:$0xff] }
 0xdf3   : > { %v10572_v58 = vcombine.high %v10570_v48, %v10570_v48  ;;  %v17985_v16 = vcombine.low %v17953_v32, %v17957_v1  ;;  %v17986_v38 = vcombine.high %v17953_v32, %v17957_v1  ;;  %v17977_v1 = vld [vmem:[%s23642_s10 + $0x17c0] sm:$0xff] }
 0xdf5   : > { %10192 = vmatpush1.bf16.msra.mxu0 %v17897_v15  ;;  %10233 = vmatpush1.bf16.msra.mxu1 %v17899_v3  ;;  %v10563_v15 = vrot.slane %v17949_v11, %v23865_v20  ;;  %v17958_v3 = vld [vmem:[%s23642_s10 + $0x1728] sm:$0xff] }
 0xdf6   : > { %10193 = vmatprep.subr.bf16.mxu0 %v17906_v62  ;;  %10234 = vmatprep.subr.bf16.mxu1 %v17908_v47  ;;  %v17987_v62 = vcombine.low %v17954_v52, %v17958_v3  ;;  %v17988_v47 = vcombine.high %v17954_v52, %v17958_v3  ;;  %v17981_v52 = vld [vmem:[%s23642_s10 + $0x17e0] sm:$0xff]  ;;  %v17982_v3 = vld [vmem:[%s23642_s10 + $0x17e8] sm:$0xff] }
 0xdf9   : > { %10194 = vmatpush1.bf16.msra.mxu0 %v17905_v57  ;;  %10235 = vmatpush1.bf16.msra.mxu1 %v17907_v12  ;;  %v17965_v57 = vld [vmem:[%s23642_s10 + $0x1760] sm:$0xff]  ;;  %v17962_v12 = vld [vmem:[%s23642_s10 + $0x1748] sm:$0xff] }
 0xdfa   : > { %22805 = vmatprep.subr.bf16.mxu0 %v23659_v4  ;;  %22837 = vmatprep.subr.bf16.mxu1 %v23670_v8 }
 0xdfc   : > { %17911 = vmatmul.mubr.msk.bf16.vlgmr.msra.gmra.mrb[12].mxu0 %vm489_vm1, %v9908_v43  ;;  %17912 = vmatmul.mubr.msk.bf16.vlgmr.msra.gmra.mrb[12].mxu1 %vm489_vm1, %v9908_v43  ;;  %v10571_v43 = vcombine.high %v10563_v15, %v10563_v15 }
 0xdfd   : > { %22807 = vmatpush3.bf16.msra.mxu0 %v23672_v9  ;;  %22839 = vmatpush3.bf16.msra.mxu1 %v23684_v13 }
 0xdfe   : > { %22809 = vmatprep.subr.bf16.mxu0 %v23697_v17  ;;  %22841 = vmatprep.subr.bf16.mxu1 %v23699_v18 }
 0xdff   : > { %10368 = vmatprep.mubr.f32.mxu0 %v10289_v51  ;;  %10438 = vmatprep.mubr.f32.mxu1 %v10290_v42  ;;  %v17993_v51 = vcombine.low %v17961_v36, %v17965_v57 }
 0xe01   : > { %22811 = vmatpush3.bf16.msra.mxu0 %v23711_v22  ;;  %22843 = vmatpush3.bf16.msra.mxu1 %v23724_v26 }
 0xe02   : > { %22813 = vmatprep.subr.bf16.mxu0 %v23726_v27  ;;  %22845 = vmatprep.subr.bf16.mxu1 %v23737_v31 }
 0xe05   : > { %22815 = vmatpush3.bf16.msra.mxu0 %v23749_v35  ;;  %22847 = vmatpush3.bf16.msra.mxu1 %v23762_v39 }
 0xe06   : > { %22817 = vmatprep.subr.bf16.mxu0 %v23764_v40  ;;  %22849 = vmatprep.subr.bf16.mxu1 %v23776_v44 }
 0xe09   : > { %22819 = vmatpush3.bf16.msra.mxu0 %v23797_v54  ;;  %22851 = vmatpush3.bf16.msra.mxu1 %v23801_v55 }
 0xe0a   : > { %22821 = vmatprep.subr.bf16.mxu0 %v23803_v56  ;;  %22853 = vmatprep.subr.bf16.mxu1 %v23815_v60 }
 0xe0d   : > { %22823 = vmatpush3.bf16.msra.mxu0 %v23835_v5  ;;  %22855 = vmatpush3.bf16.msra.mxu1 %v23839_v6 }
 0xe0e   : > { %22825 = vmatprep.subr.bf16.mxu0 %v23841_v7  ;;  %22857 = vmatprep.subr.bf16.mxu1 %v23853_v14 }
 0xe11   : > { %22827 = vmatpush3.bf16.msra.mxu0 %v23874_v24  ;;  %22859 = vmatpush3.bf16.msra.mxu1 %v23881_v28 }
 0xe12   : > { %22829 = vmatprep.subr.bf16.mxu0 %v23883_v29  ;;  %22861 = vmatprep.subr.bf16.mxu1 %v23893_v34 }
 0xe15   : > { %22831 = vmatpush3.bf16.msra.mxu0 %v23912_v46  ;;  %22863 = vmatpush3.bf16.msra.mxu1 %v23917_v49 }
 0xe16   : > { %22833 = vmatprep.subr.bf16.mxu0 %v23919_v50  ;;  %22865 = vmatprep.subr.bf16.mxu1 %v23928_v53 }
 0xe19   : > { %22835 = vmatpush3.bf16.msra.mxu0 %v23937_v61  ;;  %22867 = vmatpush3.bf16.msra.mxu1 %v23942_v63 }
 0xe1a   : > { %22868 = vmatprep.subr.bf16.mxu0 %v26528_v25  ;;  %22881 = vmatprep.subr.bf16.mxu1 %v23659_v4 }
 0xe1c   : > { %10369 = vmatmul.mubr.f32.vlgmr.msra.gmra.mrb[74].mxu0 %v10281_v2  ;;  %10439 = vmatmul.mubr.f32.vlgmr.msra.gmra.mrb[74].mxu1 %v10288_v0  ;;  %v17994_v2 = vcombine.high %v17961_v36, %v17965_v57  ;;  %v17966_v0 = vld [vmem:[%s23642_s10 + $0x1768] sm:$0xff]  ;;  %v17955_v57 = vld [vmem:[%s23642_s10 + $0x1710] sm:$0xff] }
 0xe1d   : > { %22870 = vmatpush3.bf16.msra.mxu0 %v23953_v10  ;;  %22883 = vmatpush3.bf16.msra.mxu1 %v23672_v9  ;;  %v17995_v42 = vcombine.low %v17962_v12, %v17966_v0  ;;  %v17996_v11 = vcombine.high %v17962_v12, %v17966_v0  ;;  %v17959_v12 = vld [vmem:[%s23642_s10 + $0x1730] sm:$0xff] }
 0xe1e   : > { %22871 = vmatprep.subr.bf16.mxu0 %v26528_v25  ;;  %22885 = vmatprep.subr.bf16.mxu1 %v23697_v17  ;;  %v17990_v0 = vcombine.high %v17955_v57, %v17959_v12 }
 0xe1f   : > { %21091 = vmatprep.mubr.msk.f32.mxu0 %vm23575_vm0, %v26529_v59  ;;  %10650 = vmatprep.mubr.f32.mxu1 %v10571_v43  ;;  %v17973_v43 = vld [vmem:[%s23642_s10 + $0x17a0] sm:$0xff] }
 0xe21   : > { %22873 = vmatpush3.bf16.msra.mxu0 %v23965_v19  ;;  %22887 = vmatpush3.bf16.msra.mxu1 %v23711_v22 }
 0xe22   : > { %22874 = vmatprep.subr.bf16.mxu0 %v26528_v25  ;;  %22889 = vmatprep.subr.bf16.mxu1 %v23726_v27 }
 0xe25   : > { %22876 = vmatpush3.bf16.msra.mxu0 %v23979_v30  ;;  %22891 = vmatpush3.bf16.msra.mxu1 %v23749_v35 }
 0xe26   : > { %22877 = vmatprep.subr.bf16.mxu0 %v26528_v25  ;;  %22893 = vmatprep.subr.bf16.mxu1 %v23764_v40 }
 0xe29   : > { %22879 = vmatpush3.bf16.msra.mxu0 %v23991_v37  ;;  %22895 = vmatpush3.bf16.msra.mxu1 %v23797_v54 }
 0xe2a   : > { %22913 = vmatprep.subr.bf16.mxu0 %v23670_v8  ;;  %22897 = vmatprep.subr.bf16.mxu1 %v23803_v56 }
 0xe2c   : > { %21092 = vmatmul.mubr.msk.f32.vlgmr.msra.gmra.mrb[76].mxu0 %vm489_vm1, %v17915_v23  ;;  %v17974_v23 = vld [vmem:[%s23642_s10 + $0x17a8] sm:$0xff] }
 0xe2d   : > { %22915 = vmatpush3.bf16.msra.mxu0 %v23684_v13  ;;  %22899 = vmatpush3.bf16.msra.mxu1 %v23835_v5  ;;  %v18004_v32 = vcombine.high %v17970_v45, %v17974_v23 }
 0xe2e   : > { %22917 = vmatprep.subr.bf16.mxu0 %v23699_v18  ;;  %22901 = vmatprep.subr.bf16.mxu1 %v23841_v7 }
 0xe2f   : > { %10720 = vmatprep.mubr.f32.mxu0 %v10572_v58 }
 0xe31   : > { %22919 = vmatpush3.bf16.msra.mxu0 %v23724_v26  ;;  %22903 = vmatpush3.bf16.msra.mxu1 %v23874_v24 }
 0xe32   : > { %22921 = vmatprep.subr.bf16.mxu0 %v23737_v31  ;;  %22905 = vmatprep.subr.bf16.mxu1 %v23883_v29 }
 0xe35   : > { %22923 = vmatpush3.bf16.msra.mxu0 %v23762_v39  ;;  %22907 = vmatpush3.bf16.msra.mxu1 %v23912_v46 }
 0xe36   : > { %22925 = vmatprep.subr.bf16.mxu0 %v23776_v44  ;;  %22909 = vmatprep.subr.bf16.mxu1 %v23919_v50 }
 0xe39   : > { %22927 = vmatpush3.bf16.msra.mxu0 %v23801_v55  ;;  %22911 = vmatpush3.bf16.msra.mxu1 %v23937_v61 }
 0xe3a   : > { %22929 = vmatprep.subr.bf16.mxu0 %v23815_v60  ;;  %22944 = vmatprep.subr.bf16.mxu1 %v26528_v25 }
 0xe3c   : > { %10651 = vmatmul.mubr.f32.vlgmr.msra.gmra.mrb[76].mxu1 %v10563_v15  ;;  %v17969_v15 = vld [vmem:[%s23642_s10 + $0x1780] sm:$0xff] }
 0xe3d   : > { %22931 = vmatpush3.bf16.msra.mxu0 %v23839_v6  ;;  %22946 = vmatpush3.bf16.msra.mxu1 %v23953_v10  ;;  %v18001_v58 = vcombine.low %v17969_v15, %v17973_v43 }
 0xe3e   : > { %22933 = vmatprep.subr.bf16.mxu0 %v23853_v14  ;;  %22947 = vmatprep.subr.bf16.mxu1 %v26528_v25 }
 0xe3f   : > { %21110 = vmatprep.mubr.msk.f32.mxu1 %vm23575_vm0, %v26529_v59 }
 0xe41   : > { %22935 = vmatpush3.bf16.msra.mxu0 %v23881_v28  ;;  %22949 = vmatpush3.bf16.msra.mxu1 %v23965_v19 }
 0xe42   : > { %22937 = vmatprep.subr.bf16.mxu0 %v23893_v34  ;;  %22950 = vmatprep.subr.bf16.mxu1 %v26528_v25 }
 0xe45   : > { %22939 = vmatpush3.bf16.msra.mxu0 %v23917_v49  ;;  %22952 = vmatpush3.bf16.msra.mxu1 %v23979_v30 }
 0xe46   : > { %22941 = vmatprep.subr.bf16.mxu0 %v23928_v53  ;;  %22953 = vmatprep.subr.bf16.mxu1 %v26528_v25 }
 0xe49   : > { %22943 = vmatpush3.bf16.msra.mxu0 %v23942_v63  ;;  %22955 = vmatpush3.bf16.msra.mxu1 %v23991_v37 }
 0xe4a   : > { %10996 = vmatprep.subr.bf16.mxu0 %v17986_v38  ;;  %11037 = vmatprep.subr.bf16.mxu1 %v17988_v47  ;;  %v18010_v38 = vcombine.high %v17977_v1, %v17981_v52 }
 0xe4c   : > { %10721 = vmatmul.mubr.f32.vlgmr.msra.gmra.mrb[78].mxu0 %v10570_v48  ;;  %21111 = vmatmul.mubr.msk.f32.vlgmr.msra.gmra.mrb[78].mxu1 %vm489_vm1, %v17951_v21  ;;  %v18002_v48 = vcombine.high %v17969_v15, %v17973_v43  ;;  %v18003_v21 = vcombine.low %v17970_v45, %v17974_v23 }
 0xe4d   : > { %11028 = vmatprep.mubr.bf16.mxu0 %v26531_v41  ;;  %11069 = vmatprep.mubr.bf16.mxu1 %v26531_v41 }
 0xe4e   : > { %10997 = vmatpush1.bf16.msra.mxu0 %v17985_v16  ;;  %11038 = vmatpush1.bf16.msra.mxu1 %v17987_v62  ;;  %v17978_v16 = vld [vmem:[%s23642_s10 + $0x17c8] sm:$0xff]  ;;  %v18009_v62 = vcombine.low %v17977_v1, %v17981_v52 }
 0xe4f   : > { %10998 = vmatprep.subr.bf16.mxu0 %v17994_v2  ;;  %11039 = vmatprep.subr.bf16.mxu1 %v17996_v11  ;;  %v18011_v47 = vcombine.low %v17978_v16, %v17982_v3  ;;  %v18012_v36 = vcombine.high %v17978_v16, %v17982_v3  ;;  %v17956_v2 = vld [vmem:[%s23642_s10 + $0x1718] sm:$0xff] }
 0xe52   : > { %10999 = vmatpush1.bf16.msra.mxu0 %v17993_v51  ;;  %11040 = vmatpush1.bf16.msra.mxu1 %v17995_v42  ;;  %v17960_v51 = vld [vmem:[%s23642_s10 + $0x1738] sm:$0xff]  ;;  %v17989_v42 = vcombine.low %v17955_v57, %v17959_v12 }
 0xe53   : > { %11000 = vmatprep.subr.bf16.mxu0 %v18002_v48  ;;  %11041 = vmatprep.subr.bf16.mxu1 %v18004_v32  ;;  %v17991_v11 = vcombine.low %v17956_v2, %v17960_v51  ;;  %v17992_v15 = vcombine.high %v17956_v2, %v17960_v51 }
 0xe56   : > { %11001 = vmatpush1.bf16.msra.mxu0 %v18001_v58  ;;  %11042 = vmatpush1.bf16.msra.mxu1 %v18003_v21 }
 0xe57   : > { %11002 = vmatprep.subr.bf16.mxu0 %v18010_v38  ;;  %11043 = vmatprep.subr.bf16.mxu1 %v18012_v36 }
 0xe5a   : > { %11003 = vmatpush1.bf16.msra.mxu0 %v18009_v62  ;;  %11044 = vmatpush1.bf16.msra.mxu1 %v18011_v47 }
 0xe5b   : > { %11078 = vmatprep.subr.bf16.mxu0 %v17990_v0  ;;  %11119 = vmatprep.subr.bf16.mxu1 %v17992_v15 }
 0xeef   : > { %v20364_v43 = vpop.f32.mrb[74].mxu0  ;;  %v20399_v45 = vpop.f32.mrb[74].mxu1 }
 0xef0   : > { %v20365_v48 = vpop.f32.mrb[75].mxu0  ;;  %v20400_v23 = vpop.f32.mrb[75].mxu1 }
 0xef1   : > { %v20366_v58 = vadd.f32 %v20365_v48, %v20364_v43  ;;  %v20401_v21 = vadd.f32 %v20400_v23, %v20399_v45  ;;  %v26550_v43 = vld [vmem:[#allocation14_spill] sm:$0xff]  ;;  %v17963_v48 = vld [vmem:[%s23642_s10 + $0x1750] sm:$0xff] }
 0xef2   : > { %v17967_v23 = vld [vmem:[%s23642_s10 + $0x1770] sm:$0xff] }
 0xef3   : > { %v10441_v32 = vadd.f32 %v20401_v21, %v20366_v58  ;;  %v17964_v58 = vld [vmem:[%s23642_s10 + $0x1758] sm:$0xff] }
 0xef4   : > { %v17968_v21 = vld [vmem:[%s23642_s10 + $0x1778] sm:$0xff] }
 0xeff   : > { %v10510_v1 = vpop.f32.mrb[76].mxu0 }
 0xf00   : > { %v25617_v52 = vadd.f32 %v10510_v1, %v10441_v32  ;;  %v21093_v16 = vpop.f32.mrb[77].mxu0 }
 0xf01   : > { %v17998_v16 = vcombine.high %v17963_v48, %v17967_v23 }
 0xf0f   : > { %v20443_v38 = vpop.f32.mrb[76].mxu1 }
 0xf10   : > { %v20444_v3 = vpop.f32.mrb[77].mxu1 }
 0xf11   : > { %v20445_v62 = vadd.f32 %v20444_v3, %v20443_v38  ;;  %v18000_v38 = vcombine.high %v17964_v58, %v17968_v21  ;;  %v17971_v3 = vld [vmem:[%s23642_s10 + $0x1790] sm:$0xff] }
 0xf1f   : > { %v20478_v47 = vpop.f32.mrb[78].mxu0  ;;  %v10792_v36 = vpop.f32.mrb[78].mxu1 }
 0xf20   : > { %v20479_v57 = vpop.f32.mrb[79].mxu0  ;;  %v21112_v12 = vpop.f32.mrb[79].mxu1 }
 0xf21   : > { %v20480_v2 = vadd.f32 %v20479_v57, %v20478_v47  ;;  %v17975_v47 = vld [vmem:[%s23642_s10 + $0x17b0] sm:$0xff]  ;;  %v17999_v57 = vcombine.low %v17964_v58, %v17968_v21 }
 0xf22   : > { %v18006_v12 = vcombine.high %v17971_v3, %v17975_v47 }
 0xf23   : > { %v10723_v0 = vadd.f32 %v20480_v2, %v20445_v62  ;;  %v17972_v62 = vld [vmem:[%s23642_s10 + $0x1798] sm:$0xff] }
 0xf25   : > { %v10793_v51 = vadd.f32 %v10792_v36, %v10723_v0  ;;  %v17976_v36 = vld [vmem:[%s23642_s10 + $0x17b8] sm:$0xff]  ;;  %v17979_v0 = vld [vmem:[%s23642_s10 + $0x17d0] sm:$0xff] }
 0xf26   : > { %v18008_v2 = vcombine.high %v17972_v62, %v17976_v36 }
 0xf27   : > { %v10796_v15 = vmul.f32 %v25336_v33, %v10793_v51  ;;  %v17997_v33 = vcombine.low %v17963_v48, %v17967_v23  ;;  %v17983_v51 = vld [vmem:[%s23642_s10 + $0x17f0] sm:$0xff] }
 0xf28   : > { %v18013_v58 = vcombine.low %v17979_v0, %v17983_v51 }
 0xf29   : > { %v10797_v45 = vadd.f32 %v26550_v43, %v10796_v15  ;;  %v17980_v15 = vld [vmem:[%s23642_s10 + $0x17d8] sm:$0xff] }
 0xf2a   : > { %v17984_v43 = vld [vmem:[%s23642_s10 + $0x17f8] sm:$0xff] }
 0xf2b   : > { %v10798_v32 = vmax.f32 %v10797_v45, 0.0  ;;  %v18021_v45 = vld [vmem:[%s23647_s13 + $0xf0] sm:$0xff]  ;;  %v18016_v48 = vcombine.high %v17980_v15, %v17984_v43  ;;  %v18015_v21 = vcombine.low %v17980_v15, %v17984_v43 }
 0xf2c   : > { %v11165_v23 = vcombine.high %v18021_v45, %v18021_v45 }
 0xf2d   : > { %v10799_v1 = vpack.c.bf16 %v10798_v32, %v10798_v32  ;;  %v18005_v32 = vcombine.low %v17971_v3, %v17975_v47 }
 0xf2f   : > { %18017 = vmatmul.mubr.msk.bf16.vlgmr.msra.gmra.mrb[8].mxu0 %vm489_vm1, %v10799_v1  ;;  %18018 = vmatmul.mubr.msk.bf16.vlgmr.msra.gmra.mrb[8].mxu1 %vm489_vm1, %v10799_v1 }
 0xf30   : > { %11079 = vmatpush1.bf16.msra.mxu0 %v17989_v42  ;;  %11120 = vmatpush1.bf16.msra.mxu1 %v17991_v11  ;;  %v18007_v42 = vcombine.low %v17972_v62, %v17976_v36  ;;  %v18014_v11 = vcombine.high %v17979_v0, %v17983_v51 }
 0xf31   : > { %11080 = vmatprep.subr.bf16.mxu0 %v17998_v16  ;;  %11121 = vmatprep.subr.bf16.mxu1 %v18000_v38  ;;  %v11172_v16 = vrot.slane %v18021_v45, %v23865_v20  ;;  %v11179_v38 = vrot.slane %v11165_v23, %v23865_v20 }
 0xf32   : > { %11110 = vmatprep.mubr.bf16.mxu0 %v26531_v41  ;;  %11151 = vmatprep.mubr.bf16.mxu1 %v26531_v41 }
 0xf33   : > { %v11180_v3 = vcombine.high %v11172_v16, %v11172_v16  ;;  %v11181_v47 = vcombine.high %v11179_v38, %v11179_v38 }
 0xf34   : > { %11081 = vmatpush1.bf16.msra.mxu0 %v17997_v33  ;;  %11122 = vmatpush1.bf16.msra.mxu1 %v17999_v57 }
 0xf35   : > { %11082 = vmatprep.subr.bf16.mxu0 %v18006_v12  ;;  %11123 = vmatprep.subr.bf16.mxu1 %v18008_v2 }
 0xf38   : > { %11083 = vmatpush1.bf16.msra.mxu0 %v18005_v32  ;;  %11124 = vmatpush1.bf16.msra.mxu1 %v18007_v42  ;;  %v25711_v42 = vld [vmem:[%s26504_s2] ss:$0 sm:$0xff] }
 0xf39   : > { %11084 = vmatprep.subr.bf16.mxu0 %v18014_v11  ;;  %11125 = vmatprep.subr.bf16.mxu1 %v18016_v48  ;;  %v25717_v48 = vld [vmem:[%s26505_s3] ss:$0 sm:$0xff] }
 0xf3c   : > { %11085 = vmatpush1.bf16.msra.mxu0 %v18013_v58  ;;  %11126 = vmatpush1.bf16.msra.mxu1 %v18015_v21  ;;  %v18035_v58 = vld [vmem:[%s23642_s10 + $0x1850] sm:$0xff] }
 0xf3d   : > { %22957 = vmatprep.subr.bf16.mxu0 %v23659_v4  ;;  %22989 = vmatprep.subr.bf16.mxu1 %v23670_v8  ;;  %v18023_v4 = vld.sshfl [vmem:[%s23647_s13 + $0xf8] sm:$0x3 pattern:$0x76325410]  ;;  %v18025_v8 = vld [vmem:[%s23642_s10 + $0x1800] sm:$0xff]  ;;  %v18039_v21 = vld [vmem:[%s23642_s10 + $0x1870] sm:$0xff] }
 0xf3f   : > { %18019 = vmatmul.mubr.msk.bf16.vlgmr.msra.gmra.mrb[12].mxu0 %vm489_vm1, %v10799_v1  ;;  %18020 = vmatmul.mubr.msk.bf16.vlgmr.msra.gmra.mrb[12].mxu1 %vm489_vm1, %v10799_v1 }
 0xf40   : > { %22959 = vmatpush3.bf16.msra.mxu0 %v23672_v9  ;;  %22991 = vmatpush3.bf16.msra.mxu1 %v23684_v13  ;;  %v18029_v9 = vld [vmem:[%s23642_s10 + $0x1820] sm:$0xff]  ;;  %v18026_v13 = vld [vmem:[%s23642_s10 + $0x1808] sm:$0xff] }
 0xf41   : > { %22961 = vmatprep.subr.bf16.mxu0 %v23697_v17  ;;  %22993 = vmatprep.subr.bf16.mxu1 %v23699_v18  ;;  %v18057_v17 = vcombine.low %v18025_v8, %v18029_v9  ;;  %v18058_v18 = vcombine.high %v18025_v8, %v18029_v9  ;;  %v18043_v9 = vld [vmem:[%s23642_s10 + $0x1890] sm:$0xff] }
 0xf42   : > { %11259 = vmatprep.mubr.f32.mxu0 %v11180_v3  ;;  %11329 = vmatprep.mubr.f32.mxu1 %v11181_v47 }
 0xf44   : > { %22963 = vmatpush3.bf16.msra.mxu0 %v23711_v22  ;;  %22995 = vmatpush3.bf16.msra.mxu1 %v23724_v26  ;;  %v18030_v22 = vld [vmem:[%s23642_s10 + $0x1828] sm:$0xff]  ;;  %v18033_v26 = vld [vmem:[%s23642_s10 + $0x1840] sm:$0xff] }
 0xf45   : > { %22965 = vmatprep.subr.bf16.mxu0 %v23726_v27  ;;  %22997 = vmatprep.subr.bf16.mxu1 %v23737_v31  ;;  %v18037_v27 = vld [vmem:[%s23642_s10 + $0x1860] sm:$0xff]  ;;  %v18059_v31 = vcombine.low %v18026_v13, %v18030_v22 }
 0xf48   : > { %22967 = vmatpush3.bf16.msra.mxu0 %v23749_v35  ;;  %22999 = vmatpush3.bf16.msra.mxu1 %v23762_v39  ;;  %v18060_v35 = vcombine.high %v18026_v13, %v18030_v22  ;;  %v18066_v39 = vcombine.high %v18033_v26, %v18037_v27  ;;  %v18047_v13 = vld [vmem:[%s23642_s10 + $0x18b0] sm:$0xff]  ;;  %v18069_v22 = vcombine.low %v18035_v58, %v18039_v21 }
 0xf49   : > { %22969 = vmatprep.subr.bf16.mxu0 %v23764_v40  ;;  %23001 = vmatprep.subr.bf16.mxu1 %v23776_v44  ;;  %v18034_v40 = vld [vmem:[%s23642_s10 + $0x1848] sm:$0xff] }
 0xf4a   : > { %v18038_v44 = vld [vmem:[%s23642_s10 + $0x1868] sm:$0xff] }
 0xf4c   : > { %22971 = vmatpush3.bf16.msra.mxu0 %v23797_v54  ;;  %23003 = vmatpush3.bf16.msra.mxu1 %v23801_v55  ;;  %v18068_v54 = vcombine.high %v18034_v40, %v18038_v44  ;;  %v18065_v55 = vcombine.low %v18033_v26, %v18037_v27  ;;  %v18078_v27 = vcombine.high %v18043_v9, %v18047_v13 }
 0xf4d   : > { %22973 = vmatprep.subr.bf16.mxu0 %v23803_v56  ;;  %23005 = vmatprep.subr.bf16.mxu1 %v23815_v60  ;;  %v18067_v56 = vcombine.low %v18034_v40, %v18038_v44  ;;  %v18041_v60 = vld [vmem:[%s23642_s10 + $0x1880] sm:$0xff]  ;;  %v18052_v40 = vld [vmem:[%s23642_s10 + $0x18d8] sm:$0xff] }
 0xf4e   : > { %v18056_v44 = vld [vmem:[%s23642_s10 + $0x18f8] sm:$0xff] }
 0xf50   : > { %22975 = vmatpush3.bf16.msra.mxu0 %v23835_v5  ;;  %23007 = vmatpush3.bf16.msra.mxu1 %v23839_v6  ;;  %v18045_v5 = vld [vmem:[%s23642_s10 + $0x18a0] sm:$0xff]  ;;  %v18042_v6 = vld [vmem:[%s23642_s10 + $0x1888] sm:$0xff] }
 0xf51   : > { %22977 = vmatprep.subr.bf16.mxu0 %v23841_v7  ;;  %23009 = vmatprep.subr.bf16.mxu1 %v23853_v14  ;;  %v18074_v7 = vcombine.high %v18041_v60, %v18045_v5  ;;  %v18046_v14 = vld [vmem:[%s23642_s10 + $0x18a8] sm:$0xff] }
 0xf54   : > { %22979 = vmatpush3.bf16.msra.mxu0 %v23874_v24  ;;  %23011 = vmatpush3.bf16.msra.mxu1 %v23881_v28  ;;  %v18073_v24 = vcombine.low %v18041_v60, %v18045_v5  ;;  %v18075_v28 = vcombine.low %v18042_v6, %v18046_v14  ;;  %v18088_v60 = vcombine.high %v18052_v40, %v18056_v44  ;;  %v718_v5 = vld [vmem:[%s23642_s10] sm:$0xff] }
 0xf55   : > { %22981 = vmatprep.subr.bf16.mxu0 %v23883_v29  ;;  %23013 = vmatprep.subr.bf16.mxu1 %v23893_v34  ;;  %v18076_v29 = vcombine.high %v18042_v6, %v18046_v14  ;;  %v18049_v34 = vld [vmem:[%s23642_s10 + $0x18c0] sm:$0xff]  ;;  %v723_v14 = vld [vmem:[%s23642_s10 + $0x28] sm:$0xff] }
 0xf56   : > { %v722_v6 = vld [vmem:[%s23642_s10 + $0x20] sm:$0xff] }
 0xf58   : > { %22983 = vmatpush3.bf16.msra.mxu0 %v23912_v46  ;;  %23015 = vmatpush3.bf16.msra.mxu1 %v23917_v49  ;;  %v18053_v46 = vld [vmem:[%s23642_s10 + $0x18e0] sm:$0xff]  ;;  %v18050_v49 = vld [vmem:[%s23642_s10 + $0x18c8] sm:$0xff] }
 0xf59   : > { %22985 = vmatprep.subr.bf16.mxu0 %v23919_v50  ;;  %23017 = vmatprep.subr.bf16.mxu1 %v23928_v53  ;;  %v18082_v50 = vcombine.high %v18049_v34, %v18053_v46  ;;  %v18054_v53 = vld [vmem:[%s23642_s10 + $0x18e8] sm:$0xff] }
 0xf5c   : > { %22987 = vmatpush3.bf16.msra.mxu0 %v23937_v61  ;;  %23019 = vmatpush3.bf16.msra.mxu1 %v23942_v63  ;;  %v18081_v61 = vcombine.low %v18049_v34, %v18053_v46  ;;  %v18083_v63 = vcombine.low %v18050_v49, %v18054_v53  ;;  %v726_v46 = vld [vmem:[%s23642_s10 + $0x40] sm:$0xff] }
 0xf5d   : > { %23020 = vmatprep.subr.bf16.mxu0 %v26528_v25  ;;  %11646 = vmatprep.subr.bf16.mxu1 %v18060_v35  ;;  %v18051_v35 = vld [vmem:[%s23642_s10 + $0x18d0] sm:$0xff] }
 0xf5f   : > { %11260 = vmatmul.mubr.f32.vlgmr.msra.gmra.mrb[80].mxu0 %v11172_v16  ;;  %11330 = vmatmul.mubr.f32.vlgmr.msra.gmra.mrb[80].mxu1 %v11179_v38  ;;  %v18036_v16 = vld [vmem:[%s23642_s10 + $0x1858] sm:$0xff] }
 0xf60   : > { %23022 = vmatpush3.bf16.msra.mxu0 %v23953_v10  ;;  %21129 = vmatprep.mubr.msk.f32.mxu0 %vm23575_vm0, %v26529_v59  ;;  %v18084_v10 = vcombine.high %v18050_v49, %v18054_v53  ;;  %v18032_v59 = vld [vmem:[%s23642_s10 + $0x1838] sm:$0xff]  ;;  %v730_v49 = vld [vmem:[%s23642_s10 + $0x60] sm:$0xff]  ;;  %v731_v53 = vld [vmem:[%s23642_s10 + $0x68] sm:$0xff] }
 0xf61   : > { %23023 = vmatprep.subr.bf16.mxu0 %v26528_v25  ;;  %11678 = vmatprep.mubr.bf16.mxu1 %v26531_v41  ;;  %v18040_v38 = vld [vmem:[%s23642_s10 + $0x1878] sm:$0xff] }
 0xf62   : > { %11647 = vmatpush1.bf16.msra.mxu1 %v18059_v31  ;;  %v18072_v8 = vcombine.high %v18036_v16, %v18040_v38  ;;  %v18071_v26 = vcombine.low %v18036_v16, %v18040_v38  ;;  %v721_v16 = vld [vmem:[%s23642_s10 + $0x18] sm:$0xff] }
 0xf63   : > { %11648 = vmatprep.subr.bf16.mxu1 %v18068_v54  ;;  %v18077_v54 = vcombine.low %v18043_v9, %v18047_v13  ;;  %v725_v38 = vld [vmem:[%s23642_s10 + $0x38] sm:$0xff]  ;;  %v728_v13 = vld [vmem:[%s23642_s10 + $0x50] sm:$0xff] }
 0xf64   : > { %23025 = vmatpush3.bf16.msra.mxu0 %v23965_v19  ;;  %v18027_v19 = vld [vmem:[%s23642_s10 + $0x1810] sm:$0xff]  ;;  %v18100_v9 = vcombine.high %v721_v16, %v725_v38 }
 0xf65   : > { %23026 = vmatprep.subr.bf16.mxu0 %v26528_v25 }
 0xf66   : > { %11649 = vmatpush1.bf16.msra.mxu1 %v18067_v56 }
 0xf67   : > { %11650 = vmatprep.subr.bf16.mxu1 %v18076_v29  ;;  %v18094_v29 = vcombine.high %v718_v5, %v722_v6 }
 0xf68   : > { %23028 = vmatpush3.bf16.msra.mxu0 %v23979_v30  ;;  %v18031_v30 = vld [vmem:[%s23642_s10 + $0x1830] sm:$0xff] }
 0xf69   : > { %23029 = vmatprep.subr.bf16.mxu0 %v26528_v25  ;;  %v18062_v25 = vcombine.high %v18027_v19, %v18031_v30  ;;  %v18061_v1 = vcombine.low %v18027_v19, %v18031_v30  ;;  %v734_v30 = vld [vmem:[%s23642_s10 + $0x80] sm:$0xff] }
 0xf6a   : > { %11651 = vmatpush1.bf16.msra.mxu1 %v18075_v28  ;;  %v18087_v28 = vcombine.low %v18052_v40, %v18056_v44  ;;  %v736_v40 = vld [vmem:[%s23642_s10 + $0x90] sm:$0xff] }
 0xf6b   : > { %11652 = vmatprep.subr.bf16.mxu1 %v18084_v10  ;;  %v18102_v10 = vcombine.high %v726_v46, %v730_v49  ;;  %v740_v44 = vld [vmem:[%s23642_s10 + $0xb0] sm:$0xff] }
 0xf6c   : > { %23031 = vmatpush3.bf16.msra.mxu0 %v23991_v37  ;;  %v18028_v37 = vld [vmem:[%s23642_s10 + $0x1818] sm:$0xff] }
 0xf6d   : > { %11605 = vmatprep.subr.bf16.mxu0 %v18058_v18  ;;  %v18063_v62 = vcombine.low %v18028_v37, %v18032_v59  ;;  %v18064_v36 = vcombine.high %v18028_v37, %v18032_v59  ;;  %v18048_v18 = vld [vmem:[%s23642_s10 + $0x18b8] sm:$0xff]  ;;  %v738_v37 = vld [vmem:[%s23642_s10 + $0xa0] sm:$0xff]  ;;  %v739_v59 = vld [vmem:[%s23642_s10 + $0xa8] sm:$0xff] }
 0xf6e   : > { %11653 = vmatpush1.bf16.msra.mxu1 %v18083_v63 }
 0xf6f   : > { %21130 = vmatmul.mubr.msk.f32.vlgmr.msra.gmra.mrb[82].mxu0 %vm489_vm1, %v18023_v4  ;;  %11728 = vmatprep.subr.bf16.mxu1 %v18064_v36  ;;  %v18070_v4 = vcombine.high %v18035_v58, %v18039_v21  ;;  %v26551_v36 = vld [vmem:[#allocation4_spill] sm:$0xff]  ;;  %v720_v58 = vld [vmem:[%s23642_s10 + $0x10] sm:$0xff] }
 0xf70   : > { %11637 = vmatprep.mubr.bf16.mxu0 %v26531_v41  ;;  %11606 = vmatpush1.bf16.msra.mxu0 %v18057_v17  ;;  %v18044_v17 = vld [vmem:[%s23642_s10 + $0x1898] sm:$0xff]  ;;  %v724_v21 = vld [vmem:[%s23642_s10 + $0x30] sm:$0xff] }
 0xf71   : > { %11607 = vmatprep.subr.bf16.mxu0 %v18066_v39  ;;  %v18080_v31 = vcombine.high %v18044_v17, %v18048_v18  ;;  %v18055_v39 = vld [vmem:[%s23642_s10 + $0x18f0] sm:$0xff] }
 0xf72   : > { %v18086_v56 = vcombine.high %v18051_v35, %v18055_v39 }
 0xf74   : > { %11608 = vmatpush1.bf16.msra.mxu0 %v18065_v55  ;;  %v18079_v55 = vcombine.low %v18044_v17, %v18048_v18  ;;  %v732_v17 = vld [vmem:[%s23642_s10 + $0x70] sm:$0xff]  ;;  %v729_v18 = vld [vmem:[%s23642_s10 + $0x58] sm:$0xff] }
 0xf75   : > { %11609 = vmatprep.subr.bf16.mxu0 %v18074_v7  ;;  %v719_v7 = vld [vmem:[%s23642_s10 + $0x8] sm:$0xff] }
 0xf76   : > { %v18096_v34 = vcombine.high %v719_v7, %v723_v14  ;;  %v18095_v63 = vcombine.low %v719_v7, %v723_v14  ;;  %v744_v7 = vld [vmem:[%s23642_s10 + $0xd0] sm:$0xff] }
 0xf77   : > { %v748_v14 = vld [vmem:[%s23642_s10 + $0xf0] sm:$0xff] }
 0xf78   : > { %11610 = vmatpush1.bf16.msra.mxu0 %v18073_v24  ;;  %v18085_v24 = vcombine.low %v18051_v35, %v18055_v39  ;;  %v18106_v35 = vcombine.high %v728_v13, %v732_v17 }
 0xf79   : > { %11611 = vmatprep.subr.bf16.mxu0 %v18082_v50  ;;  %v727_v50 = vld [vmem:[%s23642_s10 + $0x48] sm:$0xff] }
 0xf7a   : > { %v18104_v19 = vcombine.high %v727_v50, %v731_v53 }
 0xf7c   : > { %11612 = vmatpush1.bf16.msra.mxu0 %v18081_v61  ;;  %v18093_v61 = vcombine.low %v718_v5, %v722_v6  ;;  %v18114_v5 = vcombine.high %v736_v40, %v740_v44 }
 0xf7d   : > { %11687 = vmatprep.subr.bf16.mxu0 %v18062_v25  ;;  %v735_v25 = vld [vmem:[%s23642_s10 + $0x88] sm:$0xff] }
0x1032   : > { %v20522_v33 = vpop.f32.mrb[80].mxu0  ;;  %v20557_v57 = vpop.f32.mrb[80].mxu1 }
0x1033   : > { %v20523_v12 = vpop.f32.mrb[81].mxu0  ;;  %v20558_v2 = vpop.f32.mrb[81].mxu1 }
0x1034   : > { %v20524_v0 = vadd.f32 %v20523_v12, %v20522_v33  ;;  %v20559_v51 = vadd.f32 %v20558_v2, %v20557_v57  ;;  %v708_v33 = vmul.f32 %v25711_v42, %v26551_v36  ;;  %v18110_v57 = vcombine.high %v734_v30, %v738_v37  ;;  %v742_v2 = vld [vmem:[%s23642_s10 + $0xc0] sm:$0xff] }
0x1035   : > { %v18112_v12 = vcombine.high %v735_v25, %v739_v59 }
0x1036   : > { %v11332_v15 = vadd.f32 %v20559_v51, %v20524_v0  ;;  %v746_v0 = vld [vmem:[%s23642_s10 + $0xe0] sm:$0xff]  ;;  %v743_v51 = vld [vmem:[%s23642_s10 + $0xc8] sm:$0xff] }
0x1042   : > { %v11401_v43 = vpop.f32.mrb[82].mxu0 }
0x1043   : > { %v11402_v45 = vadd.f32 %v11401_v43, %v11332_v15  ;;  %v21131_v32 = vpop.f32.mrb[83].mxu0  ;;  %v747_v15 = vld [vmem:[%s23642_s10 + $0xe8] sm:$0xff]  ;;  %v18109_v43 = vcombine.low %v734_v30, %v738_v37 }
0x1044   : > { %v715_v32 = vadd.f32 %v25717_v48, %v708_v33 }
0x1045   : > { %v11405_v11 = vmul.f32 %v25711_v42, %v11402_v45  ;;  %v18111_v45 = vcombine.low %v735_v25, %v739_v59  ;;  %v16845_v25 = vld [vmem:[%s23642_s10 + $0x240] sm:$0xff] }
0x1046   : > { %v16849_v59 = vld [vmem:[%s23642_s10 + $0x260] sm:$0xff] }
0x1047   : > { %v11406_v23 = vadd.f32 %v25717_v48, %v11405_v11  ;;  %v18118_v11 = vcombine.high %v742_v2, %v746_v0 }
0x1049   : > { %v11407_v3 = vmax.f32 %v11406_v23, 0.0  ;;  %v18120_v23 = vcombine.high %v743_v51, %v747_v15 }
0x104b   : > { %v11408_v47 = vpack.c.bf16 %v11407_v3, %v11407_v3  ;;  %v18117_v3 = vcombine.low %v742_v2, %v746_v0  ;;  %v16853_v2 = vld [vmem:[%s23642_s10 + $0x280] sm:$0xff] }
0x104c   : > { %v16857_v0 = vld [vmem:[%s23642_s10 + $0x2a0] sm:$0xff] }
0x104d   : > { %18089 = vmatmul.mubr.msk.bf16.vlgmr.msra.gmra.mrb[8].mxu0 %vm489_vm1, %v11408_v47  ;;  %18090 = vmatmul.mubr.msk.bf16.vlgmr.msra.gmra.mrb[8].mxu1 %vm489_vm1, %v11408_v47 }
0x104e   : > { %11688 = vmatpush1.bf16.msra.mxu0 %v18061_v1  ;;  %11729 = vmatpush1.bf16.msra.mxu1 %v18063_v62  ;;  %v18101_v1 = vcombine.low %v726_v46, %v730_v49  ;;  %v18103_v62 = vcombine.low %v727_v50, %v731_v53  ;;  %v18122_v46 = vcombine.high %v744_v7, %v748_v14  ;;  %v16837_v50 = vld [vmem:[%s23642_s10 + $0x200] sm:$0xff] }
0x104f   : > { %11689 = vmatprep.subr.bf16.mxu0 %v18070_v4  ;;  %11730 = vmatprep.subr.bf16.mxu1 %v18072_v8  ;;  %v716_v4 = vmax.f32 %v715_v32, 0.0  ;;  %v18098_v8 = vcombine.high %v720_v58, %v724_v21  ;;  %v16841_v53 = vld [vmem:[%s23642_s10 + $0x220] sm:$0xff]  ;;  %v26552_v32 = vld [vmem:[#allocation6_spill] sm:$0xff] }
0x1050   : > { %11719 = vmatprep.mubr.bf16.mxu0 %v26531_v41  ;;  %11760 = vmatprep.mubr.bf16.mxu1 %v26531_v41  ;;  %v18130_v30 = vcombine.high %v16837_v50, %v16841_v53  ;;  %v18129_v36 = vcombine.low %v16837_v50, %v16841_v53 }
0x1052   : > { %11690 = vmatpush1.bf16.msra.mxu0 %v18069_v22  ;;  %11731 = vmatpush1.bf16.msra.mxu1 %v18071_v26  ;;  %v733_v22 = vld [vmem:[%s23642_s10 + $0x78] sm:$0xff]  ;;  %v18097_v26 = vcombine.low %v720_v58, %v724_v21  ;;  %v16861_v21 = vld [vmem:[%s23642_s10 + $0x2c0] sm:$0xff] }
0x1053   : > { %11691 = vmatprep.subr.bf16.mxu0 %v18078_v27  ;;  %11732 = vmatprep.subr.bf16.mxu1 %v18080_v31  ;;  %v18099_v27 = vcombine.low %v721_v16, %v725_v38  ;;  %v717_v31 = vpack.c.bf16 %v716_v4, %v716_v4  ;;  %v18108_v39 = vcombine.high %v729_v18, %v733_v22  ;;  %v16865_v16 = vld [vmem:[%s23642_s10 + $0x2e0] sm:$0xff]  ;;  %v16862_v38 = vld [vmem:[%s23642_s10 + $0x2c8] sm:$0xff] }
0x1056   : > { %11692 = vmatpush1.bf16.msra.mxu0 %v18077_v54  ;;  %11733 = vmatpush1.bf16.msra.mxu1 %v18079_v55  ;;  %v737_v54 = vld [vmem:[%s23642_s10 + $0x98] sm:$0xff] }
0x1057   : > { %11693 = vmatprep.subr.bf16.mxu0 %v18086_v56  ;;  %11734 = vmatprep.subr.bf16.mxu1 %v18088_v60  ;;  %v741_v55 = vld [vmem:[%s23642_s10 + $0xb8] sm:$0xff]  ;;  %v18105_v56 = vcombine.low %v728_v13, %v732_v17  ;;  %v18107_v60 = vcombine.low %v729_v18, %v733_v22  ;;  %v16839_v17 = vld [vmem:[%s23642_s10 + $0x210] sm:$0xff] }
0x1058   : > { %v18116_v6 = vcombine.high %v737_v54, %v741_v55  ;;  %v16843_v18 = vld [vmem:[%s23642_s10 + $0x230] sm:$0xff]  ;;  %v16840_v22 = vld [vmem:[%s23642_s10 + $0x218] sm:$0xff] }
0x105a   : > { %11694 = vmatpush1.bf16.msra.mxu0 %v18085_v24  ;;  %11735 = vmatpush1.bf16.msra.mxu1 %v18087_v28  ;;  %v745_v24 = vld [vmem:[%s23642_s10 + $0xd8] sm:$0xff] }
0x105b   : > { %11932 = vmatprep.subr.bf16.mxu0 %v18094_v29  ;;  %11973 = vmatprep.subr.bf16.mxu1 %v18096_v34  ;;  %v749_v28 = vld [vmem:[%s23642_s10 + $0xf8] sm:$0xff]  ;;  %v18113_v29 = vcombine.low %v736_v40, %v740_v44  ;;  %v18115_v34 = vcombine.low %v737_v54, %v741_v55  ;;  %v16847_v44 = vld [vmem:[%s23642_s10 + $0x250] sm:$0xff] }
0x105c   : > { %v18124_v49 = vcombine.high %v745_v24, %v749_v28  ;;  %v16851_v54 = vld [vmem:[%s23642_s10 + $0x270] sm:$0xff]  ;;  %v16848_v55 = vld [vmem:[%s23642_s10 + $0x258] sm:$0xff] }
0x105d   : > { %18091 = vmatmul.mubr.msk.bf16.vlgmr.msra.gmra.mrb[12].mxu0 %vm489_vm1, %v11408_v47  ;;  %18092 = vmatmul.mubr.msk.bf16.vlgmr.msra.gmra.mrb[12].mxu1 %vm489_vm1, %v11408_v47  ;;  %v18119_v47 = vcombine.low %v743_v51, %v747_v15  ;;  %v16854_v51 = vld [vmem:[%s23642_s10 + $0x288] sm:$0xff] }
0x105e   : > { %11933 = vmatpush1.bf16.msra.mxu0 %v18093_v61  ;;  %11974 = vmatpush1.bf16.msra.mxu1 %v18095_v63  ;;  %v16838_v61 = vld [vmem:[%s23642_s10 + $0x208] sm:$0xff] }
0x105f   : > { %11934 = vmatprep.subr.bf16.mxu0 %v18102_v10  ;;  %11975 = vmatprep.subr.bf16.mxu1 %v18104_v19  ;;  %v16842_v63 = vld [vmem:[%s23642_s10 + $0x228] sm:$0xff]  ;;  %v18121_v10 = vcombine.low %v744_v7, %v748_v14  ;;  %v18123_v19 = vcombine.low %v745_v24, %v749_v28  ;;  %v18142_v7 = vcombine.high %v16847_v44, %v16851_v54  ;;  %v16855_v24 = vld [vmem:[%s23642_s10 + $0x290] sm:$0xff] }
0x1060   : > { %11964 = vmatprep.mubr.bf16.mxu0 %v26531_v41  ;;  %12005 = vmatprep.mubr.bf16.mxu1 %v26531_v41  ;;  %v18132_v37 = vcombine.high %v16838_v61, %v16842_v63  ;;  %v18131_v33 = vcombine.low %v16838_v61, %v16842_v63  ;;  %v16858_v15 = vld [vmem:[%s23642_s10 + $0x2a8] sm:$0xff]  ;;  %v16859_v28 = vld [vmem:[%s23642_s10 + $0x2b0] sm:$0xff] }
0x1061   : > { %v18148_v58 = vcombine.high %v16854_v51, %v16858_v15  ;;  %v18147_v4 = vcombine.low %v16854_v51, %v16858_v15  ;;  %v18150_v50 = vcombine.high %v16855_v24, %v16859_v28  ;;  %v16863_v61 = vld [vmem:[%s23642_s10 + $0x2d0] sm:$0xff]  ;;  %v16953_v51 = vld [vmem:[%s23642_s10 + $0x440] sm:$0xff] }
0x1062   : > { %11935 = vmatpush1.bf16.msra.mxu0 %v18101_v1  ;;  %11976 = vmatpush1.bf16.msra.mxu1 %v18103_v62  ;;  %v16846_v1 = vld [vmem:[%s23642_s10 + $0x248] sm:$0xff]  ;;  %v16867_v63 = vld [vmem:[%s23642_s10 + $0x2f0] sm:$0xff]  ;;  %v16957_v15 = vld [vmem:[%s23642_s10 + $0x460] sm:$0xff] }
0x1063   : > { %11936 = vmatprep.subr.bf16.mxu0 %v18110_v57  ;;  %11977 = vmatprep.subr.bf16.mxu1 %v18112_v12  ;;  %v16850_v62 = vld [vmem:[%s23642_s10 + $0x268] sm:$0xff]  ;;  %v18138_v57 = vcombine.high %v16845_v25, %v16849_v59 }
0x1064   : > { %v18140_v12 = vcombine.high %v16846_v1, %v16850_v62 }
0x1066   : > { %11937 = vmatpush1.bf16.msra.mxu0 %v18109_v43  ;;  %11978 = vmatpush1.bf16.msra.mxu1 %v18111_v45  ;;  %v18137_v43 = vcombine.low %v16845_v25, %v16849_v59  ;;  %v18139_v45 = vcombine.low %v16846_v1, %v16850_v62  ;;  %v18158_v25 = vcombine.high %v16863_v61, %v16867_v63  ;;  %v16945_v1 = vld [vmem:[%s23642_s10 + $0x400] sm:$0xff] }
0x1067   : > { %11938 = vmatprep.subr.bf16.mxu0 %v18118_v11  ;;  %11979 = vmatprep.subr.bf16.mxu1 %v18120_v23  ;;  %v1604_v11 = vmul.f32 %v25711_v42, %v26552_v32  ;;  %v18146_v23 = vcombine.high %v16853_v2, %v16857_v0  ;;  %v16949_v62 = vld [vmem:[%s23642_s10 + $0x420] sm:$0xff] }
0x1068   : > { %v18165_v32 = vcombine.low %v16945_v1, %v16949_v62 }
0x106a   : > { %11939 = vmatpush1.bf16.msra.mxu0 %v18117_v3  ;;  %11980 = vmatpush1.bf16.msra.mxu1 %v18119_v47  ;;  %v16866_v3 = vld [vmem:[%s23642_s10 + $0x2e8] sm:$0xff]  ;;  %v18145_v47 = vcombine.low %v16853_v2, %v16857_v0  ;;  %v18166_v2 = vcombine.high %v16945_v1, %v16949_v62 }
0x106b   : > { %12014 = vmatprep.subr.bf16.mxu0 %v18098_v8  ;;  %12055 = vmatprep.subr.bf16.mxu1 %v18100_v9  ;;  %v1605_v8 = vadd.f32 %v25717_v48, %v1604_v11  ;;  %v18154_v9 = vcombine.high %v16861_v21, %v16865_v16  ;;  %v18156_v13 = vcombine.high %v16862_v38, %v16866_v3 }
0x106d   : > { %18125 = vmatmul.mubr.msk.bf16.vlgmr.msra.gmra.mrb[8].mxu0 %vm489_vm1, %v717_v31  ;;  %18126 = vmatmul.mubr.msk.bf16.vlgmr.msra.gmra.mrb[8].mxu1 %vm489_vm1, %v717_v31 }
0x106e   : > { %12015 = vmatpush1.bf16.msra.mxu0 %v18097_v26  ;;  %12056 = vmatpush1.bf16.msra.mxu1 %v18099_v27  ;;  %v16844_v26 = vld [vmem:[%s23642_s10 + $0x238] sm:$0xff]  ;;  %v18153_v27 = vcombine.low %v16861_v21, %v16865_v16  ;;  %v16961_v21 = vld [vmem:[%s23642_s10 + $0x480] sm:$0xff] }
0x106f   : > { %12016 = vmatprep.subr.bf16.mxu0 %v18106_v35  ;;  %12057 = vmatprep.subr.bf16.mxu1 %v18108_v39  ;;  %v1606_v35 = vmax.f32 %v1605_v8, 0.0  ;;  %v18134_v39 = vcombine.high %v16839_v17, %v16843_v18  ;;  %v18136_v40 = vcombine.high %v16840_v22, %v16844_v26  ;;  %v16965_v16 = vld [vmem:[%s23642_s10 + $0x4a0] sm:$0xff]  ;;  %v26553_v8 = vld [vmem:[#allocation7_spill] sm:$0xff] }
0x1070   : > { %12046 = vmatprep.mubr.bf16.mxu0 %v26531_v41  ;;  %12087 = vmatprep.mubr.bf16.mxu1 %v26531_v41 }
0x1072   : > { %12017 = vmatpush1.bf16.msra.mxu0 %v18105_v56  ;;  %12058 = vmatpush1.bf16.msra.mxu1 %v18107_v60  ;;  %v16852_v56 = vld [vmem:[%s23642_s10 + $0x278] sm:$0xff]  ;;  %v18133_v60 = vcombine.low %v16839_v17, %v16843_v18  ;;  %v16969_v18 = vld [vmem:[%s23642_s10 + $0x4c0] sm:$0xff] }
0x1073   : > { %12018 = vmatprep.subr.bf16.mxu0 %v18114_v5  ;;  %12059 = vmatprep.subr.bf16.mxu1 %v18116_v6  ;;  %v18135_v5 = vcombine.low %v16840_v22, %v16844_v26  ;;  %v1607_v6 = vpack.c.bf16 %v1606_v35, %v1606_v35  ;;  %v18144_v14 = vcombine.high %v16848_v55, %v16852_v56  ;;  %v16973_v22 = vld [vmem:[%s23642_s10 + $0x4e0] sm:$0xff]  ;;  %v16970_v26 = vld [vmem:[%s23642_s10 + $0x4c8] sm:$0xff] }
0x1076   : > { %12019 = vmatpush1.bf16.msra.mxu0 %v18113_v29  ;;  %12060 = vmatpush1.bf16.msra.mxu1 %v18115_v34  ;;  %v16856_v29 = vld [vmem:[%s23642_s10 + $0x298] sm:$0xff] }
0x1077   : > { %12020 = vmatprep.subr.bf16.mxu0 %v18122_v46  ;;  %12061 = vmatprep.subr.bf16.mxu1 %v18124_v49  ;;  %v16860_v34 = vld [vmem:[%s23642_s10 + $0x2b8] sm:$0xff]  ;;  %v18141_v46 = vcombine.low %v16847_v44, %v16851_v54  ;;  %v18143_v49 = vcombine.low %v16848_v55, %v16852_v56  ;;  %v16947_v54 = vld [vmem:[%s23642_s10 + $0x410] sm:$0xff] }
0x1078   : > { %v18152_v53 = vcombine.high %v16856_v29, %v16860_v34  ;;  %v16951_v55 = vld [vmem:[%s23642_s10 + $0x430] sm:$0xff]  ;;  %v16948_v56 = vld [vmem:[%s23642_s10 + $0x418] sm:$0xff] }
0x107a   : > { %12021 = vmatpush1.bf16.msra.mxu0 %v18121_v10  ;;  %12062 = vmatpush1.bf16.msra.mxu1 %v18123_v19  ;;  %v16864_v10 = vld [vmem:[%s23642_s10 + $0x2d8] sm:$0xff] }
0x107b   : > { %12259 = vmatprep.subr.bf16.mxu0 %v18130_v30  ;;  %12300 = vmatprep.subr.bf16.mxu1 %v18132_v37  ;;  %v16868_v19 = vld [vmem:[%s23642_s10 + $0x2f8] sm:$0xff]  ;;  %v18149_v30 = vcombine.low %v16855_v24, %v16859_v28  ;;  %v18151_v37 = vcombine.low %v16856_v29, %v16860_v34  ;;  %v16955_v28 = vld [vmem:[%s23642_s10 + $0x450] sm:$0xff] }
0x107c   : > { %v18160_v59 = vcombine.high %v16864_v10, %v16868_v19  ;;  %v16959_v29 = vld [vmem:[%s23642_s10 + $0x470] sm:$0xff]  ;;  %v16956_v34 = vld [vmem:[%s23642_s10 + $0x458] sm:$0xff] }
0x107d   : > { %18127 = vmatmul.mubr.msk.bf16.vlgmr.msra.gmra.mrb[12].mxu0 %vm489_vm1, %v717_v31  ;;  %18128 = vmatmul.mubr.msk.bf16.vlgmr.msra.gmra.mrb[12].mxu1 %vm489_vm1, %v717_v31  ;;  %v18155_v31 = vcombine.low %v16862_v38, %v16866_v3  ;;  %v16962_v38 = vld [vmem:[%s23642_s10 + $0x488] sm:$0xff] }
0x107e   : > { %12260 = vmatpush1.bf16.msra.mxu0 %v18129_v36  ;;  %12301 = vmatpush1.bf16.msra.mxu1 %v18131_v33  ;;  %v16946_v36 = vld [vmem:[%s23642_s10 + $0x408] sm:$0xff] }
0x107f   : > { %12261 = vmatprep.subr.bf16.mxu0 %v18138_v57  ;;  %12302 = vmatprep.subr.bf16.mxu1 %v18140_v12  ;;  %v16950_v33 = vld [vmem:[%s23642_s10 + $0x428] sm:$0xff]  ;;  %v18157_v57 = vcombine.low %v16863_v61, %v16867_v63  ;;  %v18159_v12 = vcombine.low %v16864_v10, %v16868_v19  ;;  %v18178_v61 = vcombine.high %v16955_v28, %v16959_v29  ;;  %v16963_v10 = vld [vmem:[%s23642_s10 + $0x490] sm:$0xff] }
0x1080   : > { %12291 = vmatprep.mubr.bf16.mxu0 %v26531_v41  ;;  %12332 = vmatprep.mubr.bf16.mxu1 %v26531_v41  ;;  %v18168_v0 = vcombine.high %v16946_v36, %v16950_v33  ;;  %v18167_v11 = vcombine.low %v16946_v36, %v16950_v33  ;;  %v16966_v3 = vld [vmem:[%s23642_s10 + $0x4a8] sm:$0xff]  ;;  %v16967_v19 = vld [vmem:[%s23642_s10 + $0x4b0] sm:$0xff] }
0x1081   : > { %v18184_v17 = vcombine.high %v16962_v38, %v16966_v3  ;;  %v18183_v35 = vcombine.low %v16962_v38, %v16966_v3  ;;  %v18186_v1 = vcombine.high %v16963_v10, %v16967_v19  ;;  %v16971_v36 = vld [vmem:[%s23642_s10 + $0x4d0] sm:$0xff]  ;;  %v17061_v38 = vld [vmem:[%s23642_s10 + $0x640] sm:$0xff] }
0x1082   : > { %12262 = vmatpush1.bf16.msra.mxu0 %v18137_v43  ;;  %12303 = vmatpush1.bf16.msra.mxu1 %v18139_v45  ;;  %v16954_v43 = vld [vmem:[%s23642_s10 + $0x448] sm:$0xff]  ;;  %v16975_v33 = vld [vmem:[%s23642_s10 + $0x4f0] sm:$0xff]  ;;  %v17065_v3 = vld [vmem:[%s23642_s10 + $0x660] sm:$0xff] }
0x1083   : > { %12263 = vmatprep.subr.bf16.mxu0 %v18146_v23  ;;  %12304 = vmatprep.subr.bf16.mxu1 %v18148_v58  ;;  %v16958_v45 = vld [vmem:[%s23642_s10 + $0x468] sm:$0xff]  ;;  %v18174_v23 = vcombine.high %v16953_v51, %v16957_v15 }
0x1084   : > { %v18176_v58 = vcombine.high %v16954_v43, %v16958_v45 }
0x1086   : > { %12264 = vmatpush1.bf16.msra.mxu0 %v18145_v47  ;;  %12305 = vmatpush1.bf16.msra.mxu1 %v18147_v4  ;;  %v18173_v47 = vcombine.low %v16953_v51, %v16957_v15  ;;  %v18175_v4 = vcombine.low %v16954_v43, %v16958_v45  ;;  %v18194_v51 = vcombine.high %v16971_v36, %v16975_v33  ;;  %v17053_v43 = vld [vmem:[%s23642_s10 + $0x600] sm:$0xff] }
0x1087   : > { %12265 = vmatprep.subr.bf16.mxu0 %v18154_v9  ;;  %12306 = vmatprep.subr.bf16.mxu1 %v18156_v13  ;;  %v2495_v9 = vmul.f32 %v25711_v42, %v26553_v8  ;;  %v18182_v13 = vcombine.high %v16961_v21, %v16965_v16  ;;  %v17057_v45 = vld [vmem:[%s23642_s10 + $0x620] sm:$0xff] }
0x1088   : > { %v18201_v8 = vcombine.low %v17053_v43, %v17057_v45 }
0x108a   : > { %12266 = vmatpush1.bf16.msra.mxu0 %v18153_v27  ;;  %12307 = vmatpush1.bf16.msra.mxu1 %v18155_v31  ;;  %v16974_v27 = vld [vmem:[%s23642_s10 + $0x4e8] sm:$0xff]  ;;  %v18181_v31 = vcombine.low %v16961_v21, %v16965_v16  ;;  %v18202_v21 = vcombine.high %v17053_v43, %v17057_v45  ;;  %v17079_v45 = vld [vmem:[%s23642_s10 + $0x6d0] sm:$0xff] }
0x108b   : > { %12341 = vmatprep.subr.bf16.mxu0 %v18134_v39  ;;  %12382 = vmatprep.subr.bf16.mxu1 %v18136_v40  ;;  %v2496_v39 = vadd.f32 %v25717_v48, %v2495_v9  ;;  %v18190_v40 = vcombine.high %v16969_v18, %v16973_v22  ;;  %v18192_v44 = vcombine.high %v16970_v26, %v16974_v27 }
0x108d   : > { %18161 = vmatmul.mubr.msk.bf16.vlgmr.msra.gmra.mrb[8].mxu0 %vm489_vm1, %v1607_v6  ;;  %18162 = vmatmul.mubr.msk.bf16.vlgmr.msra.gmra.mrb[8].mxu1 %vm489_vm1, %v1607_v6 }
0x108e   : > { %12342 = vmatpush1.bf16.msra.mxu0 %v18133_v60  ;;  %12383 = vmatpush1.bf16.msra.mxu1 %v18135_v5  ;;  %v16952_v60 = vld [vmem:[%s23642_s10 + $0x438] sm:$0xff]  ;;  %v18189_v5 = vcombine.low %v16969_v18, %v16973_v22  ;;  %v17069_v18 = vld [vmem:[%s23642_s10 + $0x680] sm:$0xff] }
0x108f   : > { %12343 = vmatprep.subr.bf16.mxu0 %v18142_v7  ;;  %12384 = vmatprep.subr.bf16.mxu1 %v18144_v14  ;;  %v2497_v7 = vmax.f32 %v2496_v39, 0.0  ;;  %v18170_v14 = vcombine.high %v16947_v54, %v16951_v55  ;;  %v18172_v24 = vcombine.high %v16948_v56, %v16952_v60  ;;  %v17073_v22 = vld [vmem:[%s23642_s10 + $0x6a0] sm:$0xff] }
0x1090   : > { %12373 = vmatprep.mubr.bf16.mxu0 %v26531_v41  ;;  %12414 = vmatprep.mubr.bf16.mxu1 %v26531_v41  ;;  %v26554_v39 = vld [vmem:[#allocation5_spill] sm:$0xff] }
0x1092   : > { %12344 = vmatpush1.bf16.msra.mxu0 %v18141_v46  ;;  %12385 = vmatpush1.bf16.msra.mxu1 %v18143_v49  ;;  %v16960_v46 = vld [vmem:[%s23642_s10 + $0x478] sm:$0xff]  ;;  %v18169_v49 = vcombine.low %v16947_v54, %v16951_v55  ;;  %v17077_v55 = vld [vmem:[%s23642_s10 + $0x6c0] sm:$0xff] }
0x1093   : > { %12345 = vmatprep.subr.bf16.mxu0 %v18150_v50  ;;  %12386 = vmatprep.subr.bf16.mxu1 %v18152_v53  ;;  %v18171_v50 = vcombine.low %v16948_v56, %v16952_v60  ;;  %v2498_v53 = vpack.c.bf16 %v2497_v7, %v2497_v7  ;;  %v18180_v63 = vcombine.high %v16956_v34, %v16960_v46  ;;  %v17081_v56 = vld [vmem:[%s23642_s10 + $0x6e0] sm:$0xff]  ;;  %v17078_v60 = vld [vmem:[%s23642_s10 + $0x6c8] sm:$0xff] }
0x1096   : > { %12346 = vmatpush1.bf16.msra.mxu0 %v18149_v30  ;;  %12387 = vmatpush1.bf16.msra.mxu1 %v18151_v37  ;;  %v16964_v30 = vld [vmem:[%s23642_s10 + $0x498] sm:$0xff] }
0x1097   : > { %12347 = vmatprep.subr.bf16.mxu0 %v18158_v25  ;;  %12388 = vmatprep.subr.bf16.mxu1 %v18160_v59  ;;  %v16968_v37 = vld [vmem:[%s23642_s10 + $0x4b8] sm:$0xff]  ;;  %v18177_v25 = vcombine.low %v16955_v28, %v16959_v29  ;;  %v18179_v59 = vcombine.low %v16956_v34, %v16960_v46  ;;  %v17055_v29 = vld [vmem:[%s23642_s10 + $0x610] sm:$0xff] }
0x1098   : > { %v18188_v62 = vcombine.high %v16964_v30, %v16968_v37  ;;  %v17059_v34 = vld [vmem:[%s23642_s10 + $0x630] sm:$0xff]  ;;  %v17056_v46 = vld [vmem:[%s23642_s10 + $0x618] sm:$0xff] }
0x109a   : > { %12348 = vmatpush1.bf16.msra.mxu0 %v18157_v57  ;;  %12389 = vmatpush1.bf16.msra.mxu1 %v18159_v12  ;;  %v16972_v57 = vld [vmem:[%s23642_s10 + $0x4d8] sm:$0xff] }
0x109b   : > { %12586 = vmatprep.subr.bf16.mxu0 %v18166_v2  ;;  %12627 = vmatprep.subr.bf16.mxu1 %v18168_v0  ;;  %v16976_v12 = vld [vmem:[%s23642_s10 + $0x4f8] sm:$0xff]  ;;  %v18185_v2 = vcombine.low %v16963_v10, %v16967_v19  ;;  %v18187_v0 = vcombine.low %v16964_v30, %v16968_v37  ;;  %v17063_v10 = vld [vmem:[%s23642_s10 + $0x650] sm:$0xff] }
0x109c   : > { %v18196_v15 = vcombine.high %v16972_v57, %v16976_v12  ;;  %v17067_v19 = vld [vmem:[%s23642_s10 + $0x670] sm:$0xff]  ;;  %v17064_v30 = vld [vmem:[%s23642_s10 + $0x658] sm:$0xff] }
0x109d   : > { %18163 = vmatmul.mubr.msk.bf16.vlgmr.msra.gmra.mrb[12].mxu0 %vm489_vm1, %v1607_v6  ;;  %18164 = vmatmul.mubr.msk.bf16.vlgmr.msra.gmra.mrb[12].mxu1 %vm489_vm1, %v1607_v6  ;;  %v18191_v6 = vcombine.low %v16970_v26, %v16974_v27  ;;  %v17070_v26 = vld [vmem:[%s23642_s10 + $0x688] sm:$0xff]  ;;  %v17068_v37 = vld [vmem:[%s23642_s10 + $0x678] sm:$0xff] }
0x109e   : > { %12587 = vmatpush1.bf16.msra.mxu0 %v18165_v32  ;;  %12628 = vmatpush1.bf16.msra.mxu1 %v18167_v11  ;;  %v17054_v32 = vld [vmem:[%s23642_s10 + $0x608] sm:$0xff] }
0x109f   : > { %12588 = vmatprep.subr.bf16.mxu0 %v18174_v23  ;;  %12629 = vmatprep.subr.bf16.mxu1 %v18176_v58  ;;  %v17058_v11 = vld [vmem:[%s23642_s10 + $0x628] sm:$0xff]  ;;  %v18193_v23 = vcombine.low %v16971_v36, %v16975_v33  ;;  %v18195_v58 = vcombine.low %v16972_v57, %v16976_v12  ;;  %v18216_v36 = vcombine.high %v17064_v30, %v17068_v37  ;;  %v17071_v33 = vld [vmem:[%s23642_s10 + $0x690] sm:$0xff]  ;;  %v17072_v12 = vld [vmem:[%s23642_s10 + $0x698] sm:$0xff] }
0x10a0   : > { %12618 = vmatprep.mubr.bf16.mxu0 %v26531_v41  ;;  %12659 = vmatprep.mubr.bf16.mxu1 %v26531_v41  ;;  %v18204_v16 = vcombine.high %v17054_v32, %v17058_v11  ;;  %v18203_v9 = vcombine.low %v17054_v32, %v17058_v11  ;;  %v17074_v27 = vld [vmem:[%s23642_s10 + $0x6a8] sm:$0xff]  ;;  %v17075_v57 = vld [vmem:[%s23642_s10 + $0x6b0] sm:$0xff]  ;;  %v17080_v11 = vld [vmem:[%s23642_s10 + $0x6d8] sm:$0xff] }
0x10a1   : > { %v18220_v54 = vcombine.high %v17070_v26, %v17074_v27  ;;  %v18219_v7 = vcombine.low %v17070_v26, %v17074_v27  ;;  %v17083_v32 = vld [vmem:[%s23642_s10 + $0x6f0] sm:$0xff]  ;;  %v17173_v26 = vld [vmem:[%s23642_s10 + $0x860] sm:$0xff]  ;;  %v17170_v27 = vld [vmem:[%s23642_s10 + $0x848] sm:$0xff] }
0x10a2   : > { %12589 = vmatpush1.bf16.msra.mxu0 %v18173_v47  ;;  %12630 = vmatpush1.bf16.msra.mxu1 %v18175_v4  ;;  %v17062_v47 = vld [vmem:[%s23642_s10 + $0x648] sm:$0xff] }
0x10a3   : > { %12590 = vmatprep.subr.bf16.mxu0 %v18182_v13  ;;  %12631 = vmatprep.subr.bf16.mxu1 %v18184_v17  ;;  %v17066_v4 = vld [vmem:[%s23642_s10 + $0x668] sm:$0xff]  ;;  %v18210_v13 = vcombine.high %v17061_v38, %v17065_v3 }
0x10a4   : > { %v18212_v17 = vcombine.high %v17062_v47, %v17066_v4 }
0x10a6   : > { %12591 = vmatpush1.bf16.msra.mxu0 %v18181_v31  ;;  %12632 = vmatpush1.bf16.msra.mxu1 %v18183_v35  ;;  %v18209_v31 = vcombine.low %v17061_v38, %v17065_v3  ;;  %v18211_v35 = vcombine.low %v17062_v47, %v17066_v4  ;;  %v17161_v3 = vld [vmem:[%s23642_s10 + $0x800] sm:$0xff]  ;;  %v17162_v4 = vld [vmem:[%s23642_s10 + $0x808] sm:$0xff] }
0x10a7   : > { %12592 = vmatprep.subr.bf16.mxu0 %v18190_v40  ;;  %12633 = vmatprep.subr.bf16.mxu1 %v18192_v44  ;;  %v3386_v40 = vmul.f32 %v25711_v42, %v26554_v39  ;;  %v18218_v44 = vcombine.high %v17069_v18, %v17073_v22  ;;  %v17165_v47 = vld [vmem:[%s23642_s10 + $0x820] sm:$0xff] }
0x10aa   : > { %12593 = vmatpush1.bf16.msra.mxu0 %v18189_v5  ;;  %12634 = vmatpush1.bf16.msra.mxu1 %v18191_v6  ;;  %v17082_v5 = vld [vmem:[%s23642_s10 + $0x6e8] sm:$0xff]  ;;  %v18217_v6 = vcombine.low %v17069_v18, %v17073_v22  ;;  %v17169_v22 = vld [vmem:[%s23642_s10 + $0x840] sm:$0xff] }
0x10ab   : > { %12668 = vmatprep.subr.bf16.mxu0 %v18170_v14  ;;  %12709 = vmatprep.subr.bf16.mxu1 %v18172_v24  ;;  %v3387_v14 = vadd.f32 %v25717_v48, %v3386_v40  ;;  %v18226_v24 = vcombine.high %v17077_v55, %v17081_v56  ;;  %v18228_v28 = vcombine.high %v17078_v60, %v17082_v5 }
0x10ac   : > { %v18206_v48 = vcombine.high %v17055_v29, %v17059_v34  ;;  %v18246_v40 = vcombine.high %v17169_v22, %v17173_v26 }
0x10ad   : > { %18197 = vmatmul.mubr.msk.bf16.vlgmr.msra.gmra.mrb[8].mxu0 %vm489_vm1, %v2498_v53  ;;  %18198 = vmatmul.mubr.msk.bf16.vlgmr.msra.gmra.mrb[8].mxu1 %vm489_vm1, %v2498_v53 }
0x10ae   : > { %12669 = vmatpush1.bf16.msra.mxu0 %v18169_v49  ;;  %12710 = vmatpush1.bf16.msra.mxu1 %v18171_v50  ;;  %v17060_v49 = vld [vmem:[%s23642_s10 + $0x638] sm:$0xff]  ;;  %v18225_v50 = vcombine.low %v17077_v55, %v17081_v56  ;;  %v17181_v55 = vld [vmem:[%s23642_s10 + $0x8a0] sm:$0xff]  ;;  %v17178_v56 = vld [vmem:[%s23642_s10 + $0x888] sm:$0xff] }
0x10af   : > { %12670 = vmatprep.subr.bf16.mxu0 %v18178_v61  ;;  %12711 = vmatprep.subr.bf16.mxu1 %v18180_v63  ;;  %v3388_v61 = vmax.f32 %v3387_v14, 0.0  ;;  %v18208_v63 = vcombine.high %v17056_v46, %v17060_v49 }
0x10b0   : > { %12700 = vmatprep.mubr.bf16.mxu0 %v26531_v41  ;;  %12741 = vmatprep.mubr.bf16.mxu1 %v26531_v41 }
0x10b2   : > { %12671 = vmatpush1.bf16.msra.mxu0 %v18177_v25  ;;  %12712 = vmatpush1.bf16.msra.mxu1 %v18179_v59  ;;  %v18205_v25 = vcombine.low %v17055_v29, %v17059_v34  ;;  %v18207_v59 = vcombine.low %v17056_v46, %v17060_v49  ;;  %v17185_v29 = vld [vmem:[%s23642_s10 + $0x8c0] sm:$0xff]  ;;  %v17186_v46 = vld [vmem:[%s23642_s10 + $0x8c8] sm:$0xff] }
0x10b3   : > { %12672 = vmatprep.subr.bf16.mxu0 %v18186_v1  ;;  %12713 = vmatprep.subr.bf16.mxu1 %v18188_v62  ;;  %v3389_v1 = vpack.c.bf16 %v3388_v61, %v3388_v61  ;;  %v18214_v62 = vcombine.high %v17063_v10, %v17067_v19  ;;  %v17189_v34 = vld [vmem:[%s23642_s10 + $0x8e0] sm:$0xff]  ;;  %v17190_v49 = vld [vmem:[%s23642_s10 + $0x8e8] sm:$0xff] }
0x10b6   : > { %12673 = vmatpush1.bf16.msra.mxu0 %v18185_v2  ;;  %12714 = vmatpush1.bf16.msra.mxu1 %v18187_v0  ;;  %v17076_v2 = vld [vmem:[%s23642_s10 + $0x6b8] sm:$0xff]  ;;  %v18213_v0 = vcombine.low %v17063_v10, %v17067_v19  ;;  %v17163_v10 = vld [vmem:[%s23642_s10 + $0x810] sm:$0xff] }
0x10b7   : > { %12674 = vmatprep.subr.bf16.mxu0 %v18194_v51  ;;  %12715 = vmatprep.subr.bf16.mxu1 %v18196_v15  ;;  %v18215_v51 = vcombine.low %v17064_v30, %v17068_v37  ;;  %v18222_v15 = vcombine.high %v17071_v33, %v17075_v57  ;;  %v18224_v43 = vcombine.high %v17072_v12, %v17076_v2  ;;  %v17167_v19 = vld [vmem:[%s23642_s10 + $0x830] sm:$0xff]  ;;  %v17164_v30 = vld [vmem:[%s23642_s10 + $0x818] sm:$0xff] }
0x10b8   : > { %v17168_v37 = vld [vmem:[%s23642_s10 + $0x838] sm:$0xff] }
0x10ba   : > { %12675 = vmatpush1.bf16.msra.mxu0 %v18193_v23  ;;  %12716 = vmatpush1.bf16.msra.mxu1 %v18195_v58  ;;  %v17084_v23 = vld [vmem:[%s23642_s10 + $0x6f8] sm:$0xff]  ;;  %v18221_v58 = vcombine.low %v17071_v33, %v17075_v57  ;;  %v17171_v33 = vld [vmem:[%s23642_s10 + $0x850] sm:$0xff] }
0x10bb   : > { %12913 = vmatprep.subr.bf16.mxu0 %v18202_v21  ;;  %12954 = vmatprep.subr.bf16.mxu1 %v18204_v16  ;;  %v18223_v21 = vcombine.low %v17072_v12, %v17076_v2  ;;  %v18230_v16 = vcombine.high %v17079_v45, %v17083_v32  ;;  %v18232_v38 = vcombine.high %v17080_v11, %v17084_v23  ;;  %v17175_v57 = vld [vmem:[%s23642_s10 + $0x870] sm:$0xff]  ;;  %v17172_v12 = vld [vmem:[%s23642_s10 + $0x858] sm:$0xff] }
0x10bc   : > { %v17176_v2 = vld [vmem:[%s23642_s10 + $0x878] sm:$0xff] }
0x10bd   : > { %18199 = vmatmul.mubr.msk.bf16.vlgmr.msra.gmra.mrb[12].mxu0 %vm489_vm1, %v2498_v53  ;;  %18200 = vmatmul.mubr.msk.bf16.vlgmr.msra.gmra.mrb[12].mxu1 %vm489_vm1, %v2498_v53  ;;  %v18227_v53 = vcombine.low %v17078_v60, %v17082_v5  ;;  %v17182_v60 = vld [vmem:[%s23642_s10 + $0x8a8] sm:$0xff]  ;;  %v18245_v5 = vcombine.low %v17169_v22, %v17173_v26  ;;  %v17269_v26 = vld [vmem:[%s23642_s10 + $0xa00] sm:$0xff] }
0x10be   : > { %12914 = vmatpush1.bf16.msra.mxu0 %v18201_v8  ;;  %12955 = vmatpush1.bf16.msra.mxu1 %v18203_v9  ;;  %v17166_v8 = vld [vmem:[%s23642_s10 + $0x828] sm:$0xff]  ;;  %v18229_v9 = vcombine.low %v17079_v45, %v17083_v32  ;;  %v18252_v45 = vcombine.high %v17172_v12, %v17176_v2  ;;  %v17179_v32 = vld [vmem:[%s23642_s10 + $0x890] sm:$0xff] }
0x10bf   : > { %12915 = vmatprep.subr.bf16.mxu0 %v18210_v13  ;;  %12956 = vmatprep.subr.bf16.mxu1 %v18212_v17  ;;  %v18231_v13 = vcombine.low %v17080_v11, %v17084_v23  ;;  %v18238_v17 = vcombine.high %v17161_v3, %v17165_v47  ;;  %v18240_v18 = vcombine.high %v17162_v4, %v17166_v8  ;;  %v17183_v11 = vld [vmem:[%s23642_s10 + $0x8b0] sm:$0xff]  ;;  %v17180_v23 = vld [vmem:[%s23642_s10 + $0x898] sm:$0xff] }
0x10c0   : > { %12945 = vmatprep.mubr.bf16.mxu0 %v26531_v41  ;;  %12986 = vmatprep.mubr.bf16.mxu1 %v26531_v41  ;;  %v18239_v39 = vcombine.low %v17162_v4, %v17166_v8  ;;  %v17191_v4 = vld [vmem:[%s23642_s10 + $0x8f0] sm:$0xff]  ;;  %v17188_v8 = vld [vmem:[%s23642_s10 + $0x8d8] sm:$0xff] }
0x10c2   : > { %12916 = vmatpush1.bf16.msra.mxu0 %v18209_v31  ;;  %12957 = vmatpush1.bf16.msra.mxu1 %v18211_v35  ;;  %v17174_v31 = vld [vmem:[%s23642_s10 + $0x868] sm:$0xff]  ;;  %v18237_v35 = vcombine.low %v17161_v3, %v17165_v47  ;;  %v17187_v47 = vld [vmem:[%s23642_s10 + $0x8d0] sm:$0xff] }
0x10c3   : > { %12917 = vmatprep.subr.bf16.mxu0 %v18218_v44  ;;  %12958 = vmatprep.subr.bf16.mxu1 %v18220_v54  ;;  %v18248_v44 = vcombine.high %v17170_v27, %v17174_v31  ;;  %v17177_v54 = vld [vmem:[%s23642_s10 + $0x880] sm:$0xff] }
0x10c6   : > { %12918 = vmatpush1.bf16.msra.mxu0 %v18217_v6  ;;  %12959 = vmatpush1.bf16.msra.mxu1 %v18219_v7  ;;  %v18247_v6 = vcombine.low %v17170_v27, %v17174_v31  ;;  %v26555_v7 = vld [vmem:[#allocation9_spill] sm:$0xff]  ;;  %v17270_v31 = vld [vmem:[%s23642_s10 + $0xa08] sm:$0xff] }
0x10c7   : > { %12919 = vmatprep.subr.bf16.mxu0 %v18226_v24  ;;  %12960 = vmatprep.subr.bf16.mxu1 %v18228_v28  ;;  %v4277_v14 = vmul.f32 %v25711_v42, %v26555_v7  ;;  %v18254_v24 = vcombine.high %v17177_v54, %v17181_v55  ;;  %v18256_v28 = vcombine.high %v17178_v56, %v17182_v60  ;;  %v17273_v27 = vld [vmem:[%s23642_s10 + $0xa20] sm:$0xff] }
0x10c8   : > { %v18255_v42 = vcombine.low %v17178_v56, %v17182_v60  ;;  %v17281_v56 = vld [vmem:[%s23642_s10 + $0xa60] sm:$0xff]  ;;  %v17278_v60 = vld [vmem:[%s23642_s10 + $0xa48] sm:$0xff] }
0x10ca   : > { %12920 = vmatpush1.bf16.msra.mxu0 %v18225_v50  ;;  %12961 = vmatpush1.bf16.msra.mxu1 %v18227_v53  ;;  %v18253_v50 = vcombine.low %v17177_v54, %v17181_v55  ;;  %v25933_v53 = vld [vmem:[%s26505_s3] ss:$0 sm:$0xff] }
0x10cb   : > { %12995 = vmatprep.subr.bf16.mxu0 %v18206_v48  ;;  %13036 = vmatprep.subr.bf16.mxu1 %v18208_v63  ;;  %v4278_v61 = vadd.f32 %v25933_v53, %v4277_v14  ;;  %v18262_v48 = vcombine.high %v17185_v29, %v17189_v34  ;;  %v18264_v63 = vcombine.high %v17186_v46, %v17190_v49  ;;  %v17277_v55 = vld [vmem:[%s23642_s10 + $0xa40] sm:$0xff] }
0x10cc   : > { %v18282_v14 = vcombine.high %v17277_v55, %v17281_v56 }
0x10cd   : > { %18233 = vmatmul.mubr.msk.bf16.vlgmr.msra.gmra.mrb[8].mxu0 %vm489_vm1, %v3389_v1  ;;  %18234 = vmatmul.mubr.msk.bf16.vlgmr.msra.gmra.mrb[8].mxu1 %vm489_vm1, %v3389_v1 }
0x10ce   : > { %12996 = vmatpush1.bf16.msra.mxu0 %v18205_v25  ;;  %13037 = vmatpush1.bf16.msra.mxu1 %v18207_v59  ;;  %v18261_v25 = vcombine.low %v17185_v29, %v17189_v34  ;;  %v18263_v59 = vcombine.low %v17186_v46, %v17190_v49  ;;  %v17289_v29 = vld [vmem:[%s23642_s10 + $0xaa0] sm:$0xff]  ;;  %v17286_v34 = vld [vmem:[%s23642_s10 + $0xa88] sm:$0xff]  ;;  %v18281_v49 = vcombine.low %v17277_v55, %v17281_v56 }
0x10cf   : > { %12997 = vmatprep.subr.bf16.mxu0 %v18214_v62  ;;  %13038 = vmatprep.subr.bf16.mxu1 %v18216_v36  ;;  %v18242_v62 = vcombine.high %v17163_v10, %v17167_v19  ;;  %v18244_v36 = vcombine.high %v17164_v30, %v17168_v37  ;;  %v17290_v46 = vld [vmem:[%s23642_s10 + $0xaa8] sm:$0xff] }
0x10d0   : > { %13027 = vmatprep.mubr.bf16.mxu0 %v26531_v41  ;;  %13068 = vmatprep.mubr.bf16.mxu1 %v26531_v41 }
0x10d2   : > { %12998 = vmatpush1.bf16.msra.mxu0 %v18213_v0  ;;  %13039 = vmatpush1.bf16.msra.mxu1 %v18215_v51  ;;  %v18241_v0 = vcombine.low %v17163_v10, %v17167_v19  ;;  %v18243_v51 = vcombine.low %v17164_v30, %v17168_v37  ;;  %v18292_v10 = vcombine.high %v17286_v34, %v17290_v46  ;;  %v17293_v19 = vld [vmem:[%s23642_s10 + $0xac0] sm:$0xff]  ;;  %v17294_v37 = vld [vmem:[%s23642_s10 + $0xac8] sm:$0xff] }
0x10d3   : > { %12999 = vmatprep.subr.bf16.mxu0 %v18222_v15  ;;  %13040 = vmatprep.subr.bf16.mxu1 %v18224_v43  ;;  %v18250_v43 = vcombine.high %v17171_v33, %v17175_v57  ;;  %v17297_v30 = vld [vmem:[%s23642_s10 + $0xae0] sm:$0xff] }
0x10d6   : > { %13000 = vmatpush1.bf16.msra.mxu0 %v18221_v58  ;;  %13041 = vmatpush1.bf16.msra.mxu1 %v18223_v21  ;;  %v17184_v58 = vld [vmem:[%s23642_s10 + $0x8b8] sm:$0xff]  ;;  %v18249_v21 = vcombine.low %v17171_v33, %v17175_v57  ;;  %v17271_v57 = vld [vmem:[%s23642_s10 + $0xa10] sm:$0xff] }
0x10d7   : > { %13001 = vmatprep.subr.bf16.mxu0 %v18230_v16  ;;  %13042 = vmatprep.subr.bf16.mxu1 %v18232_v38  ;;  %v18251_v16 = vcombine.low %v17172_v12, %v17176_v2  ;;  %v18258_v38 = vcombine.high %v17179_v32, %v17183_v11  ;;  %v18260_v3 = vcombine.high %v17180_v23, %v17184_v58  ;;  %v17275_v12 = vld [vmem:[%s23642_s10 + $0xa30] sm:$0xff]  ;;  %v17272_v2 = vld [vmem:[%s23642_s10 + $0xa18] sm:$0xff] }
0x10da   : > { %13002 = vmatpush1.bf16.msra.mxu0 %v18229_v9  ;;  %13043 = vmatpush1.bf16.msra.mxu1 %v18231_v13  ;;  %v17192_v9 = vld [vmem:[%s23642_s10 + $0x8f8] sm:$0xff]  ;;  %v18257_v13 = vcombine.low %v17179_v32, %v17183_v11  ;;  %v17279_v11 = vld [vmem:[%s23642_s10 + $0xa50] sm:$0xff] }
0x10db   : > { %13240 = vmatprep.subr.bf16.mxu0 %v18238_v17  ;;  %13281 = vmatprep.subr.bf16.mxu1 %v18240_v18  ;;  %v18259_v17 = vcombine.low %v17180_v23, %v17184_v58  ;;  %v18266_v18 = vcombine.high %v17187_v47, %v17191_v4  ;;  %v18268_v22 = vcombine.high %v17188_v8, %v17192_v9  ;;  %v17283_v23 = vld [vmem:[%s23642_s10 + $0xa70] sm:$0xff]  ;;  %v17280_v58 = vld [vmem:[%s23642_s10 + $0xa58] sm:$0xff] }
0x10dd   : > { %18235 = vmatmul.mubr.msk.bf16.vlgmr.msra.gmra.mrb[12].mxu0 %vm489_vm1, %v3389_v1  ;;  %18236 = vmatmul.mubr.msk.bf16.vlgmr.msra.gmra.mrb[12].mxu1 %vm489_vm1, %v3389_v1  ;;  %v4279_v1 = vmax.f32 %v4278_v61, 0.0  ;;  %v26556_v61 = vld [vmem:[#allocation10_spill] sm:$0xff] }
0x10de   : > { %13241 = vmatpush1.bf16.msra.mxu0 %v18237_v35  ;;  %13282 = vmatpush1.bf16.msra.mxu1 %v18239_v39  ;;  %v17274_v35 = vld [vmem:[%s23642_s10 + $0xa28] sm:$0xff]  ;;  %v18265_v39 = vcombine.low %v17187_v47, %v17191_v4  ;;  %v18286_v47 = vcombine.high %v17279_v11, %v17283_v23 }
0x10df   : > { %13242 = vmatprep.subr.bf16.mxu0 %v18246_v40  ;;  %13283 = vmatprep.subr.bf16.mxu1 %v18248_v44  ;;  %v4280_v15 = vpack.c.bf16 %v4279_v1, %v4279_v1  ;;  %v18267_v40 = vcombine.low %v17188_v8, %v17192_v9  ;;  %v18274_v44 = vcombine.high %v17269_v26, %v17273_v27  ;;  %v17287_v8 = vld [vmem:[%s23642_s10 + $0xa90] sm:$0xff] }
0x10e0   : > { %13272 = vmatprep.mubr.bf16.mxu0 %v26531_v41  ;;  %13313 = vmatprep.mubr.bf16.mxu1 %v26531_v41  ;;  %v18276_v54 = vcombine.high %v17270_v31, %v17274_v35  ;;  %v18275_v7 = vcombine.low %v17270_v31, %v17274_v35  ;;  %v18291_v1 = vcombine.low %v17286_v34, %v17290_v46  ;;  %v17291_v9 = vld [vmem:[%s23642_s10 + $0xab0] sm:$0xff]  ;;  %v17385_v34 = vld [vmem:[%s23642_s10 + $0xc40] sm:$0xff] }
0x10e1   : > { %v17295_v31 = vld [vmem:[%s23642_s10 + $0xad0] sm:$0xff]  ;;  %v17389_v46 = vld [vmem:[%s23642_s10 + $0xc60] sm:$0xff] }
0x10e2   : > { %13243 = vmatpush1.bf16.msra.mxu0 %v18245_v5  ;;  %13284 = vmatpush1.bf16.msra.mxu1 %v18247_v6  ;;  %v17282_v5 = vld [vmem:[%s23642_s10 + $0xa68] sm:$0xff]  ;;  %v18273_v6 = vcombine.low %v17269_v26, %v17273_v27  ;;  %v18294_v26 = vcombine.high %v17287_v8, %v17291_v9  ;;  %v17299_v35 = vld [vmem:[%s23642_s10 + $0xaf0] sm:$0xff] }
0x10e3   : > { %13244 = vmatprep.subr.bf16.mxu0 %v18254_v24  ;;  %13285 = vmatprep.subr.bf16.mxu1 %v18256_v28  ;;  %v18284_v24 = vcombine.high %v17278_v60, %v17282_v5  ;;  %v17285_v28 = vld [vmem:[%s23642_s10 + $0xa80] sm:$0xff]  ;;  %v18302_v55 = vcombine.high %v17295_v31, %v17299_v35 }
0x10e6   : > { %13245 = vmatpush1.bf16.msra.mxu0 %v18253_v50  ;;  %13286 = vmatpush1.bf16.msra.mxu1 %v18255_v42  ;;  %v18283_v50 = vcombine.low %v17278_v60, %v17282_v5  ;;  %v25973_v42 = vld [vmem:[%s26504_s2] ss:$0 sm:$0xff] }
0x10e7   : > { %13246 = vmatprep.subr.bf16.mxu0 %v18262_v48  ;;  %13287 = vmatprep.subr.bf16.mxu1 %v18264_v63  ;;  %v5168_v48 = vmul.f32 %v25973_v42, %v26556_v61  ;;  %v18290_v63 = vcombine.high %v17285_v28, %v17289_v29  ;;  %v17377_v60 = vld [vmem:[%s23642_s10 + $0xc00] sm:$0xff] }
0x10e8   : > { %v17381_v5 = vld [vmem:[%s23642_s10 + $0xc20] sm:$0xff] }
0x10e9   : > { %v18309_v61 = vcombine.low %v17377_v60, %v17381_v5 }
0x10ea   : > { %13247 = vmatpush1.bf16.msra.mxu0 %v18261_v25  ;;  %13288 = vmatpush1.bf16.msra.mxu1 %v18263_v59  ;;  %v17298_v25 = vld [vmem:[%s23642_s10 + $0xae8] sm:$0xff]  ;;  %v18289_v59 = vcombine.low %v17285_v28, %v17289_v29  ;;  %v18310_v28 = vcombine.high %v17377_v60, %v17381_v5 }
0x10eb   : > { %13322 = vmatprep.subr.bf16.mxu0 %v18242_v62  ;;  %13363 = vmatprep.subr.bf16.mxu1 %v18244_v36  ;;  %v5169_v62 = vadd.f32 %v25933_v53, %v5168_v48  ;;  %v18298_v36 = vcombine.high %v17293_v19, %v17297_v30  ;;  %v18300_v33 = vcombine.high %v17294_v37, %v17298_v25 }
0x10ed   : > { %18269 = vmatmul.mubr.msk.bf16.vlgmr.msra.gmra.mrb[8].mxu0 %vm489_vm1, %v4280_v15  ;;  %18270 = vmatmul.mubr.msk.bf16.vlgmr.msra.gmra.mrb[8].mxu1 %vm489_vm1, %v4280_v15 }
0x10ee   : > { %13323 = vmatpush1.bf16.msra.mxu0 %v18241_v0  ;;  %13364 = vmatpush1.bf16.msra.mxu1 %v18243_v51  ;;  %v17276_v0 = vld [vmem:[%s23642_s10 + $0xa38] sm:$0xff]  ;;  %v18297_v51 = vcombine.low %v17293_v19, %v17297_v30  ;;  %v17393_v19 = vld [vmem:[%s23642_s10 + $0xc80] sm:$0xff] }
0x10ef   : > { %13324 = vmatprep.subr.bf16.mxu0 %v18250_v43  ;;  %13365 = vmatprep.subr.bf16.mxu1 %v18252_v45  ;;  %v5170_v43 = vmax.f32 %v5169_v62, 0.0  ;;  %v18278_v45 = vcombine.high %v17271_v57, %v17275_v12  ;;  %v18280_v32 = vcombine.high %v17272_v2, %v17276_v0  ;;  %v17397_v30 = vld [vmem:[%s23642_s10 + $0xca0] sm:$0xff]  ;;  %v26557_v62 = vld [vmem:[#allocation8_spill] sm:$0xff] }
0x10f0   : > { %13354 = vmatprep.mubr.bf16.mxu0 %v26531_v41  ;;  %13395 = vmatprep.mubr.bf16.mxu1 %v26531_v41 }
0x10f2   : > { %13325 = vmatpush1.bf16.msra.mxu0 %v18249_v21  ;;  %13366 = vmatpush1.bf16.msra.mxu1 %v18251_v16  ;;  %v17284_v21 = vld [vmem:[%s23642_s10 + $0xa78] sm:$0xff]  ;;  %v18277_v16 = vcombine.low %v17271_v57, %v17275_v12  ;;  %v17401_v12 = vld [vmem:[%s23642_s10 + $0xcc0] sm:$0xff] }
0x10f3   : > { %13326 = vmatprep.subr.bf16.mxu0 %v18258_v38  ;;  %13367 = vmatprep.subr.bf16.mxu1 %v18260_v3  ;;  %v18279_v38 = vcombine.low %v17272_v2, %v17276_v0  ;;  %v5171_v3 = vpack.c.bf16 %v5170_v43, %v5170_v43  ;;  %v18288_v4 = vcombine.high %v17280_v58, %v17284_v21  ;;  %v17405_v2 = vld [vmem:[%s23642_s10 + $0xce0] sm:$0xff]  ;;  %v17402_v0 = vld [vmem:[%s23642_s10 + $0xcc8] sm:$0xff] }
0x10f6   : > { %13327 = vmatpush1.bf16.msra.mxu0 %v18257_v13  ;;  %13368 = vmatpush1.bf16.msra.mxu1 %v18259_v17  ;;  %v17288_v13 = vld [vmem:[%s23642_s10 + $0xa98] sm:$0xff] }
0x10f7   : > { %13328 = vmatprep.subr.bf16.mxu0 %v18266_v18  ;;  %13369 = vmatprep.subr.bf16.mxu1 %v18268_v22  ;;  %v17292_v17 = vld [vmem:[%s23642_s10 + $0xab8] sm:$0xff]  ;;  %v18285_v18 = vcombine.low %v17279_v11, %v17283_v23  ;;  %v18287_v22 = vcombine.low %v17280_v58, %v17284_v21  ;;  %v17379_v23 = vld [vmem:[%s23642_s10 + $0xc10] sm:$0xff] }
0x10f8   : > { %v18296_v27 = vcombine.high %v17288_v13, %v17292_v17  ;;  %v17383_v58 = vld [vmem:[%s23642_s10 + $0xc30] sm:$0xff]  ;;  %v17380_v21 = vld [vmem:[%s23642_s10 + $0xc18] sm:$0xff] }
0x10fa   : > { %13329 = vmatpush1.bf16.msra.mxu0 %v18265_v39  ;;  %13370 = vmatpush1.bf16.msra.mxu1 %v18267_v40  ;;  %v17296_v39 = vld [vmem:[%s23642_s10 + $0xad8] sm:$0xff] }
0x10fb   : > { %13567 = vmatprep.subr.bf16.mxu0 %v18274_v44  ;;  %13608 = vmatprep.subr.bf16.mxu1 %v18276_v54  ;;  %v17300_v40 = vld [vmem:[%s23642_s10 + $0xaf8] sm:$0xff]  ;;  %v18293_v44 = vcombine.low %v17287_v8, %v17291_v9  ;;  %v18295_v54 = vcombine.low %v17288_v13, %v17292_v17  ;;  %v17387_v9 = vld [vmem:[%s23642_s10 + $0xc50] sm:$0xff] }
0x10fc   : > { %v18304_v56 = vcombine.high %v17296_v39, %v17300_v40  ;;  %v17391_v13 = vld [vmem:[%s23642_s10 + $0xc70] sm:$0xff]  ;;  %v17388_v17 = vld [vmem:[%s23642_s10 + $0xc58] sm:$0xff] }
0x10fd   : > { %18271 = vmatmul.mubr.msk.bf16.vlgmr.msra.gmra.mrb[12].mxu0 %vm489_vm1, %v4280_v15  ;;  %18272 = vmatmul.mubr.msk.bf16.vlgmr.msra.gmra.mrb[12].mxu1 %vm489_vm1, %v4280_v15  ;;  %v18299_v15 = vcombine.low %v17294_v37, %v17298_v25  ;;  %v17394_v37 = vld [vmem:[%s23642_s10 + $0xc88] sm:$0xff] }
0x10fe   : > { %13568 = vmatpush1.bf16.msra.mxu0 %v18273_v6  ;;  %13609 = vmatpush1.bf16.msra.mxu1 %v18275_v7  ;;  %v17378_v6 = vld [vmem:[%s23642_s10 + $0xc08] sm:$0xff] }
0x10ff   : > { %13569 = vmatprep.subr.bf16.mxu0 %v18282_v14  ;;  %13610 = vmatprep.subr.bf16.mxu1 %v18284_v24  ;;  %v17382_v7 = vld [vmem:[%s23642_s10 + $0xc28] sm:$0xff]  ;;  %v18301_v14 = vcombine.low %v17295_v31, %v17299_v35  ;;  %v18303_v24 = vcombine.low %v17296_v39, %v17300_v40  ;;  %v18322_v31 = vcombine.high %v17387_v9, %v17391_v13  ;;  %v17395_v39 = vld [vmem:[%s23642_s10 + $0xc90] sm:$0xff] }
0x1100   : > { %13599 = vmatprep.mubr.bf16.mxu0 %v26531_v41  ;;  %13640 = vmatprep.mubr.bf16.mxu1 %v26531_v41  ;;  %v18312_v29 = vcombine.high %v17378_v6, %v17382_v7  ;;  %v18311_v48 = vcombine.low %v17378_v6, %v17382_v7  ;;  %v17398_v25 = vld [vmem:[%s23642_s10 + $0xca8] sm:$0xff]  ;;  %v17399_v40 = vld [vmem:[%s23642_s10 + $0xcb0] sm:$0xff] }
0x1101   : > { %v18328_v57 = vcombine.high %v17394_v37, %v17398_v25  ;;  %v18327_v43 = vcombine.low %v17394_v37, %v17398_v25  ;;  %v18330_v60 = vcombine.high %v17395_v39, %v17399_v40  ;;  %v17403_v6 = vld [vmem:[%s23642_s10 + $0xcd0] sm:$0xff]  ;;  %v17493_v37 = vld [vmem:[%s23642_s10 + $0xe40] sm:$0xff] }
0x1102   : > { %13570 = vmatpush1.bf16.msra.mxu0 %v18281_v49  ;;  %13611 = vmatpush1.bf16.msra.mxu1 %v18283_v50  ;;  %v17386_v49 = vld [vmem:[%s23642_s10 + $0xc48] sm:$0xff]  ;;  %v17407_v7 = vld [vmem:[%s23642_s10 + $0xcf0] sm:$0xff]  ;;  %v17497_v25 = vld [vmem:[%s23642_s10 + $0xe60] sm:$0xff] }
0x1103   : > { %13571 = vmatprep.subr.bf16.mxu0 %v18290_v63  ;;  %13612 = vmatprep.subr.bf16.mxu1 %v18292_v10  ;;  %v17390_v50 = vld [vmem:[%s23642_s10 + $0xc68] sm:$0xff]  ;;  %v18318_v63 = vcombine.high %v17385_v34, %v17389_v46 }
0x1104   : > { %v18320_v10 = vcombine.high %v17386_v49, %v17390_v50 }
0x1106   : > { %13572 = vmatpush1.bf16.msra.mxu0 %v18289_v59  ;;  %13613 = vmatpush1.bf16.msra.mxu1 %v18291_v1  ;;  %v18317_v59 = vcombine.low %v17385_v34, %v17389_v46  ;;  %v18319_v1 = vcombine.low %v17386_v49, %v17390_v50  ;;  %v18338_v34 = vcombine.high %v17403_v6, %v17407_v7  ;;  %v17485_v49 = vld [vmem:[%s23642_s10 + $0xe00] sm:$0xff] }
0x1107   : > { %13573 = vmatprep.subr.bf16.mxu0 %v18298_v36  ;;  %13614 = vmatprep.subr.bf16.mxu1 %v18300_v33  ;;  %v6059_v36 = vmul.f32 %v25973_v42, %v26557_v62  ;;  %v18326_v33 = vcombine.high %v17393_v19, %v17397_v30  ;;  %v17489_v50 = vld [vmem:[%s23642_s10 + $0xe20] sm:$0xff] }
0x1108   : > { %v18345_v62 = vcombine.low %v17485_v49, %v17489_v50 }
0x110a   : > { %13574 = vmatpush1.bf16.msra.mxu0 %v18297_v51  ;;  %13615 = vmatpush1.bf16.msra.mxu1 %v18299_v15  ;;  %v17406_v51 = vld [vmem:[%s23642_s10 + $0xce8] sm:$0xff]  ;;  %v18325_v15 = vcombine.low %v17393_v19, %v17397_v30  ;;  %v18346_v19 = vcombine.high %v17485_v49, %v17489_v50 }
0x110b   : > { %13649 = vmatprep.subr.bf16.mxu0 %v18278_v45  ;;  %13690 = vmatprep.subr.bf16.mxu1 %v18280_v32  ;;  %v6060_v45 = vadd.f32 %v25933_v53, %v6059_v36  ;;  %v18334_v32 = vcombine.high %v17401_v12, %v17405_v2  ;;  %v18336_v11 = vcombine.high %v17402_v0, %v17406_v51 }
0x110d   : > { %18305 = vmatmul.mubr.msk.bf16.vlgmr.msra.gmra.mrb[8].mxu0 %vm489_vm1, %v5171_v3  ;;  %18306 = vmatmul.mubr.msk.bf16.vlgmr.msra.gmra.mrb[8].mxu1 %vm489_vm1, %v5171_v3 }
0x110e   : > { %13650 = vmatpush1.bf16.msra.mxu0 %v18277_v16  ;;  %13691 = vmatpush1.bf16.msra.mxu1 %v18279_v38  ;;  %v17384_v16 = vld [vmem:[%s23642_s10 + $0xc38] sm:$0xff]  ;;  %v18333_v38 = vcombine.low %v17401_v12, %v17405_v2  ;;  %v17501_v12 = vld [vmem:[%s23642_s10 + $0xe80] sm:$0xff] }
0x110f   : > { %13651 = vmatprep.subr.bf16.mxu0 %v18286_v47  ;;  %13692 = vmatprep.subr.bf16.mxu1 %v18288_v4  ;;  %v6061_v47 = vmax.f32 %v6060_v45, 0.0  ;;  %v18314_v4 = vcombine.high %v17379_v23, %v17383_v58  ;;  %v18316_v8 = vcombine.high %v17380_v21, %v17384_v16  ;;  %v17505_v2 = vld [vmem:[%s23642_s10 + $0xea0] sm:$0xff]  ;;  %v26558_v45 = vld [vmem:[#allocation12_spill] sm:$0xff] }
0x1110   : > { %13681 = vmatprep.mubr.bf16.mxu0 %v26531_v41  ;;  %13722 = vmatprep.mubr.bf16.mxu1 %v26531_v41 }
0x1112   : > { %13652 = vmatpush1.bf16.msra.mxu0 %v18285_v18  ;;  %13693 = vmatpush1.bf16.msra.mxu1 %v18287_v22  ;;  %v17392_v18 = vld [vmem:[%s23642_s10 + $0xc78] sm:$0xff]  ;;  %v18313_v22 = vcombine.low %v17379_v23, %v17383_v58  ;;  %v17509_v58 = vld [vmem:[%s23642_s10 + $0xec0] sm:$0xff] }
0x1113   : > { %13653 = vmatprep.subr.bf16.mxu0 %v18294_v26  ;;  %13694 = vmatprep.subr.bf16.mxu1 %v18296_v27  ;;  %v18315_v26 = vcombine.low %v17380_v21, %v17384_v16  ;;  %v6062_v27 = vpack.c.bf16 %v6061_v47, %v6061_v47  ;;  %v18324_v35 = vcombine.high %v17388_v17, %v17392_v18  ;;  %v17513_v21 = vld [vmem:[%s23642_s10 + $0xee0] sm:$0xff]  ;;  %v17510_v16 = vld [vmem:[%s23642_s10 + $0xec8] sm:$0xff] }
0x1116   : > { %13654 = vmatpush1.bf16.msra.mxu0 %v18293_v44  ;;  %13695 = vmatpush1.bf16.msra.mxu1 %v18295_v54  ;;  %v17396_v44 = vld [vmem:[%s23642_s10 + $0xc98] sm:$0xff] }
0x1117   : > { %13655 = vmatprep.subr.bf16.mxu0 %v18302_v55  ;;  %13696 = vmatprep.subr.bf16.mxu1 %v18304_v56  ;;  %v17400_v54 = vld [vmem:[%s23642_s10 + $0xcb8] sm:$0xff]  ;;  %v18321_v55 = vcombine.low %v17387_v9, %v17391_v13  ;;  %v18323_v56 = vcombine.low %v17388_v17, %v17392_v18  ;;  %v17487_v13 = vld [vmem:[%s23642_s10 + $0xe10] sm:$0xff] }
0x1118   : > { %v18332_v5 = vcombine.high %v17396_v44, %v17400_v54  ;;  %v17491_v17 = vld [vmem:[%s23642_s10 + $0xe30] sm:$0xff]  ;;  %v17488_v18 = vld [vmem:[%s23642_s10 + $0xe18] sm:$0xff] }
0x111a   : > { %13656 = vmatpush1.bf16.msra.mxu0 %v18301_v14  ;;  %13697 = vmatpush1.bf16.msra.mxu1 %v18303_v24  ;;  %v17404_v14 = vld [vmem:[%s23642_s10 + $0xcd8] sm:$0xff] }
0x111b   : > { %13894 = vmatprep.subr.bf16.mxu0 %v18310_v28  ;;  %13935 = vmatprep.subr.bf16.mxu1 %v18312_v29  ;;  %v17408_v24 = vld [vmem:[%s23642_s10 + $0xcf8] sm:$0xff]  ;;  %v18329_v28 = vcombine.low %v17395_v39, %v17399_v40  ;;  %v18331_v29 = vcombine.low %v17396_v44, %v17400_v54  ;;  %v17495_v40 = vld [vmem:[%s23642_s10 + $0xe50] sm:$0xff] }
0x111c   : > { %v18340_v46 = vcombine.high %v17404_v14, %v17408_v24  ;;  %v17499_v44 = vld [vmem:[%s23642_s10 + $0xe70] sm:$0xff]  ;;  %v17496_v54 = vld [vmem:[%s23642_s10 + $0xe58] sm:$0xff] }
0x111d   : > { %18307 = vmatmul.mubr.msk.bf16.vlgmr.msra.gmra.mrb[12].mxu0 %vm489_vm1, %v5171_v3  ;;  %18308 = vmatmul.mubr.msk.bf16.vlgmr.msra.gmra.mrb[12].mxu1 %vm489_vm1, %v5171_v3  ;;  %v18335_v3 = vcombine.low %v17402_v0, %v17406_v51  ;;  %v17502_v0 = vld [vmem:[%s23642_s10 + $0xe88] sm:$0xff] }
0x111e   : > { %13895 = vmatpush1.bf16.msra.mxu0 %v18309_v61  ;;  %13936 = vmatpush1.bf16.msra.mxu1 %v18311_v48  ;;  %v17486_v61 = vld [vmem:[%s23642_s10 + $0xe08] sm:$0xff] }
0x111f   : > { %13896 = vmatprep.subr.bf16.mxu0 %v18318_v63  ;;  %13937 = vmatprep.subr.bf16.mxu1 %v18320_v10  ;;  %v17490_v48 = vld [vmem:[%s23642_s10 + $0xe28] sm:$0xff]  ;;  %v18337_v63 = vcombine.low %v17403_v6, %v17407_v7  ;;  %v18339_v10 = vcombine.low %v17404_v14, %v17408_v24  ;;  %v18358_v6 = vcombine.high %v17495_v40, %v17499_v44  ;;  %v17503_v14 = vld [vmem:[%s23642_s10 + $0xe90] sm:$0xff] }
0x1120   : > { %13926 = vmatprep.mubr.bf16.mxu0 %v26531_v41  ;;  %13967 = vmatprep.mubr.bf16.mxu1 %v26531_v41  ;;  %v18348_v30 = vcombine.high %v17486_v61, %v17490_v48  ;;  %v18347_v36 = vcombine.low %v17486_v61, %v17490_v48  ;;  %v17506_v51 = vld [vmem:[%s23642_s10 + $0xea8] sm:$0xff]  ;;  %v17507_v24 = vld [vmem:[%s23642_s10 + $0xeb0] sm:$0xff] }
0x1121   : > { %v18364_v23 = vcombine.high %v17502_v0, %v17506_v51  ;;  %v18363_v47 = vcombine.low %v17502_v0, %v17506_v51  ;;  %v18366_v49 = vcombine.high %v17503_v14, %v17507_v24  ;;  %v17511_v61 = vld [vmem:[%s23642_s10 + $0xed0] sm:$0xff]  ;;  %v17601_v0 = vld [vmem:[%s23642_s10 + $0x1040] sm:$0xff] }
0x1122   : > { %13897 = vmatpush1.bf16.msra.mxu0 %v18317_v59  ;;  %13938 = vmatpush1.bf16.msra.mxu1 %v18319_v1  ;;  %v17494_v59 = vld [vmem:[%s23642_s10 + $0xe48] sm:$0xff]  ;;  %v17515_v48 = vld [vmem:[%s23642_s10 + $0xef0] sm:$0xff]  ;;  %v17605_v51 = vld [vmem:[%s23642_s10 + $0x1060] sm:$0xff] }
0x1123   : > { %13898 = vmatprep.subr.bf16.mxu0 %v18326_v33  ;;  %13939 = vmatprep.subr.bf16.mxu1 %v18328_v57  ;;  %v17498_v1 = vld [vmem:[%s23642_s10 + $0xe68] sm:$0xff]  ;;  %v18354_v33 = vcombine.high %v17493_v37, %v17497_v25 }
0x1124   : > { %v18356_v57 = vcombine.high %v17494_v59, %v17498_v1 }
0x1126   : > { %13899 = vmatpush1.bf16.msra.mxu0 %v18325_v15  ;;  %13940 = vmatpush1.bf16.msra.mxu1 %v18327_v43  ;;  %v18353_v15 = vcombine.low %v17493_v37, %v17497_v25  ;;  %v18355_v43 = vcombine.low %v17494_v59, %v17498_v1  ;;  %v18374_v37 = vcombine.high %v17511_v61, %v17515_v48  ;;  %v17593_v59 = vld [vmem:[%s23642_s10 + $0x1000] sm:$0xff] }
0x1127   : > { %13900 = vmatprep.subr.bf16.mxu0 %v18334_v32  ;;  %13941 = vmatprep.subr.bf16.mxu1 %v18336_v11  ;;  %v6950_v32 = vmul.f32 %v25973_v42, %v26558_v45  ;;  %v18362_v11 = vcombine.high %v17501_v12, %v17505_v2  ;;  %v17597_v1 = vld [vmem:[%s23642_s10 + $0x1020] sm:$0xff] }
0x1128   : > { %v18381_v45 = vcombine.low %v17593_v59, %v17597_v1 }
0x112a   : > { %13901 = vmatpush1.bf16.msra.mxu0 %v18333_v38  ;;  %13942 = vmatpush1.bf16.msra.mxu1 %v18335_v3  ;;  %v17514_v38 = vld [vmem:[%s23642_s10 + $0xee8] sm:$0xff]  ;;  %v18361_v3 = vcombine.low %v17501_v12, %v17505_v2  ;;  %v18382_v12 = vcombine.high %v17593_v59, %v17597_v1  ;;  %v17619_v1 = vld [vmem:[%s23642_s10 + $0x10d0] sm:$0xff] }
0x112b   : > { %13976 = vmatprep.subr.bf16.mxu0 %v18314_v4  ;;  %14017 = vmatprep.subr.bf16.mxu1 %v18316_v8  ;;  %v6951_v4 = vadd.f32 %v25933_v53, %v6950_v32  ;;  %v18370_v8 = vcombine.high %v17509_v58, %v17513_v21  ;;  %v18372_v9 = vcombine.high %v17510_v16, %v17514_v38 }
0x112d   : > { %18341 = vmatmul.mubr.msk.bf16.vlgmr.msra.gmra.mrb[8].mxu0 %vm489_vm1, %v6062_v27  ;;  %18342 = vmatmul.mubr.msk.bf16.vlgmr.msra.gmra.mrb[8].mxu1 %vm489_vm1, %v6062_v27 }
0x112e   : > { %13977 = vmatpush1.bf16.msra.mxu0 %v18313_v22  ;;  %14018 = vmatpush1.bf16.msra.mxu1 %v18315_v26  ;;  %v17492_v22 = vld [vmem:[%s23642_s10 + $0xe38] sm:$0xff]  ;;  %v18369_v26 = vcombine.low %v17509_v58, %v17513_v21  ;;  %v17609_v58 = vld [vmem:[%s23642_s10 + $0x1080] sm:$0xff] }
0x112f   : > { %13978 = vmatprep.subr.bf16.mxu0 %v18322_v31  ;;  %14019 = vmatprep.subr.bf16.mxu1 %v18324_v35  ;;  %v6952_v31 = vmax.f32 %v6951_v4, 0.0  ;;  %v18350_v35 = vcombine.high %v17487_v13, %v17491_v17  ;;  %v18352_v39 = vcombine.high %v17488_v18, %v17492_v22  ;;  %v17613_v21 = vld [vmem:[%s23642_s10 + $0x10a0] sm:$0xff] }
0x1130   : > { %14008 = vmatprep.mubr.bf16.mxu0 %v26531_v41  ;;  %14049 = vmatprep.mubr.bf16.mxu1 %v26531_v41  ;;  %v26559_v4 = vld [vmem:[#allocation13_spill] sm:$0xff] }
0x1132   : > { %13979 = vmatpush1.bf16.msra.mxu0 %v18321_v55  ;;  %14020 = vmatpush1.bf16.msra.mxu1 %v18323_v56  ;;  %v17500_v55 = vld [vmem:[%s23642_s10 + $0xe78] sm:$0xff]  ;;  %v18349_v56 = vcombine.low %v17487_v13, %v17491_v17  ;;  %v17617_v17 = vld [vmem:[%s23642_s10 + $0x10c0] sm:$0xff] }
0x1133   : > { %13980 = vmatprep.subr.bf16.mxu0 %v18330_v60  ;;  %14021 = vmatprep.subr.bf16.mxu1 %v18332_v5  ;;  %v18351_v60 = vcombine.low %v17488_v18, %v17492_v22  ;;  %v6953_v5 = vpack.c.bf16 %v6952_v31, %v6952_v31  ;;  %v18360_v7 = vcombine.high %v17496_v54, %v17500_v55  ;;  %v17621_v18 = vld [vmem:[%s23642_s10 + $0x10e0] sm:$0xff]  ;;  %v17618_v22 = vld [vmem:[%s23642_s10 + $0x10c8] sm:$0xff] }
0x1136   : > { %13981 = vmatpush1.bf16.msra.mxu0 %v18329_v28  ;;  %14022 = vmatpush1.bf16.msra.mxu1 %v18331_v29  ;;  %v17504_v28 = vld [vmem:[%s23642_s10 + $0xe98] sm:$0xff] }
0x1137   : > { %13982 = vmatprep.subr.bf16.mxu0 %v18338_v34  ;;  %14023 = vmatprep.subr.bf16.mxu1 %v18340_v46  ;;  %v17508_v29 = vld [vmem:[%s23642_s10 + $0xeb8] sm:$0xff]  ;;  %v18357_v34 = vcombine.low %v17495_v40, %v17499_v44  ;;  %v18359_v46 = vcombine.low %v17496_v54, %v17500_v55  ;;  %v17595_v44 = vld [vmem:[%s23642_s10 + $0x1010] sm:$0xff] }
0x1138   : > { %v18368_v50 = vcombine.high %v17504_v28, %v17508_v29  ;;  %v17599_v54 = vld [vmem:[%s23642_s10 + $0x1030] sm:$0xff]  ;;  %v17596_v55 = vld [vmem:[%s23642_s10 + $0x1018] sm:$0xff] }
0x113a   : > { %13983 = vmatpush1.bf16.msra.mxu0 %v18337_v63  ;;  %14024 = vmatpush1.bf16.msra.mxu1 %v18339_v10  ;;  %v17512_v63 = vld [vmem:[%s23642_s10 + $0xed8] sm:$0xff] }
0x113b   : > { %14221 = vmatprep.subr.bf16.mxu0 %v18346_v19  ;;  %14262 = vmatprep.subr.bf16.mxu1 %v18348_v30  ;;  %v17516_v10 = vld [vmem:[%s23642_s10 + $0xef8] sm:$0xff]  ;;  %v18365_v19 = vcombine.low %v17503_v14, %v17507_v24  ;;  %v18367_v30 = vcombine.low %v17504_v28, %v17508_v29  ;;  %v17603_v14 = vld [vmem:[%s23642_s10 + $0x1050] sm:$0xff] }
0x113c   : > { %v18376_v25 = vcombine.high %v17512_v63, %v17516_v10  ;;  %v17607_v24 = vld [vmem:[%s23642_s10 + $0x1070] sm:$0xff]  ;;  %v17604_v28 = vld [vmem:[%s23642_s10 + $0x1058] sm:$0xff] }
0x113d   : > { %18343 = vmatmul.mubr.msk.bf16.vlgmr.msra.gmra.mrb[12].mxu0 %vm489_vm1, %v6062_v27  ;;  %18344 = vmatmul.mubr.msk.bf16.vlgmr.msra.gmra.mrb[12].mxu1 %vm489_vm1, %v6062_v27  ;;  %v18371_v27 = vcombine.low %v17510_v16, %v17514_v38  ;;  %v17610_v16 = vld [vmem:[%s23642_s10 + $0x1088] sm:$0xff]  ;;  %v17608_v29 = vld [vmem:[%s23642_s10 + $0x1078] sm:$0xff] }
0x113e   : > { %14222 = vmatpush1.bf16.msra.mxu0 %v18345_v62  ;;  %14263 = vmatpush1.bf16.msra.mxu1 %v18347_v36  ;;  %v17594_v62 = vld [vmem:[%s23642_s10 + $0x1008] sm:$0xff] }
0x113f   : > { %14223 = vmatprep.subr.bf16.mxu0 %v18354_v33  ;;  %14264 = vmatprep.subr.bf16.mxu1 %v18356_v57  ;;  %v17598_v36 = vld [vmem:[%s23642_s10 + $0x1028] sm:$0xff]  ;;  %v18373_v33 = vcombine.low %v17511_v61, %v17515_v48  ;;  %v18375_v57 = vcombine.low %v17512_v63, %v17516_v10  ;;  %v18396_v61 = vcombine.high %v17604_v28, %v17608_v29  ;;  %v17611_v48 = vld [vmem:[%s23642_s10 + $0x1090] sm:$0xff]  ;;  %v17612_v10 = vld [vmem:[%s23642_s10 + $0x1098] sm:$0xff] }
0x1140   : > { %14253 = vmatprep.mubr.bf16.mxu0 %v26531_v41  ;;  %14294 = vmatprep.mubr.bf16.mxu1 %v26531_v41  ;;  %v18384_v2 = vcombine.high %v17594_v62, %v17598_v36  ;;  %v18383_v32 = vcombine.low %v17594_v62, %v17598_v36  ;;  %v17614_v38 = vld [vmem:[%s23642_s10 + $0x10a8] sm:$0xff]  ;;  %v17615_v63 = vld [vmem:[%s23642_s10 + $0x10b0] sm:$0xff]  ;;  %v17620_v36 = vld [vmem:[%s23642_s10 + $0x10d8] sm:$0xff] }
0x1141   : > { %v18400_v13 = vcombine.high %v17610_v16, %v17614_v38  ;;  %v18399_v31 = vcombine.low %v17610_v16, %v17614_v38  ;;  %v17623_v62 = vld [vmem:[%s23642_s10 + $0x10f0] sm:$0xff]  ;;  %v17713_v16 = vld [vmem:[%s23642_s10 + $0x1260] sm:$0xff]  ;;  %v17710_v38 = vld [vmem:[%s23642_s10 + $0x1248] sm:$0xff] }
0x1142   : > { %14224 = vmatpush1.bf16.msra.mxu0 %v18353_v15  ;;  %14265 = vmatpush1.bf16.msra.mxu1 %v18355_v43  ;;  %v17602_v15 = vld [vmem:[%s23642_s10 + $0x1048] sm:$0xff] }
0x1143   : > { %14225 = vmatprep.subr.bf16.mxu0 %v18362_v11  ;;  %14266 = vmatprep.subr.bf16.mxu1 %v18364_v23  ;;  %v17606_v43 = vld [vmem:[%s23642_s10 + $0x1068] sm:$0xff]  ;;  %v18390_v11 = vcombine.high %v17601_v0, %v17605_v51 }
0x1144   : > { %v18392_v23 = vcombine.high %v17602_v15, %v17606_v43 }
0x1146   : > { %14226 = vmatpush1.bf16.msra.mxu0 %v18361_v3  ;;  %14267 = vmatpush1.bf16.msra.mxu1 %v18363_v47  ;;  %v18389_v3 = vcombine.low %v17601_v0, %v17605_v51  ;;  %v18391_v47 = vcombine.low %v17602_v15, %v17606_v43  ;;  %v17701_v51 = vld [vmem:[%s23642_s10 + $0x1200] sm:$0xff]  ;;  %v17702_v43 = vld [vmem:[%s23642_s10 + $0x1208] sm:$0xff] }
0x1147   : > { %14227 = vmatprep.subr.bf16.mxu0 %v18370_v8  ;;  %14268 = vmatprep.subr.bf16.mxu1 %v18372_v9  ;;  %v7841_v8 = vmul.f32 %v25973_v42, %v26559_v4  ;;  %v18398_v9 = vcombine.high %v17609_v58, %v17613_v21  ;;  %v17705_v15 = vld [vmem:[%s23642_s10 + $0x1220] sm:$0xff] }
0x114a   : > { %14228 = vmatpush1.bf16.msra.mxu0 %v18369_v26  ;;  %14269 = vmatpush1.bf16.msra.mxu1 %v18371_v27  ;;  %v17622_v26 = vld [vmem:[%s23642_s10 + $0x10e8] sm:$0xff]  ;;  %v18397_v27 = vcombine.low %v17609_v58, %v17613_v21  ;;  %v17709_v21 = vld [vmem:[%s23642_s10 + $0x1240] sm:$0xff] }
0x114b   : > { %14303 = vmatprep.subr.bf16.mxu0 %v18350_v35  ;;  %14344 = vmatprep.subr.bf16.mxu1 %v18352_v39  ;;  %v7842_v35 = vadd.f32 %v25933_v53, %v7841_v8  ;;  %v18406_v39 = vcombine.high %v17617_v17, %v17621_v18  ;;  %v18408_v40 = vcombine.high %v17618_v22, %v17622_v26 }
0x114c   : > { %v18386_v53 = vcombine.high %v17595_v44, %v17599_v54  ;;  %v18426_v8 = vcombine.high %v17709_v21, %v17713_v16 }
0x114d   : > { %18377 = vmatmul.mubr.msk.bf16.vlgmr.msra.gmra.mrb[8].mxu0 %vm489_vm1, %v6953_v5  ;;  %18378 = vmatmul.mubr.msk.bf16.vlgmr.msra.gmra.mrb[8].mxu1 %vm489_vm1, %v6953_v5 }
0x114e   : > { %14304 = vmatpush1.bf16.msra.mxu0 %v18349_v56  ;;  %14345 = vmatpush1.bf16.msra.mxu1 %v18351_v60  ;;  %v17600_v56 = vld [vmem:[%s23642_s10 + $0x1038] sm:$0xff]  ;;  %v18405_v60 = vcombine.low %v17617_v17, %v17621_v18  ;;  %v17721_v17 = vld [vmem:[%s23642_s10 + $0x12a0] sm:$0xff]  ;;  %v17718_v18 = vld [vmem:[%s23642_s10 + $0x1288] sm:$0xff] }
0x114f   : > { %14305 = vmatprep.subr.bf16.mxu0 %v18358_v6  ;;  %14346 = vmatprep.subr.bf16.mxu1 %v18360_v7  ;;  %v7843_v6 = vmax.f32 %v7842_v35, 0.0  ;;  %v18388_v7 = vcombine.high %v17596_v55, %v17600_v56 }
0x1150   : > { %14335 = vmatprep.mubr.bf16.mxu0 %v26531_v41  ;;  %14376 = vmatprep.mubr.bf16.mxu1 %v26531_v41 }
0x1152   : > { %14306 = vmatpush1.bf16.msra.mxu0 %v18357_v34  ;;  %14347 = vmatpush1.bf16.msra.mxu1 %v18359_v46  ;;  %v18385_v34 = vcombine.low %v17595_v44, %v17599_v54  ;;  %v18387_v46 = vcombine.low %v17596_v55, %v17600_v56  ;;  %v17725_v44 = vld [vmem:[%s23642_s10 + $0x12c0] sm:$0xff]  ;;  %v17726_v55 = vld [vmem:[%s23642_s10 + $0x12c8] sm:$0xff] }
0x1153   : > { %14307 = vmatprep.subr.bf16.mxu0 %v18366_v49  ;;  %14348 = vmatprep.subr.bf16.mxu1 %v18368_v50  ;;  %v7844_v49 = vpack.c.bf16 %v7843_v6, %v7843_v6  ;;  %v18394_v50 = vcombine.high %v17603_v14, %v17607_v24  ;;  %v17729_v54 = vld [vmem:[%s23642_s10 + $0x12e0] sm:$0xff]  ;;  %v17730_v56 = vld [vmem:[%s23642_s10 + $0x12e8] sm:$0xff] }
0x1156   : > { %14308 = vmatpush1.bf16.msra.mxu0 %v18365_v19  ;;  %14349 = vmatpush1.bf16.msra.mxu1 %v18367_v30  ;;  %v17616_v19 = vld [vmem:[%s23642_s10 + $0x10b8] sm:$0xff]  ;;  %v18393_v30 = vcombine.low %v17603_v14, %v17607_v24  ;;  %v17703_v14 = vld [vmem:[%s23642_s10 + $0x1210] sm:$0xff] }
0x1157   : > { %14309 = vmatprep.subr.bf16.mxu0 %v18374_v37  ;;  %14350 = vmatprep.subr.bf16.mxu1 %v18376_v25  ;;  %v18395_v37 = vcombine.low %v17604_v28, %v17608_v29  ;;  %v18402_v25 = vcombine.high %v17611_v48, %v17615_v63  ;;  %v18404_v59 = vcombine.high %v17612_v10, %v17616_v19  ;;  %v17707_v24 = vld [vmem:[%s23642_s10 + $0x1230] sm:$0xff]  ;;  %v17704_v28 = vld [vmem:[%s23642_s10 + $0x1218] sm:$0xff] }
0x1158   : > { %v17708_v29 = vld [vmem:[%s23642_s10 + $0x1238] sm:$0xff] }
0x115a   : > { %14310 = vmatpush1.bf16.msra.mxu0 %v18373_v33  ;;  %14351 = vmatpush1.bf16.msra.mxu1 %v18375_v57  ;;  %v17624_v33 = vld [vmem:[%s23642_s10 + $0x10f8] sm:$0xff]  ;;  %v18401_v57 = vcombine.low %v17611_v48, %v17615_v63  ;;  %v17711_v48 = vld [vmem:[%s23642_s10 + $0x1250] sm:$0xff] }
0x115b   : > { %14548 = vmatprep.subr.bf16.mxu0 %v18382_v12  ;;  %14589 = vmatprep.subr.bf16.mxu1 %v18384_v2  ;;  %v18403_v12 = vcombine.low %v17612_v10, %v17616_v19  ;;  %v18410_v2 = vcombine.high %v17619_v1, %v17623_v62  ;;  %v18412_v0 = vcombine.high %v17620_v36, %v17624_v33  ;;  %v17715_v63 = vld [vmem:[%s23642_s10 + $0x1270] sm:$0xff]  ;;  %v17712_v10 = vld [vmem:[%s23642_s10 + $0x1258] sm:$0xff] }
0x115c   : > { %v17716_v19 = vld [vmem:[%s23642_s10 + $0x1278] sm:$0xff] }
0x115d   : > { %18379 = vmatmul.mubr.msk.bf16.vlgmr.msra.gmra.mrb[12].mxu0 %vm489_vm1, %v6953_v5  ;;  %18380 = vmatmul.mubr.msk.bf16.vlgmr.msra.gmra.mrb[12].mxu1 %vm489_vm1, %v6953_v5  ;;  %v18407_v5 = vcombine.low %v17618_v22, %v17622_v26  ;;  %v17722_v22 = vld [vmem:[%s23642_s10 + $0x12a8] sm:$0xff]  ;;  %v18425_v26 = vcombine.low %v17709_v21, %v17713_v16  ;;  %v17809_v16 = vld [vmem:[%s23642_s10 + $0x1400] sm:$0xff] }
0x115e   : > { %14549 = vmatpush1.bf16.msra.mxu0 %v18381_v45  ;;  %14590 = vmatpush1.bf16.msra.mxu1 %v18383_v32  ;;  %v17706_v45 = vld [vmem:[%s23642_s10 + $0x1228] sm:$0xff]  ;;  %v18409_v32 = vcombine.low %v17619_v1, %v17623_v62  ;;  %v18432_v1 = vcombine.high %v17712_v10, %v17716_v19  ;;  %v17719_v62 = vld [vmem:[%s23642_s10 + $0x1290] sm:$0xff] }
0x115f   : > { %14550 = vmatprep.subr.bf16.mxu0 %v18390_v11  ;;  %14591 = vmatprep.subr.bf16.mxu1 %v18392_v23  ;;  %v18411_v11 = vcombine.low %v17620_v36, %v17624_v33  ;;  %v18418_v23 = vcombine.high %v17701_v51, %v17705_v15  ;;  %v18420_v58 = vcombine.high %v17702_v43, %v17706_v45  ;;  %v17723_v36 = vld [vmem:[%s23642_s10 + $0x12b0] sm:$0xff]  ;;  %v17720_v33 = vld [vmem:[%s23642_s10 + $0x1298] sm:$0xff] }
0x1160   : > { %14580 = vmatprep.mubr.bf16.mxu0 %v26531_v41  ;;  %14621 = vmatprep.mubr.bf16.mxu1 %v26531_v41  ;;  %v18419_v4 = vcombine.low %v17702_v43, %v17706_v45  ;;  %v17731_v43 = vld [vmem:[%s23642_s10 + $0x12f0] sm:$0xff]  ;;  %v17728_v45 = vld [vmem:[%s23642_s10 + $0x12d8] sm:$0xff] }
0x1162   : > { %14551 = vmatpush1.bf16.msra.mxu0 %v18389_v3  ;;  %14592 = vmatpush1.bf16.msra.mxu1 %v18391_v47  ;;  %v17714_v3 = vld [vmem:[%s23642_s10 + $0x1268] sm:$0xff]  ;;  %v18417_v47 = vcombine.low %v17701_v51, %v17705_v15  ;;  %v17727_v15 = vld [vmem:[%s23642_s10 + $0x12d0] sm:$0xff] }
0x1163   : > { %14552 = vmatprep.subr.bf16.mxu0 %v18398_v9  ;;  %14593 = vmatprep.subr.bf16.mxu1 %v18400_v13  ;;  %v18428_v9 = vcombine.high %v17710_v38, %v17714_v3  ;;  %v17717_v13 = vld [vmem:[%s23642_s10 + $0x1280] sm:$0xff] }
0x1166   : > { %14553 = vmatpush1.bf16.msra.mxu0 %v18397_v27  ;;  %14594 = vmatpush1.bf16.msra.mxu1 %v18399_v31  ;;  %v18427_v27 = vcombine.low %v17710_v38, %v17714_v3  ;;  %v26560_v31 = vld [vmem:[#allocation11_spill] sm:$0xff]  ;;  %v17813_v38 = vld [vmem:[%s23642_s10 + $0x1420] sm:$0xff]  ;;  %v17810_v3 = vld [vmem:[%s23642_s10 + $0x1408] sm:$0xff] }
0x1167   : > { %14554 = vmatprep.subr.bf16.mxu0 %v18406_v39  ;;  %14595 = vmatprep.subr.bf16.mxu1 %v18408_v40  ;;  %v8732_v35 = vmul.f32 %v25973_v42, %v26560_v31  ;;  %v18434_v39 = vcombine.high %v17717_v13, %v17721_v17  ;;  %v18436_v40 = vcombine.high %v17718_v18, %v17722_v22 }
0x1168   : > { %v18435_v42 = vcombine.low %v17718_v18, %v17722_v22  ;;  %v17821_v18 = vld [vmem:[%s23642_s10 + $0x1460] sm:$0xff]  ;;  %v17818_v22 = vld [vmem:[%s23642_s10 + $0x1448] sm:$0xff] }
0x116a   : > { %14555 = vmatpush1.bf16.msra.mxu0 %v18405_v60  ;;  %14596 = vmatpush1.bf16.msra.mxu1 %v18407_v5  ;;  %v18433_v60 = vcombine.low %v17717_v13, %v17721_v17  ;;  %v26158_v5 = vld [vmem:[%s26505_s3] ss:$0 sm:$0xff] }
0x116b   : > { %14630 = vmatprep.subr.bf16.mxu0 %v18386_v53  ;;  %14671 = vmatprep.subr.bf16.mxu1 %v18388_v7  ;;  %v8733_v6 = vadd.f32 %v26158_v5, %v8732_v35  ;;  %v18442_v53 = vcombine.high %v17725_v44, %v17729_v54  ;;  %v18444_v7 = vcombine.high %v17726_v55, %v17730_v56  ;;  %v17817_v17 = vld [vmem:[%s23642_s10 + $0x1440] sm:$0xff] }
0x116c   : > { %v18462_v35 = vcombine.high %v17817_v17, %v17821_v18 }
0x116d   : > { %18413 = vmatmul.mubr.msk.bf16.vlgmr.msra.gmra.mrb[8].mxu0 %vm489_vm1, %v7844_v49  ;;  %18414 = vmatmul.mubr.msk.bf16.vlgmr.msra.gmra.mrb[8].mxu1 %vm489_vm1, %v7844_v49 }
0x116e   : > { %14631 = vmatpush1.bf16.msra.mxu0 %v18385_v34  ;;  %14672 = vmatpush1.bf16.msra.mxu1 %v18387_v46  ;;  %v18441_v34 = vcombine.low %v17725_v44, %v17729_v54  ;;  %v18443_v46 = vcombine.low %v17726_v55, %v17730_v56  ;;  %v17829_v44 = vld [vmem:[%s23642_s10 + $0x14a0] sm:$0xff]  ;;  %v17826_v54 = vld [vmem:[%s23642_s10 + $0x1488] sm:$0xff]  ;;  %v18461_v56 = vcombine.low %v17817_v17, %v17821_v18 }
0x116f   : > { %14632 = vmatprep.subr.bf16.mxu0 %v18394_v50  ;;  %14673 = vmatprep.subr.bf16.mxu1 %v18396_v61  ;;  %v18422_v50 = vcombine.high %v17703_v14, %v17707_v24  ;;  %v18424_v61 = vcombine.high %v17704_v28, %v17708_v29  ;;  %v17830_v55 = vld [vmem:[%s23642_s10 + $0x14a8] sm:$0xff] }
0x1170   : > { %14662 = vmatprep.mubr.bf16.mxu0 %v26531_v41  ;;  %14703 = vmatprep.mubr.bf16.mxu1 %v26531_v41 }
0x1172   : > { %14633 = vmatpush1.bf16.msra.mxu0 %v18393_v30  ;;  %14674 = vmatpush1.bf16.msra.mxu1 %v18395_v37  ;;  %v18421_v30 = vcombine.low %v17703_v14, %v17707_v24  ;;  %v18423_v37 = vcombine.low %v17704_v28, %v17708_v29  ;;  %v18472_v14 = vcombine.high %v17826_v54, %v17830_v55  ;;  %v17833_v24 = vld [vmem:[%s23642_s10 + $0x14c0] sm:$0xff]  ;;  %v17834_v29 = vld [vmem:[%s23642_s10 + $0x14c8] sm:$0xff] }
0x1173   : > { %14634 = vmatprep.subr.bf16.mxu0 %v18402_v25  ;;  %14675 = vmatprep.subr.bf16.mxu1 %v18404_v59  ;;  %v18430_v59 = vcombine.high %v17711_v48, %v17715_v63  ;;  %v17837_v28 = vld [vmem:[%s23642_s10 + $0x14e0] sm:$0xff] }
0x1176   : > { %14635 = vmatpush1.bf16.msra.mxu0 %v18401_v57  ;;  %14676 = vmatpush1.bf16.msra.mxu1 %v18403_v12  ;;  %v17724_v57 = vld [vmem:[%s23642_s10 + $0x12b8] sm:$0xff]  ;;  %v18429_v12 = vcombine.low %v17711_v48, %v17715_v63  ;;  %v17811_v63 = vld [vmem:[%s23642_s10 + $0x1410] sm:$0xff] }
0x1177   : > { %14636 = vmatprep.subr.bf16.mxu0 %v18410_v2  ;;  %14677 = vmatprep.subr.bf16.mxu1 %v18412_v0  ;;  %v18431_v2 = vcombine.low %v17712_v10, %v17716_v19  ;;  %v18438_v0 = vcombine.high %v17719_v62, %v17723_v36  ;;  %v18440_v51 = vcombine.high %v17720_v33, %v17724_v57  ;;  %v17815_v10 = vld [vmem:[%s23642_s10 + $0x1430] sm:$0xff]  ;;  %v17812_v19 = vld [vmem:[%s23642_s10 + $0x1418] sm:$0xff] }
0x117a   : > { %14637 = vmatpush1.bf16.msra.mxu0 %v18409_v32  ;;  %14678 = vmatpush1.bf16.msra.mxu1 %v18411_v11  ;;  %v17732_v32 = vld [vmem:[%s23642_s10 + $0x12f8] sm:$0xff]  ;;  %v18437_v11 = vcombine.low %v17719_v62, %v17723_v36  ;;  %v17819_v36 = vld [vmem:[%s23642_s10 + $0x1450] sm:$0xff] }
0x117b   : > { %14875 = vmatprep.subr.bf16.mxu0 %v18418_v23  ;;  %14916 = vmatprep.subr.bf16.mxu1 %v18420_v58  ;;  %v18439_v23 = vcombine.low %v17720_v33, %v17724_v57  ;;  %v18446_v58 = vcombine.high %v17727_v15, %v17731_v43  ;;  %v18448_v21 = vcombine.high %v17728_v45, %v17732_v32  ;;  %v17823_v33 = vld [vmem:[%s23642_s10 + $0x1470] sm:$0xff]  ;;  %v17820_v57 = vld [vmem:[%s23642_s10 + $0x1458] sm:$0xff] }
0x117d   : > { %18415 = vmatmul.mubr.msk.bf16.vlgmr.msra.gmra.mrb[12].mxu0 %vm489_vm1, %v7844_v49  ;;  %18416 = vmatmul.mubr.msk.bf16.vlgmr.msra.gmra.mrb[12].mxu1 %vm489_vm1, %v7844_v49  ;;  %v8734_v49 = vmax.f32 %v8733_v6, 0.0  ;;  %v26561_v6 = vld [vmem:[#allocation15_spill] sm:$0xff] }
0x117e   : > { %14876 = vmatpush1.bf16.msra.mxu0 %v18417_v47  ;;  %14917 = vmatpush1.bf16.msra.mxu1 %v18419_v4  ;;  %v17814_v47 = vld [vmem:[%s23642_s10 + $0x1428] sm:$0xff]  ;;  %v18445_v4 = vcombine.low %v17727_v15, %v17731_v43  ;;  %v18466_v15 = vcombine.high %v17819_v36, %v17823_v33 }
0x117f   : > { %14877 = vmatprep.subr.bf16.mxu0 %v18426_v8  ;;  %14918 = vmatprep.subr.bf16.mxu1 %v18428_v9  ;;  %v8735_v25 = vpack.c.bf16 %v8734_v49, %v8734_v49  ;;  %v18447_v8 = vcombine.low %v17728_v45, %v17732_v32  ;;  %v18454_v9 = vcombine.high %v17809_v16, %v17813_v38  ;;  %v17827_v45 = vld [vmem:[%s23642_s10 + $0x1490] sm:$0xff] }
0x1180   : > { %14907 = vmatprep.mubr.bf16.mxu0 %v26531_v41  ;;  %14948 = vmatprep.mubr.bf16.mxu1 %v26531_v41  ;;  %v18456_v13 = vcombine.high %v17810_v3, %v17814_v47  ;;  %v18455_v31 = vcombine.low %v17810_v3, %v17814_v47  ;;  %v18471_v49 = vcombine.low %v17826_v54, %v17830_v55  ;;  %v17831_v32 = vld [vmem:[%s23642_s10 + $0x14b0] sm:$0xff]  ;;  %v17925_v54 = vld [vmem:[%s23642_s10 + $0x1640] sm:$0xff] }
0x1181   : > { %v17835_v3 = vld [vmem:[%s23642_s10 + $0x14d0] sm:$0xff]  ;;  %v17929_v55 = vld [vmem:[%s23642_s10 + $0x1660] sm:$0xff] }
0x1182   : > { %14878 = vmatpush1.bf16.msra.mxu0 %v18425_v26  ;;  %14919 = vmatpush1.bf16.msra.mxu1 %v18427_v27  ;;  %v17822_v26 = vld [vmem:[%s23642_s10 + $0x1468] sm:$0xff]  ;;  %v18453_v27 = vcombine.low %v17809_v16, %v17813_v38  ;;  %v18474_v16 = vcombine.high %v17827_v45, %v17831_v32  ;;  %v17839_v47 = vld [vmem:[%s23642_s10 + $0x14f0] sm:$0xff] }
0x1183   : > { %14879 = vmatprep.subr.bf16.mxu0 %v18434_v39  ;;  %14920 = vmatprep.subr.bf16.mxu1 %v18436_v40  ;;  %v18464_v39 = vcombine.high %v17818_v22, %v17822_v26  ;;  %v17825_v40 = vld [vmem:[%s23642_s10 + $0x1480] sm:$0xff]  ;;  %v18482_v17 = vcombine.high %v17835_v3, %v17839_v47 }
0x1186   : > { %14880 = vmatpush1.bf16.msra.mxu0 %v18433_v60  ;;  %14921 = vmatpush1.bf16.msra.mxu1 %v18435_v42  ;;  %v18463_v60 = vcombine.low %v17818_v22, %v17822_v26  ;;  %v26198_v42 = vld [vmem:[%s26504_s2] ss:$0 sm:$0xff] }
0x1187   : > { %14881 = vmatprep.subr.bf16.mxu0 %v18442_v53  ;;  %14922 = vmatprep.subr.bf16.mxu1 %v18444_v7  ;;  %v9623_v53 = vmul.f32 %v26198_v42, %v26561_v6  ;;  %v18470_v7 = vcombine.high %v17825_v40, %v17829_v44  ;;  %v17917_v22 = vld [vmem:[%s23642_s10 + $0x1600] sm:$0xff] }
0x1188   : > { %v17921_v26 = vld [vmem:[%s23642_s10 + $0x1620] sm:$0xff] }
0x1189   : > { %v18489_v6 = vcombine.low %v17917_v22, %v17921_v26 }
0x118a   : > { %14882 = vmatpush1.bf16.msra.mxu0 %v18441_v34  ;;  %14923 = vmatpush1.bf16.msra.mxu1 %v18443_v46  ;;  %v17838_v34 = vld [vmem:[%s23642_s10 + $0x14e8] sm:$0xff]  ;;  %v18469_v46 = vcombine.low %v17825_v40, %v17829_v44  ;;  %v18490_v40 = vcombine.high %v17917_v22, %v17921_v26  ;;  %v17944_v22 = vld [vmem:[%s23642_s10 + $0x16d8] sm:$0xff] }
0x118b   : > { %14957 = vmatprep.subr.bf16.mxu0 %v18422_v50  ;;  %14998 = vmatprep.subr.bf16.mxu1 %v18424_v61  ;;  %v9624_v50 = vadd.f32 %v26158_v5, %v9623_v53  ;;  %v18478_v61 = vcombine.high %v17833_v24, %v17837_v28  ;;  %v18480_v48 = vcombine.high %v17834_v29, %v17838_v34  ;;  %v17948_v26 = vld [vmem:[%s23642_s10 + $0x16f8] sm:$0xff] }
0x118d   : > { %18449 = vmatmul.mubr.msk.bf16.vlgmr.msra.gmra.mrb[8].mxu0 %vm489_vm1, %v8735_v25  ;;  %18450 = vmatmul.mubr.msk.bf16.vlgmr.msra.gmra.mrb[8].mxu1 %vm489_vm1, %v8735_v25 }
0x118e   : > { %14958 = vmatpush1.bf16.msra.mxu0 %v18421_v30  ;;  %14999 = vmatpush1.bf16.msra.mxu1 %v18423_v37  ;;  %v17816_v30 = vld [vmem:[%s23642_s10 + $0x1438] sm:$0xff]  ;;  %v18477_v37 = vcombine.low %v17833_v24, %v17837_v28  ;;  %v17933_v24 = vld [vmem:[%s23642_s10 + $0x1680] sm:$0xff] }
0x118f   : > { %14959 = vmatprep.subr.bf16.mxu0 %v18430_v59  ;;  %15000 = vmatprep.subr.bf16.mxu1 %v18432_v1  ;;  %v9625_v59 = vmax.f32 %v9624_v50, 0.0  ;;  %v18458_v1 = vcombine.high %v17811_v63, %v17815_v10  ;;  %v18460_v62 = vcombine.high %v17812_v19, %v17816_v30  ;;  %v17937_v28 = vld [vmem:[%s23642_s10 + $0x16a0] sm:$0xff]  ;;  %v10514_v50 = vmul.f32 %v26198_v42, %v25617_v52 }
0x1190   : > { %14989 = vmatprep.mubr.bf16.mxu0 %v26531_v41  ;;  %15030 = vmatprep.mubr.bf16.mxu1 %v26531_v41 }
0x1191   : > { %v10515_v42 = vadd.f32 %v26158_v5, %v10514_v50 }
0x1192   : > { %14960 = vmatpush1.bf16.msra.mxu0 %v18429_v12  ;;  %15001 = vmatpush1.bf16.msra.mxu1 %v18431_v2  ;;  %v17824_v12 = vld [vmem:[%s23642_s10 + $0x1478] sm:$0xff]  ;;  %v18457_v2 = vcombine.low %v17811_v63, %v17815_v10  ;;  %v17941_v63 = vld [vmem:[%s23642_s10 + $0x16c0] sm:$0xff] }
0x1193   : > { %14961 = vmatprep.subr.bf16.mxu0 %v18438_v0  ;;  %15002 = vmatprep.subr.bf16.mxu1 %v18440_v51  ;;  %v18459_v0 = vcombine.low %v17812_v19, %v17816_v30  ;;  %v9626_v51 = vpack.c.bf16 %v9625_v59, %v9625_v59  ;;  %v18468_v43 = vcombine.high %v17820_v57, %v17824_v12  ;;  %v17945_v10 = vld [vmem:[%s23642_s10 + $0x16e0] sm:$0xff]  ;;  %v17942_v19 = vld [vmem:[%s23642_s10 + $0x16c8] sm:$0xff] }
0x1194   : > { %v17946_v30 = vld [vmem:[%s23642_s10 + $0x16e8] sm:$0xff] }
0x1195   : > { %v18516_v59 = vcombine.high %v17942_v19, %v17946_v30 }
0x1196   : > { %14962 = vmatpush1.bf16.msra.mxu0 %v18437_v11  ;;  %15003 = vmatpush1.bf16.msra.mxu1 %v18439_v23  ;;  %v17828_v11 = vld [vmem:[%s23642_s10 + $0x1498] sm:$0xff] }
0x1197   : > { %14963 = vmatprep.subr.bf16.mxu0 %v18446_v58  ;;  %15004 = vmatprep.subr.bf16.mxu1 %v18448_v21  ;;  %v17832_v23 = vld [vmem:[%s23642_s10 + $0x14b8] sm:$0xff]  ;;  %v18465_v58 = vcombine.low %v17819_v36, %v17823_v33  ;;  %v18467_v21 = vcombine.low %v17820_v57, %v17824_v12  ;;  %v18513_v57 = vcombine.low %v17941_v63, %v17945_v10 }
0x1198   : > { %v18476_v38 = vcombine.high %v17828_v11, %v17832_v23  ;;  %v17920_v36 = vld [vmem:[%s23642_s10 + $0x1618] sm:$0xff]  ;;  %v18515_v12 = vcombine.low %v17942_v19, %v17946_v30 }
0x1199   : > { %v17924_v33 = vld [vmem:[%s23642_s10 + $0x1638] sm:$0xff] }
0x119a   : > { %14964 = vmatpush1.bf16.msra.mxu0 %v18445_v4  ;;  %15005 = vmatpush1.bf16.msra.mxu1 %v18447_v8  ;;  %v17836_v4 = vld [vmem:[%s23642_s10 + $0x14d8] sm:$0xff] }
0x119b   : > { %15202 = vmatprep.subr.bf16.mxu0 %v18454_v9  ;;  %15243 = vmatprep.subr.bf16.mxu1 %v18456_v13  ;;  %v17840_v8 = vld [vmem:[%s23642_s10 + $0x14f8] sm:$0xff]  ;;  %v18473_v9 = vcombine.low %v17827_v45, %v17831_v32  ;;  %v18475_v13 = vcombine.low %v17828_v11, %v17832_v23  ;;  %v18495_v11 = vcombine.low %v17920_v36, %v17924_v33 }
0x119c   : > { %v18484_v18 = vcombine.high %v17836_v4, %v17840_v8  ;;  %v17932_v45 = vld [vmem:[%s23642_s10 + $0x1678] sm:$0xff] }
0x119d   : > { %18451 = vmatmul.mubr.msk.bf16.vlgmr.msra.gmra.mrb[12].mxu0 %vm489_vm1, %v8735_v25  ;;  %18452 = vmatmul.mubr.msk.bf16.vlgmr.msra.gmra.mrb[12].mxu1 %vm489_vm1, %v8735_v25  ;;  %v18479_v25 = vcombine.low %v17834_v29, %v17838_v34  ;;  %v17934_v29 = vld [vmem:[%s23642_s10 + $0x1688] sm:$0xff] }
0x119e   : > { %15203 = vmatpush1.bf16.msra.mxu0 %v18453_v27  ;;  %15244 = vmatpush1.bf16.msra.mxu1 %v18455_v31  ;;  %v17918_v27 = vld [vmem:[%s23642_s10 + $0x1608] sm:$0xff] }
0x119f   : > { %15204 = vmatprep.subr.bf16.mxu0 %v18462_v35  ;;  %15245 = vmatprep.subr.bf16.mxu1 %v18464_v39  ;;  %v17922_v31 = vld [vmem:[%s23642_s10 + $0x1628] sm:$0xff]  ;;  %v18481_v35 = vcombine.low %v17835_v3, %v17839_v47  ;;  %v18483_v39 = vcombine.low %v17836_v4, %v17840_v8  ;;  %v17936_v3 = vld [vmem:[%s23642_s10 + $0x1698] sm:$0xff] }
0x11a0   : > { %15234 = vmatprep.mubr.bf16.mxu0 %v26531_v41  ;;  %15275 = vmatprep.mubr.bf16.mxu1 %v26531_v41  ;;  %v18492_v44 = vcombine.high %v17918_v27, %v17922_v31  ;;  %v18491_v53 = vcombine.low %v17918_v27, %v17922_v31  ;;  %v17938_v34 = vld [vmem:[%s23642_s10 + $0x16a8] sm:$0xff]  ;;  %v17940_v47 = vld [vmem:[%s23642_s10 + $0x16b8] sm:$0xff] }
0x11a1   : > { %v18507_v52 = vcombine.low %v17934_v29, %v17938_v34  ;;  %v18511_v31 = vcombine.low %v17936_v3, %v17940_v47 }
0x11a2   : > { %15205 = vmatpush1.bf16.msra.mxu0 %v18461_v56  ;;  %15246 = vmatpush1.bf16.msra.mxu1 %v18463_v60  ;;  %v17926_v56 = vld [vmem:[%s23642_s10 + $0x1648] sm:$0xff] }
0x11a3   : > { %15206 = vmatprep.subr.bf16.mxu0 %v18470_v7  ;;  %15247 = vmatprep.subr.bf16.mxu1 %v18472_v14  ;;  %v17930_v60 = vld [vmem:[%s23642_s10 + $0x1668] sm:$0xff]  ;;  %v18498_v7 = vcombine.high %v17925_v54, %v17929_v55 }
0x11a4   : > { %v18500_v14 = vcombine.high %v17926_v56, %v17930_v60 }
0x11a6   : > { %15207 = vmatpush1.bf16.msra.mxu0 %v18469_v46  ;;  %15248 = vmatpush1.bf16.msra.mxu1 %v18471_v49  ;;  %v18497_v46 = vcombine.low %v17925_v54, %v17929_v55  ;;  %v18499_v49 = vcombine.low %v17926_v56, %v17930_v60 }
0x11a7   : > { %15208 = vmatprep.subr.bf16.mxu0 %v18478_v61  ;;  %15249 = vmatprep.subr.bf16.mxu1 %v18480_v48  ;;  %v18506_v61 = vcombine.high %v17933_v24, %v17937_v28  ;;  %v18508_v48 = vcombine.high %v17934_v29, %v17938_v34  ;;  %v15789_v34 = vld [vmem:[#allocation2] sm:$0xff] }
0x11aa   : > { %15209 = vmatpush1.bf16.msra.mxu0 %v18477_v37  ;;  %15250 = vmatpush1.bf16.msra.mxu1 %v18479_v25  ;;  %v18505_v37 = vcombine.low %v17933_v24, %v17937_v28  ;;  %v18514_v25 = vcombine.high %v17941_v63, %v17945_v10 }
0x11ab   : > { %15284 = vmatprep.subr.bf16.mxu0 %v18458_v1  ;;  %15325 = vmatprep.subr.bf16.mxu1 %v18460_v62  ;;  %v17919_v1 = vld [vmem:[%s23642_s10 + $0x1610] sm:$0xff] }
0x11ac   : > { %v17923_v62 = vld [vmem:[%s23642_s10 + $0x1630] sm:$0xff] }
0x11ad   : > { %18485 = vmatmul.mubr.msk.bf16.vlgmr.msra.gmra.mrb[8].mxu0 %vm489_vm1, %v9626_v51  ;;  %18486 = vmatmul.mubr.msk.bf16.vlgmr.msra.gmra.mrb[8].mxu1 %vm489_vm1, %v9626_v51  ;;  %v18494_v5 = vcombine.high %v17919_v1, %v17923_v62  ;;  %v18493_v32 = vcombine.low %v17919_v1, %v17923_v62  ;;  %v15790_v1 = vld [vmem:[#allocation2 + $0x8] sm:$0xff] }
0x11ae   : > { %15285 = vmatpush1.bf16.msra.mxu0 %v18457_v2  ;;  %15326 = vmatpush1.bf16.msra.mxu1 %v18459_v0  ;;  %v10516_v2 = vmax.f32 %v10515_v42, 0.0  ;;  %v18496_v0 = vcombine.high %v17920_v36, %v17924_v33  ;;  %v23484_v33 = vld [vmem:[%s26508_s6 + $0x40] sm:$0xff] (!%p18525_p6)  }
0x11af   : > { %15286 = vmatprep.subr.bf16.mxu0 %v18466_v15  ;;  %15327 = vmatprep.subr.bf16.mxu1 %v18468_v43  ;;  %v17931_v15 = vld [vmem:[%s23642_s10 + $0x1670] sm:$0xff]  ;;  %v17928_v43 = vld [vmem:[%s23642_s10 + $0x1658] sm:$0xff] }
0x11b0   : > { %15316 = vmatprep.mubr.bf16.mxu0 %v26531_v41  ;;  %15357 = vmatprep.mubr.bf16.mxu1 %v26531_v41  ;;  %v10517_v23 = vpack.c.bf16 %v10516_v2, %v10516_v2  ;;  %v18503_v8 = vcombine.low %v17928_v43, %v17932_v45  ;;  %v23487_v2 = vld [vmem:[%s26508_s6 + $0x80] sm:$0xff] (!%p18525_p6)  }
0x11b2   : > { %15287 = vmatpush1.bf16.msra.mxu0 %v18465_v58  ;;  %15328 = vmatpush1.bf16.msra.mxu1 %v18467_v21  ;;  %v18504_v21 = vcombine.high %v17928_v43, %v17932_v45  ;;  %v23492_v43 = vld [vmem:[%s26508_s6 + $0x50] sm:$0xff] (!%p18525_p6)  }
0x11b3   : > { %15288 = vmatprep.subr.bf16.mxu0 %v18474_v16  ;;  %15329 = vmatprep.subr.bf16.mxu1 %v18476_v38  ;;  %v17935_v16 = vld [vmem:[%s23642_s10 + $0x1690] sm:$0xff] }
0x11b4   : > { %v17939_v38 = vld [vmem:[%s23642_s10 + $0x16b0] sm:$0xff] }
0x11b5   : > { %v18509_v27 = vcombine.low %v17935_v16, %v17939_v38  ;;  %v23493_v45 = vld [vmem:[%s26508_s6 + $0xd0] sm:$0xff] (!%p18525_p6)  }
0x11b6   : > { %15289 = vmatpush1.bf16.msra.mxu0 %v18473_v9  ;;  %15330 = vmatpush1.bf16.msra.mxu1 %v18475_v13  ;;  %v18510_v9 = vcombine.high %v17935_v16, %v17939_v38  ;;  %v18512_v13 = vcombine.high %v17936_v3, %v17940_v47  ;;  %v23499_v16 = vld [vmem:[%s26508_s6 + $0x98] sm:$0xff] (!%p18525_p6)   ;;  %v23500_v38 = vld [vmem:[%s26508_s6 + $0x60] sm:$0xff] (!%p18525_p6)  }
0x11b7   : > { %15290 = vmatprep.subr.bf16.mxu0 %v18482_v17  ;;  %15331 = vmatprep.subr.bf16.mxu1 %v18484_v18  ;;  %v17943_v17 = vld [vmem:[%s23642_s10 + $0x16d0] sm:$0xff]  ;;  %v23501_v3 = vld [vmem:[%s26508_s6 + $0xe0] sm:$0xff] (!%p18525_p6)  }
0x11b8   : > { %v17947_v18 = vld [vmem:[%s23642_s10 + $0x16f0] sm:$0xff]  ;;  %v23502_v47 = vld [vmem:[%s26508_s6 + $0x20] sm:$0xff] (!%p18525_p6)  }
0x11ba   : > { %15291 = vmatpush1.bf16.msra.mxu0 %v18481_v35  ;;  %15332 = vmatpush1.bf16.msra.mxu1 %v18483_v39  ;;  %v18518_v35 = vcombine.high %v17943_v17, %v17947_v18  ;;  %v18520_v39 = vcombine.high %v17944_v22, %v17948_v26 }
0x11bb   : > { %15529 = vmatprep.subr.bf16.mxu0 %v18490_v40  ;;  %15570 = vmatprep.subr.bf16.mxu1 %v18492_v44  ;;  %v18517_v40 = vcombine.low %v17943_v17, %v17947_v18  ;;  %v18519_v44 = vcombine.low %v17944_v22, %v17948_v26  ;;  %v23507_v17 = vld [vmem:[%s26508_s6 + $0xa8] sm:$0xff] (!%p18525_p6)   ;;  %v23508_v18 = vld [vmem:[%s26508_s6 + $0x70] sm:$0xff] (!%p18525_p6)  }
0x11bc   : > { %v23509_v22 = vld [vmem:[%s26508_s6 + $0xf0] sm:$0xff] (!%p18525_p6)  }
0x11bd   : > { %18487 = vmatmul.mubr.msk.bf16.vlgmr.msra.gmra.mrb[12].mxu0 %vm489_vm1, %v9626_v51  ;;  %18488 = vmatmul.mubr.msk.bf16.vlgmr.msra.gmra.mrb[12].mxu1 %vm489_vm1, %v9626_v51  ;;  %v17927_v51 = vld [vmem:[%s23642_s10 + $0x1650] sm:$0xff] }
0x11be   : > { %15530 = vmatpush1.bf16.msra.mxu0 %v18489_v6  ;;  %15571 = vmatpush1.bf16.msra.mxu1 %v18491_v53  ;;  %v18502_v58 = vcombine.high %v17927_v51, %v17931_v15  ;;  %v18501_v4 = vcombine.low %v17927_v51, %v17931_v15  ;;  %v23490_v51 = vld [vmem:[%s26508_s6 + $0x8] sm:$0xff] (!%p18525_p6)   ;;  %v23510_v26 = vld [vmem:[%s26508_s6 + $0x30] sm:$0xff] (!%p18525_p6)  }
0x11bf   : > { %15531 = vmatprep.subr.bf16.mxu0 %v18498_v7  ;;  %15572 = vmatprep.subr.bf16.mxu1 %v18500_v14  ;;  %v23491_v15 = vld [vmem:[%s26508_s6 + $0x88] sm:$0xff] (!%p18525_p6)  }
0x11c0   : > { %15561 = vmatprep.mubr.bf16.mxu0 %v26531_v41  ;;  %15602 = vmatprep.mubr.bf16.mxu1 %v26531_v41 }
0x11c2   : > { %15532 = vmatpush1.bf16.msra.mxu0 %v18497_v46  ;;  %15573 = vmatpush1.bf16.msra.mxu1 %v18499_v49 }
0x11c3   : > { %15533 = vmatprep.subr.bf16.mxu0 %v18506_v61  ;;  %15574 = vmatprep.subr.bf16.mxu1 %v18508_v48 }
0x11c6   : > { %15534 = vmatpush1.bf16.msra.mxu0 %v18505_v37  ;;  %15575 = vmatpush1.bf16.msra.mxu1 %v18507_v52 }
0x11c7   : > { %15535 = vmatprep.subr.bf16.mxu0 %v18514_v25  ;;  %15576 = vmatprep.subr.bf16.mxu1 %v18516_v59 }
0x11ca   : > { %15536 = vmatpush1.bf16.msra.mxu0 %v18513_v57  ;;  %15577 = vmatpush1.bf16.msra.mxu1 %v18515_v12  ;;  %v23485_v57 = vld [vmem:[%s26508_s6 + $0xc0] sm:$0xff] (!%p18525_p6)  }
0x11cb   : > { %15611 = vmatprep.subr.bf16.mxu0 %v18494_v5  ;;  %15652 = vmatprep.subr.bf16.mxu1 %v18496_v0  ;;  %v23486_v12 = vld [vmem:[%s26508_s6] sm:$0xff] (!%p18525_p6)   ;;  %v23488_v5 = vld [vmem:[%s26508_s6 + $0x48] sm:$0xff] (!%p18525_p6)  }
0x11cc   : > { %v23489_v0 = vld [vmem:[%s26508_s6 + $0xc8] sm:$0xff] (!%p18525_p6)  }
0x11cd   : > { %18521 = vmatmul.mubr.msk.bf16.vlgmr.msra.gmra.mrb[8].mxu0 %vm489_vm1, %v10517_v23  ;;  %18522 = vmatmul.mubr.msk.bf16.vlgmr.msra.gmra.mrb[8].mxu1 %vm489_vm1, %v10517_v23 }
0x11ce   : > { %15612 = vmatpush1.bf16.msra.mxu0 %v18493_v32  ;;  %15653 = vmatpush1.bf16.msra.mxu1 %v18495_v11  ;;  %v23494_v32 = vld [vmem:[%s26508_s6 + $0x10] sm:$0xff] (!%p18525_p6)  }
0x11cf   : > { %15613 = vmatprep.subr.bf16.mxu0 %v18502_v58  ;;  %15654 = vmatprep.subr.bf16.mxu1 %v18504_v21  ;;  %v23495_v11 = vld [vmem:[%s26508_s6 + $0x90] sm:$0xff] (!%p18525_p6)   ;;  %v23497_v58 = vld [vmem:[%s26508_s6 + $0xd8] sm:$0xff] (!%p18525_p6)  }
0x11d0   : > { %15643 = vmatprep.mubr.bf16.mxu0 %v26531_v41  ;;  %15684 = vmatprep.mubr.bf16.mxu1 %v26531_v41  ;;  %v23498_v21 = vld [vmem:[%s26508_s6 + $0x18] sm:$0xff] (!%p18525_p6)  }
0x11d2   : > { %15614 = vmatpush1.bf16.msra.mxu0 %v18501_v4  ;;  %15655 = vmatpush1.bf16.msra.mxu1 %v18503_v8  ;;  %v23503_v4 = vld [vmem:[%s26508_s6 + $0xa0] sm:$0xff] (!%p18525_p6)   ;;  %v23504_v8 = vld [vmem:[%s26508_s6 + $0x68] sm:$0xff] (!%p18525_p6)  }
0x11d3   : > { %15615 = vmatprep.subr.bf16.mxu0 %v18510_v9  ;;  %15656 = vmatprep.subr.bf16.mxu1 %v18512_v13  ;;  %v23505_v9 = vld [vmem:[%s26508_s6 + $0xe8] sm:$0xff] (!%p18525_p6)  }
0x11d4   : > { %v23506_v13 = vld [vmem:[%s26508_s6 + $0x28] sm:$0xff] (!%p18525_p6)  }
0x11d6   : > { %15616 = vmatpush1.bf16.msra.mxu0 %v18509_v27  ;;  %15657 = vmatpush1.bf16.msra.mxu1 %v18511_v31  ;;  %v26562_v27 = vld [vmem:[#allocation3_spill] sm:$0xff] (!%p18525_p6) }
0x11d7   : > { %15617 = vmatprep.subr.bf16.mxu0 %v18518_v35  ;;  %15658 = vmatprep.subr.bf16.mxu1 %v18520_v39  ;;  %v15849_v31 = vsub.s32 (!%p18525_p6), 0, %v26562_v27  ;;  %v23511_v35 = vld [vmem:[%s26508_s6 + $0xb0] sm:$0xff] (!%p18525_p6)   ;;  %v15853_v39 = vsub.s32 (!%p18525_p6), 1, %v26562_v27 }
0x11da   : > { %15618 = vmatpush1.bf16.msra.mxu0 %v18517_v40  ;;  %15659 = vmatpush1.bf16.msra.mxu1 %v18519_v44  ;;  %v23512_v40 = vld [vmem:[%s26508_s6 + $0x78] sm:$0xff] (!%p18525_p6)   ;;  %v15857_v44 = vsub.s32 (!%p18525_p6), 2, %v26562_v27 }
0x11db   : > { %20569 = vmatprep.subr.bf16.mxu0 (!%p18525_p6), %v23484_v33  ;;  %20591 = vmatprep.subr.bf16.mxu1 (!%p18525_p6), %v23485_v57  ;;  %v23520_v57 = vld [vmem:[%s26508_s6 + $0x148] sm:$0xff] (!%p18525_p6)  }
0x11dd   : > { %18523 = vmatmul.mubr.msk.bf16.vlgmr.msra.gmra.mrb[12].mxu0 %vm489_vm1, %v10517_v23  ;;  %18524 = vmatmul.mubr.msk.bf16.vlgmr.msra.gmra.mrb[12].mxu1 %vm489_vm1, %v10517_v23  ;;  %v23496_v23 = vld [vmem:[%s26508_s6 + $0x58] sm:$0xff] (!%p18525_p6)  }
0x11de   : > { %20570 = vmatpush3.bf16.msra.mxu0 (!%p18525_p6), %v23486_v12  ;;  %20592 = vmatpush3.bf16.msra.mxu1 (!%p18525_p6), %v23487_v2 }
0x11df   : > { %20571 = vmatprep.subr.bf16.mxu0 (!%p18525_p6), %v23488_v5  ;;  %20593 = vmatprep.subr.bf16.mxu1 (!%p18525_p6), %v23489_v0  ;;  %v23519_v5 = vld [vmem:[%s26508_s6 + $0x180] sm:$0xff] (!%p18525_p6)  }
0x11e2   : > { %20572 = vmatpush3.bf16.msra.mxu0 (!%p18525_p6), %v23490_v51  ;;  %20594 = vmatpush3.bf16.msra.mxu1 (!%p18525_p6), %v23491_v15 }
0x11e3   : > { %20573 = vmatprep.subr.bf16.mxu0 (!%p18525_p6), %v23492_v43  ;;  %20595 = vmatprep.subr.bf16.mxu1 (!%p18525_p6), %v23493_v45  ;;  %v23521_v43 = vld [vmem:[%s26508_s6 + $0x1c8] sm:$0xff] (!%p18525_p6)  }
0x11e4   : > { %v23522_v45 = vld [vmem:[%s26508_s6 + $0x108] sm:$0xff] (!%p18525_p6)  }
0x11e6   : > { %20574 = vmatpush3.bf16.msra.mxu0 (!%p18525_p6), %v23494_v32  ;;  %20596 = vmatpush3.bf16.msra.mxu1 (!%p18525_p6), %v23495_v11  ;;  %v23524_v32 = vld [vmem:[%s26508_s6 + $0x150] sm:$0xff] (!%p18525_p6)   ;;  %v23523_v11 = vld [vmem:[%s26508_s6 + $0x188] sm:$0xff] (!%p18525_p6)  }
0x11e7   : > { %20575 = vmatprep.subr.bf16.mxu0 (!%p18525_p6), %v23496_v23  ;;  %20597 = vmatprep.subr.bf16.mxu1 (!%p18525_p6), %v23497_v58 }
0x11ea   : > { %20576 = vmatpush3.bf16.msra.mxu0 (!%p18525_p6), %v23498_v21  ;;  %20598 = vmatpush3.bf16.msra.mxu1 (!%p18525_p6), %v23499_v16  ;;  %v23525_v21 = vld [vmem:[%s26508_s6 + $0x1d0] sm:$0xff] (!%p18525_p6)  }
0x11eb   : > { %20577 = vmatprep.subr.bf16.mxu0 (!%p18525_p6), %v23500_v38  ;;  %20599 = vmatprep.subr.bf16.mxu1 (!%p18525_p6), %v23501_v3  ;;  %v23526_v16 = vld [vmem:[%s26508_s6 + $0x110] sm:$0xff] (!%p18525_p6)   ;;  %v23528_v38 = vld [vmem:[%s26508_s6 + $0x158] sm:$0xff] (!%p18525_p6)  }
0x11ec   : > { %v23527_v3 = vld [vmem:[%s26508_s6 + $0x190] sm:$0xff] (!%p18525_p6)  }
0x11ee   : > { %20578 = vmatpush3.bf16.msra.mxu0 (!%p18525_p6), %v23502_v47  ;;  %20600 = vmatpush3.bf16.msra.mxu1 (!%p18525_p6), %v23503_v4 }
0x11ef   : > { %20579 = vmatprep.subr.bf16.mxu0 (!%p18525_p6), %v23504_v8  ;;  %20601 = vmatprep.subr.bf16.mxu1 (!%p18525_p6), %v23505_v9  ;;  %v23529_v8 = vld [vmem:[%s26508_s6 + $0x1d8] sm:$0xff] (!%p18525_p6)  }
0x11f0   : > { %v23530_v9 = vld [vmem:[%s26508_s6 + $0x118] sm:$0xff] (!%p18525_p6)  }
0x11f2   : > { %20580 = vmatpush3.bf16.msra.mxu0 (!%p18525_p6), %v23506_v13  ;;  %20602 = vmatpush3.bf16.msra.mxu1 (!%p18525_p6), %v23507_v17  ;;  %v23532_v13 = vld [vmem:[%s26508_s6 + $0x160] sm:$0xff] (!%p18525_p6)   ;;  %v23531_v17 = vld [vmem:[%s26508_s6 + $0x198] sm:$0xff] (!%p18525_p6)  }
0x11f3   : > { %20581 = vmatprep.subr.bf16.mxu0 (!%p18525_p6), %v23508_v18  ;;  %20603 = vmatprep.subr.bf16.mxu1 (!%p18525_p6), %v23509_v22  ;;  %v23533_v22 = vld [vmem:[%s26508_s6 + $0x1e0] sm:$0xff] (!%p18525_p6)  }
0x11f6   : > { %20582 = vmatpush3.bf16.msra.mxu0 (!%p18525_p6), %v23510_v26  ;;  %20604 = vmatpush3.bf16.msra.mxu1 (!%p18525_p6), %v23511_v35  ;;  %v23534_v26 = vld [vmem:[%s26508_s6 + $0x120] sm:$0xff] (!%p18525_p6)  }
0x11f7   : > { %20583 = vmatprep.subr.bf16.mxu0 (!%p18525_p6), %v23512_v40  ;;  %v23535_v35 = vld [vmem:[%s26508_s6 + $0x1a0] sm:$0xff] (!%p18525_p6)   ;;  %v23537_v40 = vld [vmem:[%s26508_s6 + $0x1e8] sm:$0xff] (!%p18525_p6)  }
0x12a0   : > { %v15563_v41 = vpop.f32.mrb[8].mxu0  ;;  %v15604_v54 = vpop.f32.mrb[8].mxu1 }
0x12a1   : > { %v15565_v55 = vpop.f32.mrb[9].mxu0  ;;  %v15606_v56 = vpop.f32.mrb[9].mxu1 }
0x12a2   : > { %v15799_v60 = vcombine.low %v15563_v41, %v15565_v55  ;;  %v15800_v6 = vcombine.low %v15604_v54, %v15606_v56  ;;  %v15567_v53 = vpop.f32.mrb[10].mxu0  ;;  %v15608_v7 = vpop.f32.mrb[10].mxu1  ;;  %v23513_v41 = vld [vmem:[%s26508_s6 + $0xf8] sm:$0xff] (!%p18525_p6)   ;;  %v15861_v54 = vsub.s32 (!%p18525_p6), 3, %v26562_v27 }
0x12a3   : > { %v15568_v14 = vpop.f32.mrb[11].mxu0  ;;  %v15609_v24 = vpop.f32.mrb[11].mxu1  ;;  %v23514_v55 = vld [vmem:[%s26508_s6 + $0x38] sm:$0xff] (!%p18525_p6)   ;;  %20605 = vmatprep.subr.bf16.mxu1 (!%p18525_p6), %v23513_v41 }
0x12a4   : > { %v15807_v28 = vrot.slane %v15799_v60, %v23865_v20  ;;  %v15814_v29 = vrot.slane %v15800_v6, %v23865_v20  ;;  %v23515_v56 = vld [vmem:[%s26508_s6 + $0xb8] sm:$0xff] (!%p18525_p6)   ;;  %20584 = vmatpush3.bf16.msra.mxu0 (!%p18525_p6), %v23514_v55  ;;  %v15845_v60 = vld [vmem:[%s26507_s5] sm:$0xff] (!%p18525_p6)  ;;  %v23540_v55 = vld [vmem:[%s26508_s6 + $0x170] sm:$0xff] (!%p18525_p6)  }
0x12a5   : > { %20606 = vmatpush3.bf16.msra.mxu1 (!%p18525_p6), %v23515_v56  ;;  %v15850_v6 = vrot.slane (!%p18525_p6), %v15845_v60, %v15849_v31  ;;  %v15854_v53 = vrot.slane (!%p18525_p6), %v15845_v60, %v15853_v39  ;;  %v15858_v7 = vrot.slane (!%p18525_p6), %v15845_v60, %v15857_v44  ;;  %v15862_v14 = vrot.slane (!%p18525_p6), %v15845_v60, %v15861_v54  ;;  %v23516_v24 = vld [vmem:[%s26508_s6 + $0x140] sm:$0xff] (!%p18525_p6)   ;;  %v23538_v44 = vld [vmem:[%s26508_s6 + $0x128] sm:$0xff] (!%p18525_p6)  }
0x12a6   : > { %v15815_v46 = vcombine.low %v15807_v28, %v15814_v29  ;;  %v23517_v28 = vld [vmem:[%s26508_s6 + $0x1c0] sm:$0xff] (!%p18525_p6)   ;;  %20613 = vmatprep.subr.bf16.mxu0 (!%p18525_p6), %v23516_v24  ;;  %v23539_v56 = vld [vmem:[%s26508_s6 + $0x1a8] sm:$0xff] (!%p18525_p6)  }
0x12a7   : > { %v15879_v29 = vcombine.low (!%p18525_p6), %v15850_v6, %v15854_v53  ;;  %20635 = vmatprep.subr.bf16.mxu1 (!%p18525_p6), %v23517_v28  ;;  %v23541_v53 = vld [vmem:[%s26508_s6 + $0x1f0] sm:$0xff] (!%p18525_p6)   ;;  %v23544_v28 = vld [vmem:[%s26508_s6 + $0x178] sm:$0xff] (!%p18525_p6)  }
0x12a8   : > { %v15835_v49 = vadd.f32 %v15815_v46, %v15789_v34  ;;  %v15880_v34 = vcombine.low (!%p18525_p6), %v15858_v7, %v15862_v14  ;;  %v23542_v7 = vld [vmem:[%s26508_s6 + $0x130] sm:$0xff] (!%p18525_p6)  }
0x12a9   : > { %v15887_v46 = vrot.slane (!%p18525_p6), %v15879_v29, %v23865_v20 }
0x12aa   : > { %15837 = vst [vmem:[#allocation2] sm:$0xff] %v15835_v49  ;;  %v15894_v49 = vrot.slane (!%p18525_p6), %v15880_v34, %v23865_v20  ;;  %v23545_v34 = vld [vmem:[%s26508_s6 + $0x1f8] sm:$0xff] (!%p18525_p6)  }
0x12b0   : > { %v15645_v50 = vpop.f32.mrb[12].mxu0  ;;  %v15686_v61 = vpop.f32.mrb[12].mxu1 }
0x12b1   : > { %v15647_v48 = vpop.f32.mrb[13].mxu0  ;;  %v15688_v63 = vpop.f32.mrb[13].mxu1 }
0x12b2   : > { %v15816_v10 = vcombine.low %v15645_v50, %v15647_v48  ;;  %v15817_v19 = vcombine.low %v15686_v61, %v15688_v63  ;;  %v15649_v30 = vpop.f32.mrb[14].mxu0  ;;  %v15690_v37 = vpop.f32.mrb[14].mxu1  ;;  %v15843_v50 = vld [vmem:[#allocation2] sm:$0xff] (!%p18525_p6)  ;;  %v15895_v61 = vcombine.low (!%p18525_p6), %v15887_v46, %v15894_v49  ;;  %v23546_v46 = vld [vmem:[%s26508_s6 + $0x138] sm:$0xff] (!%p18525_p6)  }
0x12b3   : > { %v15650_v52 = vpop.f32.mrb[15].mxu0  ;;  %v15691_v42 = vpop.f32.mrb[15].mxu1  ;;  %v15869_v30 = vsub.s32 (!%p18525_p6), 5, %v26562_v27  ;;  %v23547_v49 = vld [vmem:[%s26508_s6 + $0x1b8] sm:$0xff] (!%p18525_p6)  }
0x12b4   : > { %v15824_v25 = vrot.slane %v15816_v10, %v23865_v20  ;;  %v15831_v59 = vrot.slane %v15817_v19, %v23865_v20  ;;  %15842 = sbr.rel (%p18525_p6) target bundleno = 5049 (0x13b9), region = 56  ;;  %v15915_v48 = vadd.f32 (!%p18525_p6), %v15895_v61, %v15843_v50  ;;  %v15865_v19 = vsub.s32 (!%p18525_p6), 4, %v26562_v27 }
0x12b5   : > { %v15873_v42 = vsub.s32 (!%p18525_p6), 6, %v26562_v27  ;;  %v15870_v0 = vrot.slane (!%p18525_p6), %v15845_v60, %v15869_v30 }
0x12b6   : > { %v15832_v62 = vcombine.low %v15824_v25, %v15831_v59  ;;  %v15926_v63 = vrot.slane (!%p18525_p6), %v15915_v48, %v23865_v20  ;;  %v15919_v10 = vcombine.high (!%p18525_p6), %v15915_v48, %v15915_v48  ;;  %v15877_v25 = vsub.s32 (!%p18525_p6), 7, %v26562_v27  ;;  %v23536_v27 = vld [vmem:[%s26508_s6 + $0x168] sm:$0xff] (!%p18525_p6)  }
0x12b7   : > { %v15866_v12 = vrot.slane (!%p18525_p6), %v15845_v60, %v15865_v19  ;;  %v15874_v51 = vrot.slane (!%p18525_p6), %v15845_v60, %v15873_v42 }
0x12b8   : > { %v15836_v36 = vadd.f32 %v15832_v62, %v15790_v1  ;;  %v15934_v37 = vcombine.high (!%p18525_p6), %v15926_v63, %v15926_v63  ;;  %v15933_v52 = vrot.slane (!%p18525_p6), %v15919_v10, %v23865_v20  ;;  %v15961_v59 = vpack.c.bf16 (!%p18525_p6), %v15926_v63, %v15926_v63 }
0x12b9   : > { %v15878_v15 = vrot.slane (!%p18525_p6), %v15845_v60, %v15877_v25  ;;  %v15896_v23 = vcombine.low (!%p18525_p6), %v15866_v12, %v15870_v0 }
0x12ba   : > { %15838 = vst [vmem:[#allocation2 + $0x8] sm:$0xff] %v15836_v36  ;;  %v15962_v1 = vpack.c.bf16 (!%p18525_p6), %v15934_v37, %v15934_v37  ;;  %v15935_v62 = vcombine.high (!%p18525_p6), %v15933_v52, %v15933_v52  ;;  %v23518_v36 = vld [vmem:[%s26508_s6 + $0x100] sm:$0xff] (!%p18525_p6)   ;;  %v15963_v33 = vpack.c.bf16 (!%p18525_p6), %v15933_v52, %v15933_v52 }
0x12bb   : > { %v15897_v58 = vcombine.low %v15874_v51, %v15878_v15  ;;  %v15904_v47 = vrot.slane %v15896_v23, %v23865_v20 }
0x12bc   : > { %16513 = vmatprep.mubr.bf16.mxu0 %v15962_v1  ;;  %v15964_v2 = vpack.c.bf16 %v15935_v62, %v15935_v62 }
0x12bd   : > { %16514 = vmatmul.mubr.bf16.vlgmr.msra.gmra.mrb[0].mxu0 %v15961_v59  ;;  %v15911_v4 = vrot.slane %v15897_v58, %v23865_v20 }
0x12be   : > { %16553 = vmatprep.mubr.bf16.mxu1 %v15964_v2  ;;  %20614 = vmatpush3.bf16.msra.mxu0 %v23518_v36 }
0x12bf   : > { %16554 = vmatmul.mubr.bf16.vlgmr.msra.gmra.mrb[0].mxu1 %v15963_v33  ;;  %20615 = vmatprep.subr.bf16.mxu0 %v23520_v57  ;;  %v15912_v18 = vcombine.low %v15904_v47, %v15911_v4 }
0x12c0   : > { %20636 = vmatpush3.bf16.msra.mxu1 %v23519_v5 }
0x12c1   : > { %20637 = vmatprep.subr.bf16.mxu1 %v23521_v43  ;;  %v15844_v31 = vld [vmem:[#allocation2 + $0x8] sm:$0xff] }
0x12c2   : > { %20616 = vmatpush3.bf16.msra.mxu0 %v23522_v45  ;;  %v15916_v39 = vadd.f32 %v15912_v18, %v15844_v31 }
0x12c3   : > { %20617 = vmatprep.subr.bf16.mxu0 %v23524_v32 }
0x12c4   : > { %20638 = vmatpush3.bf16.msra.mxu1 %v23523_v11  ;;  %v15943_v41 = vrot.slane %v15916_v39, %v23865_v20  ;;  %v15936_v54 = vcombine.high %v15916_v39, %v15916_v39 }
0x12c5   : > { %20639 = vmatprep.subr.bf16.mxu1 %v23525_v21 }
0x12c6   : > { %20618 = vmatpush3.bf16.msra.mxu0 %v23526_v16  ;;  %v15951_v60 = vcombine.high %v15943_v41, %v15943_v41  ;;  %v15950_v6 = vrot.slane %v15936_v54, %v23865_v20  ;;  %v23543_v20 = vld [vmem:[%s26508_s6 + $0x1b0] sm:$0xff]   ;;  %v15965_v50 = vpack.c.bf16 %v15943_v41, %v15943_v41 }
0x12c7   : > { %20619 = vmatprep.subr.bf16.mxu0 %v23528_v38 }
0x12c8   : > { %20640 = vmatpush3.bf16.msra.mxu1 %v23527_v3  ;;  %v15966_v14 = vpack.c.bf16 %v15951_v60, %v15951_v60  ;;  %v15952_v24 = vcombine.high %v15950_v6, %v15950_v6  ;;  %v15967_v61 = vpack.c.bf16 %v15950_v6, %v15950_v6 }
0x12c9   : > { %20641 = vmatprep.subr.bf16.mxu1 %v23529_v8 }
0x12ca   : > { %20620 = vmatpush3.bf16.msra.mxu0 %v23530_v9  ;;  %16593 = vmatprep.mubr.bf16.mxu0 %v15966_v14  ;;  %v15968_v29 = vpack.c.bf16 %v15952_v24, %v15952_v24 }
0x12cb   : > { %20621 = vmatprep.subr.bf16.mxu0 %v23532_v13 }
0x12cc   : > { %20642 = vmatpush3.bf16.msra.mxu1 %v23531_v17  ;;  %16633 = vmatprep.mubr.bf16.mxu1 %v15968_v29 }
0x12cd   : > { %20643 = vmatprep.subr.bf16.mxu1 %v23533_v22 }
0x12ce   : > { %20622 = vmatpush3.bf16.msra.mxu0 %v23534_v26 }
0x12cf   : > { %20623 = vmatprep.subr.bf16.mxu0 %v23536_v27 }
0x12d0   : > { %20644 = vmatpush3.bf16.msra.mxu1 %v23535_v35 }
0x12d1   : > { %20645 = vmatprep.subr.bf16.mxu1 %v23537_v40 }
0x12d2   : > { %20624 = vmatpush3.bf16.msra.mxu0 %v23538_v44 }
0x12d3   : > { %20625 = vmatprep.subr.bf16.mxu0 %v23540_v55 }
0x12d4   : > { %20646 = vmatpush3.bf16.msra.mxu1 %v23539_v56 }
0x12d5   : > { %20647 = vmatprep.subr.bf16.mxu1 %v23541_v53 }
0x12d6   : > { %20626 = vmatpush3.bf16.msra.mxu0 %v23542_v7 }
0x12d7   : > { %20627 = vmatprep.subr.bf16.mxu0 %v23544_v28 }
0x12d8   : > { %20648 = vmatpush3.bf16.msra.mxu1 %v23543_v20 }
0x12d9   : > { %20649 = vmatprep.subr.bf16.mxu1 %v23545_v34 }
0x12da   : > { %20628 = vmatpush3.bf16.msra.mxu0 %v23546_v46 }
0x12dc   : > { %20650 = vmatpush3.bf16.msra.mxu1 %v23547_v49 }
0x12dd   : > { %16594 = vmatmul.mubr.bf16.vlgmr.msra.gmra.mrb[4].mxu0 %v15965_v50 }
0x12df   : > { %16634 = vmatmul.mubr.bf16.vlgmr.msra.gmra.mrb[4].mxu1 %v15967_v61 }
0x1390   : > { %v20585_v48 = vpop.f32.mrb[0].mxu0 }
0x1391   : > { %v20586_v63 = vpop.f32.mrb[1].mxu0 }
0x1392   : > { %v20607_v10 = vpop.f32.mrb[0].mxu1  ;;  %v20587_v19 = vadd.f32 %v20586_v63, %v20585_v48  ;;  %v20588_v30 = vpop.f32.mrb[2].mxu0 }
0x1393   : > { %v20608_v37 = vpop.f32.mrb[1].mxu1  ;;  %v20589_v52 = vpop.f32.mrb[3].mxu0 }
0x1394   : > { %v20609_v42 = vadd.f32 %v20608_v37, %v20607_v10  ;;  %v20610_v25 = vpop.f32.mrb[2].mxu1 }
0x1395   : > { %v20611_v59 = vpop.f32.mrb[3].mxu1 }
0x1396   : > { %v16556_v1 = vadd.f32 %v20609_v42, %v20587_v19 }
0x13b0   : > { %v20629_v62 = vpop.f32.mrb[4].mxu0 }
0x13b1   : > { %v20630_v36 = vpop.f32.mrb[5].mxu0 }
0x13b2   : > { %v20651_v33 = vpop.f32.mrb[4].mxu1  ;;  %v20631_v57 = vadd.f32 %v20630_v36, %v20629_v62  ;;  %v20632_v12 = vpop.f32.mrb[6].mxu0 }
0x13b3   : > { %v20652_v2 = vpop.f32.mrb[5].mxu1  ;;  %v20633_v5 = vpop.f32.mrb[7].mxu0 }
0x13b4   : > { %v16596_v0 = vadd.f32 %v20631_v57, %v16556_v1  ;;  %v20653_v51 = vadd.f32 %v20652_v2, %v20651_v33  ;;  %v20654_v15 = vpop.f32.mrb[6].mxu1 }
0x13b5   : > { %v20655_v43 = vpop.f32.mrb[7].mxu1 }
0x13b6   : > { %v16636_v45 = vadd.f32 %v20653_v51, %v16596_v0 }
0x13b8   : > { %16642 = vst.msk [vmem:[%s26509_s7] sm:$0x3] %vm16641_vm2, %v16636_v45 }
0x13b9 PF: > { %s17_s26 = sadd.s32 1, %s23570_s26   ;;  %s26563_s24 = smov %s23566_s25 }
0x13ba   : > { %p14_p7 = scmp.ge.s32.totalorder %s17_s26, 4   ;;  %s26564_s25 = smov %s26566_s27 }
0x13bc   :  { %16 = sbr.rel (!%p14_p7) target bundleno = 2 (0x2), region = 143 }

</bundles_post_ra>
